<compile_context>
chip_gen: v7x
topology: tpu7x:2x2x1
jax: 0.10.0
libtpu: 0.0.40
codegen_flags: <defaults>
</compile_context>

<pallas_src>
import jax
import jax.numpy as jnp
from jax import lax
from jax.experimental import pallas as pl
from jax.experimental.pallas import tpu as pltpu

NEG_SLOPE = 0.01   # nn.LeakyReLU default negative_slope
LANE = 128


def _leaky(x):
    return jnp.where(x > 0, x, NEG_SLOPE * x)


def _round_up(x, m):
    return ((x + m - 1) // m) * m


def _fold_bn(g, b, m, v, c_pad, eps=1e-5):
    s = g / jnp.sqrt(v + eps)
    bias = b - m * s
    pad = c_pad - s.shape[0]
    s = jnp.pad(s, (0, pad))          # padded channels: scale 0, bias 0 -> output 0
    bias = jnp.pad(bias, (0, pad))
    return (s.reshape(1, c_pad).astype(jnp.float32),
            bias.reshape(1, c_pad).astype(jnp.float32))


def _pick_row_tile(ho, wo, cin_p, cout_p, ss, s, cap=32, budget=20 * 2**20):
    """Largest divisor of ho (<= cap) fitting a rough VMEM budget; prefer T*Wo % 8 == 0."""
    def est(t):
        th, th_in, wph = t + 2, t + 2 + 2 // s, wo + 2 // s
        b = 2 * ss * th_in * wph * cin_p * 2            # input tile (double buffered, bf16)
        b += 2 * t * wo * cout_p * 2                    # output tile (double buffered)
        b += th * wo * 9 * cin_p * 2 + th * wo * cout_p * 4    # conv1 patch + f32 result
        b += t * wo * 9 * cout_p * 2 + t * wo * cout_p * 4     # conv2 patch + f32 result
        b += th * (wo + 2) * cout_p * 2                 # ypad staging scratch
        return b
    cands = [t for t in range(1, min(ho, cap) + 1) if ho % t == 0 and est(t) <= budget]
    if not cands:
        cands = [1]
    pref = [t for t in cands if (t * wo) % 8 == 0]
    return max(pref) if pref else max(cands)


def _pick_batch_block(n, t, wo, target=256, cap=8):
    """Fold images into one grid step when the matmul M = T*Wo underfills the MXU."""
    if t * wo >= target:
        return 1
    want = min(n, cap, -(-target // (t * wo)))
    for b in range(want, 0, -1):
        if n % b == 0:
            return b
    return 1


def _vmem_limit_bytes():
    try:
        info = pltpu.get_tpu_info()
        cap = getattr(info, "vmem_capacity_bytes", None)
        if cap:
            # ~48 MiB on v7x (64 MiB VMEM), 96 MiB on v5e/v6e (128 MiB VMEM).
            return int(min(96 * 2**20, max(32 * 2**20, 0.75 * cap)))
    except Exception:
        pass
    return 32 * 2**20


def make_basic_block_kernel(s, B, T, R, Wo, Cin_p, Cout_p, has_proj):
    """s: stride, B: images per grid step, T: output rows per tile, R: row tiles."""
    Th = T + 2                 # conv1 rows per tile (1-row halo above/below for conv2)
    M1 = B * Th * Wo
    M2 = B * T * Wo

    def kernel(*refs):
        if has_proj:
            (xt_ref, w1_ref, s1_ref, b1_ref, w2_ref, s2_ref, b2_ref,
             wsc_ref, ssc_ref, bsc_ref, out_ref, ypad_ref) = refs
        else:
            (xt_ref, w1_ref, s1_ref, b1_ref, w2_ref, s2_ref, b2_ref,
             out_ref, ypad_ref) = refs
            wsc_ref = ssc_ref = bsc_ref = None

        r = pl.program_id(1)

        # ---- conv1 (3x3, stride folded into phases): single MXU matmul, K = 9*Cin_p.
        parts1 = [
            xt_ref[pl.ds(((kh % s) * s + (kw % s)) * B, B),
                   pl.ds(kh // s, Th), pl.ds(kw // s, Wo), :]
            for kh in range(3) for kw in range(3)
        ]
        patch1 = jnp.concatenate(parts1, axis=-1).reshape(M1, 9 * Cin_p)
        y = jnp.dot(patch1, w1_ref[...], preferred_element_type=jnp.float32)
        y = _leaky(y * s1_ref[...] + b1_ref[...])              # BN1 + LeakyReLU
        ypad_ref[:, :, pl.ds(1, Wo), :] = (
            y.reshape(B, Th, Wo, Cout_p).astype(ypad_ref.dtype))   # bf16 staging

        # ---- thin 1-pixel zero halo around the staged conv1 output for conv2.
        zcol = jnp.zeros((B, Th, Cout_p), ypad_ref.dtype)
        ypad_ref[:, :, 0, :] = zcol
        ypad_ref[:, :, Wo + 1, :] = zcol
        zrow = jnp.zeros((B, Wo + 2, Cout_p), ypad_ref.dtype)

        @pl.when(r == 0)            # boundary tiles: conv2's zero row padding
        def _():
            ypad_ref[:, 0, :, :] = zrow

        @pl.when(r == R - 1)
        def _():
            ypad_ref[:, Th - 1, :, :] = zrow

        # ---- conv2 (3x3, stride 1) + BN2: single MXU matmul, K = 9*Cout_p.
        parts2 = [ypad_ref[:, pl.ds(kh, T), pl.ds(kw, Wo), :]
                  for kh in range(3) for kw in range(3)]
        patch2 = jnp.concatenate(parts2, axis=-1).reshape(M2, 9 * Cout_p)
        res = jnp.dot(patch2, w2_ref[...], preferred_element_type=jnp.float32)
        res = res * s2_ref[...] + b2_ref[...]

        # ---- shortcut: identity, or 1x1 conv(stride) + BN (center taps).
        phase_c = (1 % s) * s + (1 % s)
        xc = xt_ref[pl.ds(phase_c * B, B),
                    pl.ds(1 + 1 // s, T), pl.ds(1 // s, Wo), :]     # (B, T, Wo, Cin_p)
        xc2 = xc.reshape(M2, Cin_p)
        if has_proj:
            sc = jnp.dot(xc2, wsc_ref[...], preferred_element_type=jnp.float32)
            sc = sc * ssc_ref[...] + bsc_ref[...]
        else:
            sc = xc2.astype(jnp.float32)
            if Cin_p < Cout_p:      # lane-pad the residual to the padded out channels
                sc = jnp.concatenate(
                    [sc, jnp.zeros((M2, Cout_p - Cin_p), jnp.float32)], axis=-1)

        out_ref[...] = _leaky(res + sc).reshape(B, T, Wo, Cout_p).astype(out_ref.dtype)

    return kernel


def basic_block(x_nchw, params, stride, eps=1e-5):
    N, Cin, H, W = x_nchw.shape
    Cout = params["w1"].shape[0]
    has_proj = (stride != 1) or (Cin != Cout)
    assert stride in (1, 2), "only stride 1 / 2 supported"
    if stride == 2:
        assert H % 2 == 0 and W % 2 == 0
    if not has_proj:
        assert stride == 1 and Cin == Cout   # identity-shortcut invariant

    s = stride
    Ho = (H + 2 - 3) // s + 1
    Wo = (W + 2 - 3) // s + 1
    Cout_p = _round_up(Cout, LANE)
    # Pad Cin only to bf16-friendly granularity when small (saves MXU K and HBM bytes).
    Cin_p = _round_up(Cin, LANE) if Cin >= LANE else _round_up(Cin, 16)
    ss = s * s
    T = _pick_row_tile(Ho, Wo, Cin_p, Cout_p, ss, s)
    R = Ho // T
    B = _pick_batch_block(N, T, Wo)
    Nb = N // B
    Th_in = T + 2 + 2 // s          # input phase rows per tile (conv2 halo recompute)
    Wph = Wo + 2 // s               # phase width
    bf16 = jnp.bfloat16

    # ---------------- wrapper glue (layout only) ----------------
    # NCHW -> NHWC, channel pad, spatial pad 1, bf16 HBM boundary.
    x = jnp.transpose(x_nchw, (0, 2, 3, 1)).astype(jnp.float32)
    x = jnp.pad(x, ((0, 0), (1, 1), (1, 1), (0, Cin_p - Cin))).astype(bf16)

    # Stride phases (so in-kernel loads stay contiguous, even for stride=2) ...
    if s == 1:
        ph = x[None]                                            # (1, N, H+2, W+2, Cin_p)
    else:
        ph = jnp.stack([x[:, p::s, q::s, :]
                        for p in range(s) for q in range(s)], axis=0)
    ph = jnp.pad(ph, ((0, 0), (0, 0), (1, 1), (0, 0), (0, 0)))  # row halo pad
    # ... plus overlapping row tiles (conv2's 1-row halo is recomputed).
    # TODO(synk): replace this HBM materialisation with element-offset windows.
    xt = jnp.stack([ph[:, :, r * T:r * T + Th_in] for r in range(R)], axis=0)
    xt = xt.reshape(R, ss, Nb, B, Th_in, Wph, Cin_p)
    xt = jnp.transpose(xt, (0, 2, 1, 3, 4, 5, 6))               # (R, Nb, ss, B, ...)
    xt = xt.reshape(R * Nb, ss * B, Th_in, Wph, Cin_p)

    def prep3x3(w_oihw, ci, ci_p):
        w = jnp.pad(w_oihw, ((0, Cout_p - Cout), (0, ci_p - ci), (0, 0), (0, 0)))
        w = jnp.transpose(w, (2, 3, 1, 0))                      # (kh, kw, ci_p, Cout_p)
        return w.reshape(9 * ci_p, Cout_p).astype(bf16)         # matches patch concat order

    w1 = prep3x3(params["w1"], Cin, Cin_p)                      # (9*Cin_p, Cout_p)
    w2 = prep3x3(params["w2"], Cout, Cout_p)                    # (9*Cout_p, Cout_p)
    s1, b1 = _fold_bn(params["bn1_g"], params["bn1_b"], params["bn1_m"],
                      params["bn1_v"], Cout_p, eps)
    s2, b2 = _fold_bn(params["bn2_g"], params["bn2_b"], params["bn2_m"],
                      params["bn2_v"], Cout_p, eps)

    inputs = [xt, w1, s1, b1, w2, s2, b2]

    def fullspec(shape):
        nd = len(shape)
        return pl.BlockSpec(shape, lambda nb, r, _n=nd: (0,) * _n)

    in_specs = [
        pl.BlockSpec((None, ss * B, Th_in, Wph, Cin_p),
                     lambda nb, r: (r * Nb + nb, 0, 0, 0, 0)),
        fullspec((9 * Cin_p, Cout_p)),
        fullspec((1, Cout_p)), fullspec((1, Cout_p)),
        fullspec((9 * Cout_p, Cout_p)),
        fullspec((1, Cout_p)), fullspec((1, Cout_p)),
    ]

    if has_proj:
        wsc = jnp.pad(params["wsc"], ((0, Cout_p - Cout), (0, Cin_p - Cin),
                                      (0, 0), (0, 0)))
        wsc = jnp.transpose(wsc, (2, 3, 1, 0)).reshape(Cin_p, Cout_p).astype(bf16)
        ssc, bsc = _fold_bn(params["bnsc_g"], params["bnsc_b"], params["bnsc_m"],
                            params["bnsc_v"], Cout_p, eps)
        inputs += [wsc, ssc, bsc]
        in_specs += [fullspec((Cin_p, Cout_p)),
                     fullspec((1, Cout_p)), fullspec((1, Cout_p))]

    kernel = make_basic_block_kernel(s, B, T, R, Wo, Cin_p, Cout_p, has_proj)

    flops_step = (2 * B * (T + 2) * Wo * 9 * Cin_p * Cout_p      # conv1 (+halo recompute)
                  + 2 * B * T * Wo * 9 * Cout_p * Cout_p         # conv2
                  + (2 * B * T * Wo * Cin_p * Cout_p if has_proj else 0))
    bytes_in = sum(int(a.size) * a.dtype.itemsize for a in inputs)
    bytes_out = N * Ho * Wo * Cout_p * 2
    cost = pl.CostEstimate(flops=int(Nb * R * flops_step), transcendentals=0,
                           bytes_accessed=int(bytes_in + bytes_out))

    out = pl.pallas_call(
        kernel,
        out_shape=jax.ShapeDtypeStruct((Nb, B, Ho, Wo, Cout_p), bf16),
        grid_spec=pltpu.PrefetchScalarGridSpec(
            num_scalar_prefetch=0,
            grid=(Nb, R),
            in_specs=in_specs,
            out_specs=pl.BlockSpec((None, B, T, Wo, Cout_p),
                                   lambda nb, r: (nb, 0, r, 0, 0)),
            scratch_shapes=[
                pltpu.VMEM((B, T + 2, Wo + 2, Cout_p), bf16),   # staged conv1 output
            ]),
        compiler_params=pltpu.CompilerParams(
            dimension_semantics=("parallel", "parallel"),
            vmem_limit_bytes=_vmem_limit_bytes()),
        cost_estimate=cost,
    )(*inputs)

    # TODO(synk): when chaining blocks, keep this NHWC channel-padded bf16 layout.
    out = out.reshape(N, Ho, Wo, Cout_p)[..., :Cout].astype(jnp.float32)
    return jnp.transpose(out, (0, 3, 1, 2))          # back to NCHW


def basic_block_ref(x_nchw, params, stride, eps=1e-5):
    """Pure-JAX reference (XLA convs) for correctness checking."""
    x = jnp.transpose(x_nchw, (0, 2, 3, 1)).astype(jnp.float32)
    Cin, Cout = x.shape[-1], params["w1"].shape[0]
    has_proj = (stride != 1) or (Cin != Cout)
    dn = ("NHWC", "HWIO", "NHWC")

    def conv(inp, w_oihw, st, pad):
        w = jnp.transpose(w_oihw, (2, 3, 1, 0))
        return lax.conv_general_dilated(inp, w, (st, st), pad, dimension_numbers=dn,
                                        precision=lax.Precision.HIGHEST)

    def bn(y, g, b, m, v):
        return (y - m) / jnp.sqrt(v + eps) * g + b

    y = conv(x, params["w1"], stride, ((1, 1), (1, 1)))
    y = bn(y, params["bn1_g"], params["bn1_b"], params["bn1_m"], params["bn1_v"])
    y = jnp.where(y > 0, y, NEG_SLOPE * y)
    y = conv(y, params["w2"], 1, ((1, 1), (1, 1)))
    y = bn(y, params["bn2_g"], params["bn2_b"], params["bn2_m"], params["bn2_v"])
    if has_proj:
        sc = conv(x, params["wsc"], stride, ((0, 0), (0, 0)))
        sc = bn(sc, params["bnsc_g"], params["bnsc_b"], params["bnsc_m"], params["bnsc_v"])
    else:
        sc = x
    z = y + sc
    out = jnp.where(z > 0, z, NEG_SLOPE * z)
    return jnp.transpose(out, (0, 3, 1, 2))


def make_params(key, cin, cout):
    ks = jax.random.split(key, 16)
    return {
        "w1":  jax.random.normal(ks[0], (cout, cin, 3, 3), jnp.float32) * 0.2,
        "w2":  jax.random.normal(ks[1], (cout, cout, 3, 3), jnp.float32) * 0.15,
        "wsc": jax.random.normal(ks[2], (cout, cin, 1, 1), jnp.float32) * 0.3,
        "bn1_g": jax.random.uniform(ks[3], (cout,), jnp.float32, 0.5, 1.5),
        "bn1_b": jax.random.normal(ks[4], (cout,), jnp.float32) * 0.1,
        "bn1_m": jax.random.normal(ks[5], (cout,), jnp.float32) * 0.1,
        "bn1_v": jax.random.uniform(ks[6], (cout,), jnp.float32, 0.5, 1.5),
        "bn2_g": jax.random.uniform(ks[7], (cout,), jnp.float32, 0.5, 1.5),
        "bn2_b": jax.random.normal(ks[8], (cout,), jnp.float32) * 0.1,
        "bn2_m": jax.random.normal(ks[9], (cout,), jnp.float32) * 0.1,
        "bn2_v": jax.random.uniform(ks[10], (cout,), jnp.float32, 0.5, 1.5),
        "bnsc_g": jax.random.uniform(ks[11], (cout,), jnp.float32, 0.5, 1.5),
        "bnsc_b": jax.random.normal(ks[12], (cout,), jnp.float32) * 0.1,
        "bnsc_m": jax.random.normal(ks[13], (cout,), jnp.float32) * 0.1,
        "bnsc_v": jax.random.uniform(ks[14], (cout,), jnp.float32, 0.5, 1.5),
    }


if __name__ == "__main__":
    key = jax.random.PRNGKey(0)
    configs = [
        # (N, Cin, Cout, H, W, stride)
        (2, 4, 8, 16, 16, 1),     # projection shortcut (Cin != Cout)
        (2, 4, 8, 16, 16, 2),     # stride-2 projection (phase decimation path)
        (2, 8, 8, 16, 16, 1),     # identity shortcut (in-kernel lane pad)
        (4, 8, 8, 8, 8, 1),       # identity shortcut + batch folding (B > 1)
        (2, 4, 8, 56, 56, 1),     # R > 1 row tiles (interior halo recompute)
        (2, 4, 8, 112, 112, 2),   # stride 2 with R > 1 (realistic geometry)
    ]

    for i, (N, cin, cout, H, W, stride) in enumerate(configs):
        kx, kp = jax.random.split(jax.random.fold_in(key, i))
        x = jax.random.normal(kx, (N, cin, H, W), jnp.float32)
        params = make_params(kp, cin, cout)

        out = jax.block_until_ready(basic_block(x, params, stride))

        # Reference fed the same bf16-rounded values the kernel sees at its HBM
        # boundary, so the comparison isolates the kernel's math.  (The residual
        # add is bf16-rounded on the input side by design.)
        def rb(a):
            return a.astype(jnp.bfloat16).astype(jnp.float32)
        params_r = dict(params)
        for k in ("w1", "w2", "wsc"):
            params_r[k] = rb(params[k])
        ref = basic_block_ref(rb(x), params_r, stride)

        assert out.shape == ref.shape, (out.shape, ref.shape)
        err = jnp.abs(out - ref)
        tol = 5e-2 + 3e-2 * jnp.abs(ref)
        if not bool(jnp.all(err <= tol)):
            raise SystemExit(
                f"config {i} (N={N}, Cin={cin}, Cout={cout}, HxW={H}x{W}, "
                f"stride={stride}): mismatch, max abs err = {float(jnp.max(err)):.4f}")

    print("KERNEL_OK")
</pallas_src>

<mosaic_0001>
module attributes {stable_mosaic.version = 11 : i64} {
  func.func @kernel(%arg0: i32, %arg1: i32, %arg2: memref<1x1x20x18x16xbf16, #tpu.memory_space<vmem>>, %arg3: memref<144x128xbf16, #tpu.memory_space<vmem>>, %arg4: memref<1x128xf32, #tpu.memory_space<vmem>>, %arg5: memref<1x128xf32, #tpu.memory_space<vmem>>, %arg6: memref<1152x128xbf16, #tpu.memory_space<vmem>>, %arg7: memref<1x128xf32, #tpu.memory_space<vmem>>, %arg8: memref<1x128xf32, #tpu.memory_space<vmem>>, %arg9: memref<16x128xbf16, #tpu.memory_space<vmem>>, %arg10: memref<1x128xf32, #tpu.memory_space<vmem>>, %arg11: memref<1x128xf32, #tpu.memory_space<vmem>>, %arg12: memref<1x1x16x16x128xbf16, #tpu.memory_space<vmem>>, %arg13: memref<1x18x18x128xbf16, #tpu.memory_space<vmem>>) attributes {dimension_semantics = [#tpu.dimension_semantics<parallel>, #tpu.dimension_semantics<parallel>], iteration_bounds = array<i64: 2, 1>, scalar_prefetch = 0 : i64, scratch_operands = 1 : i64, tpu.core_type = #tpu.core_type<tc>, window_params = [{transform_indices = @transform_0, window_bounds = array<i64: 1, 1, 20, 18, 16>}, {pipeline_mode = #tpu.pipeline_mode<synchronous>, transform_indices = @transform_1, window_bounds = array<i64: 144, 128>}, {pipeline_mode = #tpu.pipeline_mode<synchronous>, transform_indices = @transform_2, window_bounds = array<i64: 1, 128>}, {pipeline_mode = #tpu.pipeline_mode<synchronous>, transform_indices = @transform_3, window_bounds = array<i64: 1, 128>}, {pipeline_mode = #tpu.pipeline_mode<synchronous>, transform_indices = @transform_4, window_bounds = array<i64: 1152, 128>}, {pipeline_mode = #tpu.pipeline_mode<synchronous>, transform_indices = @transform_5, window_bounds = array<i64: 1, 128>}, {pipeline_mode = #tpu.pipeline_mode<synchronous>, transform_indices = @transform_6, window_bounds = array<i64: 1, 128>}, {pipeline_mode = #tpu.pipeline_mode<synchronous>, transform_indices = @transform_7, window_bounds = array<i64: 16, 128>}, {pipeline_mode = #tpu.pipeline_mode<synchronous>, transform_indices = @transform_8, window_bounds = array<i64: 1, 128>}, {pipeline_mode = #tpu.pipeline_mode<synchronous>, transform_indices = @transform_9, window_bounds = array<i64: 1, 128>}, {transform_indices = @transform_10, window_bounds = array<i64: 1, 1, 16, 16, 128>}]} {
    %c0 = arith.constant 0 : index
    %c0_0 = arith.constant 0 : index
    %c0_1 = arith.constant 0 : index
    %c0_2 = arith.constant 0 : index
    %c0_3 = arith.constant 0 : index
    %0 = vector.load %arg2[%c0, %c0_0, %c0_1, %c0_2, %c0_3] : memref<1x1x20x18x16xbf16, #tpu.memory_space<vmem>>, vector<1x1x18x16x16xbf16>
    %1 = vector.shape_cast %0 : vector<1x1x18x16x16xbf16> to vector<1x18x16x16xbf16>
    %c0_4 = arith.constant 0 : index
    %c0_5 = arith.constant 0 : index
    %c0_6 = arith.constant 0 : index
    %c1 = arith.constant 1 : index
    %c0_7 = arith.constant 0 : index
    %2 = vector.load %arg2[%c0_4, %c0_5, %c0_6, %c1, %c0_7] : memref<1x1x20x18x16xbf16, #tpu.memory_space<vmem>>, vector<1x1x18x16x16xbf16>
    %3 = vector.shape_cast %2 : vector<1x1x18x16x16xbf16> to vector<1x18x16x16xbf16>
    %c0_8 = arith.constant 0 : index
    %c0_9 = arith.constant 0 : index
    %c0_10 = arith.constant 0 : index
    %c2 = arith.constant 2 : index
    %c0_11 = arith.constant 0 : index
    %4 = vector.load %arg2[%c0_8, %c0_9, %c0_10, %c2, %c0_11] : memref<1x1x20x18x16xbf16, #tpu.memory_space<vmem>>, vector<1x1x18x16x16xbf16>
    %5 = vector.shape_cast %4 : vector<1x1x18x16x16xbf16> to vector<1x18x16x16xbf16>
    %c0_12 = arith.constant 0 : index
    %c0_13 = arith.constant 0 : index
    %c1_14 = arith.constant 1 : index
    %c0_15 = arith.constant 0 : index
    %c0_16 = arith.constant 0 : index
    %6 = vector.load %arg2[%c0_12, %c0_13, %c1_14, %c0_15, %c0_16] : memref<1x1x20x18x16xbf16, #tpu.memory_space<vmem>>, vector<1x1x18x16x16xbf16>
    %7 = vector.shape_cast %6 : vector<1x1x18x16x16xbf16> to vector<1x18x16x16xbf16>
    %c0_17 = arith.constant 0 : index
    %c0_18 = arith.constant 0 : index
    %c1_19 = arith.constant 1 : index
    %c1_20 = arith.constant 1 : index
    %c0_21 = arith.constant 0 : index
    %8 = vector.load %arg2[%c0_17, %c0_18, %c1_19, %c1_20, %c0_21] : memref<1x1x20x18x16xbf16, #tpu.memory_space<vmem>>, vector<1x1x18x16x16xbf16>
    %9 = vector.shape_cast %8 : vector<1x1x18x16x16xbf16> to vector<1x18x16x16xbf16>
    %c0_22 = arith.constant 0 : index
    %c0_23 = arith.constant 0 : index
    %c1_24 = arith.constant 1 : index
    %c2_25 = arith.constant 2 : index
    %c0_26 = arith.constant 0 : index
    %10 = vector.load %arg2[%c0_22, %c0_23, %c1_24, %c2_25, %c0_26] : memref<1x1x20x18x16xbf16, #tpu.memory_space<vmem>>, vector<1x1x18x16x16xbf16>
    %11 = vector.shape_cast %10 : vector<1x1x18x16x16xbf16> to vector<1x18x16x16xbf16>
    %c0_27 = arith.constant 0 : index
    %c0_28 = arith.constant 0 : index
    %c2_29 = arith.constant 2 : index
    %c0_30 = arith.constant 0 : index
    %c0_31 = arith.constant 0 : index
    %12 = vector.load %arg2[%c0_27, %c0_28, %c2_29, %c0_30, %c0_31] : memref<1x1x20x18x16xbf16, #tpu.memory_space<vmem>>, vector<1x1x18x16x16xbf16>
    %13 = vector.shape_cast %12 : vector<1x1x18x16x16xbf16> to vector<1x18x16x16xbf16>
    %c0_32 = arith.constant 0 : index
    %c0_33 = arith.constant 0 : index
    %c2_34 = arith.constant 2 : index
    %c1_35 = arith.constant 1 : index
    %c0_36 = arith.constant 0 : index
    %14 = vector.load %arg2[%c0_32, %c0_33, %c2_34, %c1_35, %c0_36] : memref<1x1x20x18x16xbf16, #tpu.memory_space<vmem>>, vector<1x1x18x16x16xbf16>
    %15 = vector.shape_cast %14 : vector<1x1x18x16x16xbf16> to vector<1x18x16x16xbf16>
    %c0_37 = arith.constant 0 : index
    %c0_38 = arith.constant 0 : index
    %c2_39 = arith.constant 2 : index
    %c2_40 = arith.constant 2 : index
    %c0_41 = arith.constant 0 : index
    %16 = vector.load %arg2[%c0_37, %c0_38, %c2_39, %c2_40, %c0_41] : memref<1x1x20x18x16xbf16, #tpu.memory_space<vmem>>, vector<1x1x18x16x16xbf16>
    %17 = vector.shape_cast %16 : vector<1x1x18x16x16xbf16> to vector<1x18x16x16xbf16>
    %18 = tpu.concatenate %1, %3, %5, %7, %9, %11, %13, %15, %17 in 3 : vector<1x18x16x16xbf16>, vector<1x18x16x16xbf16>, vector<1x18x16x16xbf16>, vector<1x18x16x16xbf16>, vector<1x18x16x16xbf16>, vector<1x18x16x16xbf16>, vector<1x18x16x16xbf16>, vector<1x18x16x16xbf16>, vector<1x18x16x16xbf16> -> vector<1x18x16x144xbf16>
    %19 = vector.shape_cast %18 : vector<1x18x16x144xbf16> to vector<288x144xbf16>
    %c0_42 = arith.constant 0 : index
    %c0_43 = arith.constant 0 : index
    %20 = vector.load %arg3[%c0_42, %c0_43] : memref<144x128xbf16, #tpu.memory_space<vmem>>, vector<144x128xbf16>
    %cst = arith.constant dense<0.000000e+00> : vector<288x128xf32>
    %21 = tpu.matmul %19, %20, %cst {dimension_numbers = #tpu.dot_dimension_numbers<[1], [0], [0], [1], [0, 0, 1, 1], [], []>} : vector<288x144xbf16>, vector<144x128xbf16>, vector<288x128xf32> -> vector<288x128xf32>
    %c0_44 = arith.constant 0 : index
    %c0_45 = arith.constant 0 : index
    %22 = vector.load %arg4[%c0_44, %c0_45] : memref<1x128xf32, #tpu.memory_space<vmem>>, vector<1x128xf32>
    %23 = vector.broadcast %22 : vector<1x128xf32> to vector<288x128xf32>
    %24 = arith.mulf %21, %23 : vector<288x128xf32>
    %c0_46 = arith.constant 0 : index
    %c0_47 = arith.constant 0 : index
    %25 = vector.load %arg5[%c0_46, %c0_47] : memref<1x128xf32, #tpu.memory_space<vmem>>, vector<1x128xf32>
    %26 = vector.broadcast %25 : vector<1x128xf32> to vector<288x128xf32>
    %27 = arith.addf %24, %26 : vector<288x128xf32>
    %cst_48 = arith.constant 0.000000e+00 : f32
    %28 = vector.broadcast %cst_48 : f32 to vector<288x128xf32>
    %29 = arith.cmpf ogt, %27, %28 : vector<288x128xf32>
    %cst_49 = arith.constant 0.00999999977 : f32
    %30 = vector.broadcast %cst_49 : f32 to vector<288x128xf32>
    %31 = arith.mulf %30, %27 : vector<288x128xf32>
    %32 = arith.select %29, %27, %31 : vector<288x128xi1>, vector<288x128xf32>
    %33 = vector.shape_cast %32 : vector<288x128xf32> to vector<1x18x16x128xf32>
    %34 = arith.truncf %33 : vector<1x18x16x128xf32> to vector<1x18x16x128xbf16>
    %c0_50 = arith.constant 0 : index
    %c0_51 = arith.constant 0 : index
    %c1_52 = arith.constant 1 : index
    %c0_53 = arith.constant 0 : index
    %35 = vector.load %arg13[%c0_50, %c0_51, %c1_52, %c0_53] : memref<1x18x18x128xbf16, #tpu.memory_space<vmem>>, vector<1x18x16x128xbf16>
    tpu.vector_store %arg13[%c0_50, %c0_51, %c1_52, %c0_53], %34 {strides = array<i32>} : memref<1x18x18x128xbf16, #tpu.memory_space<vmem>>, vector<1x18x16x128xbf16>,
    %cst_54 = arith.constant 0.000000e+00 : bf16
    %36 = vector.broadcast %cst_54 : bf16 to vector<1x18x128xbf16>
    %c0_55 = arith.constant 0 : index
    %c0_56 = arith.constant 0 : index
    %c0_57 = arith.constant 0 : index
    %c0_58 = arith.constant 0 : index
    %37 = vector.load %arg13[%c0_55, %c0_56, %c0_57, %c0_58] : memref<1x18x18x128xbf16, #tpu.memory_space<vmem>>, vector<1x18x1x128xbf16>
    %38 = vector.shape_cast %37 : vector<1x18x1x128xbf16> to vector<1x18x128xbf16>
    %39 = vector.shape_cast %36 : vector<1x18x128xbf16> to vector<1x18x1x128xbf16>
    tpu.vector_store %arg13[%c0_55, %c0_56, %c0_57, %c0_58], %39 {strides = array<i32>} : memref<1x18x18x128xbf16, #tpu.memory_space<vmem>>, vector<1x18x1x128xbf16>,
    %c0_59 = arith.constant 0 : index
    %c0_60 = arith.constant 0 : index
    %c17 = arith.constant 17 : index
    %c0_61 = arith.constant 0 : index
    %40 = vector.load %arg13[%c0_59, %c0_60, %c17, %c0_61] : memref<1x18x18x128xbf16, #tpu.memory_space<vmem>>, vector<1x18x1x128xbf16>
    %41 = vector.shape_cast %40 : vector<1x18x1x128xbf16> to vector<1x18x128xbf16>
    %42 = vector.shape_cast %36 : vector<1x18x128xbf16> to vector<1x18x1x128xbf16>
    tpu.vector_store %arg13[%c0_59, %c0_60, %c17, %c0_61], %42 {strides = array<i32>} : memref<1x18x18x128xbf16, #tpu.memory_space<vmem>>, vector<1x18x1x128xbf16>,
    %cst_62 = arith.constant 0.000000e+00 : bf16
    %43 = vector.broadcast %cst_62 : bf16 to vector<1x18x128xbf16>
    %c0_i32 = arith.constant 0 : i32
    %44 = arith.cmpi eq, %arg1, %c0_i32 : i32
    %45 = arith.extui %44 : i1 to i32
    %c0_i32_63 = arith.constant 0 : i32
    %46 = arith.cmpi ne, %45, %c0_i32_63 : i32
    scf.if %46 {
      %c0_128 = arith.constant 0 : index
      %c0_129 = arith.constant 0 : index
      %c0_130 = arith.constant 0 : index
      %c0_131 = arith.constant 0 : index
      %91 = vector.load %arg13[%c0_128, %c0_129, %c0_130, %c0_131] : memref<1x18x18x128xbf16, #tpu.memory_space<vmem>>, vector<1x1x18x128xbf16>
      %92 = vector.shape_cast %91 : vector<1x1x18x128xbf16> to vector<1x18x128xbf16>
      %93 = vector.shape_cast %43 : vector<1x18x128xbf16> to vector<1x1x18x128xbf16>
      tpu.vector_store %arg13[%c0_128, %c0_129, %c0_130, %c0_131], %93 {strides = array<i32>} : memref<1x18x18x128xbf16, #tpu.memory_space<vmem>>, vector<1x1x18x128xbf16>,
    } else {
    }
    %c0_i32_64 = arith.constant 0 : i32
    %47 = arith.cmpi eq, %arg1, %c0_i32_64 : i32
    %48 = arith.extui %47 : i1 to i32
    %c0_i32_65 = arith.constant 0 : i32
    %49 = arith.cmpi ne, %48, %c0_i32_65 : i32
    scf.if %49 {
      %c0_128 = arith.constant 0 : index
      %c17_129 = arith.constant 17 : index
      %c0_130 = arith.constant 0 : index
      %c0_131 = arith.constant 0 : index
      %91 = vector.load %arg13[%c0_128, %c17_129, %c0_130, %c0_131] : memref<1x18x18x128xbf16, #tpu.memory_space<vmem>>, vector<1x1x18x128xbf16>
      %92 = vector.shape_cast %91 : vector<1x1x18x128xbf16> to vector<1x18x128xbf16>
      %93 = vector.shape_cast %43 : vector<1x18x128xbf16> to vector<1x1x18x128xbf16>
      tpu.vector_store %arg13[%c0_128, %c17_129, %c0_130, %c0_131], %93 {strides = array<i32>} : memref<1x18x18x128xbf16, #tpu.memory_space<vmem>>, vector<1x1x18x128xbf16>,
    } else {
    }
    %c0_66 = arith.constant 0 : index
    %c0_67 = arith.constant 0 : index
    %c0_68 = arith.constant 0 : index
    %c0_69 = arith.constant 0 : index
    %50 = vector.load %arg13[%c0_66, %c0_67, %c0_68, %c0_69] : memref<1x18x18x128xbf16, #tpu.memory_space<vmem>>, vector<1x16x16x128xbf16>
    %c0_70 = arith.constant 0 : index
    %c0_71 = arith.constant 0 : index
    %c1_72 = arith.constant 1 : index
    %c0_73 = arith.constant 0 : index
    %51 = vector.load %arg13[%c0_70, %c0_71, %c1_72, %c0_73] : memref<1x18x18x128xbf16, #tpu.memory_space<vmem>>, vector<1x16x16x128xbf16>
    %c0_74 = arith.constant 0 : index
    %c0_75 = arith.constant 0 : index
    %c2_76 = arith.constant 2 : index
    %c0_77 = arith.constant 0 : index
    %52 = vector.load %arg13[%c0_74, %c0_75, %c2_76, %c0_77] : memref<1x18x18x128xbf16, #tpu.memory_space<vmem>>, vector<1x16x16x128xbf16>
    %c0_78 = arith.constant 0 : index
    %c1_79 = arith.constant 1 : index
    %c0_80 = arith.constant 0 : index
    %c0_81 = arith.constant 0 : index
    %53 = vector.load %arg13[%c0_78, %c1_79, %c0_80, %c0_81] : memref<1x18x18x128xbf16, #tpu.memory_space<vmem>>, vector<1x16x16x128xbf16>
    %c0_82 = arith.constant 0 : index
    %c1_83 = arith.constant 1 : index
    %c1_84 = arith.constant 1 : index
    %c0_85 = arith.constant 0 : index
    %54 = vector.load %arg13[%c0_82, %c1_83, %c1_84, %c0_85] : memref<1x18x18x128xbf16, #tpu.memory_space<vmem>>, vector<1x16x16x128xbf16>
    %c0_86 = arith.constant 0 : index
    %c1_87 = arith.constant 1 : index
    %c2_88 = arith.constant 2 : index
    %c0_89 = arith.constant 0 : index
    %55 = vector.load %arg13[%c0_86, %c1_87, %c2_88, %c0_89] : memref<1x18x18x128xbf16, #tpu.memory_space<vmem>>, vector<1x16x16x128xbf16>
    %c0_90 = arith.constant 0 : index
    %c2_91 = arith.constant 2 : index
    %c0_92 = arith.constant 0 : index
    %c0_93 = arith.constant 0 : index
    %56 = vector.load %arg13[%c0_90, %c2_91, %c0_92, %c0_93] : memref<1x18x18x128xbf16, #tpu.memory_space<vmem>>, vector<1x16x16x128xbf16>
    %c0_94 = arith.constant 0 : index
    %c2_95 = arith.constant 2 : index
    %c1_96 = arith.constant 1 : index
    %c0_97 = arith.constant 0 : index
    %57 = vector.load %arg13[%c0_94, %c2_95, %c1_96, %c0_97] : memref<1x18x18x128xbf16, #tpu.memory_space<vmem>>, vector<1x16x16x128xbf16>
    %c0_98 = arith.constant 0 : index
    %c2_99 = arith.constant 2 : index
    %c2_100 = arith.constant 2 : index
    %c0_101 = arith.constant 0 : index
    %58 = vector.load %arg13[%c0_98, %c2_99, %c2_100, %c0_101] : memref<1x18x18x128xbf16, #tpu.memory_space<vmem>>, vector<1x16x16x128xbf16>
    %59 = tpu.concatenate %50, %51, %52, %53, %54, %55, %56, %57, %58 in 3 : vector<1x16x16x128xbf16>, vector<1x16x16x128xbf16>, vector<1x16x16x128xbf16>, vector<1x16x16x128xbf16>, vector<1x16x16x128xbf16>, vector<1x16x16x128xbf16>, vector<1x16x16x128xbf16>, vector<1x16x16x128xbf16>, vector<1x16x16x128xbf16> -> vector<1x16x16x1152xbf16>
    %60 = vector.shape_cast %59 : vector<1x16x16x1152xbf16> to vector<256x1152xbf16>
    %c0_102 = arith.constant 0 : index
    %c0_103 = arith.constant 0 : index
    %61 = vector.load %arg6[%c0_102, %c0_103] : memref<1152x128xbf16, #tpu.memory_space<vmem>>, vector<1152x128xbf16>
    %cst_104 = arith.constant dense<0.000000e+00> : vector<256x128xf32>
    %62 = tpu.matmul %60, %61, %cst_104 {dimension_numbers = #tpu.dot_dimension_numbers<[1], [0], [0], [1], [0, 0, 1, 1], [], []>} : vector<256x1152xbf16>, vector<1152x128xbf16>, vector<256x128xf32> -> vector<256x128xf32>
    %c0_105 = arith.constant 0 : index
    %c0_106 = arith.constant 0 : index
    %63 = vector.load %arg7[%c0_105, %c0_106] : memref<1x128xf32, #tpu.memory_space<vmem>>, vector<1x128xf32>
    %64 = vector.broadcast %63 : vector<1x128xf32> to vector<256x128xf32>
    %65 = arith.mulf %62, %64 : vector<256x128xf32>
    %c0_107 = arith.constant 0 : index
    %c0_108 = arith.constant 0 : index
    %66 = vector.load %arg8[%c0_107, %c0_108] : memref<1x128xf32, #tpu.memory_space<vmem>>, vector<1x128xf32>
    %67 = vector.broadcast %66 : vector<1x128xf32> to vector<256x128xf32>
    %68 = arith.addf %65, %67 : vector<256x128xf32>
    %c0_109 = arith.constant 0 : index
    %c0_110 = arith.constant 0 : index
    %c2_111 = arith.constant 2 : index
    %c1_112 = arith.constant 1 : index
    %c0_113 = arith.constant 0 : index
    %69 = vector.load %arg2[%c0_109, %c0_110, %c2_111, %c1_112, %c0_113] : memref<1x1x20x18x16xbf16, #tpu.memory_space<vmem>>, vector<1x1x16x16x16xbf16>
    %70 = vector.shape_cast %69 : vector<1x1x16x16x16xbf16> to vector<1x16x16x16xbf16>
    %71 = vector.shape_cast %70 : vector<1x16x16x16xbf16> to vector<256x16xbf16>
    %c0_114 = arith.constant 0 : index
    %c0_115 = arith.constant 0 : index
    %72 = vector.load %arg9[%c0_114, %c0_115] : memref<16x128xbf16, #tpu.memory_space<vmem>>, vector<16x128xbf16>
    %cst_116 = arith.constant dense<0.000000e+00> : vector<256x128xf32>
    %73 = tpu.matmul %71, %72, %cst_116 {dimension_numbers = #tpu.dot_dimension_numbers<[1], [0], [0], [1], [0, 0, 1, 1], [], []>} : vector<256x16xbf16>, vector<16x128xbf16>, vector<256x128xf32> -> vector<256x128xf32>
    %c0_117 = arith.constant 0 : index
    %c0_118 = arith.constant 0 : index
    %74 = vector.load %arg10[%c0_117, %c0_118] : memref<1x128xf32, #tpu.memory_space<vmem>>, vector<1x128xf32>
    %75 = vector.broadcast %74 : vector<1x128xf32> to vector<256x128xf32>
    %76 = arith.mulf %73, %75 : vector<256x128xf32>
    %c0_119 = arith.constant 0 : index
    %c0_120 = arith.constant 0 : index
    %77 = vector.load %arg11[%c0_119, %c0_120] : memref<1x128xf32, #tpu.memory_space<vmem>>, vector<1x128xf32>
    %78 = vector.broadcast %77 : vector<1x128xf32> to vector<256x128xf32>
    %79 = arith.addf %76, %78 : vector<256x128xf32>
    %80 = arith.addf %68, %79 : vector<256x128xf32>
    %cst_121 = arith.constant 0.000000e+00 : f32
    %81 = vector.broadcast %cst_121 : f32 to vector<256x128xf32>
    %82 = arith.cmpf ogt, %80, %81 : vector<256x128xf32>
    %cst_122 = arith.constant 0.00999999977 : f32
    %83 = vector.broadcast %cst_122 : f32 to vector<256x128xf32>
    %84 = arith.mulf %83, %80 : vector<256x128xf32>
    %85 = arith.select %82, %80, %84 : vector<256x128xi1>, vector<256x128xf32>
    %86 = vector.shape_cast %85 : vector<256x128xf32> to vector<1x16x16x128xf32>
    %87 = arith.truncf %86 : vector<1x16x16x128xf32> to vector<1x16x16x128xbf16>
    %c0_123 = arith.constant 0 : index
    %c0_124 = arith.constant 0 : index
    %c0_125 = arith.constant 0 : index
    %c0_126 = arith.constant 0 : index
    %c0_127 = arith.constant 0 : index
    %88 = vector.load %arg12[%c0_123, %c0_124, %c0_125, %c0_126, %c0_127] : memref<1x1x16x16x128xbf16, #tpu.memory_space<vmem>>, vector<1x1x16x16x128xbf16>
    %89 = vector.shape_cast %88 : vector<1x1x16x16x128xbf16> to vector<1x16x16x128xbf16>
    %90 = vector.shape_cast %87 : vector<1x16x16x128xbf16> to vector<1x1x16x16x128xbf16>
    tpu.vector_store %arg12[%c0_123, %c0_124, %c0_125, %c0_126, %c0_127], %90 {strides = array<i32>} : memref<1x1x16x16x128xbf16, #tpu.memory_space<vmem>>, vector<1x1x16x16x128xbf16>,
    return
  }
  func.func @transform_0(%arg0: i32, %arg1: i32) -> (i32, i32, i32, i32, i32) {
    %c2_i32 = arith.constant 2 : i32
    %0 = arith.muli %arg1, %c2_i32 : i32
    %1 = arith.addi %0, %arg0 : i32
    %c0_i32 = arith.constant 0 : i32
    %c0_i32_0 = arith.constant 0 : i32
    %c0_i32_1 = arith.constant 0 : i32
    %c0_i32_2 = arith.constant 0 : i32
    %c0_i32_3 = arith.constant 0 : i32
    return %1, %c0_i32, %c0_i32_0, %c0_i32_1, %c0_i32_2 : i32, i32, i32, i32, i32
  }
  func.func @transform_1(%arg0: i32, %arg1: i32) -> (i32, i32) {
    %c0_i32 = arith.constant 0 : i32
    %c0_i32_0 = arith.constant 0 : i32
    %c0_i32_1 = arith.constant 0 : i32
    return %c0_i32, %c0_i32_0 : i32, i32
  }
  func.func @transform_2(%arg0: i32, %arg1: i32) -> (i32, i32) {
    %c0_i32 = arith.constant 0 : i32
    %c0_i32_0 = arith.constant 0 : i32
    %c0_i32_1 = arith.constant 0 : i32
    return %c0_i32, %c0_i32_0 : i32, i32
  }
  func.func @transform_3(%arg0: i32, %arg1: i32) -> (i32, i32) {
    %c0_i32 = arith.constant 0 : i32
    %c0_i32_0 = arith.constant 0 : i32
    %c0_i32_1 = arith.constant 0 : i32
    return %c0_i32, %c0_i32_0 : i32, i32
  }
  func.func @transform_4(%arg0: i32, %arg1: i32) -> (i32, i32) {
    %c0_i32 = arith.constant 0 : i32
    %c0_i32_0 = arith.constant 0 : i32
    %c0_i32_1 = arith.constant 0 : i32
    return %c0_i32, %c0_i32_0 : i32, i32
  }
  func.func @transform_5(%arg0: i32, %arg1: i32) -> (i32, i32) {
    %c0_i32 = arith.constant 0 : i32
    %c0_i32_0 = arith.constant 0 : i32
    %c0_i32_1 = arith.constant 0 : i32
    return %c0_i32, %c0_i32_0 : i32, i32
  }
  func.func @transform_6(%arg0: i32, %arg1: i32) -> (i32, i32) {
    %c0_i32 = arith.constant 0 : i32
    %c0_i32_0 = arith.constant 0 : i32
    %c0_i32_1 = arith.constant 0 : i32
    return %c0_i32, %c0_i32_0 : i32, i32
  }
  func.func @transform_7(%arg0: i32, %arg1: i32) -> (i32, i32) {
    %c0_i32 = arith.constant 0 : i32
    %c0_i32_0 = arith.constant 0 : i32
    %c0_i32_1 = arith.constant 0 : i32
    return %c0_i32, %c0_i32_0 : i32, i32
  }
  func.func @transform_8(%arg0: i32, %arg1: i32) -> (i32, i32) {
    %c0_i32 = arith.constant 0 : i32
    %c0_i32_0 = arith.constant 0 : i32
    %c0_i32_1 = arith.constant 0 : i32
    return %c0_i32, %c0_i32_0 : i32, i32
  }
  func.func @transform_9(%arg0: i32, %arg1: i32) -> (i32, i32) {
    %c0_i32 = arith.constant 0 : i32
    %c0_i32_0 = arith.constant 0 : i32
    %c0_i32_1 = arith.constant 0 : i32
    return %c0_i32, %c0_i32_0 : i32, i32
  }
  func.func @transform_10(%arg0: i32, %arg1: i32) -> (i32, i32, i32, i32, i32) {
    %c0_i32 = arith.constant 0 : i32
    %c0_i32_0 = arith.constant 0 : i32
    %c0_i32_1 = arith.constant 0 : i32
    %c0_i32_2 = arith.constant 0 : i32
    return %arg0, %c0_i32, %arg1, %c0_i32_0, %c0_i32_1 : i32, i32, i32, i32, i32
  }
}

</mosaic_0001>

<bundles_post_ra>
// kernel: tpu_custom_call.1
= control target key start
LH: loop header
LB: loop body
LE: loop exit
PB: predicated region body
PF: predicated region fallthrough
CT: control target
= control target key end

     0   :  { %15 = vsyncpa [#allocation4], 0  ;;  %s13615_s0 = inlined_call_operand.vmem [shape: bf16[2,1,20,18,16], index: 0, kind: input, shape index: {}]   ;;  %s13616_s1 = inlined_call_operand.vmem [shape: bf16[144,128], index: 1, kind: input, shape index: {}]   ;;  %s13617_s2 = inlined_call_operand.vmem [shape: f32[1,128], index: 2, kind: input, shape index: {}]   ;;  %s13618_s3 = inlined_call_operand.vmem [shape: f32[1,128], index: 3, kind: input, shape index: {}]   ;;  %s13619_s4 = inlined_call_operand.vmem [shape: bf16[1152,128], index: 4, kind: input, shape index: {}]   ;;  %s13620_s5 = inlined_call_operand.vmem [shape: f32[1,128], index: 5, kind: input, shape index: {}]   ;;  %s13621_s6 = inlined_call_operand.vmem [shape: f32[1,128], index: 6, kind: input, shape index: {}]   ;;  %s13622_s7 = inlined_call_operand.vmem [shape: bf16[16,128], index: 7, kind: input, shape index: {}]   ;;  %s13623_s8 = inlined_call_operand.vmem [shape: f32[1,128], index: 8, kind: input, shape index: {}]   ;;  %s13624_s9 = inlined_call_operand.vmem [shape: f32[1,128], index: 9, kind: input, shape index: {}]   ;;  %s13625_s10 = inlined_call_operand.hbm [shape: bf16[2,1,16,16,128], index: 10, kind: output, shape index: {}]  }
   0x1   :  { %17 = vsyncpa [#allocation4 + $0x1], 0  ;;  %s10078_s13 = smov 0   ;;  %s10080_s14 = smov 0  }
   0x2   :  { %s10082_s15 = smov 0   ;;  %s10084_s16 = smov 0  }
   0x3   :  { %s10086_s17 = smov 0   ;;  %s10088_s18 = smov 0  }
   0x4 LB: > { %s7961_s19 = sadd.s32 4294967295, %s10011_s18   ;;  %s7962_s20 = sadd.s32 4294967294, %s10011_s18   ;;  %s10011_s18 = sphi %s10088_s18, %s23_s18   ;;  %s10007_s17 = sphi %s10086_s17, %s13916_s17   ;;  %s10003_s16 = sphi %s10084_s16, %s13915_s16   ;;  %s9999_s15 = sphi %s10082_s15, %s13914_s15   ;;  %s9995_s14 = sphi %s10080_s14, %s13913_s14   ;;  %s9991_s13 = sphi %s10078_s13, %s13912_s13  }
   0x5   : > { %s35_s21 = sadd.s32 1, %s10007_s17  ;;  %s263_s22 = sadd.s32 1, %s9999_s15 }
   0x6   : > { %p37_p0 = scmp.ge.s32.totalorder %s35_s21, 2  ;;  %p273_p1 = scmp.ne.s32.totalorder %s9999_s15, %s9995_s14 }
   0x7   : > { %p274_p2 = scmp.eq.s32.totalorder %s7961_s19, 1  ;;  %p279_p3 = scmp.ne.s32.totalorder %s9995_s14, %s9991_s13 }
   0x8   : > { %s13918_s21 = smov (%p37_p0, %s35_s21), 0  ;;  %p280_p5 = scmp.eq.s32.totalorder %s7962_s20, 1 }
   0x9   : > { %13651 = sst [smem:[#allocation6_spill]] %s13918_s21  ;;  %p10118_p4 = por %p274_p2, %p273_p1 }
   0xa   : > { %s258_s24 = ssub.s32 %s10007_s17, %s13918_s21  ;;  %p7965_p6 = scmp.ge.s32.totalorder %s10011_s18, 1 }
   0xb   : > { %p261_p7 = scmp.eq.s32.totalorder %s258_s24, 0  ;;  %p10125_p8 = por %p280_p5, %p279_p3 }
   0xc   : > { %p337_p9 = scmp.lt.s32.totalorder %s10011_s18, 3 }
   0xd   : > { %s10131_s26 = scalar_select %p261_p7, %s9999_s15, %s263_s22  }
   0xe   : > { %p338_p10 = pnand %p7965_p6, %p337_p9 }
  0x10   : > { %341 = sbr.rel (%p338_p10) target bundleno = 1138 (0x472), region = 60 }
  0x17   : > { %p379_p11 = scmp.lt.s32.totalorder %s10003_s16, 1  ;;  %v13627_v0 = vmov 0   ;;  %v9557_v1 = vld [vmem:[%s13616_s1] sm:$0xff]   ;;  %v9561_v2 = vld [vmem:[%s13616_s1 + $0x8] sm:$0xff]   ;;  %vm1057_vm0 = vcmask 1046528   ;;  %v9563_v3 = vld [vmem:[%s13616_s1 + $0x10] sm:$0xff]  }
  0x18   : > { %2667 = vmatprep.subr.bf16.mxu0 %v13627_v0  ;;  %vm750_vm1 = vsmask.f32 7424  ;;  %s10014_s21 = smov 48   ;;  %v9567_v18 = vld [vmem:[%s13616_s1 + $0x18] sm:$0xff]   ;;  %s10015_s29 = smov 32   ;;  %v9571_v36 = vld [vmem:[%s13616_s1 + $0x20] sm:$0xff]  }
  0x19   : > { %s380_s27 = scalar_select %p379_p11, %s10003_s16, 1  ;;  %2668 = vmatpush1.bf16.msra.mxu0 %v9557_v1  ;;  %v9575_v57 = vld [vmem:[%s13616_s1 + $0x28] sm:$0xff]   ;;  %vm2264_vm2 = vcmask 130048   ;;  %vm2301_vm3 = vcmask 261120   ;;  %vm2338_vm4 = vcmask 392192   ;;  %vm2375_vm5 = vcmask 523264  }
  0x1a   : > { %2669 = vmatprep.subr.bf16.mxu0 %v13627_v0  ;;  %s10017_s19 = smov 80   ;;  %s10019_s12 = smov 16   ;;  %vm2412_vm6 = vcmask 654336   ;;  %vm2449_vm7 = vcmask 785408   ;;  %vm2486_vm8 = vcmask 916480   ;;  %vm3509_vm12 = vcmask 1043456  }
  0x1b   : > { %s9428_s30 = smul.u32 240, %s380_s27  ;;  %s13647_s27 = smov 64   ;;  %vm3146_vm11 = vsmask.f32 256  ;;  %vm3510_vm13 = vsmask.f32 7938 }
  0x1c   : > { %s10020_s28 = smov 112   ;;  %vm3516_vm14 = vcmask 1040384   ;;  %vm3147_vm15 = vsmask.f32 4368  ;;  %s374_s20 = sand.u32 1, %s9995_s14  }
  0x1d   : > { %s10146_s22 = scalar_lea.vmem %s13615_s0, %s9428_s30  ;;  %2670 = vmatpush1.bf16.msra.mxu0 %v9561_v2  ;;  %s13649_s30 = smov 96  }
  0x1e   : > { %v7968_v4 = vld [vmem:[%s10146_s22 + $0xc] sm:$0xf]  ;;  %v7969_v5 = vld [vmem:[%s10146_s22 + $0x10] sm:$0xf]  ;;  %v389_v9 = vld [vmem:[%s10146_s22 + $0x4] sm:$0xf]  ;;  %2671 = vmatprep.subr.bf16.mxu0 %v13627_v0 }
  0x1f   : > { %v8022_v6 = vld [vmem:[%s10146_s22 + $0xc] sm:$0xe]  ;;  %v8166_v7 = vcombine.low %v7968_v4, %v7969_v5  ;;  %v442_v10 = vld [vmem:[%s10146_s22] sm:$0xe]  ;;  %v8040_v15 = vld [vmem:[%s10146_s22 + $0x18] sm:$0xf] }
  0x20   : > { %v8202_v8 = vcombine.low %v8022_v6, %v7969_v5  ;;  %v9495_v11 = vld [vmem:[%s10146_s22 + $0x8] ss:$0 sps:$4 sm:$0x11]   ;;  %v8148_v12 = vcombine.low %v442_v10, %v389_v9  ;;  %v388_v13 = vld [vmem:[%s10146_s22] sm:$0xf]  ;;  %s10021_s11 = smov [#allocation3]  }
  0x21   : > { %1238 = vrot.lane.b32.xlu1 %v8166_v7, %s10014_s21  ;;  %v1331_v14 = vshll.u32 %v8166_v7, 16  ;;  %v10162_v16 = vld [vmem:[%s10146_s22 + $0x1c] sm:$0xf]  ;;  %v1059_v20 = vrot.slane %v9495_v11, 1  ;;  %v7970_v22 = vld [vmem:[%s10146_s22 + $0x18] sm:$0xf]  ;;  %v10169_v23 = vcombine.low %v388_v13, %v389_v9  ;;  %2672 = vmatpush1.bf16.msra.mxu0 %v9563_v3 }
  0x22   : > { %v1634_v17 = vrot.slane %v8202_v8, 1  ;;  %v1058_v19 = vrot.slane %v8148_v12, 1  ;;  %v8220_v21 = vcombine.low %v8040_v15, %v10162_v16  ;;  %v9499_v24 = vld [vmem:[%s10146_s22 + $0x14] ss:$0 sps:$4 sm:$0x11]   ;;  %v1329_v26 = vshrl.u32 %v8166_v7, 16  ;;  %2673 = vmatprep.subr.bf16.mxu0 %v13627_v0 }
  0x23   : > { %v10173_v25 = vld [vmem:[%s10146_s22 + $0x1c] sm:$0xf]  ;;  %v10177_v29 = vld [vmem:[%s10146_s22 + $0x18] sm:$0xe]  ;;  %v390_v31 = vld [vmem:[%s10146_s22 + $0xc] sm:$0xf] }
  0x24   : > { %v1060_v27 = vsel %vm1057_vm0, %v1058_v19, %v1059_v20  ;;  %v1907_v28 = vshll.u32 %v8220_v21, 16  ;;  %v10180_v30 = vcombine.low %v7970_v22, %v10173_v25  ;;  %v1333_v32 = vrot.slane %v1331_v14, 1  ;;  %v391_v34 = vld [vmem:[%s10146_s22 + $0x10] sm:$0xf]  ;;  %v443_v39 = vld [vmem:[%s10146_s22 + $0xc] sm:$0xe] }
  0x25   : > { %1112 = vrot.lane.b32.xlu0 %v1060_v27, %s10015_s29  ;;  %1814 = vrot.lane.b32.xlu1 %v8220_v21, %s13649_s30  ;;  %v1635_v33 = vrot.slane %v9499_v24, 1  ;;  %v1336_v35 = vshll.u32 %v9499_v24, 16  ;;  %v8203_v38 = vcombine.low %v10177_v29, %v10173_v25  ;;  %v10194_v40 = vcombine.low %v390_v31, %v391_v34  ;;  %v9503_v41 = vld [vmem:[%s10146_s22 + $0x14] ss:$0 sps:$4 sm:$0x11]  }
  0x26   : > { %v1343_v37 = vshll.u32 %v10180_v30, 16  ;;  %v1334_v42 = vor.u32 %v1333_v32, %v1329_v26  ;;  %v8149_v44 = vcombine.low %v443_v39, %v391_v34  ;;  %v752_v46 = vshrl.u32 %v10169_v23, 16  ;;  %2674 = vmatpush1.bf16.msra.mxu0 %v9567_v18  ;;  %v10208_v55 = vld [vmem:[%s10146_s22 + $0x20] ss:$0 sps:$4 sm:$0x11]   ;;  %v9578_v22 = vld [vmem:[%s13616_s1 + $0x30] sm:$0xff]  }
  0x27   : > { %v1636_v43 = vsel %vm1057_vm0, %v1634_v17, %v1635_v33  ;;  %v1338_v45 = vrot.slane %v1336_v35, 1  ;;  %v1062_v47 = vrot.slane %v9503_v41, 1  ;;  %v754_v48 = vshll.u32 %v10169_v23, 16  ;;  %2675 = vmatprep.subr.bf16.mxu0 %v13627_v0  ;;  %v8042_v56 = vld [vmem:[%s10146_s22 + $0x24] sm:$0xf] }
  0x28   : > { %v759_v49 = vshll.u32 %v9495_v11, 16  ;;  %v764_v50 = vshrl.u32 %v10194_v40, 16  ;;  %v1061_v51 = vrot.slane %v8149_v44, 1  ;;  %v766_v53 = vshll.u32 %v10194_v40, 16  ;;  %v10215_v62 = vld [vmem:[%s10146_s22 + $0x28] sm:$0xf] }
  0x29   : > { %1688 = vrot.lane.b32.xlu0 %v1636_v43, %s10017_s19  ;;  %1240 = vrot.lane.b32.xlu1 %v10180_v30, %s10014_s21  ;;  %v1339_v52 = vsel %vm750_vm1, %v1334_v42, %v1338_v45  ;;  %v771_v54 = vshll.u32 %v9503_v41, 16  ;;  %v756_v58 = vrot.slane %v754_v48, 1  ;;  %v1905_v60 = vshrl.u32 %v8220_v21, 16  ;;  %v9506_v4 = vld [vmem:[%s10146_s22 + $0x20] ss:$0 sps:$4 sm:$0x11]  }
  0x2a   : > { %v761_v59 = vrot.slane %v759_v49, 1  ;;  %v1909_v61 = vrot.slane %v1907_v28, 1  ;;  %v1063_v63 = vsel %vm1057_vm0, %v1061_v51, %v1062_v47  ;;  %v768_v1 = vrot.slane %v766_v53, 1  ;;  %2676 = vmatpush1.bf16.msra.mxu0 %v9571_v36  ;;  %v10225_v12 = vld [vmem:[%s10146_s22 + $0x2c] ss:$0 sps:$4 sm:$0x11]  }
  0x2b   : > { %v773_v2 = vrot.slane %v771_v54, 1  ;;  %v1912_v3 = vshll.u32 %v10208_v55, 16  ;;  %v757_v5 = vor.u32 %v756_v58, %v752_v46  ;;  %v1341_v7 = vshrl.u32 %v10180_v30, 16  ;;  %2677 = vmatprep.subr.bf16.mxu0 %v13627_v0  ;;  %v392_v18 = vld [vmem:[%s10146_s22 + $0x18] sm:$0xf]  ;;  %v9586_v58 = vld [vmem:[%s13616_s1 + $0x40] sm:$0xff]  }
  0x2c   : > { %v1910_v6 = vor.u32 %v1909_v61, %v1905_v60  ;;  %v769_v8 = vor.u32 %v768_v1, %v764_v50  ;;  %v1345_v10 = vrot.slane %v1343_v37, 1  ;;  %v1348_v11 = vshll.u32 %v9506_v4, 16  ;;  %v393_v19 = vld [vmem:[%s10146_s22 + $0x1c] sm:$0xf]  ;;  %v444_v27 = vld [vmem:[%s10146_s22 + $0x18] sm:$0xe] }
  0x2d   : > { %1114 = vrot.lane.b32.xlu0 %v1063_v63, %s10015_s29  ;;  %1544 = vrot.lane.b32.xlu1 %v1339_v52, %s13647_s27  ;;  %v1914_v9 = vrot.slane %v1912_v3, 1  ;;  %v762_v13 = vsel %vm750_vm1, %v757_v5, %v761_v59  ;;  %v1637_v14 = vrot.slane %v8203_v38, 1  ;;  %v1638_v15 = vrot.slane %v9506_v4, 1  ;;  %v9511_v21 = vld [vmem:[%s10146_s22 + $0x20] ss:$0 sps:$4 sm:$0x11]  }
  0x2e   : > { %v10229_v17 = vcombine.low %v8042_v56, %v10215_v62  ;;  %v774_v20 = vsel %vm750_vm1, %v769_v8, %v773_v2  ;;  %2678 = vmatpush1.bf16.msra.mxu0 %v9575_v57  ;;  %v1924_v26 = vshll.u32 %v10225_v12, 16  ;;  %v1346_v29 = vor.u32 %v1345_v10, %v1341_v7  ;;  %v7972_v32 = vld [vmem:[%s10146_s22 + $0x24] sm:$0xf]  ;;  %v10250_v33 = vld [vmem:[%s10146_s22 + $0x28] sm:$0xf]  ;;  %v9582_v41 = vld [vmem:[%s13616_s1 + $0x38] sm:$0xff]  }
  0x2f   : > { %2679 = vmatprep.subr.bf16.mxu0 %v13627_v0  ;;  %v1915_v28 = vsel %vm750_vm1, %v1910_v6, %v1914_v9  ;;  %v1350_v30 = vrot.slane %v1348_v11, 1  ;;  %v10246_v31 = vcombine.low %v392_v18, %v393_v19  ;;  %v1639_v34 = vsel %vm1057_vm0, %v1637_v14, %v1638_v15  ;;  %v10261_v45 = vld [vmem:[%s10146_s22 + $0x2c] ss:$0 sps:$4 sm:$0x11]   ;;  %v8044_v50 = vld [vmem:[%s10146_s22 + $0x30] sm:$0xf] }
  0x30   : > { %v1919_v24 = vshll.u32 %v10229_v17, 16  ;;  %v1917_v25 = vshrl.u32 %v10229_v17, 16  ;;  %v1926_v36 = vrot.slane %v1924_v26, 1  ;;  %v8150_v37 = vcombine.low %v444_v27, %v393_v19  ;;  %v10274_v56 = vld [vmem:[%s10146_s22 + $0x34] sm:$0xf] }
  0x31   : > { %967 = vrot.lane.b32.xlu0 %v762_v13, %s10019_s12  ;;  %969 = vrot.lane.b32.xlu1 %v774_v20, %s10019_s12  ;;  %v778_v38 = vshll.u32 %v10246_v31, 16  ;;  %v10255_v39 = vcombine.low %v7972_v32, %v10250_v33  ;;  %v783_v43 = vshll.u32 %v9511_v21, 16  ;;  %v1065_v44 = vrot.slane %v9511_v21, 1  ;;  %v394_v59 = vld [vmem:[%s10146_s22 + $0x24] sm:$0xf] }
  0x32   : > { %v1921_v35 = vrot.slane %v1919_v24, 1  ;;  %2680 = vmatpush1.bf16.msra.mxu0 %v9578_v22  ;;  %v776_v46 = vshrl.u32 %v10246_v31, 16  ;;  %v1064_v48 = vrot.slane %v8150_v37, 1  ;;  %v1351_v51 = vsel %vm750_vm1, %v1346_v29, %v1350_v30  ;;  %v395_v60 = vld [vmem:[%s10146_s22 + $0x28] sm:$0xf] }
  0x33   : > { %2681 = vmatprep.subr.bf16.mxu0 %v13627_v0  ;;  %v780_v47 = vrot.slane %v778_v38, 1  ;;  %v1355_v49 = vshll.u32 %v10255_v39, 16  ;;  %v1353_v53 = vshrl.u32 %v10255_v39, 16  ;;  %v1360_v54 = vshll.u32 %v10261_v45, 16  ;;  %v8024_v3 = vld [vmem:[%s10146_s22 + $0x24] sm:$0xe] }
  0x34   : > { %v1922_v42 = vor.u32 %v1921_v35, %v1917_v25  ;;  %v785_v63 = vrot.slane %v783_v43, 1  ;;  %v8222_v1 = vcombine.low %v8044_v50, %v10274_v56  ;;  %v1066_v2 = vsel %vm1057_vm0, %v1064_v48, %v1065_v44  ;;  %v10290_v7 = vld [vmem:[%s10146_s22 + $0x2c] ss:$0 sps:$4 sm:$0x11]   ;;  %v7974_v10 = vld [vmem:[%s10146_s22 + $0x30] sm:$0xf] }
  0x35   : > { %2120 = vrot.lane.b32.xlu0 %v1915_v28, %s10020_s28  ;;  %1690 = vrot.lane.b32.xlu1 %v1639_v34, %s10017_s19  ;;  %v1357_v57 = vrot.slane %v1355_v49, 1  ;;  %v781_v61 = vor.u32 %v780_v47, %v776_v46  ;;  %v1362_v5 = vrot.slane %v1360_v54, 1  ;;  %v10287_v6 = vcombine.low %v394_v59, %v395_v60  ;;  %v10293_v8 = vld [vmem:[%s10146_s22 + $0x38] ss:$0 sps:$4 sm:$0x11]  }
  0x36   : > { %v1927_v52 = vsel %vm750_vm1, %v1922_v42, %v1926_v36  ;;  %2682 = vmatpush1.bf16.msra.mxu0 %v9582_v41  ;;  %v8204_v13 = vcombine.low %v8024_v3, %v10250_v33  ;;  %v1931_v14 = vshll.u32 %v8222_v1, 16  ;;  %v7975_v15 = vld [vmem:[%s10146_s22 + $0x34] sm:$0xf]  ;;  %v795_v21 = vshll.u32 %v10290_v7, 16  ;;  %v8046_v22 = vld [vmem:[%s10146_s22 + $0x3c] sm:$0xf] }
  0x37   : > { %2683 = vmatprep.subr.bf16.mxu0 %v13627_v0  ;;  %v1358_v4 = vor.u32 %v1357_v57, %v1353_v53  ;;  %v790_v9 = vshll.u32 %v10287_v6, 16  ;;  %v786_v11 = vsel %vm750_vm1, %v781_v61, %v785_v63  ;;  %v788_v19 = vshrl.u32 %v10287_v6, 16  ;;  %v10308_v24 = vld [vmem:[%s10146_s22 + $0x40] sm:$0xf]  ;;  %v445_v29 = vld [vmem:[%s10146_s22 + $0x24] sm:$0xe] }
  0x38   : > { %v1640_v25 = vrot.slane %v8204_v13, 1  ;;  %v1641_v26 = vrot.slane %v10261_v45, 1  ;;  %v1929_v27 = vshrl.u32 %v8222_v1, 16  ;;  %v1936_v28 = vshll.u32 %v10293_v8, 16  ;;  %v8025_v34 = vld [vmem:[%s10146_s22 + $0x30] sm:$0xe] }
  0x39   : > { %1546 = vrot.lane.b32.xlu0 %v1351_v51, %s13647_s27  ;;  %2122 = vrot.lane.b32.xlu1 %v1927_v52, %s10020_s28  ;;  %v1363_v18 = vsel %vm750_vm1, %v1358_v4, %v1362_v5  ;;  %v792_v20 = vrot.slane %v790_v9, 1  ;;  %v1933_v30 = vrot.slane %v1931_v14, 1  ;;  %v797_v33 = vrot.slane %v795_v21, 1  ;;  %v9524_v38 = vld [vmem:[%s10146_s22 + $0x38] ss:$0 sps:$4 sm:$0x11]  }
  0x3a   : > { %2684 = vmatpush1.bf16.msra.mxu0 %v9586_v58  ;;  %v10317_v35 = vcombine.low %v8046_v22, %v10308_v24  ;;  %v8151_v36 = vcombine.low %v445_v29, %v395_v60  ;;  %v1642_v41 = vsel %vm1057_vm0, %v1640_v25, %v1641_v26  ;;  %v8205_v42 = vcombine.low %v8025_v34, %v7975_v15  ;;  %v10325_v43 = vld [vmem:[%s10146_s22 + $0x44] ss:$0 sps:$4 sm:$0x11]   ;;  %v396_v44 = vld [vmem:[%s10146_s22 + $0x30] sm:$0xf] }
  0x3b   : > { %v793_v32 = vor.u32 %v792_v20, %v788_v19  ;;  %v1934_v45 = vor.u32 %v1933_v30, %v1929_v27  ;;  %v1938_v46 = vrot.slane %v1936_v28, 1  ;;  %v397_v49 = vld [vmem:[%s10146_s22 + $0x34] sm:$0xf]  ;;  %v1068_v50 = vrot.slane %v10290_v7, 1  ;;  %v7976_v51 = vld [vmem:[%s10146_s22 + $0x3c] sm:$0xf] }
  0x3c   : > { %v1943_v48 = vshll.u32 %v10317_v35, 16  ;;  %v1067_v52 = vrot.slane %v8151_v36, 1  ;;  %v1372_v57 = vshll.u32 %v9524_v38, 16  ;;  %v1643_v58 = vrot.slane %v8205_v42, 1  ;;  %v446_v3 = vld [vmem:[%s10146_s22 + $0x30] sm:$0xe] }
  0x3d   : > { %1816 = vrot.lane.b32.xlu0 %v10229_v17, %s13649_s30  ;;  %1116 = vrot.lane.b32.xlu1 %v1066_v2, %s10015_s29  ;;  %v8169_v17 = vcombine.low %v7974_v10, %v7975_v15  ;;  %v798_v47 = vsel %vm750_vm1, %v793_v32, %v797_v33  ;;  %v1644_v59 = vrot.slane %v9524_v38, 1  ;;  %v1948_v60 = vshll.u32 %v10325_v43, 16  ;;  %v9529_v5 = vld [vmem:[%s10146_s22 + $0x38] ss:$0 sps:$4 sm:$0x11]  }
  0x3e   : > { %v10339_v61 = vcombine.low %v396_v44, %v397_v49  ;;  %v1939_v63 = vsel %vm750_vm1, %v1934_v45, %v1938_v46  ;;  %v1945_v2 = vrot.slane %v1943_v48, 1  ;;  %v1374_v9 = vrot.slane %v1372_v57, 1  ;;  %v8095_v14 = vld [vmem:[%s10146_s22 + $0x24] sm:$0xe]  ;;  %v8096_v15 = vld [vmem:[%s10146_s22 + $0x30] sm:$0xe] }
  0x3f   : > { %v1367_v37 = vshll.u32 %v8169_v17, 16  ;;  %v1365_v53 = vshrl.u32 %v8169_v17, 16  ;;  %v1069_v10 = vsel %vm1057_vm0, %v1067_v52, %v1068_v50  ;;  %v8152_v13 = vcombine.low %v446_v3, %v397_v49  ;;  %v10357_v22 = vld [vmem:[%s10146_s22 + $0x44] ss:$0 sps:$4 sm:$0x11]  }
  0x40   : > { %13654 = vst [vmem:[#allocation7_spill] sm:$0xff] %v10339_v61  ;;  %v1950_v20 = vrot.slane %v1948_v60, 1  ;;  %v807_v25 = vshll.u32 %v9529_v5, 16  ;;  %v1071_v26 = vrot.slane %v9529_v5, 1  ;;  %v398_v27 = vld [vmem:[%s10146_s22 + $0x3c] sm:$0xf]  ;;  %v8257_v45 = vcombine.low %v8095_v14, %v10215_v62 }
  0x41   : > { %971 = vrot.lane.b32.xlu0 %v786_v11, %s10019_s12  ;;  %1548 = vrot.lane.b32.xlu1 %v1363_v18, %s13647_s27  ;;  %v1369_v54 = vrot.slane %v1367_v37, 1  ;;  %v802_v11 = vshll.u32 %v10339_v61, 16  ;;  %v1645_v18 = vsel %vm1057_vm0, %v1643_v58, %v1644_v59  ;;  %v10361_v28 = vld [vmem:[%s10146_s22 + $0x40] sm:$0xf]  ;;  %v8048_v29 = vld [vmem:[%s10146_s22 + $0x48] sm:$0xf]  ;;  %v8258_v46 = vcombine.low %v8096_v15, %v10274_v56 }
  0x42   : > { %v8049_v30 = vld [vmem:[%s10146_s22 + $0x4c] sm:$0xf]  ;;  %v8097_v32 = vld [vmem:[%s10146_s22 + $0x3c] sm:$0xe]  ;;  %v800_v33 = vshrl.u32 %v10339_v61, 16  ;;  %v1070_v36 = vrot.slane %v8152_v13, 1  ;;  %v10374_v44 = vcombine.low %v398_v27, %v10361_v28 }
  0x43   : > { %v1370_v7 = vor.u32 %v1369_v54, %v1365_v53  ;;  %v804_v34 = vrot.slane %v802_v11, 1  ;;  %v1384_v42 = vshll.u32 %v10357_v22, 16  ;;  %v8259_v48 = vcombine.low %v8097_v32, %v10308_v24  ;;  %v8026_v49 = vld [vmem:[%s10146_s22 + $0x3c] sm:$0xe]  ;;  %v8098_v50 = vld [vmem:[%s10146_s22 + $0x48] sm:$0xe] }
  0x44   : > { %13655 = vst [vmem:[#allocation8_spill] sm:$0xff] %v10374_v44  ;;  %v1072_v52 = vsel %vm1057_vm0, %v1070_v36, %v1071_v26  ;;  %v10385_v53 = vld [vmem:[%s10146_s22 + $0x50] ss:$0 sps:$4 sm:$0x11]   ;;  %v814_v24 = vshll.u32 %v10374_v44, 16  ;;  %v2213_v58 = vrot.slane %v8257_v45, 1 }
  0x45   : > { %1242 = vrot.lane.b32.xlu0 %v10255_v39, %s10014_s21  ;;  %1818 = vrot.lane.b32.xlu1 %v8222_v1, %s13649_s30  ;;  %v10334_v39 = vld [vmem:[%s10146_s22 + $0x40] sm:$0xf]  ;;  %v1941_v1 = vshrl.u32 %v10317_v35, 16  ;;  %v805_v54 = vor.u32 %v804_v34, %v800_v33  ;;  %v1386_v57 = vrot.slane %v1384_v42, 1  ;;  %v2216_v59 = vrot.slane %v8258_v46, 1 }
  0x46   : > { %v10345_v4 = vcombine.low %v7976_v51, %v10334_v39  ;;  %v809_v51 = vrot.slane %v807_v25, 1  ;;  %v10388_v56 = vld [vmem:[%s10146_s22 + $0x44] ss:$0 sps:$4 sm:$0x11]   ;;  %v447_v3 = vld [vmem:[%s10146_s22 + $0x3c] sm:$0xe] }
  0x47   : > { %v1946_v19 = vor.u32 %v1945_v2, %v1941_v1  ;;  %v10392_v1 = vrot.slane %v8259_v48, 1  ;;  %v7978_v5 = vld [vmem:[%s10146_s22 + $0x48] sm:$0xf]  ;;  %v7979_v11 = vld [vmem:[%s10146_s22 + $0x4c] sm:$0xf]  ;;  %v816_v15 = vrot.slane %v814_v24, 1 }
  0x48   : > { %v1379_v21 = vshll.u32 %v10345_v4, 16  ;;  %v1377_v37 = vshrl.u32 %v10345_v4, 16  ;;  %v810_v13 = vsel %vm750_vm1, %v805_v54, %v809_v51  ;;  %v2217_v26 = vrot.slane %v10293_v8, 1  ;;  %v8099_v36 = vld [vmem:[%s10146_s22 + $0x54] sm:$0xe] }
  0x49   : > { %1692 = vrot.lane.b32.xlu0 %v1642_v41, %s10017_s19  ;;  %973 = vrot.lane.b32.xlu1 %v798_v47, %s10019_s12  ;;  %v1951_v38 = vsel %vm750_vm1, %v1946_v19, %v1950_v20  ;;  %v8224_v47 = vcombine.low %v8048_v29, %v8049_v30  ;;  %v8050_v19 = vld [vmem:[%s10146_s22 + $0x54] sm:$0xf]  ;;  %v10414_v27 = vcombine.low %v7978_v5, %v7979_v11  ;;  %v2211_v29 = vrot.slane %v10208_v55, 1 }
  0x4a   : > { %v1381_v41 = vrot.slane %v1379_v21, 1  ;;  %v8027_v21 = vld [vmem:[%s10146_s22 + $0x48] sm:$0xe]  ;;  %v1074_v51 = vrot.slane %v10388_v56, 1 }
  0x4b   : > { %v1955_v60 = vshll.u32 %v8224_v47, 16  ;;  %v1953_v2 = vshrl.u32 %v8224_v47, 16  ;;  %v8207_v46 = vcombine.low %v8027_v21, %v7979_v11 }
  0x4c   : > { %v1382_v62 = vor.u32 %v1381_v41, %v1377_v37  ;;  %v10429_v37 = vld [vmem:[%s10146_s22 + $0x5c] ss:$0 sps:$4 sm:$0x11]  }
  0x4d   : > { %2124 = vrot.lane.b32.xlu0 %v1939_v63, %s10020_s28  ;;  %1244 = vrot.lane.b32.xlu1 %v8169_v17, %s10014_s21  ;;  %v1375_v17 = vsel %vm750_vm1, %v1370_v7, %v1374_v9  ;;  %v2214_v63 = vrot.slane %v10225_v12, 1  ;;  %v8206_v7 = vcombine.low %v8026_v49, %v10334_v39  ;;  %v8260_v9 = vcombine.low %v8098_v50, %v8049_v30  ;;  %v400_v49 = vld [vmem:[%s10146_s22 + $0x48] sm:$0xf]  ;;  %v401_v50 = vld [vmem:[%s10146_s22 + $0x4c] sm:$0xf] }
  0x4e   : > { %v812_v12 = vshrl.u32 %v10374_v44, 16  ;;  %v1387_v14 = vsel %vm750_vm1, %v1382_v62, %v1386_v57  ;;  %v1957_v20 = vrot.slane %v1955_v60, 1  ;;  %v8153_v39 = vcombine.low %v447_v3, %v10361_v28  ;;  %v10444_v62 = vld [vmem:[%s10146_s22 + $0x50] ss:$0 sps:$4 sm:$0x11]  }
  0x4f   : > { %v10411_v25 = vsel %vm1057_vm0, %v2213_v58, %v2214_v63  ;;  %v1646_v30 = vrot.slane %v8206_v7, 1  ;;  %v1647_v28 = vrot.slane %v10357_v22, 1  ;;  %v10423_v32 = vrot.slane %v8260_v9, 1  ;;  %v7980_v60 = vld [vmem:[%s10146_s22 + $0x54] sm:$0xf] }
  0x50   : > { %v817_v8 = vor.u32 %v816_v15, %v812_v12  ;;  %v1958_v41 = vor.u32 %v1957_v20, %v1953_v2  ;;  %v1073_v45 = vrot.slane %v8153_v39, 1  ;;  %v1391_v22 = vshll.u32 %v10414_v27, 16  ;;  %v448_v3 = vld [vmem:[%s10146_s22 + $0x48] sm:$0xe]  ;;  %v8052_v20 = vld [vmem:[%s10146_s22 + $0x60] sm:$0xf] }
  0x51   : > { %1118 = vrot.lane.b32.xlu0 %v1069_v10, %s10015_s29  ;;  %1694 = vrot.lane.b32.xlu1 %v1645_v18, %s10017_s19  ;;  %v1960_v10 = vshll.u32 %v10385_v53, 16  ;;  %v819_v18 = vshll.u32 %v10388_v56, 16  ;;  %v2220_v57 = vrot.slane %v10325_v43, 1  ;;  %v1648_v24 = vsel %vm1057_vm0, %v1646_v30, %v1647_v28  ;;  %v8053_v39 = vld [vmem:[%s10146_s22 + $0x64] sm:$0xf] }
  0x52   : > { %v1649_v63 = vrot.slane %v8207_v46, 1  ;;  %v1393_v5 = vrot.slane %v1391_v22, 1  ;;  %v10456_v7 = vcombine.low %v400_v49, %v401_v50  ;;  %v8100_v30 = vld [vmem:[%s10146_s22 + $0x60] sm:$0xe]  ;;  %v2223_v28 = vrot.slane %v10385_v53, 1 }
  0x53   : > { %v821_v34 = vrot.slane %v819_v18, 1  ;;  %v1962_v42 = vrot.slane %v1960_v10, 1  ;;  %v10460_v9 = vsel %vm1057_vm0, %v10392_v1, %v2220_v57  ;;  %v8154_v1 = vcombine.low %v448_v3, %v401_v50  ;;  %v402_v53 = vld [vmem:[%s10146_s22 + $0x54] sm:$0xf]  ;;  %v403_v50 = vld [vmem:[%s10146_s22 + $0x58] sm:$0xf] }
  0x54   : > { %13656 = vst [vmem:[#allocation9_spill] sm:$0xff] %v10456_v7  ;;  %v824_v18 = vshrl.u32 %v10456_v7, 16  ;;  %v826_v21 = vshll.u32 %v10456_v7, 16  ;;  %v10488_v49 = vcombine.low %v8052_v20, %v8053_v39  ;;  %v8105_v7 = vld [vmem:[%s10146_s22 + $0x9c] sm:$0xe] }
  0x55   : > { %1550 = vrot.lane.b32.xlu0 %v1375_v17, %s13647_s27  ;;  %2126 = vrot.lane.b32.xlu1 %v1951_v38, %s10020_s28  ;;  %v10417_v17 = vld [vmem:[%s10146_s22 + $0x50] ss:$0 sps:$4 sm:$0x11]   ;;  %v10432_v38 = vsel %vm1057_vm0, %v2216_v59, %v2217_v26  ;;  %v822_v58 = vsel %vm750_vm1, %v817_v8, %v821_v34  ;;  %v1389_v59 = vshrl.u32 %v10414_v27, 16  ;;  %v1963_v56 = vsel %vm750_vm1, %v1958_v41, %v1962_v42 }
  0x56   : > { %v1396_v48 = vshll.u32 %v10417_v17, 16  ;;  %v1650_v2 = vrot.slane %v10417_v17, 1  ;;  %v1077_v26 = vrot.slane %v10444_v62, 1  ;;  %v1075_v8 = vsel %vm1057_vm0, %v1073_v45, %v1074_v51  ;;  %v10486_v42 = vld [vmem:[%s10146_s22 + $0x68] ss:$0 sps:$4 sm:$0x11]  }
  0x57   : > { %v1394_v34 = vor.u32 %v1393_v5, %v1389_v59  ;;  %v8262_v45 = vcombine.low %v8100_v30, %v8053_v39  ;;  %v2226_v51 = vrot.slane %v10429_v37, 1  ;;  %v7982_v5 = vld [vmem:[%s10146_s22 + $0x60] sm:$0xf] }
  0x58   : > { %v1398_v43 = vrot.slane %v1396_v48, 1  ;;  %v1076_v48 = vrot.slane %v8154_v1, 1 }
  0x59   : > { %1820 = vrot.lane.b32.xlu0 %v10317_v35, %s13649_s30  ;;  %1120 = vrot.lane.b32.xlu1 %v1072_v52, %s10015_s29  ;;  %v8051_v35 = vld [vmem:[%s10146_s22 + $0x58] sm:$0xf]  ;;  %v2228_v3 = vrot.slane %v8262_v45, 1 }
  0x5a   : > { %v10425_v33 = vcombine.low %v8050_v19, %v8051_v35  ;;  %v8261_v54 = vcombine.low %v8099_v36, %v8051_v35  ;;  %v831_v19 = vshll.u32 %v10444_v62, 16  ;;  %v10471_v35 = vld [vmem:[%s10146_s22 + $0x5c] ss:$0 sps:$4 sm:$0x11]   ;;  %v1651_v36 = vsel %vm1057_vm0, %v1649_v63, %v1650_v2 }
  0x5b   : > { %v1399_v59 = vsel %vm750_vm1, %v1394_v34, %v1398_v43  ;;  %v8029_v43 = vld [vmem:[%s10146_s22 + $0x60] sm:$0xe] }
  0x5c   : > { %v1967_v52 = vshll.u32 %v10425_v33, 16  ;;  %v2225_v10 = vrot.slane %v8261_v54, 1  ;;  %v1965_v12 = vshrl.u32 %v10425_v33, 16  ;;  %v833_v22 = vrot.slane %v831_v19, 1  ;;  %v8054_v19 = vld [vmem:[%s10146_s22 + $0x6c] sm:$0xf] }
  0x5d   : > { %975 = vrot.lane.b32.xlu0 %v810_v13, %s10019_s12  ;;  %1552 = vrot.lane.b32.xlu1 %v1387_v14, %s13647_s27  ;;  %v8028_v13 = vld [vmem:[%s10146_s22 + $0x54] sm:$0xe]  ;;  %v828_v54 = vrot.slane %v826_v21, 1 }
  0x5e   : > { %v1969_v11 = vrot.slane %v1967_v52, 1  ;;  %v1408_v52 = vshll.u32 %v10471_v35, 16  ;;  %v10515_v63 = vsel %vm1057_vm0, %v2225_v10, %v2226_v51  ;;  %v1977_v10 = vshrl.u32 %v10488_v49, 16 }
  0x5f   : > { %13659 = vst [vmem:[#allocation12_spill] sm:$0xff] %v10515_v63 }
  0x60   : > { %v1970_v46 = vor.u32 %v1969_v11, %v1965_v12  ;;  %v1410_v2 = vrot.slane %v1408_v52, 1  ;;  %v7983_v12 = vld [vmem:[%s10146_s22 + $0x64] sm:$0xf]  ;;  %v829_v11 = vor.u32 %v828_v54, %v824_v18 }
  0x61   : > { %1246 = vrot.lane.b32.xlu0 %v10345_v4, %s10014_s21  ;;  %1822 = vrot.lane.b32.xlu1 %v8224_v47, %s13649_s30  ;;  %v1972_v4 = vshll.u32 %v10429_v37, 16  ;;  %v7981_v47 = vld [vmem:[%s10146_s22 + $0x58] sm:$0xf]  ;;  %v10505_v37 = vcombine.low %v402_v53, %v403_v50  ;;  %v10551_v54 = vld [vmem:[%s10146_s22 + $0x64] sm:$0xf] }
  0x62   : > { %v10466_v14 = vcombine.low %v7980_v60, %v7981_v47  ;;  %v8208_v17 = vcombine.low %v8028_v13, %v7981_v47  ;;  %v1979_v60 = vshll.u32 %v10488_v49, 16  ;;  %v10511_v47 = vld [vmem:[%s10146_s22 + $0x5c] ss:$0 sps:$4 sm:$0x11]   ;;  %v1078_v13 = vsel %vm1057_vm0, %v1076_v48, %v1077_v26 }
  0x63   : > { %v1974_v15 = vrot.slane %v1972_v4, 1  ;;  %13658 = vst [vmem:[#allocation11_spill] sm:$0xff] %v10505_v37  ;;  %v838_v20 = vshll.u32 %v10505_v37, 16  ;;  %v843_v26 = vshll.u32 %v10511_v47, 16  ;;  %v1080_v30 = vrot.slane %v10511_v47, 1 }
  0x64   : > { %v1403_v41 = vshll.u32 %v10466_v14, 16  ;;  %v1401_v62 = vshrl.u32 %v10466_v14, 16  ;;  %v10499_v57 = vrot.slane %v8208_v17, 1  ;;  %v1981_v18 = vrot.slane %v1979_v60, 1  ;;  %v7985_v47 = vld [vmem:[%s10146_s22 + $0x70] sm:$0xf] }
  0x65   : > { %1696 = vrot.lane.b32.xlu0 %v1648_v24, %s10017_s19  ;;  %977 = vrot.lane.b32.xlu1 %v822_v58, %s10019_s12  ;;  %v1653_v24 = vrot.slane %v10471_v35, 1  ;;  %v1975_v4 = vsel %vm750_vm1, %v1970_v46, %v1974_v15  ;;  %v8055_v15 = vld [vmem:[%s10146_s22 + $0x70] sm:$0xf]  ;;  %v10530_v17 = vcombine.low %v7982_v5, %v7983_v12  ;;  %v836_v34 = vshrl.u32 %v10505_v37, 16  ;;  %v8062_v37 = vld [vmem:[%s10146_s22 + $0x9c] sm:$0xf] }
  0x66   : > { %v1405_v58 = vrot.slane %v1403_v41, 1  ;;  %v10538_v41 = vcombine.low %v8054_v19, %v8055_v15  ;;  %v10541_v46 = vld [vmem:[%s10146_s22 + $0x74] ss:$0 sps:$4 sm:$0x11]   ;;  %v840_v48 = vrot.slane %v838_v20, 1  ;;  %v834_v52 = vsel %vm750_vm1, %v829_v11, %v833_v22 }
  0x67   : > { %v1415_v51 = vshll.u32 %v10530_v17, 16  ;;  %v7984_v22 = vld [vmem:[%s10146_s22 + $0x6c] sm:$0xf]  ;;  %v450_v19 = vld [vmem:[%s10146_s22 + $0x60] sm:$0xe] }
  0x68   : > { %v1406_v1 = vor.u32 %v1405_v58, %v1401_v62  ;;  %v2229_v62 = vrot.slane %v10486_v42, 1  ;;  %v845_v58 = vrot.slane %v843_v26, 1  ;;  %v1991_v60 = vshll.u32 %v10538_v41, 16  ;;  %v10582_v26 = vld [vmem:[%s10146_s22 + $0x74] ss:$0 sps:$4 sm:$0x11]  }
  0x69   : > { %2128 = vrot.lane.b32.xlu0 %v1963_v56, %s10020_s28  ;;  %1248 = vrot.lane.b32.xlu1 %v10414_v27, %s10014_s21  ;;  %v10495_v27 = vsel %vm1057_vm0, %v10423_v32, %v2223_v28  ;;  %v1984_v32 = vshll.u32 %v10486_v42, 16  ;;  %v449_v56 = vld [vmem:[%s10146_s22 + $0x54] sm:$0xe]  ;;  %v10534_v28 = vld [vmem:[%s10146_s22 + $0x68] ss:$0 sps:$4 sm:$0x11]  }
  0x6a   : > { %13657 = vst [vmem:[#allocation10_spill] sm:$0xff] %v10495_v27  ;;  %v8155_v39 = vcombine.low %v449_v56, %v403_v50  ;;  %v404_v50 = vld [vmem:[%s10146_s22 + $0x60] sm:$0xf]  ;;  %v1411_v45 = vsel %vm750_vm1, %v1406_v1, %v1410_v2  ;;  %v10560_v56 = vsel %vm1057_vm0, %v2228_v3, %v2229_v62  ;;  %v1656_v42 = vrot.slane %v10534_v28, 1  ;;  %v407_v62 = vld [vmem:[%s10146_s22 + $0x70] sm:$0xf] }
  0x6b   : > { %v10527_v21 = vrot.slane %v1984_v32, 1  ;;  %v1420_v32 = vshll.u32 %v10534_v28, 16  ;;  %13660 = vst [vmem:[#allocation13_spill] sm:$0xff] %v10560_v56  ;;  %v1996_v2 = vshll.u32 %v10541_v46, 16  ;;  %v10567_v5 = vcombine.low %v404_v50, %v10551_v54 }
  0x6c   : > { %v1079_v53 = vrot.slane %v8155_v39, 1  ;;  %v1417_v11 = vrot.slane %v1415_v51, 1  ;;  %v1989_v1 = vshrl.u32 %v10538_v41, 16  ;;  %v1993_v20 = vrot.slane %v1991_v60, 1  ;;  %v406_v51 = vld [vmem:[%s10146_s22 + $0x6c] sm:$0xf] }
  0x6d   : > { %1122 = vrot.lane.b32.xlu0 %v1075_v8, %s10015_s29  ;;  %1698 = vrot.lane.b32.xlu1 %v1651_v36, %s10017_s19  ;;  %v8101_v8 = vld [vmem:[%s10146_s22 + $0x6c] sm:$0xe]  ;;  %v8209_v36 = vcombine.low %v8029_v43, %v7983_v12  ;;  %13661 = vst [vmem:[#allocation14_spill] sm:$0xff] %v10567_v5  ;;  %v841_v12 = vor.u32 %v840_v48, %v836_v34  ;;  %v10572_v3 = vrot.slane %v1420_v32, 1  ;;  %v10589_v34 = vrot.slane %v1996_v2, 1 }
  0x6e   : > { %v10579_v39 = vcombine.low %v7984_v22, %v7985_v47  ;;  %v8030_v48 = vld [vmem:[%s10146_s22 + $0x6c] sm:$0xe]  ;;  %v1654_v50 = vsel %vm1057_vm0, %v10499_v57, %v1653_v24  ;;  %v1432_v57 = vshll.u32 %v10582_v26, 16  ;;  %v8102_v24 = vld [vmem:[%s10146_s22 + $0x78] sm:$0xe]  ;;  %v1994_v22 = vor.u32 %v1993_v20, %v1989_v1 }
  0x6f   : > { %v8210_v32 = vcombine.low %v8030_v48, %v7985_v47  ;;  %v10620_v60 = vld [vmem:[%s10146_s22 + $0x74] ss:$0 sps:$4 sm:$0x11]   ;;  %v848_v55 = vshrl.u32 %v10567_v5, 16  ;;  %v7986_v2 = vld [vmem:[%s10146_s22 + $0x78] sm:$0xf] }
  0x70   : > { %v1427_v35 = vshll.u32 %v10579_v39, 16  ;;  %v451_v1 = vld [vmem:[%s10146_s22 + $0x6c] sm:$0xe]  ;;  %v2232_v20 = vrot.slane %v10541_v46, 1  ;;  %v13672_v63 = vrot.slane %v10620_v60, 1 }
  0x71   : > { %1554 = vrot.lane.b32.xlu0 %v1399_v59, %s13647_s27  ;;  %2130 = vrot.lane.b32.xlu1 %v1975_v4, %s10020_s28  ;;  %v8263_v59 = vcombine.low %v8101_v8, %v8055_v15  ;;  %v1655_v4 = vrot.slane %v8209_v36, 1  ;;  %v8094_v15 = vld [vmem:[%s10146_s22 + $0x18] sm:$0xe]  ;;  %v1982_v8 = vor.u32 %v1981_v18, %v1977_v10  ;;  %v850_v36 = vshll.u32 %v10567_v5, 16 }
  0x72   : > { %v8256_v28 = vcombine.low %v8094_v15, %v10162_v16  ;;  %v846_v16 = vsel %vm750_vm1, %v841_v12, %v845_v58  ;;  %v1081_v10 = vsel %vm1057_vm0, %v1079_v53, %v1080_v30  ;;  %v8156_v18 = vcombine.low %v450_v19, %v10551_v54  ;;  %v7987_v12 = vld [vmem:[%s10146_s22 + $0x7c] sm:$0xf]  ;;  %v10826_v56 = vld [vmem:[%s10146_s22 + $0xa4] ss:$0 sps:$4 sm:$0x11]  }
  0x73   : > { %v10574_v43 = vrot.slane %v8263_v59, 1  ;;  %v1987_v30 = vsel %vm750_vm1, %v1982_v8, %v10527_v21  ;;  %v1657_v54 = vsel %vm1057_vm0, %v1655_v4, %v1656_v42  ;;  %v10617_v59 = vld [vmem:[%s10146_s22 + $0x80] ss:$0 sps:$4 sm:$0x11]   ;;  %v852_v21 = vrot.slane %v850_v36, 1  ;;  %13671 = vst [vmem:[#allocation22_spill] sm:$0xff] %v10826_v56 }
  0x74   : > { %v1082_v4 = vrot.slane %v8156_v18, 1  ;;  %v10634_v19 = vrot.slane %v8210_v32, 1  ;;  %v1434_v8 = vrot.slane %v1432_v57, 1  ;;  %v8031_v36 = vld [vmem:[%s10146_s22 + $0x78] sm:$0xe]  ;;  %v10643_v48 = vcombine.low %v7986_v2, %v7987_v12 }
  0x75   : > { %1824 = vrot.lane.b32.xlu0 %v10425_v33, %s13649_s30  ;;  %1124 = vrot.lane.b32.xlu1 %v1078_v13, %s10015_s29  ;;  %v1413_v33 = vshrl.u32 %v10530_v17, 16  ;;  %v10570_v13 = vld [vmem:[%s10146_s22 + $0x68] ss:$0 sps:$4 sm:$0x11]   ;;  %v408_v32 = vld [vmem:[%s10146_s22 + $0x78] sm:$0xf] }
  0x76   : > { %v1083_v42 = vrot.slane %v10570_v13, 1 }
  0x77   : > { %v1418_v53 = vor.u32 %v1417_v11, %v1413_v33  ;;  %v1425_v11 = vshrl.u32 %v10579_v39, 16 }
  0x79   : > { %979 = vrot.lane.b32.xlu0 %v834_v52, %s10019_s12  ;;  %1556 = vrot.lane.b32.xlu1 %v1411_v45, %s13647_s27  ;;  %v855_v52 = vshll.u32 %v10570_v13, 16  ;;  %v8057_v45 = vld [vmem:[%s10146_s22 + $0x7c] sm:$0xf]  ;;  %v1423_v57 = vsel %vm750_vm1, %v1418_v53, %v10572_v3  ;;  %v10678_v3 = vld [vmem:[%s10146_s22 + $0x8c] ss:$0 sps:$4 sm:$0x11]  }
  0x7a   : > { %v8264_v15 = vcombine.low %v8102_v24, %v8057_v45  ;;  %v1439_v24 = vshll.u32 %v10643_v48, 16  ;;  %v2238_v44 = vrot.slane %v10678_v3, 1 }
  0x7b   : > { %v10630_v33 = vrot.slane %v855_v52, 1  ;;  %v867_v52 = vshll.u32 %v10620_v60, 16 }
  0x7c   : > { %v2234_v18 = vrot.slane %v8264_v15, 1  ;;  %v8103_v15 = vld [vmem:[%s10146_s22 + $0x84] sm:$0xe] }
  0x7d   : > { %1250 = vrot.lane.b32.xlu0 %v10466_v14, %s10014_s21  ;;  %1826 = vrot.lane.b32.xlu1 %v10488_v49, %s13649_s30  ;;  %v8056_v14 = vld [vmem:[%s10146_s22 + $0x78] sm:$0xf]  ;;  %v2210_v49 = vrot.slane %v8256_v28, 1  ;;  %v1429_v28 = vrot.slane %v1427_v35, 1 }
  0x7e   : > { %v10623_v47 = vcombine.low %v8056_v14, %v8057_v45  ;;  %v8157_v14 = vcombine.low %v451_v1, %v407_v62  ;;  %v8059_v45 = vld [vmem:[%s10146_s22 + $0x88] sm:$0xf]  ;;  %v10656_v35 = vld [vmem:[%s10146_s22 + $0x80] ss:$0 sps:$4 sm:$0x11]   ;;  %v2020_v1 = vshll.u32 %v10678_v3, 16 }
  0x7f   : > { %v2212_v58 = vsel %vm1057_vm0, %v2210_v49, %v2211_v29  ;;  %v10625_v29 = vcombine.low %v406_v51, %v407_v62  ;;  %v10653_v49 = vsel %vm1057_vm0, %v10574_v43, %v2232_v20  ;;  %v8211_v51 = vcombine.low %v8031_v36, %v7987_v12  ;;  %v8060_v43 = vld [vmem:[%s10146_s22 + $0x90] sm:$0xf]  ;;  %v10874_v3 = vld [vmem:[%s10146_s22 + $0x98] ss:$0 sps:$4 sm:$0x11]  }
  0x80   : > { %8283 = vmatprep.mubr.msk.bf16.mxu0 %vm2264_vm2, %v2212_v58  ;;  %13663 = vst [vmem:[#allocation16_spill] sm:$0xff] %v10653_v49  ;;  %v1999_v62 = vsel %vm750_vm1, %v1994_v22, %v10589_v34  ;;  %v10668_v58 = vld [vmem:[%s10146_s22 + $0x7c] sm:$0xf]  ;;  %v10682_v34 = vrot.slane %v8157_v14, 1  ;;  %v1444_v20 = vshll.u32 %v10656_v35, 16  ;;  %v8265_v0 = vcombine.low %v8103_v15, %v8059_v45 }
  0x81   : > { %1700 = vrot.lane.b32.xlu0 %v1654_v50, %s10017_s19  ;;  %981 = vrot.lane.b32.xlu1 %v846_v16, %s10019_s12  ;;  %13662 = vst [vmem:[#allocation15_spill] sm:$0xff] %v10625_v29  ;;  %v2003_v50 = vshll.u32 %v10623_v47, 16  ;;  %v2008_v16 = vshll.u32 %v10617_v59, 16  ;;  %v862_v46 = vshll.u32 %v10625_v29, 16  ;;  %v10688_v36 = vrot.slane %v8211_v51, 1 }
  0x82   : > { %v10698_v14 = vld [vmem:[%s10146_s22 + $0x80] ss:$0 sps:$4 sm:$0x11]   ;;  %v7989_v22 = vld [vmem:[%s10146_s22 + $0x88] sm:$0xf]  ;;  %v13669_v5 = vshrl.u32 %v10623_v47, 16 }
  0x83   : > { %v10672_v2 = vrot.slane %v2008_v16, 1  ;;  %v864_v53 = vrot.slane %v862_v46, 1  ;;  %v853_v16 = vor.u32 %v852_v21, %v848_v55  ;;  %v1430_v46 = vor.u32 %v1429_v28, %v1425_v11  ;;  %v10723_v15 = vld [vmem:[%s10146_s22 + $0x8c] ss:$0 sps:$4 sm:$0x11]  }
  0x84   : > { %v10708_v55 = vrot.slane %v1444_v20, 1  ;;  %v2235_v20 = vrot.slane %v10617_v59, 1  ;;  %v10726_v11 = vrot.slane %v8265_v0, 1  ;;  %v879_v21 = vshll.u32 %v10698_v14, 16 }
  0x85   : > { %2132 = vrot.lane.b32.xlu0 %v1987_v30, %s10020_s28  ;;  %1252 = vrot.lane.b32.xlu1 %v10530_v17, %s10014_s21  ;;  %v8058_v17 = vld [vmem:[%s10146_s22 + $0x84] sm:$0xf]  ;;  %v10670_v30 = vrot.slane %v2003_v50, 1  ;;  %v10691_v50 = vcombine.low %v408_v32, %v10668_v58  ;;  %v10815_v49 = vld [vmem:[%s10146_s22 + $0x98] ss:$0 sps:$4 sm:$0x11]  }
  0x86   : > { %v10675_v12 = vcombine.low %v8058_v17, %v8059_v45  ;;  %v1084_v17 = vsel %vm1057_vm0, %v1082_v4, %v1083_v42  ;;  %v7988_v32 = vld [vmem:[%s10146_s22 + $0x84] sm:$0xf]  ;;  %v858_v42 = vsel %vm750_vm1, %v853_v16, %v10630_v33  ;;  %v1435_v45 = vsel %vm750_vm1, %v1430_v46, %v1434_v8  ;;  %v8104_v46 = vld [vmem:[%s10146_s22 + $0x90] sm:$0xe] }
  0x87   : > { %13664 = vst [vmem:[#allocation17_spill] sm:$0xff] %v10691_v50  ;;  %v874_v28 = vshll.u32 %v10691_v50, 16  ;;  %v8032_v4 = vld [vmem:[%s10146_s22 + $0x84] sm:$0xe]  ;;  %v10736_v16 = vrot.slane %v2020_v1, 1 }
  0x88   : > { %v2015_v51 = vshll.u32 %v10675_v12, 16 }
  0x89   : > { %1126 = vrot.lane.b32.xlu0 %v1081_v10, %s10015_s29  ;;  %1702 = vrot.lane.b32.xlu1 %v1657_v54, %s10017_s19  ;;  %v860_v10 = vshrl.u32 %v10625_v29, 16  ;;  %v10680_v54 = vrot.slane %v867_v52, 1  ;;  %v10695_v52 = vrot.slane %v1439_v24, 1  ;;  %v10720_v24 = vcombine.low %v7988_v32, %v7989_v22  ;;  %v7991_v29 = vld [vmem:[%s10146_s22 + $0x94] sm:$0xf] }
  0x8a   : > { %v10734_v8 = vrot.slane %v2015_v51, 1  ;;  %v10750_v1 = vrot.slane %v874_v28, 1  ;;  %v10757_v51 = vrot.slane %v879_v21, 1  ;;  %v13667_v32 = vrot.slane %v10582_v26, 1 }
  0x8b   : > { %v865_v59 = vor.u32 %v864_v53, %v860_v10  ;;  %v1456_v10 = vshll.u32 %v10723_v15, 16  ;;  %v10755_v53 = vld [vmem:[%s10146_s22 + $0x98] ss:$0 sps:$4 sm:$0x11]  }
  0x8c   : > { %13666 = vst [vmem:[#allocation19_spill] sm:$0xff] %v10755_v53  ;;  %v1660_v0 = vsel %vm1057_vm0, %v10634_v19, %v13667_v32  ;;  %v10788_v19 = vld [vmem:[%s10146_s22 + $0xa0] sm:$0xf] }
  0x8d   : > { %1558 = vrot.lane.b32.xlu0 %v1423_v57, %s13647_s27  ;;  %2134 = vrot.lane.b32.xlu1 %v1999_v62, %s10020_s28  ;;  %v452_v57 = vld [vmem:[%s10146_s22 + $0x78] sm:$0xe]  ;;  %v8061_v62 = vld [vmem:[%s10146_s22 + $0x94] sm:$0xf] }
  0x8e   : > { %v10730_v13 = vcombine.low %v8060_v43, %v8061_v62  ;;  %v410_v43 = vld [vmem:[%s10146_s22 + $0x84] sm:$0xf] }
  0x91   : > { %1828 = vrot.lane.b32.xlu0 %v10538_v41, %s13649_s30  ;;  %1128 = vrot.lane.b32.xlu1 %v1084_v17, %s10015_s29  ;;  %v8158_v41 = vcombine.low %v452_v57, %v10668_v58  ;;  %v10740_v17 = vsel %vm1057_vm0, %v2234_v18, %v2235_v20  ;;  %v8212_v58 = vcombine.low %v8032_v4, %v7989_v22  ;;  %v10746_v57 = vld [vmem:[%s10146_s22 + $0x88] sm:$0xf]  ;;  %v1451_v18 = vshll.u32 %v10720_v24, 16  ;;  %v10763_v20 = vld [vmem:[%s10146_s22 + $0x8c] ss:$0 sps:$4 sm:$0x11]  }
  0x92   : > { %13665 = vst [vmem:[#allocation18_spill] sm:$0xff] %v10740_v17  ;;  %v2027_v4 = vshll.u32 %v10730_v13, 16  ;;  %v10774_v21 = vcombine.low %v410_v43, %v10746_v57 }
  0x93   : > { %v10732_v33 = vpop.permute.xlu1 %1238  ;;  %v10759_v22 = vrot.slane %v8158_v41, 1  ;;  %v7990_v41 = vld [vmem:[%s10146_s22 + $0x90] sm:$0xf]  ;;  %v10784_v26 = vrot.slane %v8212_v58, 1  ;;  %v10794_v32 = vrot.slane %v1451_v18, 1 }
  0x94   : > { %13668 = vst [vmem:[#allocation20_spill] sm:$0xff] %v10774_v21  ;;  %v10804_v43 = vrot.slane %v2027_v4, 1  ;;  %v10807_v17 = vcombine.low %v7990_v41, %v7991_v29  ;;  %v891_v4 = vshll.u32 %v10763_v20, 16 }
  0x95   : > { %983 = vrot.lane.b32.xlu0 %v858_v42, %s10019_s12  ;;  %1560 = vrot.lane.b32.xlu1 %v1435_v45, %s13647_s27  ;;  %v8266_v42 = vcombine.low %v8104_v46, %v8061_v62  ;;  %v2006_v62 = vor.u32 %v10670_v30, %v13669_v5  ;;  %v870_v46 = vsel %vm750_vm1, %v865_v59, %v10680_v54  ;;  %v10796_v5 = vrot.slane %v1456_v10, 1  ;;  %v453_v59 = vld [vmem:[%s10146_s22 + $0x84] sm:$0xe] }
  0x96   : > { %v2032_v54 = vshll.u32 %v10755_v53, 16  ;;  %v886_v30 = vshll.u32 %v10774_v21, 16  ;;  %v8159_v41 = vcombine.low %v453_v59, %v10746_v57  ;;  %v1087_v57 = vsel %vm1057_vm0, %v10682_v34, %v13672_v63 }
  0x97   : > { %v10765_v45 = vpop.permute.xlu0 %1112  ;;  %v10767_v28 = vpop.permute.xlu1 %1814  ;;  %v10801_v58 = vrot.slane %v8266_v42, 1  ;;  %v10818_v42 = vcombine.low %v8062_v37, %v10788_v19  ;;  %v13673_v59 = vshrl.u32 %v10643_v48, 16  ;;  %v1468_v63 = vshll.u32 %v10815_v49, 16 }
  0x98   : > { %v10830_v37 = vrot.slane %v2032_v54, 1  ;;  %v10844_v54 = vld [vmem:[%s10146_s22 + $0x94] sm:$0xf]  ;;  %v10847_v60 = vrot.slane %v886_v30, 1  ;;  %v8267_v34 = vcombine.low %v8105_v7, %v10788_v19  ;;  %v13674_v30 = vrot.slane %v10656_v35, 1 }
  0x99   : > { %1254 = vrot.lane.b32.xlu0 %v10579_v39, %s10014_s21  ;;  %1830 = vrot.lane.b32.xlu1 %v10623_v47, %s13649_s30  ;;  %13670 = vst [vmem:[#allocation21_spill] sm:$0xff] %v10801_v58  ;;  %v8033_v47 = vld [vmem:[%s10146_s22 + $0x90] sm:$0xe]  ;;  %v2011_v39 = vsel %vm750_vm1, %v2006_v62, %v10672_v2  ;;  %v1442_v61 = vor.u32 %v10695_v52, %v13673_v59  ;;  %v10852_v52 = vrot.slane %v891_v4, 1  ;;  %v2044_v59 = vshll.u32 %v10826_v56, 16 }
  0x9a   : > { %v8213_v62 = vcombine.low %v8033_v47, %v7991_v29  ;;  %v2039_v29 = vshll.u32 %v10818_v42, 16  ;;  %v10854_v47 = vrot.slane %v8159_v41, 1  ;;  %v1663_v58 = vsel %vm1057_vm0, %v10688_v36, %v13674_v30  ;;  %v7992_v30 = vld [vmem:[%s10146_s22 + $0x9c] sm:$0xf] }
  0x9b   : > { %v10809_v18 = vpop.permute.xlu0 %1688  ;;  %v10811_v10 = vpop.permute.xlu1 %1240  ;;  %v13675_v7 = vshrl.u32 %v10675_v12, 16  ;;  %v10890_v56 = vrot.slane %v1468_v63, 1  ;;  %v1447_v53 = vsel %vm750_vm1, %v1442_v61, %v10708_v55  ;;  %v8064_v63 = vld [vmem:[%s10146_s22 + $0xa8] sm:$0xf]  ;;  %v8034_v61 = vld [vmem:[%s10146_s22 + $0x9c] sm:$0xe] }
  0x9c   : > { %v10868_v4 = vrot.slane %v8213_v62, 1  ;;  %v10888_v62 = vsel %vm1057_vm0, %v10726_v11, %v2238_v44  ;;  %v10902_v44 = vrot.slane %v2044_v59, 1 }
  0x9d   : > { %1704 = vrot.lane.b32.xlu0 %v1660_v0, %s10017_s19  ;;  %985 = vrot.lane.b32.xlu1 %v870_v46, %s10019_s12  ;;  %v1463_v0 = vshll.u32 %v10807_v17, 16  ;;  %v412_v46 = vld [vmem:[%s10146_s22 + $0x90] sm:$0xf]  ;;  %v2018_v19 = vor.u32 %v10734_v8, %v13675_v7  ;;  %v10884_v8 = vld [vmem:[%s10146_s22 + $0xa0] sm:$0xf]  ;;  %13678 = vst [vmem:[#allocation24_spill] sm:$0xff] %v10888_v62 }
  0x9e   : > { %v10871_v41 = vcombine.low %v412_v46, %v10844_v54  ;;  %v10916_v55 = vcombine.low %v7992_v30, %v10884_v8  ;;  %v13680_v62 = vshrl.u32 %v10720_v24, 16 }
  0x9f   : > { %v1115_v27 = vpop.permute.xlu0 %1114  ;;  %v1545_v2 = vpop.permute.xlu1 %1544  ;;  %v10879_v35 = vrot.slane %v1463_v0, 1  ;;  %v10895_v0 = vrot.slane %v2039_v29, 1 }
  0xa0   : > { %13676 = vst [vmem:[#allocation23_spill] sm:$0xff] %v10871_v41 }
  0xa1   : > { %2136 = vrot.lane.b32.xlu0 %v2011_v39, %s10020_s28  ;;  %1256 = vrot.lane.b32.xlu1 %v10643_v48, %s10014_s21  ;;  %v13677_v39 = vshrl.u32 %v10691_v50, 16  ;;  %v10892_v50 = vrot.slane %v8267_v34, 1  ;;  %v8065_v34 = vld [vmem:[%s10146_s22 + $0xac] sm:$0xf] }
  0xa3   : > { %v877_v48 = vor.u32 %v10750_v1, %v13677_v39  ;;  %v968_v46 = vpop.permute.xlu0 %967  ;;  %v970_v7 = vpop.permute.xlu1 %969  ;;  %v454_v39 = vld [vmem:[%s10146_s22 + $0x90] sm:$0xe] }
  0xa4   : > { %v2266_v36 = vsel %vm2264_vm2, %v10169_v23, %v968_v46  ;;  %v2268_v29 = vsel %vm2264_vm2, %v10194_v40, %v970_v7  ;;  %v898_v23 = vshll.u32 %v10871_v41, 16  ;;  %v13679_v40 = vrot.slane %v10698_v14, 1  ;;  %v8106_v46 = vld [vmem:[%s10146_s22 + $0xa8] sm:$0xe] }
  0xa5   : > { %v2303_v1 = vsel %vm2301_vm3, %v2266_v36, %v10765_v45  ;;  %1130 = vrot.lane.b32.xlu0 %v1087_v57, %s10015_s29  ;;  %1706 = vrot.lane.b32.xlu1 %v1663_v58, %s10017_s19  ;;  %v2023_v45 = vsel %vm750_vm1, %v2018_v19, %v10736_v16  ;;  %v903_v58 = vshll.u32 %v10874_v3, 16  ;;  %v10928_v36 = vld [vmem:[%s10146_s22 + $0xa4] ss:$0 sps:$4 sm:$0x11]   ;;  %v8160_v16 = vcombine.low %v454_v39, %v10844_v54  ;;  %v10939_v19 = vld [vmem:[%s10146_s22 + $0xa0] sm:$0xf] }
  0xa6   : > { %v2340_v59 = vsel %vm2338_vm4, %v2303_v1, %v10732_v33  ;;  %v1090_v57 = vsel %vm1057_vm0, %v10759_v22, %v13679_v40  ;;  %v882_v33 = vsel %vm750_vm1, %v877_v48, %v10757_v51  ;;  %v10935_v14 = vcombine.low %v8064_v63, %v8065_v34  ;;  %v414_v22 = vld [vmem:[%s10146_s22 + $0x9c] sm:$0xf]  ;;  %v10949_v51 = vld [vmem:[%s10146_s22 + $0xb0] ss:$0 sps:$4 sm:$0x11]  }
  0xa7   : > { %v2121_v30 = vpop.permute.xlu0 %2120  ;;  %v2377_v7 = vsel %vm2375_vm5, %v2340_v59, %v1545_v2  ;;  %v1691_v11 = vpop.permute.xlu1 %1690  ;;  %v2305_v1 = vsel %vm2301_vm3, %v2268_v29, %v1115_v27  ;;  %v1454_v2 = vor.u32 %v10794_v32, %v13680_v62  ;;  %v7994_v54 = vld [vmem:[%s10146_s22 + $0xa8] sm:$0xf]  ;;  %v10956_v27 = vrot.slane %v898_v23, 1  ;;  %v10961_v32 = vld [vmem:[%s10146_s22 + $0xac] sm:$0xf] }
  0xa8   : > { %v2414_v40 = vsel %vm2412_vm6, %v2377_v7, %v10809_v18  ;;  %v1475_v18 = vshll.u32 %v10916_v55, 16  ;;  %v8214_v39 = vcombine.low %v8034_v61, %v10884_v8  ;;  %v1480_v63 = vshll.u32 %v10928_v36, 16 }
  0xa9   : > { %1562 = vrot.lane.b32.xlu0 %v1447_v53, %s13647_s27  ;;  %v2451_v48 = vsel %vm2449_vm7, %v2414_v40, %v10767_v28  ;;  %2138 = vrot.lane.b32.xlu1 %v2023_v45, %s10020_s28  ;;  %v8268_v53 = vcombine.low %v8106_v46, %v8065_v34  ;;  %v10966_v29 = vcombine.low %v414_v22, %v10939_v19  ;;  %v10970_v7 = vrot.slane %v903_v58, 1  ;;  %v455_v22 = vld [vmem:[%s10146_s22 + $0x9c] sm:$0xe]  ;;  %v8066_v40 = vld [vmem:[%s10146_s22 + $0xb4] sm:$0xf] }
  0xaa   : > { %v2488_v62 = vsel %vm2486_vm8, %v2451_v48, %v2121_v30  ;;  %v2342_v28 = vsel %vm2338_vm4, %v2305_v1, %v10811_v10  ;;  %v10972_v8 = vrot.slane %v8160_v16, 1  ;;  %v2051_v61 = vshll.u32 %v10935_v14, 16  ;;  %v10976_v30 = vld [vmem:[%s10146_s22 + $0xa4] ss:$0 sps:$4 sm:$0x11]  }
  0xab   : > { %2700 = vmatmul.mubr.bf16.vlgmr.msra.gmra.mrb[0].mxu0 %v2488_v62  ;;  %v1547_v23 = vpop.permute.xlu0 %1546  ;;  %v2123_v45 = vpop.permute.xlu1 %2122  ;;  %13681 = vst [vmem:[#allocation25_spill] sm:$0xff] %v10976_v30  ;;  %v2056_v10 = vshll.u32 %v10949_v51, 16  ;;  %v10985_v58 = vcombine.low %v7994_v54, %v10961_v32  ;;  %v1459_v16 = vsel %vm750_vm1, %v1454_v2, %v10796_v5  ;;  %v10992_v1 = vrot.slane %v1475_v18, 1  ;;  %v10998_v48 = vld [vmem:[%s10146_s22 + $0xb0] ss:$0 sps:$4 sm:$0x11]  }
  0xac   : > { %v2379_v34 = vsel %vm2375_vm5, %v2342_v28, %v1547_v23  ;;  %8284 = vmatprep.mubr.msk.bf16.mxu0 %vm2264_vm2, %v10411_v25  ;;  %v10994_v25 = vrot.slane %v8214_v39, 1  ;;  %v11000_v54 = vrot.slane %v1480_v63, 1  ;;  %v11002_v62 = vrot.slane %v8268_v53, 1  ;;  %v8067_v63 = vld [vmem:[%s10146_s22 + $0xb8] sm:$0xf] }
  0xad   : > { %1832 = vrot.lane.b32.xlu0 %v10675_v12, %s13649_s30  ;;  %1132 = vrot.lane.b32.xlu1 %v1090_v57, %s10015_s29  ;;  %v910_v57 = vshll.u32 %v10966_v29, 16  ;;  %v2416_v5 = vsel %vm2412_vm6, %v2379_v34, %v1691_v11  ;;  %v11007_v39 = vrot.slane %v2051_v61, 1  ;;  %v915_v28 = vshll.u32 %v10976_v30, 16  ;;  %v8035_v12 = vld [vmem:[%s10146_s22 + $0xa8] sm:$0xe] }
  0xae   : > { %v8161_v23 = vcombine.low %v455_v22, %v10939_v19  ;;  %v11014_v46 = vrot.slane %v2056_v10, 1  ;;  %v1487_v59 = vshll.u32 %v10985_v58, 16  ;;  %v1492_v34 = vshll.u32 %v10998_v48, 16  ;;  %v8107_v22 = vld [vmem:[%s10146_s22 + $0xb4] sm:$0xe] }
  0xaf   : > { %v1817_v2 = vpop.permute.xlu0 %1816  ;;  %v1117_v18 = vpop.permute.xlu1 %1116  ;;  %v13683_v10 = vshrl.u32 %v10774_v21, 16  ;;  %v11035_v19 = vrot.slane %v915_v28, 1  ;;  %v8215_v30 = vcombine.low %v8035_v12, %v10961_v32  ;;  %v417_v21 = vld [vmem:[%s10146_s22 + $0xac] sm:$0xf]  ;;  %v8269_v28 = vcombine.low %v8107_v22, %v8067_v63  ;;  %v11073_v22 = vld [vmem:[%s10146_s22 + $0xb8] sm:$0xf] }
  0xb0   : > { %v2453_v53 = vsel %vm2449_vm7, %v2416_v5, %v1817_v2  ;;  %13682 = vst [vmem:[#allocation26_spill] sm:$0xff] %v11014_v46  ;;  %v11028_v2 = vrot.slane %v910_v57, 1  ;;  %v11037_v61 = vrot.slane %v8161_v23, 1  ;;  %v416_v46 = vld [vmem:[%s10146_s22 + $0xa8] sm:$0xf]  ;;  %v11047_v57 = vrot.slane %v1487_v59, 1 }
  0xb1   : > { %987 = vrot.lane.b32.xlu0 %v882_v33, %s10019_s12  ;;  %v2491_v11 = vsel %vm2486_vm8, %v2453_v53, %v2123_v45  ;;  %1564 = vrot.lane.b32.xlu1 %v1459_v16, %s13647_s27  ;;  %v889_v5 = vor.u32 %v10847_v60, %v13683_v10  ;;  %v11030_v33 = vcombine.low %v8066_v40, %v8067_v63  ;;  %v11033_v45 = vld [vmem:[%s10146_s22 + $0xbc] ss:$0 sps:$4 sm:$0x11]   ;;  %v13685_v32 = vrot.slane %v10723_v15, 1 }
  0xb2   : > { %v11060_v59 = vrot.slane %v1492_v34, 1  ;;  %v11063_v23 = vld [vmem:[%s10146_s22 + $0xb0] ss:$0 sps:$4 sm:$0x11]   ;;  %v11069_v63 = vcombine.low %v416_v46, %v417_v21  ;;  %v11076_v10 = vrot.slane %v8215_v30, 1 }
  0xb3   : > { %13684 = vst [vmem:[#allocation27_spill] sm:$0xff] %v11030_v33  ;;  %2708 = vmatmul.mubr.bf16.gmra.mrb[4].mxu0 %v2491_v11  ;;  %v972_v16 = vpop.permute.xlu0 %971  ;;  %v1549_v53 = vpop.permute.xlu1 %1548  ;;  %v1666_v12 = vsel %vm1057_vm0, %v10784_v26, %v13685_v32  ;;  %v2063_v15 = vshll.u32 %v11030_v33, 16  ;;  %v2068_v26 = vshll.u32 %v11033_v45, 16  ;;  %v7996_v11 = vld [vmem:[%s10146_s22 + $0xb4] sm:$0xf]  ;;  %v13691_v33 = vrot.slane %v10763_v20, 1 }
  0xb4   : > { %v2270_v60 = vsel %vm2264_vm2, %v10246_v31, %v972_v16  ;;  %8285 = vmatprep.mubr.msk.bf16.mxu0 %vm2264_vm2, %v10432_v38  ;;  %v13686_v31 = vshrl.u32 %v10730_v13, 16  ;;  %13687 = vst [vmem:[#allocation28_spill] sm:$0xff] %v11060_v59  ;;  %13688 = vst [vmem:[#allocation29_spill] sm:$0xff] %v11076_v10  ;;  %v456_v16 = vld [vmem:[%s10146_s22 + $0xa8] sm:$0xe]  ;;  %v13696_v20 = vrot.slane %v10815_v49, 1 }
  0xb5   : > { %1258 = vrot.lane.b32.xlu0 %v10720_v24, %s10014_s21  ;;  %1834 = vrot.lane.b32.xlu1 %v10730_v13, %s13649_s30  ;;  %v894_v24 = vsel %vm750_vm1, %v889_v5, %v10852_v52  ;;  %v2307_v13 = vsel %vm2301_vm3, %v2270_v60, %v1117_v18  ;;  %v11080_v32 = vld [vmem:[%s10146_s22 + $0xbc] ss:$0 sps:$4 sm:$0x11]   ;;  %v11084_v5 = vrot.slane %v8269_v28, 1  ;;  %v927_v60 = vshll.u32 %v11063_v23, 16 }
  0xb6   : > { %v2030_v38 = vor.u32 %v10804_v43, %v13686_v31  ;;  %v8036_v31 = vld [vmem:[%s10146_s22 + $0xb4] sm:$0xe]  ;;  %v11098_v28 = vld [vmem:[%s10146_s22 + $0xc4] sm:$0xf]  ;;  %v11100_v46 = vrot.slane %v2063_v15, 1  ;;  %v13692_v15 = vshrl.u32 %v10807_v17, 16 }
  0xb7   : > { %v1243_v43 = vpop.permute.xlu0 %1242  ;;  %v1819_v34 = vpop.permute.xlu1 %1818 }
  0xb8   : > { %v2344_v52 = vsel %vm2338_vm4, %v2307_v13, %v1243_v43  ;;  %v2035_v18 = vsel %vm750_vm1, %v2030_v38, %v10830_v37  ;;  %v11094_v13 = vcombine.low %v7996_v11, %v11073_v22  ;;  %v8068_v43 = vld [vmem:[%s10146_s22 + $0xc0] sm:$0xf]  ;;  %13689 = vst [vmem:[#allocation30_spill] sm:$0xff] %v11100_v46  ;;  %v922_v37 = vshll.u32 %v11069_v63, 16  ;;  %v11121_v46 = vld [vmem:[%s10146_s22 + $0xb8] sm:$0xf] }
  0xb9   : > { %1708 = vrot.lane.b32.xlu0 %v1666_v12, %s10017_s19  ;;  %989 = vrot.lane.b32.xlu1 %v894_v24, %s10019_s12  ;;  %v11102_v12 = vrot.slane %v2068_v26, 1  ;;  %v8162_v38 = vcombine.low %v456_v16, %v417_v21  ;;  %v11106_v24 = vld [vmem:[%s10146_s22 + $0xc8] ss:$0 sps:$4 sm:$0x11]   ;;  %v2381_v30 = vsel %vm2375_vm5, %v2344_v52, %v1549_v53  ;;  %v1093_v11 = vsel %vm1057_vm0, %v10854_v47, %v13691_v33  ;;  %v418_v16 = vld [vmem:[%s10146_s22 + $0xb4] sm:$0xf] }
  0xba   : > { %v1466_v26 = vor.u32 %v10879_v35, %v13692_v15  ;;  %v11127_v10 = vcombine.low %v8068_v43, %v11098_v28  ;;  %v11132_v47 = vrot.slane %v927_v60, 1  ;;  %v1499_v35 = vshll.u32 %v11094_v13, 16  ;;  %v7998_v52 = vld [vmem:[%s10146_s22 + $0xc0] sm:$0xf] }
  0xbb   : > { %13690 = vst [vmem:[#allocation31_spill] sm:$0xff] %v11102_v12  ;;  %v1693_v40 = vpop.permute.xlu0 %1692  ;;  %v974_v59 = vpop.permute.xlu1 %973  ;;  %v13693_v12 = vshrl.u32 %v10818_v42, 16  ;;  %v8216_v33 = vcombine.low %v8036_v31, %v11073_v22  ;;  %v11146_v60 = vcombine.low %v418_v16, %v11121_v46  ;;  %v1669_v22 = vsel %vm1057_vm0, %v10868_v4, %v13696_v20 }
  0xbc   : > { %v2418_v53 = vsel %vm2412_vm6, %v2381_v30, %v1693_v40  ;;  %13694 = vst [vmem:[#allocation32_spill] sm:$0xff] %v11132_v47  ;;  %v11138_v40 = vld [vmem:[%s10146_s22 + $0xbc] ss:$0 sps:$4 sm:$0x11]   ;;  %v11140_v30 = vrot.slane %v922_v37, 1  ;;  %v2080_v37 = vshll.u32 %v11106_v24, 16  ;;  %v1471_v16 = vsel %vm750_vm1, %v1466_v26, %v10890_v56 }
  0xbd   : > { %v2042_v21 = vor.u32 %v10895_v0, %v13693_v12  ;;  %2140 = vrot.lane.b32.xlu0 %v2035_v18, %s10020_s28  ;;  %1260 = vrot.lane.b32.xlu1 %v10807_v17, %s10014_s21  ;;  %v1504_v0 = vshll.u32 %v11080_v32, 16  ;;  %13695 = vst [vmem:[#allocation33_spill] sm:$0xff] %v11138_v40  ;;  %v11142_v18 = vrot.slane %v8162_v38, 1  ;;  %v2455_v43 = vsel %vm2449_vm7, %v2418_v53, %v1819_v34  ;;  %v457_v38 = vld [vmem:[%s10146_s22 + $0xb4] sm:$0xe] }
  0xbe   : > { %v2075_v34 = vshll.u32 %v11127_v10, 16  ;;  %v7999_v53 = vld [vmem:[%s10146_s22 + $0xc4] sm:$0xf]  ;;  %v11163_v47 = vld [vmem:[%s10146_s22 + $0xc8] ss:$0 sps:$4 sm:$0x11]  }
  0xbf   : > { %v2125_v12 = vpop.permute.xlu0 %2124  ;;  %v1245_v15 = vpop.permute.xlu1 %1244  ;;  %13697 = vst [vmem:[#allocation34_spill] sm:$0xff] %v11163_v47  ;;  %v11166_v49 = vrot.slane %v1499_v35, 1  ;;  %v11168_v4 = vrot.slane %v1504_v0, 1  ;;  %v11170_v20 = vrot.slane %v8216_v33, 1  ;;  %v2047_v56 = vsel %vm750_vm1, %v2042_v21, %v10902_v44  ;;  %v8037_v0 = vld [vmem:[%s10146_s22 + $0xc0] sm:$0xe] }
  0xc0   : > { %v2494_v17 = vsel %vm2486_vm8, %v2455_v43, %v2125_v12  ;;  %v939_v43 = vshll.u32 %v11138_v40, 16  ;;  %v934_v26 = vshll.u32 %v11146_v60, 16  ;;  %v8163_v35 = vcombine.low %v457_v38, %v11121_v46  ;;  %v8070_v21 = vld [vmem:[%s10146_s22 + $0xcc] sm:$0xf] }
  0xc1   : > { %1134 = vrot.lane.b32.xlu0 %v1093_v11, %s10015_s29  ;;  %2716 = vmatmul.mubr.bf16.gmra.mrb[8].mxu0 %v2494_v17  ;;  %v2272_v33 = vsel %vm2264_vm2, %v10287_v6, %v974_v59  ;;  %v11191_v11 = vld [vmem:[%s10146_s22 + $0xd0] sm:$0xf]  ;;  %v13700_v46 = vshrl.u32 %v10871_v41, 16  ;;  %v11197_v6 = vrot.slane %v2075_v34, 1  ;;  %v1516_v59 = vshll.u32 %v11163_v47, 16  ;;  %v13707_v40 = vld [vmem:[#allocation21_spill] sm:$0xff] }
  0xc2   : > { %1710 = vrot.lane.b32.xlu1 %v1669_v22, %s10017_s19  ;;  %8286 = vmatprep.mubr.msk.bf16.mxu0 %vm2264_vm2, %v10460_v9  ;;  %v11184_v22 = vrot.slane %v2080_v37, 1  ;;  %v11187_v9 = vcombine.low %v7998_v52, %v7999_v53  ;;  %v420_v37 = vld [vmem:[%s10146_s22 + $0xc0] sm:$0xf]  ;;  %v13701_v44 = vrot.slane %v10874_v3, 1  ;;  %v8217_v41 = vcombine.low %v8037_v0, %v7999_v53  ;;  %v421_v34 = vld [vmem:[%s10146_s22 + $0xc4] sm:$0xf] }
  0xc3   : > { %v1119_v17 = vpop.permute.xlu0 %1118  ;;  %v1695_v12 = vpop.permute.xlu1 %1694  ;;  %v901_v38 = vor.u32 %v10956_v27, %v13700_v46  ;;  %v11212_v27 = vld [vmem:[%s10146_s22 + $0xd4] ss:$0 sps:$4 sm:$0x11]   ;;  %v11218_v3 = vrot.slane %v8163_v35, 1  ;;  %v11229_v35 = vrot.slane %v1516_v59, 1  ;;  %v11231_v46 = vcombine.low %v420_v37, %v421_v34 }
  0xc4   : > { %13698 = vst [vmem:[#allocation35_spill] sm:$0xff] %v11184_v22  ;;  %13699 = vst [vmem:[#allocation36_spill] sm:$0xff] %v11187_v9  ;;  %v2309_v31 = vsel %vm2301_vm3, %v2272_v33, %v1119_v17  ;;  %v1096_v52 = vsel %vm1057_vm0, %v10972_v8, %v13701_v44  ;;  %v13702_v22 = vshrl.u32 %v10916_v55, 16  ;;  %v11209_v17 = vrot.slane %v939_v43, 1  ;;  %v8000_v0 = vld [vmem:[%s10146_s22 + $0xcc] sm:$0xf] }
  0xc5   : > { %1566 = vrot.lane.b32.xlu0 %v1471_v16, %s13647_s27  ;;  %v11216_v16 = vrot.slane %v934_v26, 1  ;;  %13703 = vst [vmem:[#allocation37_spill] sm:$0xff] %v11218_v3  ;;  %v11222_v44 = vcombine.low %v8070_v21, %v11191_v11  ;;  %13704 = vst [vmem:[#allocation38_spill] sm:$0xff] %v11229_v35  ;;  %v11234_v8 = vld [vmem:[%s10146_s22 + $0xc8] ss:$0 sps:$4 sm:$0x11]  }
  0xc6   : > { %v1478_v33 = vor.u32 %v10992_v1, %v13702_v22  ;;  %2142 = vrot.lane.b32.xlu1 %v2047_v56, %s10020_s28  ;;  %v2346_v1 = vsel %vm2338_vm4, %v2309_v31, %v1245_v15  ;;  %v1511_v22 = vshll.u32 %v11187_v9, 16  ;;  %v458_v21 = vld [vmem:[%s10146_s22 + $0xc0] sm:$0xe]  ;;  %v11239_v15 = vrot.slane %v8217_v41, 1  ;;  %v11248_v37 = vld [vmem:[%s10146_s22 + $0xd0] sm:$0xf] }
  0xc7   : > { %v1551_v53 = vpop.permute.xlu0 %1550  ;;  %v2127_v43 = vpop.permute.xlu1 %2126  ;;  %v2092_v31 = vshll.u32 %v11212_v27, 16  ;;  %v906_v56 = vsel %vm750_vm1, %v901_v38, %v10970_v7  ;;  %v2087_v59 = vshll.u32 %v11222_v44, 16  ;;  %v2085_v9 = vshrl.u32 %v11222_v44, 16  ;;  %v11260_v3 = vld [vmem:[%s10146_s22 + $0xd4] ss:$0 sps:$4 sm:$0x11]  }
  0xc8   : > { %v2383_v26 = vsel %vm2375_vm5, %v2346_v1, %v1551_v53  ;;  %13705 = vst [vmem:[#allocation39_spill] sm:$0xff] %v11239_v15  ;;  %v13706_v1 = vld [vmem:[#allocation19_spill] sm:$0xff]  ;;  %v1483_v15 = vsel %vm750_vm1, %v1478_v33, %v11000_v54  ;;  %v11254_v47 = vrot.slane %v1511_v22, 1  ;;  %v946_v38 = vshll.u32 %v11231_v46, 16 }
  0xc9   : > { %1836 = vrot.lane.b32.xlu0 %v10818_v42, %s13649_s30  ;;  %v2241_v53 = vrot.slane %v13706_v1, 1  ;;  %v2420_v35 = vsel %vm2412_vm6, %v2383_v26, %v1695_v12  ;;  %v11268_v54 = vrot.slane %v2092_v31, 1  ;;  %v944_v33 = vshrl.u32 %v11231_v46, 16 }
  0xca   : > { %1136 = vrot.lane.b32.xlu1 %v1096_v52, %s10015_s29  ;;  %v8164_v52 = vcombine.low %v458_v21, %v421_v34  ;;  %v951_v22 = vshll.u32 %v11234_v8, 16  ;;  %v11273_v34 = vrot.slane %v2087_v59, 1  ;;  %v11276_v26 = vcombine.low %v8000_v0, %v11248_v37  ;;  %v13711_v59 = vld [vmem:[#allocation7_spill] sm:$0xff] }
  0xcb   : > { %v1821_v42 = vpop.permute.xlu0 %1820  ;;  %v1121_v41 = vpop.permute.xlu1 %1120  ;;  %v11264_v1 = vsel %vm1057_vm0, %v13707_v40, %v2241_v53  ;;  %v13708_v40 = vld [vmem:[#allocation22_spill] sm:$0xff]  ;;  %v11288_v0 = vrot.slane %v946_v38, 1 }
  0xcc   : > { %v2457_v7 = vsel %vm2449_vm7, %v2420_v35, %v1821_v42  ;;  %v2244_v35 = vrot.slane %v13708_v40, 1  ;;  %v13710_v53 = vld [vmem:[#allocation10_spill] sm:$0xff]  ;;  %v1107_v42 = vrot.slane %v11234_v8, 1  ;;  %v1521_v40 = vshrl.u32 %v11276_v26, 16 }
  0xcd   : > { %991 = vrot.lane.b32.xlu0 %v906_v56, %s10019_s12  ;;  %v2497_v12 = vsel %vm2486_vm8, %v2457_v7, %v2127_v43  ;;  %v13709_v43 = vshrl.u32 %v10966_v29, 16 }
  0xce   : > { %2724 = vmatmul.mubr.bf16.gmra.mrb[12].mxu0 %v2497_v12  ;;  %1568 = vrot.lane.b32.xlu1 %v1483_v15, %s13647_s27  ;;  %v2247_v15 = vrot.slane %v10949_v51, 1  ;;  %v11290_v12 = vrot.slane %v8164_v52, 1  ;;  %v13712_v51 = vrot.slane %v10928_v36, 1  ;;  %v13713_v52 = vshrl.u32 %v10935_v14, 16 }
  0xcf   : > { %v976_v21 = vpop.permute.xlu0 %975  ;;  %v1553_v56 = vpop.permute.xlu1 %1552  ;;  %v913_v31 = vor.u32 %v11028_v2, %v13709_v43  ;;  %8287 = vmatprep.mubr.msk.bf16.mxu0 %vm2264_vm2, %v13710_v53  ;;  %v11297_v2 = vsel %vm1057_vm0, %v10892_v50, %v2244_v35  ;;  %v1528_v50 = vshll.u32 %v11260_v3, 16 }
  0xd0   : > { %v2274_v7 = vsel %vm2264_vm2, %v13711_v59, %v976_v21  ;;  %v11301_v43 = vsel %vm1057_vm0, %v11002_v62, %v2247_v15  ;;  %v1672_v38 = vsel %vm1057_vm0, %v10994_v25, %v13712_v51  ;;  %v1523_v21 = vshll.u32 %v11276_v26, 16  ;;  %v13714_v15 = vld [vmem:[#allocation26_spill] sm:$0xff] }
  0xd1   : > { %1262 = vrot.lane.b32.xlu0 %v10916_v55, %s10014_s21  ;;  %v2054_v55 = vor.u32 %v11007_v39, %v13713_v52  ;;  %v2311_v35 = vsel %vm2301_vm3, %v2274_v7, %v1121_v41  ;;  %v918_v36 = vsel %vm750_vm1, %v913_v31, %v11035_v19  ;;  %v2250_v59 = vrot.slane %v11033_v45, 1  ;;  %v13715_v31 = vld [vmem:[#allocation25_spill] sm:$0xff] }
  0xd2   : > { %1838 = vrot.lane.b32.xlu1 %v10935_v14, %s13649_s30  ;;  %v11322_v39 = vrot.slane %v1523_v21, 1  ;;  %v13717_v45 = vshrl.u32 %v10985_v58, 16 }
  0xd3   : > { %v1247_v62 = vpop.permute.xlu0 %1246  ;;  %v1823_v53 = vpop.permute.xlu1 %1822  ;;  %v2059_v14 = vsel %vm750_vm1, %v2054_v55, %v13714_v15  ;;  %v11329_v19 = vsel %vm1057_vm0, %v11084_v5, %v2250_v59  ;;  %v13718_v5 = vrot.slane %v10998_v48, 1  ;;  %v13720_v15 = vld [vmem:[#allocation27_spill] sm:$0xff]  ;;  %v13722_v59 = vld [vmem:[#allocation30_spill] sm:$0xff]  ;;  %v13725_v48 = vld [vmem:[#allocation8_spill] sm:$0xff] }
  0xd4   : > { %v2348_v25 = vsel %vm2338_vm4, %v2311_v35, %v1247_v62 }
  0xd5   : > { %1712 = vrot.lane.b32.xlu0 %v1672_v38, %s10017_s19  ;;  %v2385_v41 = vsel %vm2375_vm5, %v2348_v25, %v1553_v56  ;;  %v13716_v38 = vrot.slane %v13715_v31, 1  ;;  %v1490_v56 = vor.u32 %v11047_v57, %v13717_v45 }
  0xd6   : > { %993 = vrot.lane.b32.xlu1 %v918_v36, %s10019_s12  ;;  %v13719_v36 = vld [vmem:[#allocation29_spill] sm:$0xff] }
  0xd7   : > { %v1697_v7 = vpop.permute.xlu0 %1696  ;;  %v978_v51 = vpop.permute.xlu1 %977  ;;  %v1099_v55 = vsel %vm1057_vm0, %v11037_v61, %v13716_v38  ;;  %v1675_v25 = vsel %vm1057_vm0, %v13719_v36, %v13718_v5  ;;  %v13726_v38 = vld [vmem:[#allocation31_spill] sm:$0xff] }
  0xd8   : > { %v2422_v52 = vsel %vm2412_vm6, %v2385_v41, %v1697_v7  ;;  %v2276_v7 = vsel %vm2264_vm2, %v13725_v48, %v978_v51 }
  0xd9   : > { %2144 = vrot.lane.b32.xlu0 %v2059_v14, %s10020_s28  ;;  %v2459_v21 = vsel %vm2449_vm7, %v2422_v52, %v1823_v53  ;;  %v13721_v14 = vshrl.u32 %v13720_v15, 16  ;;  %v13724_v53 = vld [vmem:[#allocation12_spill] sm:$0xff] }
  0xda   : > { %1264 = vrot.lane.b32.xlu1 %v10985_v58, %s10014_s21  ;;  %v13723_v58 = vld [vmem:[#allocation28_spill] sm:$0xff] }
  0xdb   : > { %v2129_v35 = vpop.permute.xlu0 %2128  ;;  %v1249_v62 = vpop.permute.xlu1 %1248  ;;  %v2066_v61 = vor.u32 %v13722_v59, %v13721_v14  ;;  %v1495_v57 = vsel %vm750_vm1, %v1490_v56, %v13723_v58  ;;  %v13729_v59 = vshrl.u32 %v11094_v13, 16 }
  0xdc   : > { %v2500_v41 = vsel %vm2486_vm8, %v2459_v21, %v2129_v35  ;;  %v8108_v35 = vld [vmem:[%s10146_s22 + $0xc0] sm:$0xe] }
  0xdd   : > { %1138 = vrot.lane.b32.xlu0 %v1099_v55, %s10015_s29  ;;  %2732 = vmatmul.mubr.bf16.gmra.mrb[16].mxu0 %v2500_v41  ;;  %v2071_v45 = vsel %vm750_vm1, %v2066_v61, %v13726_v38  ;;  %v13727_v55 = vshrl.u32 %v11069_v63, 16  ;;  %v1502_v61 = vor.u32 %v11166_v49, %v13729_v59  ;;  %v8270_v41 = vcombine.low %v8108_v35, %v11098_v28 }
  0xde   : > { %1714 = vrot.lane.b32.xlu1 %v1675_v25, %s10017_s19  ;;  %8288 = vmatprep.mubr.msk.bf16.mxu0 %vm2264_vm2, %v13724_v53  ;;  %v13728_v25 = vrot.slane %v11063_v23, 1  ;;  %v13735_v35 = vshrl.u32 %v11127_v10, 16  ;;  %v2256_v59 = vrot.slane %v11212_v27, 1  ;;  %v13740_v27 = vld [vmem:[#allocation36_spill] sm:$0xff] }
  0xdf   : > { %v1123_v52 = vpop.permute.xlu0 %1122  ;;  %v1699_v31 = vpop.permute.xlu1 %1698  ;;  %v925_v56 = vor.u32 %v11140_v30, %v13727_v55  ;;  %v2252_v30 = vrot.slane %v8270_v41, 1  ;;  %v1507_v28 = vsel %vm750_vm1, %v1502_v61, %v11168_v4  ;;  %v13732_v4 = vld [vmem:[#allocation13_spill] sm:$0xff]  ;;  %v13734_v55 = vrot.slane %v11080_v32, 1 }
  0xe0   : > { %v2313_v21 = vsel %vm2301_vm3, %v2276_v7, %v1123_v52  ;;  %v1102_v14 = vsel %vm1057_vm0, %v11142_v18, %v13728_v25 }
  0xe1   : > { %1570 = vrot.lane.b32.xlu0 %v1495_v57, %s13647_s27  ;;  %v2350_v5 = vsel %vm2338_vm4, %v2313_v21, %v1249_v62  ;;  %v2253_v62 = vrot.slane %v11106_v24, 1  ;;  %v13730_v57 = vld [vmem:[#allocation32_spill] sm:$0xff] }
  0xe2   : > { %2146 = vrot.lane.b32.xlu1 %v2071_v45, %s10020_s28  ;;  %v930_v23 = vsel %vm750_vm1, %v925_v56, %v13730_v57  ;;  %v13733_v45 = vld [vmem:[#allocation9_spill] sm:$0xff]  ;;  %v1678_v56 = vsel %vm1057_vm0, %v11170_v20, %v13734_v55  ;;  %v8073_v55 = vld [vmem:[%s10146_s22 + $0xdc] sm:$0xf] }
  0xe3   : > { %v1555_v36 = vpop.permute.xlu0 %1554  ;;  %v2131_v51 = vpop.permute.xlu1 %2130  ;;  %v11387_v49 = vsel %vm1057_vm0, %v2252_v30, %v2253_v62  ;;  %v13737_v30 = vld [vmem:[#allocation33_spill] sm:$0xff] }
  0xe4   : > { %v2387_v58 = vsel %vm2375_vm5, %v2350_v5, %v1555_v36  ;;  %v13738_v62 = vrot.slane %v13737_v30, 1  ;;  %v13739_v57 = vld [vmem:[#allocation37_spill] sm:$0xff] }
  0xe5   : > { %1840 = vrot.lane.b32.xlu0 %v13720_v15, %s13649_s30  ;;  %v2424_v18 = vsel %vm2412_vm6, %v2387_v58, %v1699_v31  ;;  %v13731_v31 = vshrl.u32 %v11146_v60, 16 }
  0xe6   : > { %1140 = vrot.lane.b32.xlu1 %v1102_v14, %s10015_s29  ;;  %v13736_v14 = vld [vmem:[#allocation35_spill] sm:$0xff] }
  0xe7   : > { %v1825_v53 = vpop.permute.xlu0 %1824  ;;  %v1125_v48 = vpop.permute.xlu1 %1124  ;;  %v937_v38 = vor.u32 %v11216_v16, %v13731_v31  ;;  %v2078_v16 = vor.u32 %v11197_v6, %v13735_v35 }
  0xe8   : > { %v2461_v15 = vsel %vm2449_vm7, %v2424_v18, %v1825_v53  ;;  %v13741_v18 = vshrl.u32 %v13740_v27, 16 }
  0xe9   : > { %995 = vrot.lane.b32.xlu0 %v930_v23, %s10019_s12  ;;  %v2503_v24 = vsel %vm2486_vm8, %v2461_v15, %v2131_v51  ;;  %v942_v25 = vsel %vm750_vm1, %v937_v38, %v11209_v17  ;;  %v1105_v23 = vsel %vm1057_vm0, %v13739_v57, %v13738_v62  ;;  %v13744_v38 = vld [vmem:[#allocation39_spill] sm:$0xff] }
  0xea   : > { %2740 = vmatmul.mubr.bf16.gmra.mrb[20].mxu0 %v2503_v24  ;;  %1572 = vrot.lane.b32.xlu1 %v1507_v28, %s13647_s27  ;;  %v1514_v53 = vor.u32 %v11254_v47, %v13741_v18  ;;  %v11439_v28 = vld [vmem:[%s10146_s22 + $0xd0] sm:$0xf]  ;;  %v8072_v47 = vld [vmem:[%s10146_s22 + $0xd8] sm:$0xf] }
  0xeb   : > { %v980_v7 = vpop.permute.xlu0 %979  ;;  %v1557_v52 = vpop.permute.xlu1 %1556  ;;  %8289 = vmatprep.mubr.msk.bf16.mxu0 %vm2264_vm2, %v13732_v4 }
  0xec   : > { %v2278_v21 = vsel %vm2264_vm2, %v13733_v45, %v980_v7  ;;  %v2090_v45 = vor.u32 %v11273_v34, %v2085_v9 }
  0xed   : > { %1266 = vrot.lane.b32.xlu0 %v11094_v13, %s10014_s21  ;;  %v2315_v5 = vsel %vm2301_vm3, %v2278_v21, %v1125_v48  ;;  %v8109_v13 = vld [vmem:[%s10146_s22 + $0xcc] sm:$0xe] }
  0xee   : > { %1842 = vrot.lane.b32.xlu1 %v11127_v10, %s13649_s30  ;;  %v8271_v20 = vcombine.low %v8109_v13, %v11191_v11  ;;  %v2083_v10 = vsel %vm750_vm1, %v2078_v16, %v13736_v14  ;;  %v422_v48 = vld [vmem:[%s10146_s22 + $0xcc] sm:$0xf]  ;;  %v13746_v16 = vld [vmem:[#allocation16_spill] sm:$0xff]  ;;  %v8236_v14 = vcombine.low %v8072_v47, %v8073_v55  ;;  %v1683_v47 = vrot.slane %v11260_v3, 1 }
  0xef   : > { %v1251_v36 = vpop.permute.xlu0 %1250  ;;  %v1827_v51 = vpop.permute.xlu1 %1826 }
  0xf0   : > { %v2352_v32 = vsel %vm2338_vm4, %v2315_v5, %v1251_v36  ;;  %v2255_v6 = vrot.slane %v8271_v20, 1  ;;  %v13747_v5 = vld [vmem:[#allocation11_spill] sm:$0xff]  ;;  %v8038_v20 = vld [vmem:[%s10146_s22 + $0xcc] sm:$0xe] }
  0xf1   : > { %1716 = vrot.lane.b32.xlu0 %v1678_v56, %s10017_s19  ;;  %v2389_v61 = vsel %vm2375_vm5, %v2352_v32, %v1557_v52  ;;  %v13742_v52 = vld [vmem:[#allocation34_spill] sm:$0xff] }
  0xf2   : > { %997 = vrot.lane.b32.xlu1 %v942_v25, %s10019_s12  ;;  %v11425_v11 = vsel %vm1057_vm0, %v2255_v6, %v2256_v59  ;;  %v13743_v31 = vrot.slane %v13742_v52, 1  ;;  %v13745_v56 = vld [vmem:[#allocation38_spill] sm:$0xff]  ;;  %v11463_v25 = vcombine.low %v422_v48, %v11439_v28  ;;  %v949_v6 = vor.u32 %v11288_v0, %v944_v33  ;;  %v8002_v48 = vld [vmem:[%s10146_s22 + $0xd8] sm:$0xf]  ;;  %v8074_v52 = vld [vmem:[%s10146_s22 + $0xe4] sm:$0xf] }
  0xf3   : > { %v1701_v17 = vpop.permute.xlu0 %1700  ;;  %v982_v41 = vpop.permute.xlu1 %981  ;;  %v1519_v35 = vsel %vm750_vm1, %v1514_v53, %v13745_v56  ;;  %v11467_v32 = vld [vmem:[%s10146_s22 + $0xd4] ss:$0 sps:$4 sm:$0x11]   ;;  %v1526_v59 = vor.u32 %v11322_v39, %v1521_v40  ;;  %v1108_v33 = vsel %vm1057_vm0, %v11290_v12, %v1107_v42  ;;  %v2099_v40 = vshll.u32 %v8236_v14, 16 }
  0xf4   : > { %v2426_v58 = vsel %vm2412_vm6, %v2389_v61, %v1701_v17  ;;  %v1681_v4 = vsel %vm1057_vm0, %v13744_v38, %v13743_v31  ;;  %v2280_v9 = vsel %vm2264_vm2, %v13747_v5, %v982_v41  ;;  %v1530_v61 = vrot.slane %v1528_v50, 1  ;;  %v8110_v17 = vld [vmem:[%s10146_s22 + $0xd8] sm:$0xe]  ;;  %v11508_v31 = vld [vmem:[%s10146_s22 + $0xe8] sm:$0xf]  ;;  %v13748_v5 = vld [vmem:[#allocation18_spill] sm:$0xff] }
  0xf5   : > { %2148 = vrot.lane.b32.xlu0 %v2083_v10, %s10020_s28  ;;  %v2463_v15 = vsel %vm2449_vm7, %v2426_v58, %v1827_v51  ;;  %v2095_v51 = vsel %vm750_vm1, %v2090_v45, %v11268_v54  ;;  %v9651_v10 = vld [vmem:[%s10146_s22 + $0xe0] ss:$0 sps:$4 sm:$0x11]   ;;  %v953_v54 = vrot.slane %v951_v22, 1  ;;  %v958_v0 = vshll.u32 %v11463_v25, 16 }
  0xf6   : > { %1268 = vrot.lane.b32.xlu1 %v13740_v27, %s10014_s21  ;;  %v8272_v22 = vcombine.low %v8110_v17, %v8073_v55  ;;  %v2259_v39 = vrot.slane %v9651_v10, 1  ;;  %v1531_v42 = vsel %vm750_vm1, %v1526_v59, %v1530_v61  ;;  %v8218_v12 = vcombine.low %v8038_v20, %v11248_v37  ;;  %v459_v55 = vld [vmem:[%s10146_s22 + $0xcc] sm:$0xe] }
  0xf7   : > { %v2133_v24 = vpop.permute.xlu0 %2132  ;;  %v1253_v7 = vpop.permute.xlu1 %1252  ;;  %v954_v8 = vsel %vm750_vm1, %v949_v6, %v953_v54  ;;  %v963_v57 = vshll.u32 %v11467_v32, 16  ;;  %v960_v53 = vrot.slane %v958_v0, 1  ;;  %v2097_v38 = vshrl.u32 %v8236_v14, 16  ;;  %v9656_v54 = vld [vmem:[%s10146_s22 + $0xe0] ss:$0 sps:$4 sm:$0x11]  }
  0xf8   : > { %v2506_v21 = vsel %vm2486_vm8, %v2463_v15, %v2133_v24  ;;  %v2258_v50 = vrot.slane %v8272_v22, 1  ;;  %v8003_v15 = vld [vmem:[%s10146_s22 + $0xdc] sm:$0xf]  ;;  %v2104_v45 = vshll.u32 %v9651_v10, 16  ;;  %v8165_v6 = vcombine.low %v459_v55, %v11439_v28 }
  0xf9   : > { %1142 = vrot.lane.b32.xlu0 %v1105_v23, %s10015_s29  ;;  %2748 = vmatmul.mubr.bf16.gmra.mrb[24].mxu0 %v2506_v21  ;;  %v1682_v21 = vrot.slane %v8218_v12, 1  ;;  %v8183_v56 = vcombine.low %v8002_v48, %v8003_v15  ;;  %v11535_v0 = vld [vmem:[%s10146_s22 + $0xec] ss:$0 sps:$4 sm:$0x11]  }
  0xfa   : > { %1718 = vrot.lane.b32.xlu1 %v1681_v4, %s10017_s19  ;;  %8290 = vmatprep.mubr.msk.bf16.mxu0 %vm2264_vm2, %v13746_v16  ;;  %v11503_v24 = vsel %vm1057_vm0, %v2258_v50, %v2259_v39  ;;  %v2101_v4 = vrot.slane %v2099_v40, 1  ;;  %v2106_v10 = vrot.slane %v2104_v45, 1  ;;  %v1109_v40 = vrot.slane %v8165_v6, 1  ;;  %v13751_v6 = vld [vmem:[#allocation15_spill] sm:$0xff] }
  0xfb   : > { %v1127_v34 = vpop.permute.xlu0 %1126  ;;  %v1703_v36 = vpop.permute.xlu1 %1702  ;;  %v1684_v59 = vsel %vm1057_vm0, %v1682_v21, %v1683_v47  ;;  %v1535_v61 = vshll.u32 %v8183_v56, 16  ;;  %v1110_v50 = vrot.slane %v11467_v32, 1  ;;  %v1540_v39 = vshll.u32 %v9656_v54, 16  ;;  %v9669_v21 = vld [vmem:[%s13619_s4 + $0x50] sm:$0xff]  }
  0xfc   : > { %v2317_v13 = vsel %vm2301_vm3, %v2280_v9, %v1127_v34  ;;  %v965_v34 = vrot.slane %v963_v57, 1  ;;  %v2102_v3 = vor.u32 %v2101_v4, %v2097_v38  ;;  %v1686_v57 = vrot.slane %v9656_v54, 1 }
  0xfd   : > { %1574 = vrot.lane.b32.xlu0 %v1519_v35, %s13647_s27  ;;  %v2354_v41 = vsel %vm2338_vm4, %v2317_v13, %v1253_v7  ;;  %v13749_v13 = vld [vmem:[#allocation14_spill] sm:$0xff]  ;;  %v2116_v32 = vshll.u32 %v11535_v0, 16  ;;  %v1111_v38 = vsel %vm1057_vm0, %v1109_v40, %v1110_v50  ;;  %v1542_v45 = vrot.slane %v1540_v39, 1  ;;  %v9679_v50 = vld [vmem:[%s13619_s4 + $0x158] sm:$0xff]  }
  0xfe   : > { %2150 = vrot.lane.b32.xlu1 %v2095_v51, %s10020_s28  ;;  %v11519_v51 = vcombine.low %v8074_v52, %v11508_v31  ;;  %v9667_v52 = vld [vmem:[%s13619_s4 + $0x140] sm:$0xff]   ;;  %v9680_v39 = vld [vmem:[%s13619_s4 + $0x118] sm:$0xff]  }
  0xff   : > { %v1559_v58 = vpop.permute.xlu0 %1558  ;;  %v2135_v30 = vpop.permute.xlu1 %2134  ;;  %9065 = vmatprep.subr.bf16.mxu0 %v9667_v52 }
 0x100   : > { %v2391_v62 = vsel %vm2375_vm5, %v2354_v41, %v1559_v58  ;;  %v9663_v41 = vld [vmem:[%s13619_s4 + $0x40] sm:$0xff]   ;;  %v2111_v28 = vshll.u32 %v11519_v51, 16 }
 0x101   : > { %1844 = vrot.lane.b32.xlu0 %v11222_v44, %s13649_s30  ;;  %v2428_v23 = vsel %vm2412_vm6, %v2391_v62, %v1703_v36  ;;  %v956_v44 = vshrl.u32 %v11463_v25, 16  ;;  %v8039_v36 = vld [vmem:[%s10146_s22 + $0xd8] sm:$0xe]  ;;  %8841 = vmatprep.subr.bf16.mxu1 %v9663_v41  ;;  %v2107_v62 = vsel %vm750_vm1, %v2102_v3, %v2106_v10 }
 0x102   : > { %1144 = vrot.lane.b32.xlu1 %v1108_v33, %s10015_s29  ;;  %v8219_v17 = vcombine.low %v8039_v36, %v8003_v15  ;;  %v2113_v48 = vrot.slane %v2111_v28, 1  ;;  %v9666_v15 = vld [vmem:[%s13619_s4 + $0x8] sm:$0xff]   ;;  %v9673_v10 = vld [vmem:[%s13619_s4 + $0x58] sm:$0xff]  }
 0x103   : > { %v1829_v27 = vpop.permute.xlu0 %1828  ;;  %v1129_v18 = vpop.permute.xlu1 %1128  ;;  %v961_v9 = vor.u32 %v960_v53, %v956_v44  ;;  %v2109_v53 = vshrl.u32 %v11519_v51, 16  ;;  %v9671_v36 = vld [vmem:[%s13619_s4 + $0x148] sm:$0xff]   ;;  %v9674_v41 = vld [vmem:[%s13619_s4 + $0x18] sm:$0xff]  }
 0x104   : > { %v2465_v7 = vsel %vm2449_vm7, %v2428_v23, %v1829_v27  ;;  %v1685_v12 = vrot.slane %v8219_v17, 1  ;;  %v9665_v23 = vld [vmem:[%s13619_s4 + $0x48] sm:$0xff]  }
 0x105   : > { %999 = vrot.lane.b32.xlu0 %v954_v8, %s10019_s12  ;;  %v2509_v37 = vsel %vm2486_vm8, %v2465_v7, %v2135_v30  ;;  %v1533_v8 = vshrl.u32 %v8183_v56, 16 }
 0x106   : > { %2756 = vmatmul.mubr.bf16.gmra.mrb[28].mxu0 %v2509_v37  ;;  %1576 = vrot.lane.b32.xlu1 %v1531_v42, %s13647_s27  ;;  %v1537_v42 = vrot.slane %v1535_v61, 1  ;;  %v9668_v37 = vld [vmem:[%s13619_s4 + $0x100] sm:$0xff]   ;;  %s13752_s27 = smov 64  }
 0x107   : > { %v984_v35 = vpop.permute.xlu0 %983  ;;  %v1561_v16 = vpop.permute.xlu1 %1560  ;;  %8291 = vmatprep.mubr.msk.bf16.mxu0 %vm2264_vm2, %v13748_v5  ;;  %v2114_v5 = vor.u32 %v2113_v48, %v2109_v53  ;;  %9066 = vmatpush3.bf16.msra.mxu0 %v9668_v37  ;;  %v9685_v53 = vld [vmem:[%s13619_s4 + $0x70] sm:$0xff]   ;;  %v9687_v37 = vld [vmem:[%s13619_s4 + $0x168] sm:$0xff]  }
 0x108   : > { %v2282_v20 = vsel %vm2264_vm2, %v13749_v13, %v984_v35  ;;  %v1538_v4 = vor.u32 %v1537_v42, %v1533_v8  ;;  %v9672_v13 = vld [vmem:[%s13619_s4 + $0x108] sm:$0xff]   ;;  %9067 = vmatprep.subr.bf16.mxu0 %v9671_v36  ;;  %v9696_v36 = vld [vmem:[%s13619_s4 + $0x178] sm:$0xff]  }
 0x109   : > { %1270 = vrot.lane.b32.xlu0 %v11276_v26, %s10014_s21  ;;  %v2319_v58 = vsel %vm2301_vm3, %v2282_v20, %v1129_v18  ;;  %v966_v26 = vsel %vm750_vm1, %v961_v9, %v965_v34  ;;  %v2118_v9 = vrot.slane %v2116_v32, 1  ;;  %v13750_v20 = vld [vmem:[#allocation24_spill] sm:$0xff]  ;;  %v9681_v8 = vld [vmem:[%s13619_s4 + $0x68] sm:$0xff]  }
 0x10a   : > { %1846 = vrot.lane.b32.xlu1 %v8236_v14, %s13649_s30  ;;  %v9664_v14 = vld [vmem:[%s13619_s4] sm:$0xff]   ;;  %v1543_v3 = vsel %vm750_vm1, %v1538_v4, %v1542_v45  ;;  %s7966_s30 = sshll.u32 %s374_s20, 7 }
 0x10b   : > { %v1255_v30 = vpop.permute.xlu0 %1254  ;;  %v1831_v33 = vpop.permute.xlu1 %1830  ;;  %8842 = vmatpush3.bf16.msra.mxu1 %v9664_v14  ;;  %v2119_v17 = vsel %vm750_vm1, %v2114_v5, %v2118_v9  ;;  %9068 = vmatpush3.bf16.msra.mxu0 %v9672_v13  ;;  %v9697_v13 = vld [vmem:[%s13619_s4 + $0x138] sm:$0xff]  }
 0x10c   : > { %v2356_v22 = vsel %vm2338_vm4, %v2319_v58, %v1255_v30  ;;  %8843 = vmatprep.subr.bf16.mxu1 %v9665_v23  ;;  %v9675_v30 = vld [vmem:[%s13619_s4 + $0x150] sm:$0xff]   ;;  %v9682_v23 = vld [vmem:[%s13619_s4 + $0x28] sm:$0xff]  }
 0x10d   : > { %1720 = vrot.lane.b32.xlu0 %v1684_v59, %s10017_s19  ;;  %v2393_v27 = vsel %vm2375_vm5, %v2356_v22, %v1561_v16  ;;  %v1687_v16 = vsel %vm1057_vm0, %v1685_v12, %v1686_v57  ;;  %9069 = vmatprep.subr.bf16.mxu0 %v9675_v30 }
 0x10e   : > { %1001 = vrot.lane.b32.xlu1 %v966_v26, %s10019_s12  ;;  %v9677_v26 = vld [vmem:[%s13619_s4 + $0x60] sm:$0xff]  }
 0x10f   : > { %v1705_v18 = vpop.permute.xlu0 %1704  ;;  %v986_v44 = vpop.permute.xlu1 %985  ;;  %8844 = vmatpush3.bf16.msra.mxu1 %v9666_v15  ;;  %v9686_v15 = vld [vmem:[%s13619_s4 + $0x30] sm:$0xff]  }
 0x110   : > { %v2430_v7 = vsel %vm2412_vm6, %v2393_v27, %v1705_v18  ;;  %8845 = vmatprep.subr.bf16.mxu1 %v9669_v21  ;;  %v2284_v54 = vsel %vm2264_vm2, %v13751_v6, %v986_v44  ;;  %v9683_v27 = vld [vmem:[%s13619_s4 + $0x160] sm:$0xff]  }
 0x111   : > { %2152 = vrot.lane.b32.xlu0 %v2107_v62, %s10020_s28  ;;  %v2467_v47 = vsel %vm2449_vm7, %v2430_v7, %v1831_v33  ;;  %v9676_v33 = vld [vmem:[%s13619_s4 + $0x110] sm:$0xff]   ;;  %v9678_v62 = vld [vmem:[%s13619_s4 + $0x20] sm:$0xff]   ;;  %v13754_v7 = vld [vmem:[#allocation17_spill] sm:$0xff] }
 0x112   : > { %1272 = vrot.lane.b32.xlu1 %v8183_v56, %s10014_s21  ;;  %v9670_v56 = vld [vmem:[%s13619_s4 + $0x10] sm:$0xff]   ;;  %9070 = vmatpush3.bf16.msra.mxu0 %v9676_v33  ;;  %s13753_s21 = smov 96   ;;  %v9684_v44 = vld [vmem:[%s13619_s4 + $0x120] sm:$0xff]  }
 0x113   : > { %v2137_v55 = vpop.permute.xlu0 %2136  ;;  %v1257_v35 = vpop.permute.xlu1 %1256  ;;  %8846 = vmatpush3.bf16.msra.mxu1 %v9670_v56  ;;  %9071 = vmatprep.subr.bf16.mxu0 %v9679_v50  ;;  %v13756_v50 = vld [vmem:[#allocation23_spill] sm:$0xff] }
 0x114   : > { %v2512_v34 = vsel %vm2486_vm8, %v2467_v47, %v2137_v55  ;;  %8847 = vmatprep.subr.bf16.mxu1 %v9673_v10  ;;  %v9691_v47 = vld [vmem:[%s13619_s4 + $0x38] sm:$0xff]  }
 0x115   : > { %2764 = vmatmul.mubr.bf16.gmra.mrb[32].mxu0 %v2512_v34  ;;  %1146 = vrot.lane.b32.xlu0 %v1111_v38, %s10015_s29  ;;  %v9688_v38 = vld [vmem:[%s13619_s4 + $0x128] sm:$0xff]   ;;  %s8745_s29 = sshll.u32 %s10003_s16, 11  ;;  %s13567_s16 = scalar_lea.sflag [#allocation4], %s374_s20 }
 0x116   : > { %8292 = vmatprep.mubr.msk.bf16.mxu0 %vm2264_vm2, %v13750_v20  ;;  %1722 = vrot.lane.b32.xlu1 %v1687_v16, %s10017_s19  ;;  %v9695_v16 = vld [vmem:[%s13619_s4 + $0x130] sm:$0xff]  }
 0x117   : > { %v1131_v59 = vpop.permute.xlu0 %1130  ;;  %v1707_v61 = vpop.permute.xlu1 %1706  ;;  %8848 = vmatpush3.bf16.msra.mxu1 %v9674_v41  ;;  %9072 = vmatpush3.bf16.msra.mxu0 %v9680_v39 }
 0x118   : > { %v2321_v58 = vsel %vm2301_vm3, %v2284_v54, %v1131_v59  ;;  %8849 = vmatprep.subr.bf16.mxu1 %v9677_v26  ;;  %9073 = vmatprep.subr.bf16.mxu0 %v9683_v27  ;;  %v13755_v54 = vld [vmem:[#allocation20_spill] sm:$0xff] }
 0x119   : > { %1578 = vrot.lane.b32.xlu0 %v1543_v3, %s13752_s27  ;;  %v2358_v28 = vsel %vm2338_vm4, %v2321_v58, %v1257_v35  ;;  %v9692_v35 = vld [vmem:[%s13619_s4 + $0x170] sm:$0xff]  }
 0x11a   : > { %2154 = vrot.lane.b32.xlu1 %v2119_v17, %s10020_s28 }
 0x11b   : > { %v1563_v14 = vpop.permute.xlu0 %1562  ;;  %v2139_v22 = vpop.permute.xlu1 %2138  ;;  %8850 = vmatpush3.bf16.msra.mxu1 %v9678_v62  ;;  %9074 = vmatpush3.bf16.msra.mxu0 %v9684_v44 }
 0x11c   : > { %v2395_v40 = vsel %vm2375_vm5, %v2358_v28, %v1563_v14  ;;  %8851 = vmatprep.subr.bf16.mxu1 %v9681_v8  ;;  %9075 = vmatprep.subr.bf16.mxu0 %v9687_v37 }
 0x11d   : > { %1848 = vrot.lane.b32.xlu0 %v11519_v51, %s13753_s21  ;;  %v2432_v42 = vsel %vm2412_vm6, %v2395_v40, %v1707_v61  ;;  %s13559_s21 = scalar_lea.hbm %s13625_s10, %s8745_s29 }
 0x11f   : > { %v1833_v12 = vpop.permute.xlu0 %1832  ;;  %v1133_v57 = vpop.permute.xlu1 %1132  ;;  %8852 = vmatpush3.bf16.msra.mxu1 %v9682_v23  ;;  %9076 = vmatpush3.bf16.msra.mxu0 %v9688_v38 }
 0x120   : > { %v2469_v51 = vsel %vm2449_vm7, %v2432_v42, %v1833_v12  ;;  %8853 = vmatprep.subr.bf16.mxu1 %v9685_v53  ;;  %9077 = vmatprep.subr.bf16.mxu0 %v9692_v35 }
 0x121   : > { %v2515_v18 = vsel %vm2486_vm8, %v2469_v51, %v2139_v22 }
 0x122   : > { %2772 = vmatmul.mubr.bf16.gmra.mrb[36].mxu0 %v2515_v18 }
 0x123   : > { %v988_v48 = vpop.permute.xlu0 %987  ;;  %v1565_v32 = vpop.permute.xlu1 %1564  ;;  %8293 = vmatprep.mubr.msk.bf16.mxu0 %vm2264_vm2, %v11264_v1  ;;  %v9689_v1 = vld [vmem:[%s13619_s4 + $0x78] sm:$0xff]   ;;  %8854 = vmatpush3.bf16.msra.mxu1 %v9686_v15 }
 0x124   : > { %v2286_v52 = vsel %vm2264_vm2, %v13754_v7, %v988_v48  ;;  %8855 = vmatprep.subr.bf16.mxu1 %v9689_v1  ;;  %9078 = vmatpush3.bf16.msra.mxu0 %v9695_v16 }
 0x125   : > { %v2323_v4 = vsel %vm2301_vm3, %v2286_v52, %v1133_v57  ;;  %9079 = vmatprep.subr.bf16.mxu0 %v9696_v36 }
 0x127   : > { %v1259_v45 = vpop.permute.xlu0 %1258  ;;  %v1835_v21 = vpop.permute.xlu1 %1834  ;;  %8856 = vmatpush3.bf16.msra.mxu1 %v9691_v47 }
 0x128   : > { %v2360_v55 = vsel %vm2338_vm4, %v2323_v4, %v1259_v45  ;;  %9080 = vmatpush3.bf16.msra.mxu0 %v9697_v13 }
 0x129   : > { %v2397_v5 = vsel %vm2375_vm5, %v2360_v55, %v1565_v32 }
 0x12b   : > { %v1709_v9 = vpop.permute.xlu0 %1708  ;;  %v990_v56 = vpop.permute.xlu1 %989 }
 0x12c   : > { %v2434_v34 = vsel %vm2412_vm6, %v2397_v5, %v1709_v9  ;;  %v2288_v59 = vsel %vm2264_vm2, %v13755_v54, %v990_v56 }
 0x12d   : > { %v2471_v20 = vsel %vm2449_vm7, %v2434_v34, %v1835_v21 }
 0x12f   : > { %v2141_v3 = vpop.permute.xlu0 %2140  ;;  %v1261_v10 = vpop.permute.xlu1 %1260 }
 0x130   : > { %v2518_v6 = vsel %vm2486_vm8, %v2471_v20, %v2141_v3 }
 0x131   : > { %2780 = vmatmul.mubr.bf16.gmra.mrb[40].mxu0 %v2518_v6 }
 0x132   : > { %8294 = vmatprep.mubr.msk.bf16.mxu0 %vm2264_vm2, %v11297_v2 }
 0x133   : > { %v1135_v61 = vpop.permute.xlu0 %1134 }
 0x134   : > { %v2325_v17 = vsel %vm2301_vm3, %v2288_v59, %v1135_v61  ;;  %v1711_v41 = vpop.permute.xlu1 %1710 }
 0x135   : > { %v2362_v58 = vsel %vm2338_vm4, %v2325_v17, %v1261_v10 }
 0x137   : > { %v1567_v30 = vpop.permute.xlu0 %1566 }
 0x138   : > { %v2399_v33 = vsel %vm2375_vm5, %v2362_v58, %v1567_v30  ;;  %v2143_v26 = vpop.permute.xlu1 %2142 }
 0x139   : > { %v2436_v28 = vsel %vm2412_vm6, %v2399_v33, %v1711_v41 }
 0x13b   : > { %v1837_v14 = vpop.permute.xlu0 %1836 }
 0x13c   : > { %v2473_v22 = vsel %vm2449_vm7, %v2436_v28, %v1837_v14  ;;  %v1137_v62 = vpop.permute.xlu1 %1136 }
 0x13d   : > { %v2521_v2 = vsel %vm2486_vm8, %v2473_v22, %v2143_v26 }
 0x13e   : > { %2788 = vmatmul.mubr.bf16.gmra.mrb[44].mxu0 %v2521_v2 }
 0x13f   : > { %v992_v40 = vpop.permute.xlu0 %991  ;;  %8295 = vmatprep.mubr.msk.bf16.mxu0 %vm2264_vm2, %v11301_v43 }
 0x140   : > { %v2290_v39 = vsel %vm2264_vm2, %v13756_v50, %v992_v40  ;;  %v1569_v8 = vpop.permute.xlu1 %1568  ;;  %v8111_v50 = vld [vmem:[%s10146_s22 + $0xe4] sm:$0xe] }
 0x141   : > { %v2327_v42 = vsel %vm2301_vm3, %v2290_v39, %v1137_v62 }
 0x143   : > { %v1263_v12 = vpop.permute.xlu0 %1262 }
 0x144   : > { %v2364_v57 = vsel %vm2338_vm4, %v2327_v42, %v1263_v12  ;;  %v1839_v23 = vpop.permute.xlu1 %1838  ;;  %v8273_v42 = vcombine.low %v8111_v50, %v11508_v31 }
 0x145   : > { %v2401_v51 = vsel %vm2375_vm5, %v2364_v57, %v1569_v8  ;;  %v11735_v57 = vld [vmem:[%s13617_s2] ss:$0 sm:$0xff] }
 0x147   : > { %v1713_v27 = vpop.permute.xlu0 %1712 }
 0x148   : > { %v2438_v18 = vsel %vm2412_vm6, %v2401_v51, %v1713_v27  ;;  %v994_v44 = vpop.permute.xlu1 %993 }
 0x149   : > { %v2475_v53 = vsel %vm2449_vm7, %v2438_v18, %v1839_v23  ;;  %v2292_v15 = vsel %vm2264_vm2, %v10966_v29, %v994_v44  ;;  %v2261_v44 = vrot.slane %v8273_v42, 1 }
 0x14b   : > { %v2145_v48 = vpop.permute.xlu0 %2144 }
 0x14c   : > { %v2524_v43 = vsel %vm2486_vm8, %v2475_v53, %v2145_v48  ;;  %v1265_v32 = vpop.permute.xlu1 %1264  ;;  %v2262_v53 = vrot.slane %v11535_v0, 1 }
 0x14d   : > { %2796 = vmatmul.mubr.bf16.gmra.mrb[48].mxu0 %v2524_v43 }
 0x14e   : > { %8296 = vmatprep.mubr.msk.bf16.mxu0 %vm2264_vm2, %v11329_v19 }
 0x14f   : > { %v1139_v7 = vpop.permute.xlu0 %1138 }
 0x150   : > { %v2329_v52 = vsel %vm2301_vm3, %v2292_v15, %v1139_v7  ;;  %v1715_v37 = vpop.permute.xlu1 %1714 }
 0x151   : > { %v2366_v38 = vsel %vm2338_vm4, %v2329_v52, %v1265_v32 }
 0x153   : > { %v1571_v1 = vpop.permute.xlu0 %1570 }
 0x154   : > { %v2403_v4 = vsel %vm2375_vm5, %v2366_v38, %v1571_v1  ;;  %v2147_v45 = vpop.permute.xlu1 %2146 }
 0x155   : > { %v2440_v21 = vsel %vm2412_vm6, %v2403_v4, %v1715_v37 }
 0x157   : > { %v1841_v47 = vpop.permute.xlu0 %1840 }
 0x158   : > { %v2477_v55 = vsel %vm2449_vm7, %v2440_v21, %v1841_v47  ;;  %v1141_v35 = vpop.permute.xlu1 %1140 }
 0x159   : > { %v2527_v19 = vsel %vm2486_vm8, %v2477_v55, %v2147_v45  ;;  %v2263_v45 = vsel %vm1057_vm0, %v2261_v44, %v2262_v53 }
 0x15a   : > { %2804 = vmatmul.mubr.bf16.gmra.mrb[52].mxu0 %v2527_v19 }
 0x15b   : > { %v996_v29 = vpop.permute.xlu0 %995  ;;  %8297 = vmatprep.mubr.msk.bf16.mxu0 %vm2264_vm2, %v11387_v49 }
 0x15c   : > { %v2294_v16 = vsel %vm2264_vm2, %v11069_v63, %v996_v29  ;;  %v1573_v5 = vpop.permute.xlu1 %1572 }
 0x15d   : > { %v2331_v9 = vsel %vm2301_vm3, %v2294_v16, %v1141_v35 }
 0x15f   : > { %v1267_v56 = vpop.permute.xlu0 %1266 }
 0x160   : > { %v2368_v34 = vsel %vm2338_vm4, %v2331_v9, %v1267_v56  ;;  %v1843_v36 = vpop.permute.xlu1 %1842 }
 0x161   : > { %v2405_v13 = vsel %vm2375_vm5, %v2368_v34, %v1573_v5 }
 0x163   : > { %v1717_v20 = vpop.permute.xlu0 %1716 }
 0x164   : > { %v2442_v3 = vsel %vm2412_vm6, %v2405_v13, %v1717_v20  ;;  %v998_v10 = vpop.permute.xlu1 %997 }
 0x165   : > { %v2479_v6 = vsel %vm2449_vm7, %v2442_v3, %v1843_v36  ;;  %v2296_v63 = vsel %vm2264_vm2, %v11146_v60, %v998_v10 }
 0x167   : > { %v2149_v54 = vpop.permute.xlu0 %2148 }
 0x168   : > { %v2530_v49 = vsel %vm2486_vm8, %v2479_v6, %v2149_v54  ;;  %v1269_v59 = vpop.permute.xlu1 %1268 }
 0x169   : > { %2812 = vmatmul.mubr.bf16.gmra.mrb[56].mxu0 %v2530_v49 }
 0x16a   : > { %8298 = vmatprep.mubr.msk.bf16.mxu0 %vm2264_vm2, %v11425_v11 }
 0x16b   : > { %v1143_v61 = vpop.permute.xlu0 %1142 }
 0x16c   : > { %v2333_v17 = vsel %vm2301_vm3, %v2296_v63, %v1143_v61  ;;  %v1719_v41 = vpop.permute.xlu1 %1718 }
 0x16d   : > { %v2370_v58 = vsel %vm2338_vm4, %v2333_v17, %v1269_v59  ;;  %v3512_v17 = vld [vmem:[#allocation2] sm:$0xf] }
 0x16f   : > { %v1575_v30 = vpop.permute.xlu0 %1574 }
 0x170   : > { %v2407_v33 = vsel %vm2375_vm5, %v2370_v58, %v1575_v30  ;;  %v2151_v26 = vpop.permute.xlu1 %2150 }
 0x171   : > { %v2444_v28 = vsel %vm2412_vm6, %v2407_v33, %v1719_v41 }
 0x173   : > { %v1845_v14 = vpop.permute.xlu0 %1844 }
 0x174   : > { %v2481_v22 = vsel %vm2449_vm7, %v2444_v28, %v1845_v14  ;;  %v1145_v11 = vpop.permute.xlu1 %1144 }
 0x175   : > { %v2533_v62 = vsel %vm2486_vm8, %v2481_v22, %v2151_v26 }
 0x176   : > { %2820 = vmatmul.mubr.bf16.gmra.mrb[60].mxu0 %v2533_v62  ;;  %v9814_v62 = vld [vmem:[%s13619_s4 + $0x188] sm:$0xff]  }
 0x177   : > { %v1000_v60 = vpop.permute.xlu0 %999  ;;  %8299 = vmatprep.mubr.msk.bf16.mxu0 %vm2264_vm2, %v11503_v24 }
 0x178   : > { %v2298_v2 = vsel %vm2264_vm2, %v11231_v46, %v1000_v60  ;;  %v1577_v40 = vpop.permute.xlu1 %1576  ;;  %v11741_v46 = vld [vmem:[%s13618_s3] ss:$0 sm:$0xff]  ;;  %v3518_v60 = vld [vmem:[#allocation2 + $0x8] sm:$0x1] }
 0x179   : > { %v2335_v39 = vsel %vm2301_vm3, %v2298_v2, %v1145_v11 }
 0x17b   : > { %v1271_v8 = vpop.permute.xlu0 %1270 }
 0x17c   : > { %v2372_v12 = vsel %vm2338_vm4, %v2335_v39, %v1271_v8  ;;  %v1847_v23 = vpop.permute.xlu1 %1846 }
 0x17d   : > { %v2409_v24 = vsel %vm2375_vm5, %v2372_v12, %v1577_v40 }
 0x17e   : > { %v2701_v51 = vpop.f32.mrb[0].mxu0 }
 0x17f   : > { %v2851_v27 = vmul.f32 %v11735_v57, %v2701_v51  ;;  %v2703_v18 = vpop.f32.mrb[1].mxu0  ;;  %v1721_v31 = vpop.permute.xlu0 %1720 }
 0x180   : > { %v2446_v48 = vsel %vm2412_vm6, %v2409_v24, %v1721_v31  ;;  %v2704_v43 = vpop.f32.mrb[2].mxu0  ;;  %v1002_v32 = vpop.permute.xlu1 %1001 }
 0x181   : > { %v2894_v15 = vadd.f32 %v11741_v46, %v2851_v27  ;;  %v2852_v7 = vmul.f32 %v11735_v57, %v2704_v43  ;;  %v2706_v52 = vpop.f32.mrb[3].mxu0  ;;  %v2483_v37 = vsel %vm2449_vm7, %v2446_v48, %v1847_v23  ;;  %v2300_v35 = vsel %vm2264_vm2, %v11463_v25, %v1002_v32 }
 0x182   : > { %v13763_v48 = vmov 0   ;;  %v3521_v52 = vld [vmem:[#allocation2 + $0xc] sm:$0xf] }
 0x183   : > { %vm2930_vm9 = vcmp.gt.f32.partialorder %v2894_v15, 0.0  ;;  %v2966_v38 = vmul.f32 0.01, %v2894_v15  ;;  %v2895_v1 = vadd.f32 %v11741_v46, %v2852_v7  ;;  %v2153_v4 = vpop.permute.xlu0 %2152  ;;  %v9728_v7 = vld [vmem:[%s13619_s4 + $0xc0] sm:$0xff]  }
 0x184   : > { %v2536_v0 = vsel %vm2486_vm8, %v2483_v37, %v2153_v4  ;;  %v1273_v21 = vpop.permute.xlu1 %1272  ;;  %8953 = vmatprep.subr.bf16.mxu1 %v9728_v7 }
 0x185   : > { %v3002_v47 = vsel %vm2930_vm9, %v2894_v15, %v2966_v38  ;;  %vm2931_vm10 = vcmp.gt.f32.partialorder %v2895_v1, 0.0  ;;  %v2967_v55 = vmul.f32 0.01, %v2895_v1  ;;  %2828 = vmatmul.mubr.bf16.gmra.mrb[64].mxu0 %v2536_v0  ;;  %vm11762_vm9 = vmand %vm3509_vm12, %vm3510_vm13 }
 0x186   : > { %v8677_v19 = vpack.c.bf16 %v3002_v47, %v3002_v47  ;;  %v2709_v29 = vpop.f32.mrb[4].mxu0  ;;  %8300 = vmatprep.mubr.msk.bf16.mxu0 %vm2264_vm2, %v2263_v45 }
 0x187   : > { %v3003_v16 = vsel %vm2931_vm10, %v2895_v1, %v2967_v55  ;;  %v2853_v5 = vmul.f32 %v11735_v57, %v2709_v29  ;;  %v2711_v9 = vpop.f32.mrb[5].mxu0  ;;  %v1147_v56 = vpop.permute.xlu0 %1146  ;;  %vm11775_vm10 = vmor %vm3146_vm11, %vm3147_vm15  ;;  %v3525_v29 = vld [vmem:[#allocation2 + $0x14] sm:$0x1] }
 0x188   : > { %v3150_v34 = vshrl.u32 %v8677_v19, 16  ;;  %v8678_v36 = vpack.c.bf16 %v3003_v16, %v3003_v16  ;;  %v2712_v13 = vpop.f32.mrb[6].mxu0  ;;  %v2337_v20 = vsel %vm2301_vm3, %v2300_v35, %v1147_v56  ;;  %v1723_v54 = vpop.permute.xlu1 %1722  ;;  %v3153_v59 = vshll.u32 %v8677_v19, 16 }
 0x189   : > { %v2896_v25 = vadd.f32 %v11741_v46, %v2853_v5  ;;  %v2854_v3 = vmul.f32 %v11735_v57, %v2712_v13  ;;  %v2714_v10 = vpop.f32.mrb[7].mxu0  ;;  %v2374_v6 = vsel %vm2338_vm4, %v2337_v20, %v1273_v21  ;;  %vm11769_vm4 = vmand %vm3516_vm14, %vm3146_vm11 }
 0x18a   : > { %v3152_v49 = vrot.slane %v3150_v34, 7  ;;  %v3158_v63 = vshrl.u32 %v8678_v36, 16  ;;  %v3161_v41 = vshll.u32 %v8678_v36, 16 }
 0x18b   : > { %vm2932_vm3 = vcmp.gt.f32.partialorder %v2896_v25, 0.0  ;;  %v2968_v58 = vmul.f32 0.01, %v2896_v25  ;;  %v2897_v30 = vadd.f32 %v11741_v46, %v2854_v3  ;;  %v1579_v33 = vpop.permute.xlu0 %1578 }
 0x18c   : > { %v3155_v26 = vor.u32 %v3153_v59, %v3152_v49  ;;  %v3156_v28 = vrot.slane %v3152_v49, 4  ;;  %v3160_v22 = vrot.slane %v3158_v63, 7  ;;  %v2411_v11 = vsel %vm2375_vm5, %v2374_v6, %v1579_v33  ;;  %v2155_v51 = vpop.permute.xlu1 %2154  ;;  %vm11795_vm5 = vmand %vm3516_vm14, %vm3510_vm13 }
 0x18d   : > { %v3004_v2 = vsel %vm2932_vm3, %v2896_v25, %v2968_v58  ;;  %vm2933_vm12 = vcmp.gt.f32.partialorder %v2897_v30, 0.0  ;;  %v2969_v40 = vmul.f32 0.01, %v2897_v30  ;;  %v2448_v50 = vsel %vm2412_vm6, %v2411_v11, %v1723_v54 }
 0x18e   : > { %v3513_v39 = vsel %vm11762_vm9, %v3155_v26, %v3512_v17  ;;  %v3163_v8 = vor.u32 %v3161_v41, %v3160_v22  ;;  %v3165_v42 = vrot.slane %v3160_v22, 4  ;;  %v8679_v12 = vpack.c.bf16 %v3004_v2, %v3004_v2 }
 0x18f   : > { %3514 = vst [vmem:[#allocation2] sm:$0xf] %v3513_v39  ;;  %v3005_v23 = vsel %vm2933_vm12, %v2897_v30, %v2969_v40  ;;  %v1849_v24 = vpop.permute.xlu0 %1848 }
 0x190   : > { %v3164_v27 = vsel %vm11775_vm10, %v3156_v28, %v3163_v8  ;;  %v3519_v18 = vsel %vm11769_vm4, %v3165_v42, %v3518_v60  ;;  %v3167_v31 = vshrl.u32 %v8679_v12, 16  ;;  %v8680_v44 = vpack.c.bf16 %v3005_v23, %v3005_v23  ;;  %v3528_v28 = vld [vmem:[#allocation2 + $0x18] sm:$0xf] }
 0x191   : > { %3515 = vst [vmem:[#allocation2 + $0x4] sm:$0xf] %v3164_v27  ;;  %3520 = vst [vmem:[#allocation2 + $0x8] sm:$0x1] %v3519_v18  ;;  %v2485_v53 = vsel %vm2449_vm7, %v2448_v50, %v1849_v24  ;;  %v3170_v32 = vshll.u32 %v8679_v12, 16 }
 0x192   : > { %3754 = vst [vmem:[#allocation2 + $0x4] sm:$0xf] %v13763_v48  ;;  %v3169_v43 = vrot.slane %v3167_v31, 7  ;;  %v2539_v15 = vsel %vm2486_vm8, %v2485_v53, %v2155_v51  ;;  %v3175_v37 = vshrl.u32 %v8680_v44, 16  ;;  %v3178_v45 = vshll.u32 %v8680_v44, 16 }
 0x193   : > { %2836 = vmatmul.mubr.bf16.gmra.mrb[68].mxu0 %v2539_v15  ;;  %v3532_v12 = vld [vmem:[#allocation2 + $0x20] sm:$0x1] }
 0x194   : > { %v3172_v38 = vor.u32 %v3170_v32, %v3169_v43  ;;  %v2717_v1 = vpop.f32.mrb[8].mxu0  ;;  %v3177_v4 = vrot.slane %v3175_v37, 7  ;;  %v3173_v35 = vrot.slane %v3169_v43, 4 }
 0x195   : > { %v2855_v0 = vmul.f32 %v11735_v57, %v2717_v1  ;;  %v2719_v21 = vpop.f32.mrb[9].mxu0 }
 0x196   : > { %v3640_v47 = vld [vmem:[#allocation2] sm:$0x1]  ;;  %v3522_v19 = vsel %vm11762_vm9, %v3172_v38, %v3521_v52  ;;  %v2720_v16 = vpop.f32.mrb[10].mxu0  ;;  %v3180_v9 = vor.u32 %v3178_v45, %v3177_v4  ;;  %v3182_v56 = vrot.slane %v3177_v4, 4 }
 0x197   : > { %v3641_v5 = vsel %vm11769_vm4, 0, %v3640_v47  ;;  %3523 = vst [vmem:[#allocation2 + $0xc] sm:$0xf] %v3522_v19  ;;  %v2898_v34 = vadd.f32 %v11741_v46, %v2855_v0  ;;  %v2722_v36 = vpop.f32.mrb[11].mxu0  ;;  %v2856_v20 = vmul.f32 %v11735_v57, %v2720_v16 }
 0x198   : > { %3642 = vst [vmem:[#allocation2] sm:$0x1] %v3641_v5  ;;  %v3695_v13 = vld [vmem:[#allocation2 + $0x8] sm:$0x1]  ;;  %v3181_v3 = vsel %vm11775_vm10, %v3173_v35, %v3180_v9  ;;  %v3526_v10 = vsel %vm11769_vm4, %v3182_v56, %v3525_v29 }
 0x199   : > { %3753 = vst [vmem:[#allocation2] sm:$0xf] %v13763_v48  ;;  %v3696_v25 = vsel %vm11795_vm5, 0, %v3695_v13  ;;  %vm2934_vm6 = vcmp.gt.f32.partialorder %v2898_v34, 0.0  ;;  %3524 = vst [vmem:[#allocation2 + $0x10] sm:$0xf] %v3181_v3  ;;  %v2899_v54 = vadd.f32 %v11741_v46, %v2856_v20 }
 0x19a   : > { %3697 = vst [vmem:[#allocation2 + $0x8] sm:$0x1] %v3696_v25  ;;  %3527 = vst [vmem:[#allocation2 + $0x14] sm:$0x1] %v3526_v10  ;;  %v2970_v6 = vmul.f32 0.01, %v2898_v34 }
 0x19b   : > { %3755 = vst [vmem:[#allocation2 + $0x8] sm:$0x1] %v13763_v48  ;;  %vm2935_vm7 = vcmp.gt.f32.partialorder %v2899_v54, 0.0  ;;  %v2971_v59 = vmul.f32 0.01, %v2899_v54  ;;  %v9729_v3 = vld [vmem:[%s13619_s4 + $0x80] sm:$0xff]  }
 0x19c   : > { %v3006_v49 = vsel %vm2934_vm6, %v2898_v34, %v2970_v6  ;;  %v3761_v58 = vld [vmem:[#allocation2 + $0x4] sm:$0xf] }
 0x19d   : > { %v8681_v63 = vpack.c.bf16 %v3006_v49, %v3006_v49  ;;  %v3007_v41 = vsel %vm2935_vm7, %v2899_v54, %v2971_v59  ;;  %v9735_v59 = vld [vmem:[%s13619_s4 + $0xc8] sm:$0xff]  }
 0x19e   : > { %v3643_v17 = vld [vmem:[#allocation2 + $0xc] sm:$0x1]  ;;  %v8682_v26 = vpack.c.bf16 %v3007_v41, %v3007_v41  ;;  %v3873_v47 = vld [vmem:[#allocation2 + $0xc] sm:$0xe] }
 0x19f   : > { %v3644_v30 = vsel %vm11769_vm4, 0, %v3643_v17  ;;  %v3184_v33 = vshrl.u32 %v8681_v63, 16  ;;  %v3187_v2 = vshll.u32 %v8681_v63, 16  ;;  %v11836_v10 = vld [vmem:[#allocation2 + $0xc] sm:$0xe] }
 0x1a0   : > { %3645 = vst [vmem:[#allocation2 + $0xc] sm:$0x1] %v3644_v30  ;;  %v3760_v22 = vld [vmem:[#allocation2] sm:$0xf]  ;;  %v3192_v40 = vshrl.u32 %v8682_v26, 16  ;;  %v3195_v42 = vshll.u32 %v8682_v26, 16 }
 0x1a1   : > { %v3698_v11 = vld [vmem:[#allocation2 + $0x14] sm:$0x1]  ;;  %v3186_v60 = vrot.slane %v3184_v33, 7  ;;  %v2725_v50 = vpop.f32.mrb[12].mxu0  ;;  %v8339_v39 = vcombine.low %v3760_v22, %v3761_v58  ;;  %v3826_v52 = vld [vmem:[#allocation2 + $0x10] sm:$0xf] }
 0x1a2   : > { %v3699_v8 = vsel %vm11795_vm5, 0, %v3698_v11  ;;  %v2857_v23 = vmul.f32 %v11735_v57, %v2725_v50  ;;  %v2727_v24 = vpop.f32.mrb[13].mxu0  ;;  %v3194_v18 = vrot.slane %v3192_v40, 7  ;;  %v9694_v44 = vld [vmem:[#allocation2 + $0x8] ss:$0 sps:$4 sm:$0x11]   ;;  %v8419_v16 = vcombine.low %v3873_v47, %v3826_v52 }
 0x1a3   : > { %3700 = vst [vmem:[#allocation2 + $0x14] sm:$0x1] %v3699_v8  ;;  %v3189_v51 = vor.u32 %v3187_v2, %v3186_v60  ;;  %v3190_v27 = vrot.slane %v3186_v60, 4  ;;  %v2728_v31 = vpop.f32.mrb[14].mxu0  ;;  %v4099_v15 = vshrl.u32 %v8339_v39, 16  ;;  %v4101_v7 = vshll.u32 %v8339_v39, 16 }
 0x1a4   : > { %v2900_v53 = vadd.f32 %v11741_v46, %v2857_v23  ;;  %v2858_v43 = vmul.f32 %v11735_v57, %v2728_v31  ;;  %v2730_v32 = vpop.f32.mrb[15].mxu0  ;;  %v3197_v38 = vor.u32 %v3195_v42, %v3194_v18  ;;  %v3199_v1 = vrot.slane %v3194_v18, 4  ;;  %v11828_v9 = vld [vmem:[#allocation2 + $0x10] sm:$0xf]  ;;  %v9736_v30 = vld [vmem:[%s13619_s4 + $0x88] sm:$0xff]  }
 0x1a5   : > { %v3529_v37 = vsel %vm11762_vm9, %v3189_v51, %v3528_v28  ;;  %v4106_v4 = vshll.u32 %v9694_v44, 16  ;;  %v4103_v21 = vrot.slane %v4101_v7, 1  ;;  %v4818_v58 = vrot.slane %v8419_v16, 1  ;;  %v9742_v51 = vld [vmem:[%s13619_s4 + $0xd0] sm:$0xff]  }
 0x1a6   : > { %3530 = vst [vmem:[#allocation2 + $0x18] sm:$0xf] %v3529_v37  ;;  %vm2936_vm8 = vcmp.gt.f32.partialorder %v2900_v53, 0.0  ;;  %v2972_v45 = vmul.f32 0.01, %v2900_v53  ;;  %v2901_v0 = vadd.f32 %v11741_v46, %v2858_v43  ;;  %v3198_v35 = vsel %vm11775_vm10, %v3190_v27, %v3197_v38  ;;  %v9743_v47 = vld [vmem:[%s13619_s4 + $0x90] sm:$0xff]  }
 0x1a7   : > { %v3533_v19 = vsel %vm11769_vm4, %v3199_v1, %v3532_v12  ;;  %v4108_v29 = vrot.slane %v4106_v4, 1  ;;  %v3762_v5 = vld [vmem:[#allocation2 + $0xc] sm:$0xf]  ;;  %3531 = vst [vmem:[#allocation2 + $0x1c] sm:$0xf] %v3198_v35  ;;  %v4104_v36 = vor.u32 %v4103_v21, %v4099_v15  ;;  %v8372_v11 = vcombine.low %v11836_v10, %v11828_v9 }
 0x1a8   : > { %3534 = vst [vmem:[#allocation2 + $0x20] sm:$0x1] %v3533_v19  ;;  %v3008_v56 = vsel %vm2936_vm8, %v2900_v53, %v2972_v45  ;;  %vm2937_vm11 = vcmp.gt.f32.partialorder %v2901_v0, 0.0  ;;  %v2973_v34 = vmul.f32 0.01, %v2901_v0  ;;  %v11831_v25 = vcombine.low %v3762_v5, %v11828_v9 }
 0x1a9   : > { %v3825_v13 = vld [vmem:[#allocation2 + $0xc] sm:$0xf]  ;;  %v8683_v20 = vpack.c.bf16 %v3008_v56, %v3008_v56  ;;  %v4109_v54 = vsel %vm750_vm1, %v4104_v36, %v4108_v29  ;;  %v3535_v12 = vld [vmem:[#allocation2 + $0x24] sm:$0xf] }
 0x1aa   : > { %v3009_v6 = vsel %vm2937_vm11, %v2901_v0, %v2973_v34  ;;  %v9699_v49 = vld [vmem:[#allocation2 + $0x14] ss:$0 sps:$4 sm:$0x11]   ;;  %5954 = vmatprep.mubr.bf16.mxu1 %v4109_v54  ;;  %v11842_v41 = vcombine.low %v3825_v13, %v3826_v52  ;;  %v4113_v22 = vshll.u32 %v11831_v25, 16  ;;  %v4111_v8 = vshrl.u32 %v11831_v25, 16 }
 0x1ab   : > { %v3201_v63 = vshrl.u32 %v8683_v20, 16  ;;  %v8684_v17 = vpack.c.bf16 %v3009_v6, %v3009_v6  ;;  %v3204_v33 = vshll.u32 %v8683_v20, 16  ;;  %5955 = vmatmul.mubr.bf16.vlgmr.msra.gmra.mrb[0].mxu1 %v8339_v39  ;;  %v4819_v26 = vrot.slane %v9699_v49, 1  ;;  %v11847_v28 = vld [vmem:[#allocation2 + $0x14] ss:$0 sps:$4 sm:$0x11]  }
 0x1ac   : > { %v4570_v50 = vshll.u32 %v9699_v49, 16  ;;  %8954 = vmatpush3.bf16.msra.mxu1 %v9729_v3  ;;  %v4115_v23 = vrot.slane %v4113_v22, 1  ;;  %v4118_v24 = vshll.u32 %v11847_v28, 16  ;;  %v4565_v53 = vshll.u32 %v11842_v41, 16  ;;  %v3539_v15 = vld [vmem:[#allocation2 + $0x2c] sm:$0x1] }
 0x1ad   : > { %v3646_v60 = vld [vmem:[#allocation2 + $0x18] sm:$0x1]  ;;  %v3203_v2 = vrot.slane %v3201_v63, 7  ;;  %v3209_v40 = vshrl.u32 %v8684_v17, 16  ;;  %v4820_v39 = vsel %vm1057_vm0, %v4818_v58, %v4819_v26  ;;  %8955 = vmatprep.subr.bf16.mxu1 %v9735_v59  ;;  %v3212_v44 = vshll.u32 %v8684_v17, 16 }
 0x1ae   : > { %v3647_v42 = vsel %vm11769_vm4, 0, %v3646_v60  ;;  %6276 = vmatprep.mubr.bf16.mxu0 %v4820_v39  ;;  %v4116_v52 = vor.u32 %v4115_v23, %v4111_v8  ;;  %v4120_v37 = vrot.slane %v4118_v24, 1  ;;  %v3828_v21 = vld [vmem:[#allocation2 + $0x1c] sm:$0xf]  ;;  %v4563_v19 = vshrl.u32 %v11842_v41, 16 }
 0x1af   : > { %3648 = vst [vmem:[#allocation2 + $0x18] sm:$0x1] %v3647_v42  ;;  %v3701_v27 = vld [vmem:[#allocation2 + $0x20] sm:$0x1]  ;;  %v3206_v18 = vor.u32 %v3204_v33, %v3203_v2  ;;  %v3211_v31 = vrot.slane %v3209_v40, 7  ;;  %v3207_v32 = vrot.slane %v3203_v2, 4 }
 0x1b0   : > { %v3702_v43 = vsel %vm11795_vm5, 0, %v3701_v27  ;;  %v2733_v7 = vpop.f32.mrb[16].mxu0  ;;  %8956 = vmatpush3.bf16.msra.mxu1 %v9736_v30  ;;  %v4121_v35 = vsel %vm750_vm1, %v4116_v52, %v4120_v37  ;;  %v4567_v29 = vrot.slane %v4565_v53, 1  ;;  %v4572_v16 = vrot.slane %v4570_v50, 1  ;;  %v3874_v20 = vld [vmem:[#allocation2 + $0x18] sm:$0xe] }
 0x1b1   : > { %3703 = vst [vmem:[#allocation2 + $0x20] sm:$0x1] %v3702_v43  ;;  %v3536_v38 = vsel %vm11762_vm9, %v3206_v18, %v3535_v12  ;;  %v3214_v1 = vor.u32 %v3212_v44, %v3211_v31  ;;  %v3216_v4 = vrot.slane %v3211_v31, 4  ;;  %v2859_v45 = vmul.f32 %v11735_v57, %v2733_v7  ;;  %v2735_v0 = vpop.f32.mrb[17].mxu0  ;;  %8957 = vmatprep.subr.bf16.mxu1 %v9742_v51  ;;  %v3542_v37 = vld [vmem:[#allocation2 + $0x30] sm:$0xf] }
 0x1b2   : > { %3537 = vst [vmem:[#allocation2 + $0x24] sm:$0xf] %v3536_v38  ;;  %v2736_v5 = vpop.f32.mrb[18].mxu0  ;;  %5962 = vmatprep.mubr.bf16.mxu1 %v4121_v35  ;;  %v4568_v3 = vor.u32 %v4567_v29, %v4563_v19  ;;  %v8420_v10 = vcombine.low %v3874_v20, %v3828_v21  ;;  %v4358_v49 = vrot.slane %v11847_v28, 1  ;;  %v4357_v58 = vrot.slane %v8372_v11, 1 }
 0x1b3   : > { %v3215_v9 = vsel %vm11775_vm10, %v3207_v32, %v3214_v1  ;;  %v3540_v56 = vsel %vm11769_vm4, %v3216_v4, %v3539_v15  ;;  %v2902_v34 = vadd.f32 %v11741_v46, %v2859_v45  ;;  %v2860_v36 = vmul.f32 %v11735_v57, %v2736_v5  ;;  %v2738_v13 = vpop.f32.mrb[19].mxu0  ;;  %5963 = vmatmul.mubr.bf16.gmra.mrb[4].mxu1 %v11831_v25  ;;  %v11883_v25 = vld [vmem:[#allocation2 + $0x1c] sm:$0xf] }
 0x1b4   : > { %3538 = vst [vmem:[#allocation2 + $0x28] sm:$0xf] %v3215_v9  ;;  %3541 = vst [vmem:[#allocation2 + $0x2c] sm:$0x1] %v3540_v56  ;;  %8958 = vmatpush3.bf16.msra.mxu1 %v9743_v47  ;;  %v4573_v59 = vsel %vm750_vm1, %v4568_v3, %v4572_v16  ;;  %v4821_v2 = vrot.slane %v8420_v10, 1  ;;  %v11891_v42 = vsel %vm1057_vm0, %v4357_v58, %v4358_v49 }
 0x1b5   : > { %vm2938_vm13 = vcmp.gt.f32.partialorder %v2902_v34, 0.0  ;;  %v2974_v6 = vmul.f32 0.01, %v2902_v34  ;;  %v2903_v54 = vadd.f32 %v11741_v46, %v2860_v36  ;;  %6277 = vmatmul.mubr.bf16.vlgmr.msra.gmra.mrb[72].mxu0 %v4573_v59  ;;  %v3546_v9 = vld [vmem:[#allocation2 + $0x38] sm:$0x1] }
 0x1b6   : > { %v3827_v63 = vld [vmem:[#allocation2 + $0x18] sm:$0xf] }
 0x1b7   : > { %v3764_v17 = vld [vmem:[#allocation2 + $0x18] sm:$0xf]  ;;  %v3010_v30 = vsel %vm2938_vm13, %v2902_v34, %v2974_v6  ;;  %vm2939_vm14 = vcmp.gt.f32.partialorder %v2903_v54, 0.0  ;;  %v2975_v33 = vmul.f32 0.01, %v2903_v54  ;;  %v11881_v26 = vcombine.low %v3827_v63, %v3828_v21 }
 0x1b8   : > { %v8685_v22 = vpack.c.bf16 %v3010_v30, %v3010_v30  ;;  %v9704_v60 = vld [vmem:[#allocation2 + $0x20] ss:$0 sps:$4 sm:$0x11]   ;;  %v11886_v40 = vcombine.low %v3764_v17, %v11883_v25  ;;  %v9749_v21 = vld [vmem:[%s13619_s4 + $0xd8] sm:$0xff]  }
 0x1b9   : > { %v3649_v28 = vld [vmem:[#allocation2 + $0x24] sm:$0x1]  ;;  %v3011_v50 = vsel %vm2939_vm14, %v2903_v54, %v2975_v33  ;;  %v4575_v8 = vshrl.u32 %v11881_v26, 16  ;;  %v4577_v11 = vshll.u32 %v11881_v26, 16  ;;  %v4822_v18 = vrot.slane %v9704_v60, 1  ;;  %8959 = vmatprep.subr.bf16.mxu1 %v9749_v21 }
 0x1ba   : > { %v3650_v12 = vsel %vm11769_vm4, 0, %v3649_v28  ;;  %v3218_v39 = vshrl.u32 %v8685_v22, 16  ;;  %v3221_v23 = vshll.u32 %v8685_v22, 16  ;;  %v8686_v24 = vpack.c.bf16 %v3011_v50, %v3011_v50  ;;  %v11895_v51 = vld [vmem:[#allocation2 + $0x20] ss:$0 sps:$4 sm:$0x11]  }
 0x1bb   : > { %3651 = vst [vmem:[#allocation2 + $0x24] sm:$0x1] %v3650_v12  ;;  %v3704_v27 = vld [vmem:[#allocation2 + $0x2c] sm:$0x1]  ;;  %v4123_v31 = vshrl.u32 %v11886_v40, 16  ;;  %v4125_v44 = vshll.u32 %v11886_v40, 16  ;;  %v4823_v1 = vsel %vm1057_vm0, %v4821_v2, %v4822_v18 }
 0x1bc   : > { %v4579_v53 = vrot.slane %v4577_v11, 1  ;;  %v3705_v43 = vsel %vm11795_vm5, 0, %v3704_v27  ;;  %v3220_v32 = vrot.slane %v3218_v39, 7  ;;  %v3226_v15 = vshrl.u32 %v8686_v24, 16  ;;  %v3830_v52 = vld [vmem:[#allocation2 + $0x28] sm:$0xf]  ;;  %6284 = vmatprep.mubr.bf16.mxu0 %v4823_v1 }
 0x1bd   : > { %v3229_v7 = vshll.u32 %v8686_v24, 16  ;;  %3706 = vst [vmem:[#allocation2 + $0x2c] sm:$0x1] %v3705_v43  ;;  %v2741_v38 = vpop.f32.mrb[20].mxu0  ;;  %v4127_v4 = vrot.slane %v4125_v44, 1  ;;  %v4130_v45 = vshll.u32 %v11895_v51, 16 }
 0x1be   : > { %v4580_v0 = vor.u32 %v4579_v53, %v4575_v8  ;;  %v3223_v47 = vor.u32 %v3221_v23, %v3220_v32  ;;  %v3224_v35 = vrot.slane %v3220_v32, 4  ;;  %v3228_v19 = vrot.slane %v3226_v15, 7  ;;  %v2743_v16 = vpop.f32.mrb[21].mxu0  ;;  %v3875_v5 = vld [vmem:[#allocation2 + $0x24] sm:$0xe] }
 0x1bf   : > { %v2861_v29 = vmul.f32 %v11735_v57, %v2741_v38  ;;  %v2744_v56 = vpop.f32.mrb[22].mxu0  ;;  %v4128_v34 = vor.u32 %v4127_v4, %v4123_v31  ;;  %v4132_v36 = vrot.slane %v4130_v45, 1  ;;  %v4582_v13 = vshll.u32 %v9704_v60, 16  ;;  %v11921_v8 = vld [vmem:[#allocation2 + $0x28] sm:$0xf]  ;;  %v9750_v38 = vld [vmem:[%s13619_s4 + $0x98] sm:$0xff]  }
 0x1c0   : > { %v8421_v20 = vcombine.low %v3875_v5, %v3830_v52  ;;  %v3543_v3 = vsel %vm11762_vm9, %v3223_v47, %v3542_v37  ;;  %v3231_v10 = vor.u32 %v3229_v7, %v3228_v19  ;;  %v3233_v6 = vrot.slane %v3228_v19, 4  ;;  %v2746_v49 = vpop.f32.mrb[23].mxu0  ;;  %v3810_v11 = vld [vmem:[#allocation2 + $0x18] sm:$0xe]  ;;  %8960 = vmatpush3.bf16.msra.mxu1 %v9750_v38  ;;  %v3549_v16 = vld [vmem:[#allocation2 + $0x3c] sm:$0xf] }
 0x1c1   : > { %v2904_v54 = vadd.f32 %v11741_v46, %v2861_v29  ;;  %3544 = vst [vmem:[#allocation2 + $0x30] sm:$0xf] %v3543_v3  ;;  %v2862_v59 = vmul.f32 %v11735_v57, %v2744_v56  ;;  %v4133_v63 = vsel %vm750_vm1, %v4128_v34, %v4132_v36  ;;  %v4584_v17 = vrot.slane %v4582_v13, 1 }
 0x1c2   : > { %v3232_v58 = vsel %vm11775_vm10, %v3224_v35, %v3231_v10  ;;  %v3547_v30 = vsel %vm11769_vm4, %v3233_v6, %v3546_v9  ;;  %5970 = vmatprep.mubr.bf16.mxu1 %v4133_v63  ;;  %v3829_v22 = vld [vmem:[#allocation2 + $0x24] sm:$0xf]  ;;  %v4824_v23 = vrot.slane %v8421_v20, 1  ;;  %v8373_v32 = vcombine.low %v3810_v11, %v11883_v25 }
 0x1c3   : > { %vm2940_vm15 = vcmp.gt.f32.partialorder %v2904_v54, 0.0  ;;  %v2976_v33 = vmul.f32 0.01, %v2904_v54  ;;  %3545 = vst [vmem:[#allocation2 + $0x34] sm:$0xf] %v3232_v58  ;;  %v2905_v60 = vadd.f32 %v11741_v46, %v2862_v59  ;;  %v4585_v2 = vsel %vm750_vm1, %v4580_v0, %v4584_v17  ;;  %5971 = vmatmul.mubr.bf16.gmra.mrb[8].mxu1 %v11886_v40 }
 0x1c4   : > { %3548 = vst [vmem:[#allocation2 + $0x38] sm:$0x1] %v3547_v30  ;;  %v11919_v28 = vcombine.low %v3829_v22, %v3830_v52  ;;  %v3766_v50 = vld [vmem:[#allocation2 + $0x24] sm:$0xf]  ;;  %6285 = vmatmul.mubr.bf16.gmra.mrb[76].mxu0 %v4585_v2  ;;  %v4360_v30 = vrot.slane %v8373_v32, 1 }
 0x1c5   : > { %v3012_v12 = vsel %vm2940_vm15, %v2904_v54, %v2976_v33  ;;  %v9709_v39 = vld [vmem:[#allocation2 + $0x2c] ss:$0 sps:$4 sm:$0x11]   ;;  %v8342_v24 = vcombine.low %v3766_v50, %v11921_v8  ;;  %vm2941_vm3 = vcmp.gt.f32.partialorder %v2905_v60, 0.0  ;;  %v2977_v18 = vmul.f32 0.01, %v2905_v60 }
 0x1c6   : > { %v8687_v27 = vpack.c.bf16 %v3012_v12, %v3012_v12  ;;  %v4587_v31 = vshrl.u32 %v11919_v28, 16  ;;  %v4825_v44 = vrot.slane %v9709_v39, 1  ;;  %v11925_v53 = vld [vmem:[#allocation2 + $0x2c] ss:$0 sps:$4 sm:$0x11]   ;;  %v4589_v37 = vshll.u32 %v11919_v28, 16 }
 0x1c7   : > { %v4135_v40 = vshrl.u32 %v8342_v24, 16  ;;  %v4137_v43 = vshll.u32 %v8342_v24, 16  ;;  %v3013_v52 = vsel %vm2941_vm3, %v2905_v60, %v2977_v18  ;;  %v4142_v21 = vshll.u32 %v11925_v53, 16  ;;  %v3553_v10 = vld [vmem:[#allocation2 + $0x44] sm:$0x1] }
 0x1c8   : > { %v3235_v15 = vshrl.u32 %v8687_v27, 16  ;;  %v3238_v7 = vshll.u32 %v8687_v27, 16  ;;  %v3652_v1 = vld [vmem:[#allocation2 + $0x30] sm:$0x1]  ;;  %v8688_v4 = vpack.c.bf16 %v3013_v52, %v3013_v52  ;;  %v4826_v45 = vsel %vm1057_vm0, %v4824_v23, %v4825_v44  ;;  %v3876_v27 = vld [vmem:[#allocation2 + $0x30] sm:$0xe] }
 0x1c9   : > { %v4139_v0 = vrot.slane %v4137_v43, 1  ;;  %v3653_v47 = vsel %vm11769_vm4, 0, %v3652_v1  ;;  %6292 = vmatprep.mubr.bf16.mxu0 %v4826_v45  ;;  %v4591_v35 = vrot.slane %v4589_v37, 1  ;;  %v4594_v19 = vshll.u32 %v9709_v39, 16  ;;  %v11958_v52 = vld [vmem:[#allocation2 + $0x24] sm:$0xe] }
 0x1ca   : > { %v3237_v25 = vrot.slane %v3235_v15, 7  ;;  %3654 = vst [vmem:[#allocation2 + $0x30] sm:$0x1] %v3653_v47  ;;  %v3243_v5 = vshrl.u32 %v8688_v4, 16  ;;  %v4144_v56 = vrot.slane %v4142_v21, 1  ;;  %v3246_v3 = vshll.u32 %v8688_v4, 16 }
 0x1cb   : > { %v3707_v29 = vld [vmem:[#allocation2 + $0x38] sm:$0x1]  ;;  %v4140_v9 = vor.u32 %v4139_v0, %v4135_v40  ;;  %v4592_v13 = vor.u32 %v4591_v35, %v4587_v31  ;;  %v4596_v49 = vrot.slane %v4594_v19, 1  ;;  %v3832_v58 = vld [vmem:[#allocation2 + $0x34] sm:$0xf]  ;;  %v4361_v33 = vrot.slane %v11895_v51, 1 }
 0x1cc   : > { %v3708_v34 = vsel %vm11795_vm5, 0, %v3707_v29  ;;  %v3240_v36 = vor.u32 %v3238_v7, %v3237_v25  ;;  %v3245_v20 = vrot.slane %v3243_v5, 7  ;;  %v2749_v6 = vpop.f32.mrb[24].mxu0  ;;  %v3241_v22 = vrot.slane %v3237_v25, 4  ;;  %v11956_v7 = vld [vmem:[#allocation2 + $0x34] sm:$0xf] }
 0x1cd   : > { %3709 = vst [vmem:[#allocation2 + $0x38] sm:$0x1] %v3708_v34  ;;  %v4145_v54 = vsel %vm750_vm1, %v4140_v9, %v4144_v56  ;;  %v2863_v63 = vmul.f32 %v11735_v57, %v2749_v6  ;;  %v2751_v17 = vpop.f32.mrb[25].mxu0  ;;  %v4597_v50 = vsel %vm750_vm1, %v4592_v13, %v4596_v49  ;;  %v11947_v18 = vsel %vm1057_vm0, %v4360_v30, %v4361_v33  ;;  %v9761_v56 = vld [vmem:[%s13619_s4 + $0xe0] sm:$0xff]  }
 0x1ce   : > { %v3550_v59 = vsel %vm11762_vm9, %v3240_v36, %v3549_v16  ;;  %5978 = vmatprep.mubr.bf16.mxu1 %v4145_v54  ;;  %v3248_v60 = vor.u32 %v3246_v3, %v3245_v20  ;;  %v3250_v2 = vrot.slane %v3245_v20, 4  ;;  %v2752_v11 = vpop.f32.mrb[26].mxu0  ;;  %6293 = vmatmul.mubr.bf16.gmra.mrb[80].mxu0 %v4597_v50  ;;  %v8422_v44 = vcombine.low %v3876_v27, %v3832_v58 }
 0x1cf   : > { %3551 = vst [vmem:[#allocation2 + $0x3c] sm:$0xf] %v3550_v59  ;;  %5979 = vmatmul.mubr.bf16.gmra.mrb[12].mxu1 %v8342_v24  ;;  %v2906_v12 = vadd.f32 %v11741_v46, %v2863_v63  ;;  %v2864_v39 = vmul.f32 %v11735_v57, %v2752_v11  ;;  %v2754_v23 = vpop.f32.mrb[27].mxu0  ;;  %v8374_v19 = vcombine.low %v11958_v52, %v11921_v8  ;;  %v9762_v8 = vld [vmem:[%s13619_s4 + $0xa0] sm:$0xff]   ;;  %v3556_v63 = vld [vmem:[#allocation2 + $0x48] sm:$0xf] }
 0x1d0   : > { %v3249_v51 = vsel %vm11775_vm10, %v3241_v22, %v3248_v60  ;;  %v3554_v31 = vsel %vm11769_vm4, %v3250_v2, %v3553_v10  ;;  %v4827_v0 = vrot.slane %v8422_v44, 1  ;;  %8961 = vmatprep.subr.bf16.mxu1 %v9761_v56  ;;  %v3560_v23 = vld [vmem:[#allocation2 + $0x50] sm:$0x1] }
 0x1d1   : > { %3552 = vst [vmem:[#allocation2 + $0x40] sm:$0xf] %v3249_v51  ;;  %3555 = vst [vmem:[#allocation2 + $0x44] sm:$0x1] %v3554_v31  ;;  %vm2942_vm12 = vcmp.gt.f32.partialorder %v2906_v12, 0.0  ;;  %v2907_v40 = vadd.f32 %v11741_v46, %v2864_v39  ;;  %8962 = vmatpush3.bf16.msra.mxu1 %v9762_v8  ;;  %v4363_v56 = vrot.slane %v8374_v19, 1 }
 0x1d2   : > { %v2978_v24 = vmul.f32 0.01, %v2906_v12  ;;  %v3831_v43 = vld [vmem:[#allocation2 + $0x30] sm:$0xf] }
 0x1d3   : > { %v11954_v32 = vcombine.low %v3831_v43, %v3832_v58  ;;  %v3768_v15 = vld [vmem:[#allocation2 + $0x30] sm:$0xf]  ;;  %vm2943_vm6 = vcmp.gt.f32.partialorder %v2907_v40, 0.0  ;;  %v2979_v38 = vmul.f32 0.01, %v2907_v40 }
 0x1d4   : > { %v3014_v37 = vsel %vm2942_vm12, %v2906_v12, %v2978_v24  ;;  %v11961_v1 = vcombine.low %v3768_v15, %v11956_v7  ;;  %v9714_v45 = vld [vmem:[#allocation2 + $0x38] ss:$0 sps:$4 sm:$0x11]  }
 0x1d5   : > { %v8689_v4 = vpack.c.bf16 %v3014_v37, %v3014_v37  ;;  %v3015_v47 = vsel %vm2943_vm6, %v2907_v40, %v2979_v38  ;;  %v11963_v25 = vld [vmem:[#allocation2 + $0x38] ss:$0 sps:$4 sm:$0x11]   ;;  %v4599_v35 = vshrl.u32 %v11954_v32, 16  ;;  %v4828_v34 = vrot.slane %v9714_v45, 1 }
 0x1d6   : > { %v3655_v21 = vld [vmem:[#allocation2 + $0x3c] sm:$0x1]  ;;  %v8690_v5 = vpack.c.bf16 %v3015_v47, %v3015_v47  ;;  %v4147_v9 = vshrl.u32 %v11961_v1, 16  ;;  %v4149_v36 = vshll.u32 %v11961_v1, 16  ;;  %v4154_v13 = vshll.u32 %v11963_v25, 16 }
 0x1d7   : > { %v3656_v29 = vsel %vm11769_vm4, 0, %v3655_v21  ;;  %v3252_v16 = vshrl.u32 %v8689_v4, 16  ;;  %v4601_v20 = vshll.u32 %v11954_v32, 16  ;;  %v3255_v6 = vshll.u32 %v8689_v4, 16  ;;  %v3877_v37 = vld [vmem:[#allocation2 + $0x3c] sm:$0xe] }
 0x1d8   : > { %3657 = vst [vmem:[#allocation2 + $0x3c] sm:$0x1] %v3656_v29  ;;  %v3710_v3 = vld [vmem:[#allocation2 + $0x44] sm:$0x1]  ;;  %v3260_v54 = vshrl.u32 %v8690_v5, 16  ;;  %v4606_v49 = vshll.u32 %v9714_v45, 16  ;;  %v4829_v58 = vsel %vm1057_vm0, %v4827_v0, %v4828_v34 }
 0x1d9   : > { %v3254_v10 = vrot.slane %v3252_v16, 7  ;;  %v3711_v59 = vsel %vm11795_vm5, 0, %v3710_v3  ;;  %v2757_v17 = vpop.f32.mrb[28].mxu0  ;;  %v4151_v30 = vrot.slane %v4149_v36, 1  ;;  %v4156_v33 = vrot.slane %v4154_v13, 1  ;;  %6300 = vmatprep.mubr.bf16.mxu0 %v4829_v58 }
 0x1da   : > { %3712 = vst [vmem:[#allocation2 + $0x44] sm:$0x1] %v3711_v59  ;;  %v3262_v60 = vrot.slane %v3260_v54, 7  ;;  %v3263_v2 = vshll.u32 %v8690_v5, 16  ;;  %v2865_v50 = vmul.f32 %v11735_v57, %v2757_v17  ;;  %v2759_v11 = vpop.f32.mrb[29].mxu0  ;;  %v4603_v31 = vrot.slane %v4601_v20, 1 }
 0x1db   : > { %v3257_v22 = vor.u32 %v3255_v6, %v3254_v10  ;;  %v3834_v12 = vld [vmem:[#allocation2 + $0x40] sm:$0xf]  ;;  %v3258_v39 = vrot.slane %v3254_v10, 4  ;;  %v2760_v27 = vpop.f32.mrb[30].mxu0  ;;  %v4152_v51 = vor.u32 %v4151_v30, %v4147_v9  ;;  %v4608_v44 = vrot.slane %v4606_v49, 1 }
 0x1dc   : > { %v3265_v40 = vor.u32 %v3263_v2, %v3262_v60  ;;  %v3267_v43 = vrot.slane %v3262_v60, 4  ;;  %v2908_v15 = vadd.f32 %v11741_v46, %v2865_v50  ;;  %v2762_v52 = vpop.f32.mrb[31].mxu0  ;;  %v2866_v38 = vmul.f32 %v11735_v57, %v2760_v27  ;;  %v11996_v9 = vld [vmem:[#allocation2 + $0x40] sm:$0xf]  ;;  %v3563_v2 = vld [vmem:[#allocation2 + $0x54] sm:$0xf] }
 0x1dd   : > { %v3557_v24 = vsel %vm11762_vm9, %v3257_v22, %v3556_v63  ;;  %v4157_v4 = vsel %vm750_vm1, %v4152_v51, %v4156_v33  ;;  %v4604_v45 = vor.u32 %v4603_v31, %v4599_v35  ;;  %v8423_v0 = vcombine.low %v3877_v37, %v3834_v12  ;;  %v9768_v31 = vld [vmem:[%s13619_s4 + $0xe8] sm:$0xff]   ;;  %v3812_v52 = vld [vmem:[#allocation2 + $0x30] sm:$0xe] }
 0x1de   : > { %3558 = vst [vmem:[#allocation2 + $0x48] sm:$0xf] %v3557_v24  ;;  %v3266_v21 = vsel %vm11775_vm10, %v3258_v39, %v3265_v40  ;;  %v3561_v47 = vsel %vm11769_vm4, %v3267_v43, %v3560_v23  ;;  %vm2944_vm7 = vcmp.gt.f32.partialorder %v2908_v15, 0.0  ;;  %v2980_v29 = vmul.f32 0.01, %v2908_v15  ;;  %5986 = vmatprep.mubr.bf16.mxu1 %v4157_v4  ;;  %8963 = vmatprep.subr.bf16.mxu1 %v9768_v31 }
 0x1df   : > { %v3833_v16 = vld [vmem:[#allocation2 + $0x3c] sm:$0xf]  ;;  %3559 = vst [vmem:[#allocation2 + $0x4c] sm:$0xf] %v3266_v21  ;;  %3562 = vst [vmem:[#allocation2 + $0x50] sm:$0x1] %v3561_v47  ;;  %v2909_v5 = vadd.f32 %v11741_v46, %v2866_v38  ;;  %v4609_v57 = vsel %vm750_vm1, %v4604_v45, %v4608_v44  ;;  %5987 = vmatmul.mubr.bf16.gmra.mrb[16].mxu1 %v11961_v1 }
 0x1e0   : > { %v3770_v35 = vld [vmem:[#allocation2 + $0x3c] sm:$0xf]  ;;  %v3016_v34 = vsel %vm2944_vm7, %v2908_v15, %v2980_v29  ;;  %6301 = vmatmul.mubr.bf16.gmra.mrb[84].mxu0 %v4609_v57  ;;  %v11998_v36 = vcombine.low %v3833_v16, %v3834_v12  ;;  %v4364_v20 = vrot.slane %v11925_v53, 1  ;;  %v4830_v3 = vrot.slane %v8423_v0, 1  ;;  %v9769_v21 = vld [vmem:[%s13619_s4 + $0xa8] sm:$0xff]  }
 0x1e1   : > { %v12001_v13 = vcombine.low %v3770_v35, %v11996_v9  ;;  %v8691_v8 = vpack.c.bf16 %v3016_v34, %v3016_v34  ;;  %vm2945_vm8 = vcmp.gt.f32.partialorder %v2909_v5, 0.0  ;;  %v2981_v46 = vmul.f32 0.01, %v2909_v5  ;;  %v9719_v10 = vld [vmem:[#allocation2 + $0x44] ss:$0 sps:$4 sm:$0x11]   ;;  %8964 = vmatpush3.bf16.msra.mxu1 %v9769_v21 }
 0x1e2   : > { %v12006_v6 = vsel %vm1057_vm0, %v4363_v56, %v4364_v20  ;;  %v12008_v59 = vld [vmem:[#allocation2 + $0x44] ss:$0 sps:$4 sm:$0x11]   ;;  %v4831_v53 = vrot.slane %v9719_v10, 1  ;;  %v4613_v30 = vshll.u32 %v11998_v36, 16  ;;  %v4618_v33 = vshll.u32 %v9719_v10, 16 }
 0x1e3   : > { %v4159_v1 = vshrl.u32 %v12001_v13, 16  ;;  %v3269_v19 = vshrl.u32 %v8691_v8, 16  ;;  %v3272_v54 = vshll.u32 %v8691_v8, 16  ;;  %v3017_v49 = vsel %vm2945_vm8, %v2909_v5, %v2981_v46  ;;  %v3567_v43 = vld [vmem:[#allocation2 + $0x5c] sm:$0x1] }
 0x1e4   : > { %v4161_v63 = vshll.u32 %v12001_v13, 16  ;;  %v8692_v58 = vpack.c.bf16 %v3017_v49, %v3017_v49  ;;  %v4166_v11 = vshll.u32 %v12008_v59, 16  ;;  %v4832_v23 = vsel %vm1057_vm0, %v4830_v3, %v4831_v53  ;;  %v12030_v16 = vld [vmem:[%s13617_s2] ss:$0 sm:$0xff] }
 0x1e5   : > { %v3658_v17 = vld [vmem:[#allocation2 + $0x48] sm:$0x1]  ;;  %v3271_v60 = vrot.slane %v3269_v19, 7  ;;  %v4611_v27 = vshrl.u32 %v11998_v36, 16  ;;  %v4615_v51 = vrot.slane %v4613_v30, 1  ;;  %6308 = vmatprep.mubr.bf16.mxu0 %v4832_v23  ;;  %v4620_v0 = vrot.slane %v4618_v33, 1 }
 0x1e6   : > { %v3659_v22 = vsel %vm11769_vm4, 0, %v3658_v17  ;;  %v4163_v50 = vrot.slane %v4161_v63, 1  ;;  %v3713_v12 = vld [vmem:[#allocation2 + $0x50] sm:$0x1]  ;;  %v3277_v39 = vshrl.u32 %v8692_v58, 16  ;;  %v3280_v40 = vshll.u32 %v8692_v58, 16 }
 0x1e7   : > { %3660 = vst [vmem:[#allocation2 + $0x48] sm:$0x1] %v3659_v22  ;;  %v3714_v44 = vsel %vm11795_vm5, 0, %v3713_v12  ;;  %v3274_v24 = vor.u32 %v3272_v54, %v3271_v60  ;;  %v4168_v4 = vrot.slane %v4166_v11, 1  ;;  %v4616_v45 = vor.u32 %v4615_v51, %v4611_v27  ;;  %v3836_v35 = vld [vmem:[#allocation2 + $0x4c] sm:$0xf] }
 0x1e8   : > { %v4164_v15 = vor.u32 %v4163_v50, %v4159_v1  ;;  %3715 = vst [vmem:[#allocation2 + $0x50] sm:$0x1] %v3714_v44  ;;  %v3279_v37 = vrot.slane %v3277_v39, 7  ;;  %v2765_v38 = vpop.f32.mrb[32].mxu0  ;;  %v3275_v47 = vrot.slane %v3271_v60, 4  ;;  %v8375_v56 = vcombine.low %v3812_v52, %v11956_v7 }
 0x1e9   : > { %v3564_v29 = vsel %vm11762_vm9, %v3274_v24, %v3563_v2  ;;  %v2867_v5 = vmul.f32 %v12030_v16, %v2765_v38  ;;  %v2767_v57 = vpop.f32.mrb[33].mxu0  ;;  %v4621_v46 = vsel %vm750_vm1, %v4616_v45, %v4620_v0  ;;  %v12039_v10 = vld [vmem:[%s13618_s3] ss:$0 sm:$0xff]  ;;  %v3878_v54 = vld [vmem:[#allocation2 + $0x48] sm:$0xe]  ;;  %v4367_v50 = vrot.slane %v11963_v25, 1 }
 0x1ea   : > { %3565 = vst [vmem:[#allocation2 + $0x54] sm:$0xf] %v3564_v29  ;;  %v3282_v34 = vor.u32 %v3280_v40, %v3279_v37  ;;  %v3284_v20 = vrot.slane %v3279_v37, 4  ;;  %v4169_v8 = vsel %vm750_vm1, %v4164_v15, %v4168_v4  ;;  %v2768_v3 = vpop.f32.mrb[34].mxu0  ;;  %6309 = vmatmul.mubr.bf16.gmra.mrb[88].mxu0 %v4621_v46  ;;  %v8424_v17 = vcombine.low %v3878_v54, %v3836_v35  ;;  %v3773_v60 = vld [vmem:[#allocation2 + $0x4c] sm:$0xf] }
 0x1eb   : > { %v2910_v1 = vadd.f32 %v12039_v10, %v2867_v5  ;;  %5994 = vmatprep.mubr.bf16.mxu1 %v4169_v8  ;;  %v2868_v7 = vmul.f32 %v12030_v16, %v2768_v3  ;;  %v2770_v19 = vpop.f32.mrb[35].mxu0  ;;  %v4366_v2 = vrot.slane %v8375_v56, 1  ;;  %v3570_v38 = vld [vmem:[#allocation2 + $0x60] sm:$0xf] }
 0x1ec   : > { %v3283_v49 = vsel %vm11775_vm10, %v3275_v47, %v3282_v34  ;;  %v3568_v63 = vsel %vm11769_vm4, %v3284_v20, %v3567_v43  ;;  %5995 = vmatmul.mubr.bf16.gmra.mrb[20].mxu1 %v12001_v13  ;;  %v9782_v13 = vld [vmem:[%s13619_s4 + $0x200] sm:$0xff]   ;;  %v4833_v51 = vrot.slane %v8424_v17, 1  ;;  %v3574_v34 = vld [vmem:[#allocation2 + $0x68] sm:$0x1]  ;;  %v9775_v17 = vld [vmem:[%s13619_s4 + $0xf0] sm:$0xff]  }
 0x1ed   : > { %3566 = vst [vmem:[#allocation2 + $0x58] sm:$0xf] %v3283_v49  ;;  %3569 = vst [vmem:[#allocation2 + $0x5c] sm:$0x1] %v3568_v63  ;;  %vm2946_vm11 = vcmp.gt.f32.partialorder %v2910_v1, 0.0  ;;  %v2911_v53 = vadd.f32 %v12039_v10, %v2868_v7  ;;  %v12058_v31 = vsel %vm1057_vm0, %v4366_v2, %v4367_v50  ;;  %9330 = vmatprep.subr.bf16.mxu0 %v9782_v13  ;;  %v9776_v2 = vld [vmem:[%s13619_s4 + $0xb0] sm:$0xff]   ;;  %8965 = vmatprep.subr.bf16.mxu1 %v9775_v17 }
 0x1ee   : > { %v2982_v58 = vmul.f32 0.01, %v2910_v1  ;;  %v3835_v30 = vld [vmem:[#allocation2 + $0x48] sm:$0xf]  ;;  %9331 = vmatpush3.bf16.msra.mxu0 %v9782_v13  ;;  %v9783_v50 = vld [vmem:[%s13619_s4 + $0xf8] sm:$0xff]   ;;  %8966 = vmatpush3.bf16.msra.mxu1 %v9776_v2 }
 0x1ef   : > { %v12049_v33 = vcombine.low %v3835_v30, %v3836_v35  ;;  %v3772_v22 = vld [vmem:[#allocation2 + $0x48] sm:$0xf]  ;;  %vm2947_vm13 = vcmp.gt.f32.partialorder %v2911_v53, 0.0  ;;  %v2983_v12 = vmul.f32 0.01, %v2911_v53  ;;  %8967 = vmatprep.subr.bf16.mxu1 %v9783_v50 }
 0x1f0   : > { %v3018_v11 = vsel %vm2946_vm11, %v2910_v1, %v2982_v58  ;;  %v12052_v39 = vcombine.low %v3772_v22, %v3773_v60  ;;  %v9724_v27 = vld [vmem:[#allocation2 + $0x50] ss:$0 sps:$4 sm:$0x11]   ;;  %v3577_v2 = vld [vmem:[#allocation2 + $0x6c] sm:$0xf] }
 0x1f1   : > { %v8693_v23 = vpack.c.bf16 %v3018_v11, %v3018_v11  ;;  %v3661_v44 = vld [vmem:[#allocation2 + $0x54] sm:$0x1]  ;;  %v3019_v24 = vsel %vm2947_vm13, %v2911_v53, %v2983_v12  ;;  %v9727_v40 = vld [vmem:[#allocation2 + $0x50] ss:$0 sps:$4 sm:$0x11]   ;;  %v4623_v25 = vshrl.u32 %v12049_v33, 16 }
 0x1f2   : > { %v3662_v43 = vsel %vm11769_vm4, 0, %v3661_v44  ;;  %v8694_v52 = vpack.c.bf16 %v3019_v24, %v3019_v24  ;;  %v4171_v37 = vshrl.u32 %v12052_v39, 16  ;;  %v4834_v4 = vrot.slane %v9724_v27, 1  ;;  %v9785_v44 = vld [vmem:[%s13619_s4 + $0x208] sm:$0xff]  }
 0x1f3   : > { %v3286_v15 = vshrl.u32 %v8693_v23, 16  ;;  %3663 = vst [vmem:[#allocation2 + $0x54] sm:$0x1] %v3662_v43  ;;  %v4173_v45 = vshll.u32 %v12052_v39, 16  ;;  %v4178_v0 = vshll.u32 %v9727_v40, 16  ;;  %v4625_v21 = vshll.u32 %v12049_v33, 16  ;;  %9332 = vmatprep.subr.bf16.mxu0 %v9785_v44 }
 0x1f4   : > { %v3716_v47 = vld [vmem:[#allocation2 + $0x5c] sm:$0x1]  ;;  %v3289_v5 = vshll.u32 %v8693_v23, 16  ;;  %v3294_v57 = vshrl.u32 %v8694_v52, 16  ;;  %v4630_v35 = vshll.u32 %v9724_v27, 16  ;;  %v4835_v8 = vsel %vm1057_vm0, %v4833_v51, %v4834_v4  ;;  %9333 = vmatpush3.bf16.msra.mxu0 %v9785_v44  ;;  %v9793_v44 = vld [vmem:[%s13619_s4 + $0x220] sm:$0xff]  }
 0x1f5   : > { %v3288_v29 = vrot.slane %v3286_v15, 7  ;;  %v3717_v56 = vsel %vm11795_vm5, 0, %v3716_v47  ;;  %v2773_v20 = vpop.f32.mrb[36].mxu0  ;;  %v4175_v46 = vrot.slane %v4173_v45, 1  ;;  %v4180_v3 = vrot.slane %v4178_v0, 1  ;;  %6316 = vmatprep.mubr.bf16.mxu0 %v4835_v8  ;;  %v9794_v0 = vld [vmem:[%s13619_s4 + $0x1c0] sm:$0xff]  }
 0x1f6   : > { %3718 = vst [vmem:[#allocation2 + $0x5c] sm:$0x1] %v3717_v56  ;;  %v3296_v7 = vrot.slane %v3294_v57, 7  ;;  %v3297_v19 = vshll.u32 %v8694_v52, 16  ;;  %v2869_v54 = vmul.f32 %v12030_v16, %v2773_v20  ;;  %v2775_v49 = vpop.f32.mrb[37].mxu0  ;;  %v4627_v22 = vrot.slane %v4625_v21, 1 }
 0x1f7   : > { %v3291_v1 = vor.u32 %v3289_v5, %v3288_v29  ;;  %v3838_v63 = vld [vmem:[#allocation2 + $0x58] sm:$0xf]  ;;  %v3292_v58 = vrot.slane %v3288_v29, 4  ;;  %v2776_v53 = vpop.f32.mrb[38].mxu0  ;;  %v4176_v30 = vor.u32 %v4175_v46, %v4171_v37  ;;  %v4632_v60 = vrot.slane %v4630_v35, 1  ;;  %v9789_v37 = vld [vmem:[%s13619_s4 + $0x210] sm:$0xff]  }
 0x1f8   : > { %v3299_v12 = vor.u32 %v3297_v19, %v3296_v7  ;;  %v3301_v13 = vrot.slane %v3296_v7, 4  ;;  %v2912_v23 = vadd.f32 %v12039_v10, %v2869_v54  ;;  %v2778_v27 = vpop.f32.mrb[39].mxu0  ;;  %v3879_v51 = vld [vmem:[#allocation2 + $0x54] sm:$0xe]  ;;  %v2870_v24 = vmul.f32 %v12030_v16, %v2776_v53  ;;  %v9784_v52 = vld [vmem:[%s13619_s4 + $0xb8] sm:$0xff]   ;;  %9334 = vmatprep.subr.bf16.mxu0 %v9789_v37 }
 0x1f9   : > { %v3571_v11 = vsel %vm11762_vm9, %v3291_v1, %v3570_v38  ;;  %v4181_v40 = vsel %vm750_vm1, %v4176_v30, %v4180_v3  ;;  %v4628_v43 = vor.u32 %v4627_v22, %v4623_v25  ;;  %v8425_v15 = vcombine.low %v3879_v51, %v3838_v63  ;;  %v3775_v5 = vld [vmem:[#allocation2 + $0x58] sm:$0xf]  ;;  %8968 = vmatpush3.bf16.msra.mxu1 %v9784_v52 }
 0x1fa   : > { %3572 = vst [vmem:[#allocation2 + $0x60] sm:$0xf] %v3571_v11  ;;  %v3300_v38 = vsel %vm11775_vm10, %v3292_v58, %v3299_v12  ;;  %v3575_v4 = vsel %vm11769_vm4, %v3301_v13, %v3574_v34  ;;  %vm2948_vm14 = vcmp.gt.f32.partialorder %v2912_v23, 0.0  ;;  %v2984_v45 = vmul.f32 0.01, %v2912_v23  ;;  %6002 = vmatprep.mubr.bf16.mxu1 %v4181_v40  ;;  %v9792_v34 = vld [vmem:[%s13619_s4 + $0x218] sm:$0xff]   ;;  %9177 = vmatprep.subr.bf16.mxu1 %v9794_v0 }
 0x1fb   : > { %v3837_v25 = vld [vmem:[#allocation2 + $0x54] sm:$0xf]  ;;  %3573 = vst [vmem:[#allocation2 + $0x64] sm:$0xf] %v3300_v38  ;;  %3576 = vst [vmem:[#allocation2 + $0x68] sm:$0x1] %v3575_v4  ;;  %v2913_v21 = vadd.f32 %v12039_v10, %v2870_v24  ;;  %v4633_v47 = vsel %vm750_vm1, %v4628_v43, %v4632_v60  ;;  %6003 = vmatmul.mubr.bf16.gmra.mrb[24].mxu1 %v12052_v39  ;;  %9335 = vmatpush3.bf16.msra.mxu0 %v9789_v37 }
 0x1fc   : > { %v3774_v29 = vld [vmem:[#allocation2 + $0x54] sm:$0xf]  ;;  %v3020_v57 = vsel %vm2948_vm14, %v2912_v23, %v2984_v45  ;;  %6317 = vmatmul.mubr.bf16.gmra.mrb[92].mxu0 %v4633_v47  ;;  %v12103_v35 = vcombine.low %v3837_v25, %v3838_v63  ;;  %v4836_v46 = vrot.slane %v8425_v15, 1  ;;  %9336 = vmatprep.subr.bf16.mxu0 %v9792_v34 }
 0x1fd   : > { %v12105_v56 = vcombine.low %v3774_v29, %v3775_v5  ;;  %v8695_v20 = vpack.c.bf16 %v3020_v57, %v3020_v57  ;;  %vm2949_vm15 = vcmp.gt.f32.partialorder %v2913_v21, 0.0  ;;  %v2985_v8 = vmul.f32 0.01, %v2913_v21  ;;  %v9731_v39 = vld [vmem:[#allocation2 + $0x5c] ss:$0 sps:$4 sm:$0x11]  }
 0x1fe   : > { %v9734_v54 = vld [vmem:[#allocation2 + $0x5c] ss:$0 sps:$4 sm:$0x11]   ;;  %v4837_v58 = vrot.slane %v9731_v39, 1  ;;  %v4637_v53 = vshll.u32 %v12103_v35, 16  ;;  %v4642_v30 = vshll.u32 %v9731_v39, 16 }
 0x1ff   : > { %v4183_v3 = vshrl.u32 %v12105_v56, 16  ;;  %v3303_v1 = vshrl.u32 %v8695_v20, 16  ;;  %v3306_v7 = vshll.u32 %v8695_v20, 16  ;;  %v3021_v19 = vsel %vm2949_vm15, %v2913_v21, %v2985_v8  ;;  %v3581_v37 = vld [vmem:[#allocation2 + $0x74] sm:$0x1]  ;;  %9337 = vmatpush3.bf16.msra.mxu0 %v9792_v34 }
 0x200   : > { %v4185_v49 = vshll.u32 %v12105_v56, 16  ;;  %v8696_v17 = vpack.c.bf16 %v3021_v19, %v3021_v19  ;;  %v4190_v11 = vshll.u32 %v9734_v54, 16  ;;  %v4838_v23 = vsel %vm1057_vm0, %v4836_v46, %v4837_v58  ;;  %9338 = vmatprep.subr.bf16.mxu0 %v9793_v44 }
 0x201   : > { %v3664_v63 = vld [vmem:[#allocation2 + $0x60] sm:$0x1]  ;;  %v3305_v60 = vrot.slane %v3303_v1, 7  ;;  %v4635_v27 = vshrl.u32 %v12103_v35, 16  ;;  %v4639_v51 = vrot.slane %v4637_v53, 1  ;;  %6324 = vmatprep.mubr.bf16.mxu0 %v4838_v23  ;;  %v4644_v25 = vrot.slane %v4642_v30, 1 }
 0x202   : > { %v3665_v22 = vsel %vm11769_vm4, 0, %v3664_v63  ;;  %v4187_v50 = vrot.slane %v4185_v49, 1  ;;  %v3719_v12 = vld [vmem:[#allocation2 + $0x68] sm:$0x1]  ;;  %v3311_v13 = vshrl.u32 %v8696_v17, 16  ;;  %v3314_v43 = vshll.u32 %v8696_v17, 16 }
 0x203   : > { %3666 = vst [vmem:[#allocation2 + $0x60] sm:$0x1] %v3665_v22  ;;  %v3720_v24 = vsel %vm11795_vm5, 0, %v3719_v12  ;;  %v3308_v40 = vor.u32 %v3306_v7, %v3305_v60  ;;  %v4192_v4 = vrot.slane %v4190_v11, 1  ;;  %v4640_v45 = vor.u32 %v4639_v51, %v4635_v27  ;;  %v3840_v5 = vld [vmem:[#allocation2 + $0x64] sm:$0xf]  ;;  %9339 = vmatpush3.bf16.msra.mxu0 %v9793_v44 }
 0x204   : > { %v4188_v15 = vor.u32 %v4187_v50, %v4183_v3  ;;  %3721 = vst [vmem:[#allocation2 + $0x68] sm:$0x1] %v3720_v24  ;;  %v3313_v52 = vrot.slane %v3311_v13, 7  ;;  %v2781_v38 = vpop.f32.mrb[40].mxu0  ;;  %v3309_v0 = vrot.slane %v3305_v60, 4  ;;  %v9797_v3 = vld [vmem:[%s13619_s4 + $0x228] sm:$0xff]  }
 0x205   : > { %v3578_v21 = vsel %vm11762_vm9, %v3308_v40, %v3577_v2  ;;  %v2871_v47 = vmul.f32 %v12030_v16, %v2781_v38  ;;  %v2783_v29 = vpop.f32.mrb[41].mxu0  ;;  %v4645_v46 = vsel %vm750_vm1, %v4640_v45, %v4644_v25  ;;  %v3880_v19 = vld [vmem:[#allocation2 + $0x60] sm:$0xe]  ;;  %v3777_v60 = vld [vmem:[#allocation2 + $0x64] sm:$0xf]  ;;  %9340 = vmatprep.subr.bf16.mxu0 %v9797_v3  ;;  %v9801_v2 = vld [vmem:[%s13619_s4 + $0x230] sm:$0xff]  }
 0x206   : > { %3579 = vst [vmem:[#allocation2 + $0x6c] sm:$0xf] %v3578_v21  ;;  %v3316_v57 = vor.u32 %v3314_v43, %v3313_v52  ;;  %v3318_v20 = vrot.slane %v3313_v52, 4  ;;  %v4193_v8 = vsel %vm750_vm1, %v4188_v15, %v4192_v4  ;;  %v2784_v39 = vpop.f32.mrb[42].mxu0  ;;  %6325 = vmatmul.mubr.bf16.gmra.mrb[96].mxu0 %v4645_v46  ;;  %v8426_v63 = vcombine.low %v3880_v19, %v3840_v5  ;;  %v3584_v38 = vld [vmem:[#allocation2 + $0x78] sm:$0xf] }
 0x207   : > { %v2914_v1 = vadd.f32 %v12039_v10, %v2871_v47  ;;  %6010 = vmatprep.mubr.bf16.mxu1 %v4193_v8  ;;  %v2872_v7 = vmul.f32 %v12030_v16, %v2784_v39  ;;  %v2786_v34 = vpop.f32.mrb[43].mxu0  ;;  %9341 = vmatpush3.bf16.msra.mxu0 %v9797_v3  ;;  %v3588_v8 = vld [vmem:[#allocation2 + $0x80] sm:$0x1] }
 0x208   : > { %v3317_v54 = vsel %vm11775_vm10, %v3309_v0, %v3316_v57  ;;  %v3582_v49 = vsel %vm11769_vm4, %v3318_v20, %v3581_v37  ;;  %6011 = vmatmul.mubr.bf16.gmra.mrb[28].mxu1 %v12105_v56  ;;  %v4839_v23 = vrot.slane %v8426_v63, 1  ;;  %9342 = vmatprep.subr.bf16.mxu0 %v9801_v2  ;;  %v9806_v37 = vld [vmem:[%s13619_s4 + $0x238] sm:$0xff]  }
 0x209   : > { %3580 = vst [vmem:[#allocation2 + $0x70] sm:$0xf] %v3317_v54  ;;  %3583 = vst [vmem:[#allocation2 + $0x74] sm:$0x1] %v3582_v49  ;;  %vm2950_vm3 = vcmp.gt.f32.partialorder %v2914_v1, 0.0  ;;  %v2915_v58 = vadd.f32 %v12039_v10, %v2872_v7 }
 0x20a   : > { %v2986_v17 = vmul.f32 0.01, %v2914_v1  ;;  %v3839_v53 = vld [vmem:[#allocation2 + $0x60] sm:$0xf] }
 0x20b   : > { %v12138_v30 = vcombine.low %v3839_v53, %v3840_v5  ;;  %v3776_v22 = vld [vmem:[#allocation2 + $0x60] sm:$0xf]  ;;  %vm2951_vm12 = vcmp.gt.f32.partialorder %v2915_v58, 0.0  ;;  %v2987_v56 = vmul.f32 0.01, %v2915_v58  ;;  %9343 = vmatpush3.bf16.msra.mxu0 %v9801_v2 }
 0x20c   : > { %v3022_v50 = vsel %vm2950_vm3, %v2914_v1, %v2986_v17  ;;  %v12143_v11 = vcombine.low %v3776_v22, %v3777_v60  ;;  %v9738_v13 = vld [vmem:[#allocation2 + $0x68] ss:$0 sps:$4 sm:$0x11]   ;;  %9344 = vmatprep.subr.bf16.mxu0 %v9806_v37 }
 0x20d   : > { %v8697_v12 = vpack.c.bf16 %v3022_v50, %v3022_v50  ;;  %v3667_v27 = vld [vmem:[#allocation2 + $0x6c] sm:$0x1]  ;;  %v3023_v51 = vsel %vm2951_vm12, %v2915_v58, %v2987_v56  ;;  %v9741_v44 = vld [vmem:[#allocation2 + $0x68] ss:$0 sps:$4 sm:$0x11]   ;;  %v4647_v24 = vshrl.u32 %v12138_v30, 16 }
 0x20e   : > { %v3668_v40 = vsel %vm11769_vm4, 0, %v3667_v27  ;;  %v8698_v15 = vpack.c.bf16 %v3023_v51, %v3023_v51  ;;  %v4195_v52 = vshrl.u32 %v12143_v11, 16  ;;  %v4840_v4 = vrot.slane %v9738_v13, 1 }
 0x20f   : > { %v3320_v43 = vshrl.u32 %v8697_v12, 16  ;;  %3669 = vst [vmem:[#allocation2 + $0x6c] sm:$0x1] %v3668_v40  ;;  %v4197_v45 = vshll.u32 %v12143_v11, 16  ;;  %v4202_v25 = vshll.u32 %v9741_v44, 16  ;;  %v4649_v0 = vshll.u32 %v12138_v30, 16  ;;  %9345 = vmatpush3.bf16.msra.mxu0 %v9806_v37 }
 0x210   : > { %v3722_v21 = vld [vmem:[#allocation2 + $0x74] sm:$0x1]  ;;  %v3323_v29 = vshll.u32 %v8697_v12, 16  ;;  %v3328_v5 = vshrl.u32 %v8698_v15, 16  ;;  %v4654_v57 = vshll.u32 %v9738_v13, 16  ;;  %v4841_v39 = vsel %vm1057_vm0, %v4839_v23, %v4840_v4 }
 0x211   : > { %v3322_v47 = vrot.slane %v3320_v43, 7  ;;  %v3723_v20 = vsel %vm11795_vm5, 0, %v3722_v21  ;;  %v2789_v46 = vpop.f32.mrb[44].mxu0  ;;  %v4199_v3 = vrot.slane %v4197_v45, 1  ;;  %v4204_v1 = vrot.slane %v4202_v25, 1  ;;  %6332 = vmatprep.mubr.bf16.mxu0 %v4841_v39 }
 0x212   : > { %3724 = vst [vmem:[#allocation2 + $0x74] sm:$0x1] %v3723_v20  ;;  %v3330_v34 = vrot.slane %v3328_v5, 7  ;;  %v3331_v19 = vshll.u32 %v8698_v15, 16  ;;  %v2873_v54 = vmul.f32 %v12030_v16, %v2789_v46  ;;  %v2791_v49 = vpop.f32.mrb[45].mxu0  ;;  %v4651_v22 = vrot.slane %v4649_v0, 1 }
 0x213   : > { %v3325_v7 = vor.u32 %v3323_v29, %v3322_v47  ;;  %v3842_v63 = vld [vmem:[#allocation2 + $0x70] sm:$0xf]  ;;  %v3326_v17 = vrot.slane %v3322_v47, 4  ;;  %v2792_v58 = vpop.f32.mrb[46].mxu0  ;;  %v4200_v53 = vor.u32 %v4199_v3, %v4195_v52  ;;  %v4656_v60 = vrot.slane %v4654_v57, 1 }
 0x214   : > { %v3333_v56 = vor.u32 %v3331_v19, %v3330_v34  ;;  %v3335_v2 = vrot.slane %v3330_v34, 4  ;;  %v2916_v12 = vadd.f32 %v12039_v10, %v2873_v54  ;;  %v2794_v13 = vpop.f32.mrb[47].mxu0  ;;  %v3881_v23 = vld [vmem:[#allocation2 + $0x6c] sm:$0xe]  ;;  %v2874_v27 = vmul.f32 %v12030_v16, %v2792_v58  ;;  %v3779_v37 = vld [vmem:[#allocation2 + $0x70] sm:$0xf] }
 0x215   : > { %v3585_v50 = vsel %vm11762_vm9, %v3325_v7, %v3584_v38  ;;  %v4205_v51 = vsel %vm750_vm1, %v4200_v53, %v4204_v1  ;;  %v4652_v44 = vor.u32 %v4651_v22, %v4647_v24  ;;  %v8427_v40 = vcombine.low %v3881_v23, %v3842_v63  ;;  %v3813_v47 = vld [vmem:[#allocation2 + $0x3c] sm:$0xe]  ;;  %v3591_v53 = vld [vmem:[#allocation2 + $0x84] sm:$0xf] }
 0x216   : > { %3586 = vst [vmem:[#allocation2 + $0x78] sm:$0xf] %v3585_v50  ;;  %v3334_v43 = vsel %vm11775_vm10, %v3326_v17, %v3333_v56  ;;  %v3589_v15 = vsel %vm11769_vm4, %v3335_v2, %v3588_v8  ;;  %vm2952_vm6 = vcmp.gt.f32.partialorder %v2916_v12, 0.0  ;;  %v2988_v52 = vmul.f32 0.01, %v2916_v12  ;;  %6018 = vmatprep.mubr.bf16.mxu1 %v4205_v51 }
 0x217   : > { %v3841_v38 = vld [vmem:[#allocation2 + $0x6c] sm:$0xf]  ;;  %3587 = vst [vmem:[#allocation2 + $0x7c] sm:$0xf] %v3334_v43  ;;  %3590 = vst [vmem:[#allocation2 + $0x80] sm:$0x1] %v3589_v15  ;;  %v2917_v4 = vadd.f32 %v12039_v10, %v2874_v27  ;;  %v4657_v45 = vsel %vm750_vm1, %v4652_v44, %v4656_v60  ;;  %6019 = vmatmul.mubr.bf16.gmra.mrb[32].mxu1 %v12143_v11  ;;  %v8376_v46 = vcombine.low %v3813_v47, %v11996_v9 }
 0x218   : > { %v3778_v24 = vld [vmem:[#allocation2 + $0x6c] sm:$0xf]  ;;  %v3024_v25 = vsel %vm2952_vm6, %v2916_v12, %v2988_v52  ;;  %6333 = vmatmul.mubr.bf16.gmra.mrb[100].mxu0 %v4657_v45  ;;  %v12170_v0 = vcombine.low %v3841_v38, %v3842_v63  ;;  %v4842_v57 = vrot.slane %v8427_v40, 1 }
 0x219   : > { %v12172_v21 = vcombine.low %v3778_v24, %v3779_v37  ;;  %v8699_v29 = vpack.c.bf16 %v3024_v25, %v3024_v25  ;;  %vm2953_vm7 = vcmp.gt.f32.partialorder %v2917_v4, 0.0  ;;  %v2989_v5 = vmul.f32 0.01, %v2917_v4  ;;  %v9745_v20 = vld [vmem:[#allocation2 + $0x74] ss:$0 sps:$4 sm:$0x11]  }
 0x21a   : > { %v9748_v1 = vld [vmem:[#allocation2 + $0x74] ss:$0 sps:$4 sm:$0x11]   ;;  %v4843_v54 = vrot.slane %v9745_v20, 1  ;;  %v4661_v49 = vshll.u32 %v12170_v0, 16  ;;  %v4666_v63 = vshll.u32 %v9745_v20, 16 }
 0x21b   : > { %v4207_v8 = vshrl.u32 %v12172_v21, 16  ;;  %v3337_v39 = vshrl.u32 %v8699_v29, 16  ;;  %v3340_v11 = vshll.u32 %v8699_v29, 16  ;;  %v3025_v3 = vsel %vm2953_vm7, %v2917_v4, %v2989_v5  ;;  %v3595_v45 = vld [vmem:[#allocation2 + $0x8c] sm:$0x1] }
 0x21c   : > { %v4209_v7 = vshll.u32 %v12172_v21, 16  ;;  %v8700_v19 = vpack.c.bf16 %v3025_v3, %v3025_v3  ;;  %v4214_v60 = vshll.u32 %v9748_v1, 16  ;;  %v4844_v56 = vsel %vm1057_vm0, %v4842_v57, %v4843_v54 }
 0x21d   : > { %v3670_v34 = vld [vmem:[#allocation2 + $0x78] sm:$0x1]  ;;  %v3339_v58 = vrot.slane %v3337_v39, 7  ;;  %v4659_v2 = vshrl.u32 %v12170_v0, 16  ;;  %v4663_v12 = vrot.slane %v4661_v49, 1  ;;  %6340 = vmatprep.mubr.bf16.mxu0 %v4844_v56  ;;  %v4668_v52 = vrot.slane %v4666_v63, 1 }
 0x21e   : > { %v3671_v17 = vsel %vm11769_vm4, 0, %v3670_v34  ;;  %v4211_v22 = vrot.slane %v4209_v7, 1  ;;  %v3725_v9 = vld [vmem:[#allocation2 + $0x80] sm:$0x1]  ;;  %v3345_v50 = vshrl.u32 %v8700_v19, 16  ;;  %v3348_v27 = vshll.u32 %v8700_v19, 16 }
 0x21f   : > { %3672 = vst [vmem:[#allocation2 + $0x78] sm:$0x1] %v3671_v17  ;;  %v3726_v13 = vsel %vm11795_vm5, 0, %v3725_v9  ;;  %v3342_v23 = vor.u32 %v3340_v11, %v3339_v58  ;;  %v4216_v43 = vrot.slane %v4214_v60, 1  ;;  %v4664_v15 = vor.u32 %v4663_v12, %v4659_v2  ;;  %v3844_v25 = vld [vmem:[#allocation2 + $0x7c] sm:$0xf] }
 0x220   : > { %v4212_v51 = vor.u32 %v4211_v22, %v4207_v8  ;;  %3727 = vst [vmem:[#allocation2 + $0x80] sm:$0x1] %v3726_v13  ;;  %v3347_v44 = vrot.slane %v3345_v50, 7  ;;  %v2797_v40 = vpop.f32.mrb[48].mxu0  ;;  %v3343_v38 = vrot.slane %v3339_v58, 4  ;;  %v4369_v1 = vrot.slane %v8376_v46, 1 }
 0x221   : > { %v3592_v4 = vsel %vm11762_vm9, %v3342_v23, %v3591_v53  ;;  %v2875_v24 = vmul.f32 %v12030_v16, %v2797_v40  ;;  %v2799_v37 = vpop.f32.mrb[49].mxu0  ;;  %v4669_v57 = vsel %vm750_vm1, %v4664_v15, %v4668_v52  ;;  %v3882_v3 = vld [vmem:[#allocation2 + $0x78] sm:$0xe]  ;;  %v4370_v54 = vrot.slane %v12008_v59, 1  ;;  %v3781_v53 = vld [vmem:[#allocation2 + $0x7c] sm:$0xf] }
 0x222   : > { %3593 = vst [vmem:[#allocation2 + $0x84] sm:$0xf] %v3592_v4  ;;  %v3350_v47 = vor.u32 %v3348_v27, %v3347_v44  ;;  %v3352_v29 = vrot.slane %v3347_v44, 4  ;;  %v4217_v5 = vsel %vm750_vm1, %v4212_v51, %v4216_v43  ;;  %v2800_v20 = vpop.f32.mrb[50].mxu0  ;;  %6341 = vmatmul.mubr.bf16.gmra.mrb[104].mxu0 %v4669_v57  ;;  %v8428_v19 = vcombine.low %v3882_v3, %v3844_v25 }
 0x223   : > { %v2918_v8 = vadd.f32 %v12039_v10, %v2875_v24  ;;  %6026 = vmatprep.mubr.bf16.mxu1 %v4217_v5  ;;  %v2876_v39 = vmul.f32 %v12030_v16, %v2800_v20  ;;  %v2802_v11 = vpop.f32.mrb[51].mxu0  ;;  %v12201_v22 = vsel %vm1057_vm0, %v4369_v1, %v4370_v54  ;;  %v3602_v54 = vld [vmem:[#allocation2 + $0x98] sm:$0x1] }
 0x224   : > { %v3351_v7 = vsel %vm11775_vm10, %v3343_v38, %v3350_v47  ;;  %v3596_v34 = vsel %vm11769_vm4, %v3352_v29, %v3595_v45  ;;  %6027 = vmatmul.mubr.bf16.gmra.mrb[36].mxu1 %v12172_v21  ;;  %v4845_v56 = vrot.slane %v8428_v19, 1  ;;  %v3598_v29 = vld [vmem:[#allocation2 + $0x90] sm:$0xf] }
 0x225   : > { %3594 = vst [vmem:[#allocation2 + $0x88] sm:$0xf] %v3351_v7  ;;  %3597 = vst [vmem:[#allocation2 + $0x8c] sm:$0x1] %v3596_v34  ;;  %vm2954_vm8 = vcmp.gt.f32.partialorder %v2918_v8, 0.0  ;;  %v2919_v63 = vadd.f32 %v12039_v10, %v2876_v39 }
 0x226   : > { %v2990_v49 = vmul.f32 0.01, %v2918_v8  ;;  %v3843_v17 = vld [vmem:[#allocation2 + $0x78] sm:$0xf] }
 0x227   : > { %v12198_v58 = vcombine.low %v3843_v17, %v3844_v25  ;;  %v3780_v46 = vld [vmem:[#allocation2 + $0x78] sm:$0xf]  ;;  %vm2955_vm11 = vcmp.gt.f32.partialorder %v2919_v63, 0.0  ;;  %v2991_v21 = vmul.f32 0.01, %v2919_v63 }
 0x228   : > { %v3026_v60 = vsel %vm2954_vm8, %v2918_v8, %v2990_v49  ;;  %v12203_v9 = vcombine.low %v3780_v46, %v3781_v53  ;;  %v9752_v50 = vld [vmem:[#allocation2 + $0x80] ss:$0 sps:$4 sm:$0x11]  }
 0x229   : > { %v8701_v59 = vpack.c.bf16 %v3026_v60, %v3026_v60  ;;  %v3673_v2 = vld [vmem:[#allocation2 + $0x84] sm:$0x1]  ;;  %v3027_v12 = vsel %vm2955_vm11, %v2919_v63, %v2991_v21  ;;  %v9755_v13 = vld [vmem:[#allocation2 + $0x80] ss:$0 sps:$4 sm:$0x11]   ;;  %v4671_v23 = vshrl.u32 %v12198_v58, 16 }
 0x22a   : > { %v3674_v27 = vsel %vm11769_vm4, 0, %v3673_v2  ;;  %v8702_v44 = vpack.c.bf16 %v3027_v12, %v3027_v12  ;;  %v4219_v40 = vshrl.u32 %v12203_v9, 16  ;;  %v4846_v43 = vrot.slane %v9752_v50, 1 }
 0x22b   : > { %v3354_v51 = vshrl.u32 %v8701_v59, 16  ;;  %3675 = vst [vmem:[#allocation2 + $0x84] sm:$0x1] %v3674_v27  ;;  %v4221_v15 = vshll.u32 %v12203_v9, 16  ;;  %v4226_v52 = vshll.u32 %v9755_v13, 16  ;;  %v4673_v38 = vshll.u32 %v12198_v58, 16 }
 0x22c   : > { %v3728_v4 = vld [vmem:[#allocation2 + $0x8c] sm:$0x1]  ;;  %v3357_v24 = vshll.u32 %v8701_v59, 16  ;;  %v3362_v37 = vshrl.u32 %v8702_v44, 16  ;;  %v4678_v25 = vshll.u32 %v9752_v50, 16  ;;  %v4847_v57 = vsel %vm1057_vm0, %v4845_v56, %v4846_v43 }
 0x22d   : > { %v3356_v45 = vrot.slane %v3354_v51, 7  ;;  %v3729_v47 = vsel %vm11795_vm5, 0, %v3728_v4  ;;  %v2805_v5 = vpop.f32.mrb[52].mxu0  ;;  %v4223_v20 = vrot.slane %v4221_v15, 1  ;;  %v4228_v8 = vrot.slane %v4226_v52, 1  ;;  %6348 = vmatprep.mubr.bf16.mxu0 %v4847_v57 }
 0x22e   : > { %3730 = vst [vmem:[#allocation2 + $0x8c] sm:$0x1] %v3729_v47  ;;  %v3364_v11 = vrot.slane %v3362_v37, 7  ;;  %v3365_v3 = vshll.u32 %v8702_v44, 16  ;;  %v2877_v1 = vmul.f32 %v12030_v16, %v2805_v5  ;;  %v2807_v7 = vpop.f32.mrb[53].mxu0  ;;  %v4675_v17 = vrot.slane %v4673_v38, 1 }
 0x22f   : > { %v3359_v39 = vor.u32 %v3357_v24, %v3356_v45  ;;  %v3846_v34 = vld [vmem:[#allocation2 + $0x88] sm:$0xf]  ;;  %v3360_v19 = vrot.slane %v3356_v45, 4  ;;  %v2808_v49 = vpop.f32.mrb[54].mxu0  ;;  %v4224_v63 = vor.u32 %v4223_v20, %v4219_v40  ;;  %v4680_v46 = vrot.slane %v4678_v25, 1 }
 0x230   : > { %v3367_v60 = vor.u32 %v3365_v3, %v3364_v11  ;;  %v3369_v21 = vrot.slane %v3364_v11, 4  ;;  %v2920_v59 = vadd.f32 %v12039_v10, %v2877_v1  ;;  %v2810_v50 = vpop.f32.mrb[55].mxu0  ;;  %v3883_v56 = vld [vmem:[#allocation2 + $0x84] sm:$0xe]  ;;  %v2878_v2 = vmul.f32 %v12030_v16, %v2808_v49  ;;  %v12227_v38 = vld [vmem:[#allocation2 + $0x88] sm:$0xf] }
 0x231   : > { %v3599_v53 = vsel %vm11762_vm9, %v3359_v39, %v3598_v29  ;;  %v4229_v12 = vsel %vm750_vm1, %v4224_v63, %v4228_v8  ;;  %v4676_v13 = vor.u32 %v4675_v17, %v4671_v23  ;;  %v8429_v27 = vcombine.low %v3883_v56, %v3846_v34  ;;  %v3605_v49 = vld [vmem:[#allocation2 + $0x9c] sm:$0xf] }
 0x232   : > { %3600 = vst [vmem:[#allocation2 + $0x90] sm:$0xf] %v3599_v53  ;;  %v3368_v51 = vsel %vm11775_vm10, %v3360_v19, %v3367_v60  ;;  %v3603_v44 = vsel %vm11769_vm4, %v3369_v21, %v3602_v54  ;;  %vm2956_vm13 = vcmp.gt.f32.partialorder %v2920_v59, 0.0  ;;  %v2992_v40 = vmul.f32 0.01, %v2920_v59  ;;  %6034 = vmatprep.mubr.bf16.mxu1 %v4229_v12 }
 0x233   : > { %v3845_v43 = vld [vmem:[#allocation2 + $0x84] sm:$0xf]  ;;  %3601 = vst [vmem:[#allocation2 + $0x94] sm:$0xf] %v3368_v51  ;;  %3604 = vst [vmem:[#allocation2 + $0x98] sm:$0x1] %v3603_v44  ;;  %v2921_v15 = vadd.f32 %v12039_v10, %v2878_v2  ;;  %v4681_v52 = vsel %vm750_vm1, %v4676_v13, %v4680_v46  ;;  %6035 = vmatmul.mubr.bf16.gmra.mrb[40].mxu1 %v12203_v9 }
 0x234   : > { %v3782_v23 = vld [vmem:[#allocation2 + $0x84] sm:$0xf]  ;;  %v3028_v4 = vsel %vm2956_vm13, %v2920_v59, %v2992_v40  ;;  %6349 = vmatmul.mubr.bf16.gmra.mrb[108].mxu0 %v4681_v52  ;;  %v12229_v45 = vcombine.low %v3845_v43, %v3846_v34  ;;  %v4848_v47 = vrot.slane %v8429_v27, 1 }
 0x235   : > { %v8350_v24 = vcombine.low %v3782_v23, %v12227_v38  ;;  %v8703_v37 = vpack.c.bf16 %v3028_v4, %v3028_v4  ;;  %vm2957_vm14 = vcmp.gt.f32.partialorder %v2921_v15, 0.0  ;;  %v2993_v25 = vmul.f32 0.01, %v2921_v15  ;;  %v9757_v29 = vld [vmem:[#allocation2 + $0x8c] ss:$0 sps:$4 sm:$0x11]  }
 0x236   : > { %v12232_v39 = vld [vmem:[#allocation2 + $0x8c] ss:$0 sps:$4 sm:$0x11]   ;;  %v4849_v1 = vrot.slane %v9757_v29, 1  ;;  %v4685_v7 = vshll.u32 %v12229_v45, 16  ;;  %v4690_v34 = vshll.u32 %v9757_v29, 16 }
 0x237   : > { %v4231_v5 = vshrl.u32 %v8350_v24, 16  ;;  %v3371_v57 = vshrl.u32 %v8703_v37, 16  ;;  %v3374_v20 = vshll.u32 %v8703_v37, 16  ;;  %v3029_v8 = vsel %vm2957_vm14, %v2921_v15, %v2993_v25  ;;  %v3609_v52 = vld [vmem:[#allocation2 + $0xa4] sm:$0x1] }
 0x238   : > { %v4233_v9 = vshll.u32 %v8350_v24, 16  ;;  %v8704_v3 = vpack.c.bf16 %v3029_v8, %v3029_v8  ;;  %v4238_v17 = vshll.u32 %v12232_v39, 16  ;;  %v4850_v60 = vsel %vm1057_vm0, %v4848_v47, %v4849_v1 }
 0x239   : > { %v3676_v11 = vld [vmem:[#allocation2 + $0x90] sm:$0x1]  ;;  %v3373_v54 = vrot.slane %v3371_v57, 7  ;;  %v4683_v21 = vshrl.u32 %v12229_v45, 16  ;;  %v4687_v59 = vrot.slane %v4685_v7, 1  ;;  %6356 = vmatprep.mubr.bf16.mxu0 %v4850_v60  ;;  %v4692_v40 = vrot.slane %v4690_v34, 1 }
 0x23a   : > { %v3677_v19 = vsel %vm11769_vm4, 0, %v3676_v11  ;;  %v4235_v63 = vrot.slane %v4233_v9, 1  ;;  %v3731_v46 = vld [vmem:[#allocation2 + $0x98] sm:$0x1]  ;;  %v3379_v53 = vshrl.u32 %v8704_v3, 16  ;;  %v3382_v2 = vshll.u32 %v8704_v3, 16 }
 0x23b   : > { %3678 = vst [vmem:[#allocation2 + $0x90] sm:$0x1] %v3677_v19  ;;  %v3732_v50 = vsel %vm11795_vm5, 0, %v3731_v46  ;;  %v3376_v56 = vor.u32 %v3374_v20, %v3373_v54  ;;  %v4240_v51 = vrot.slane %v4238_v17, 1  ;;  %v4688_v44 = vor.u32 %v4687_v59, %v4683_v21  ;;  %v3848_v37 = vld [vmem:[#allocation2 + $0x94] sm:$0xf] }
 0x23c   : > { %v4236_v12 = vor.u32 %v4235_v63, %v4231_v5  ;;  %3733 = vst [vmem:[#allocation2 + $0x98] sm:$0x1] %v3732_v50  ;;  %v3381_v13 = vrot.slane %v3379_v53, 7  ;;  %v2813_v27 = vpop.f32.mrb[56].mxu0  ;;  %v3377_v43 = vrot.slane %v3373_v54, 4 }
 0x23d   : > { %v3606_v15 = vsel %vm11762_vm9, %v3376_v56, %v3605_v49  ;;  %v2879_v23 = vmul.f32 %v12030_v16, %v2813_v27  ;;  %v2815_v4 = vpop.f32.mrb[57].mxu0  ;;  %v4693_v5 = vsel %vm750_vm1, %v4688_v44, %v4692_v40  ;;  %v3884_v11 = vld [vmem:[#allocation2 + $0x90] sm:$0xe]  ;;  %v12256_v63 = vld [vmem:[#allocation2 + $0x94] sm:$0xf] }
 0x23e   : > { %3607 = vst [vmem:[#allocation2 + $0x9c] sm:$0xf] %v3606_v15  ;;  %v3384_v25 = vor.u32 %v3382_v2, %v3381_v13  ;;  %v3386_v47 = vrot.slane %v3381_v13, 4  ;;  %v4241_v29 = vsel %vm750_vm1, %v4236_v12, %v4240_v51  ;;  %v2816_v57 = vpop.f32.mrb[58].mxu0  ;;  %6357 = vmatmul.mubr.bf16.gmra.mrb[112].mxu0 %v4693_v5  ;;  %v8430_v7 = vcombine.low %v3884_v11, %v3848_v37 }
 0x23f   : > { %v2922_v20 = vadd.f32 %v12039_v10, %v2879_v23  ;;  %6042 = vmatprep.mubr.bf16.mxu1 %v4241_v29  ;;  %v2880_v8 = vmul.f32 %v12030_v16, %v2816_v57  ;;  %v2818_v9 = vpop.f32.mrb[59].mxu0 }
 0x240   : > { %v3385_v3 = vsel %vm11775_vm10, %v3377_v43, %v3384_v25  ;;  %v3610_v1 = vsel %vm11769_vm4, %v3386_v47, %v3609_v52  ;;  %6043 = vmatmul.mubr.bf16.gmra.mrb[44].mxu1 %v8350_v24  ;;  %v4851_v21 = vrot.slane %v8430_v7, 1  ;;  %v3612_v47 = vld [vmem:[#allocation2 + $0xa8] sm:$0xf] }
 0x241   : > { %3608 = vst [vmem:[#allocation2 + $0xa0] sm:$0xf] %v3385_v3  ;;  %3611 = vst [vmem:[#allocation2 + $0xa4] sm:$0x1] %v3610_v1  ;;  %vm2958_vm15 = vcmp.gt.f32.partialorder %v2922_v20, 0.0  ;;  %v2923_v19 = vadd.f32 %v12039_v10, %v2880_v8 }
 0x242   : > { %v2994_v34 = vmul.f32 0.01, %v2922_v20  ;;  %v3847_v54 = vld [vmem:[#allocation2 + $0x90] sm:$0xf]  ;;  %v12276_v3 = vld [vmem:[%s13617_s2] ss:$0 sm:$0xff] }
 0x243   : > { %v12254_v49 = vcombine.low %v3847_v54, %v3848_v37  ;;  %v3784_v16 = vld [vmem:[#allocation2 + $0x90] sm:$0xf]  ;;  %vm2959_vm3 = vcmp.gt.f32.partialorder %v2923_v19, 0.0  ;;  %v2995_v46 = vmul.f32 0.01, %v2923_v19 }
 0x244   : > { %v3030_v17 = vsel %vm2958_vm15, %v2922_v20, %v2994_v34  ;;  %v12259_v53 = vcombine.low %v3784_v16, %v12256_v63  ;;  %v9764_v60 = vld [vmem:[#allocation2 + $0x98] ss:$0 sps:$4 sm:$0x11]   ;;  %v3616_v54 = vld [vmem:[#allocation2 + $0xb0] sm:$0x1] }
 0x245   : > { %v8705_v24 = vpack.c.bf16 %v3030_v17, %v3030_v17  ;;  %v3679_v59 = vld [vmem:[#allocation2 + $0x9c] sm:$0x1]  ;;  %v3031_v50 = vsel %vm2959_vm3, %v2923_v19, %v2995_v46  ;;  %v12261_v56 = vld [vmem:[#allocation2 + $0x98] ss:$0 sps:$4 sm:$0x11]   ;;  %v4695_v10 = vshrl.u32 %v12254_v49, 16 }
 0x246   : > { %v3680_v2 = vsel %vm11769_vm4, 0, %v3679_v59  ;;  %v8706_v13 = vpack.c.bf16 %v3031_v50, %v3031_v50  ;;  %v4243_v27 = vshrl.u32 %v12259_v53, 16  ;;  %v4852_v51 = vrot.slane %v9764_v60, 1  ;;  %v12284_v50 = vld [vmem:[%s13618_s3] ss:$0 sm:$0xff] }
 0x247   : > { %v3388_v12 = vshrl.u32 %v8705_v24, 16  ;;  %3681 = vst [vmem:[#allocation2 + $0x9c] sm:$0x1] %v3680_v2  ;;  %v4245_v44 = vshll.u32 %v12259_v53, 16  ;;  %v4250_v40 = vshll.u32 %v12261_v56, 16  ;;  %v4697_v43 = vshll.u32 %v12254_v49, 16 }
 0x248   : > { %v3734_v15 = vld [vmem:[#allocation2 + $0xa4] sm:$0x1]  ;;  %v3391_v23 = vshll.u32 %v8705_v24, 16  ;;  %v3396_v4 = vshrl.u32 %v8706_v13, 16  ;;  %v4702_v37 = vshll.u32 %v9764_v60, 16  ;;  %v4853_v5 = vsel %vm1057_vm0, %v4851_v21, %v4852_v51 }
 0x249   : > { %v3390_v52 = vrot.slane %v3388_v12, 7  ;;  %v3735_v25 = vsel %vm11795_vm5, 0, %v3734_v15  ;;  %v2821_v29 = vpop.f32.mrb[60].mxu0  ;;  %v4247_v57 = vrot.slane %v4245_v44, 1  ;;  %v4252_v20 = vrot.slane %v4250_v40, 1  ;;  %6364 = vmatprep.mubr.bf16.mxu0 %v4853_v5 }
 0x24a   : > { %3736 = vst [vmem:[#allocation2 + $0xa4] sm:$0x1] %v3735_v25  ;;  %v3398_v9 = vrot.slane %v3396_v4, 7  ;;  %v3399_v11 = vshll.u32 %v8706_v13, 16  ;;  %v2881_v1 = vmul.f32 %v12276_v3, %v2821_v29  ;;  %v2823_v7 = vpop.f32.mrb[61].mxu0  ;;  %v4699_v46 = vrot.slane %v4697_v43, 1 }
 0x24b   : > { %v3393_v8 = vor.u32 %v3391_v23, %v3390_v52  ;;  %v3850_v34 = vld [vmem:[#allocation2 + $0xa0] sm:$0xf]  ;;  %v3394_v19 = vrot.slane %v3390_v52, 4  ;;  %v2824_v16 = vpop.f32.mrb[62].mxu0  ;;  %v4248_v17 = vor.u32 %v4247_v57, %v4243_v27  ;;  %v4704_v24 = vrot.slane %v4702_v37, 1 }
 0x24c   : > { %v3401_v21 = vor.u32 %v3399_v11, %v3398_v9  ;;  %v3403_v59 = vrot.slane %v3398_v9, 4  ;;  %v2924_v2 = vadd.f32 %v12284_v50, %v2881_v1  ;;  %v2826_v12 = vpop.f32.mrb[63].mxu0  ;;  %v3885_v13 = vld [vmem:[#allocation2 + $0x9c] sm:$0xe]  ;;  %v2882_v51 = vmul.f32 %v12276_v3, %v2824_v16  ;;  %v12296_v25 = vld [vmem:[#allocation2 + $0xa0] sm:$0xf] }
 0x24d   : > { %v3613_v60 = vsel %vm11762_vm9, %v3393_v8, %v3612_v47  ;;  %v4253_v27 = vsel %vm750_vm1, %v4248_v17, %v4252_v20  ;;  %v4700_v44 = vor.u32 %v4699_v46, %v4695_v10  ;;  %v8431_v40 = vcombine.low %v3885_v13, %v3850_v34 }
 0x24e   : > { %3614 = vst [vmem:[#allocation2 + $0xa8] sm:$0xf] %v3613_v60  ;;  %v3402_v43 = vsel %vm11775_vm10, %v3394_v19, %v3401_v21  ;;  %v3617_v15 = vsel %vm11769_vm4, %v3403_v59, %v3616_v54  ;;  %vm2960_vm12 = vcmp.gt.f32.partialorder %v2924_v2, 0.0  ;;  %v2996_v52 = vmul.f32 0.01, %v2924_v2  ;;  %6050 = vmatprep.mubr.bf16.mxu1 %v4253_v27 }
 0x24f   : > { %v3849_v23 = vld [vmem:[#allocation2 + $0x9c] sm:$0xf]  ;;  %3615 = vst [vmem:[#allocation2 + $0xac] sm:$0xf] %v3402_v43  ;;  %3618 = vst [vmem:[#allocation2 + $0xb0] sm:$0x1] %v3617_v15  ;;  %v2925_v4 = vadd.f32 %v12284_v50, %v2882_v51  ;;  %v4705_v37 = vsel %vm750_vm1, %v4700_v44, %v4704_v24  ;;  %6051 = vmatmul.mubr.bf16.gmra.mrb[48].mxu1 %v12259_v53 }
 0x250   : > { %v3786_v10 = vld [vmem:[#allocation2 + $0x9c] sm:$0xf]  ;;  %v3032_v47 = vsel %vm2960_vm12, %v2924_v2, %v2996_v52  ;;  %6365 = vmatmul.mubr.bf16.gmra.mrb[116].mxu0 %v4705_v37  ;;  %v12298_v29 = vcombine.low %v3849_v23, %v3850_v34  ;;  %v4854_v8 = vrot.slane %v8431_v40, 1  ;;  %v3619_v59 = vld [vmem:[#allocation2 + $0xb4] sm:$0xf] }
 0x251   : > { %v8352_v5 = vcombine.low %v3786_v10, %v12296_v25  ;;  %v8707_v57 = vpack.c.bf16 %v3032_v47, %v3032_v47  ;;  %vm2961_vm6 = vcmp.gt.f32.partialorder %v2925_v4, 0.0  ;;  %v2997_v20 = vmul.f32 0.01, %v2925_v4  ;;  %v9771_v9 = vld [vmem:[#allocation2 + $0xa4] ss:$0 sps:$4 sm:$0x11]  }
 0x252   : > { %v12301_v54 = vld [vmem:[#allocation2 + $0xa4] ss:$0 sps:$4 sm:$0x11]   ;;  %v4855_v46 = vrot.slane %v9771_v9, 1  ;;  %v4709_v34 = vshll.u32 %v12298_v29, 16  ;;  %v4714_v24 = vshll.u32 %v9771_v9, 16 }
 0x253   : > { %v4255_v11 = vshrl.u32 %v8352_v5, 16  ;;  %v3405_v1 = vshrl.u32 %v8707_v57, 16  ;;  %v3408_v7 = vshll.u32 %v8707_v57, 16  ;;  %v3033_v19 = vsel %vm2961_vm6, %v2925_v4, %v2997_v20 }
 0x254   : > { %v4257_v53 = vshll.u32 %v8352_v5, 16  ;;  %v8708_v17 = vpack.c.bf16 %v3033_v19, %v3033_v19  ;;  %v4262_v12 = vshll.u32 %v12301_v54, 16  ;;  %v4856_v27 = vsel %vm1057_vm0, %v4854_v8, %v4855_v46  ;;  %v3623_v19 = vld [vmem:[#allocation2 + $0xbc] sm:$0x1] }
 0x255   : > { %v3682_v16 = vld [vmem:[#allocation2 + $0xa8] sm:$0x1]  ;;  %v3407_v21 = vrot.slane %v3405_v1, 7  ;;  %v4707_v44 = vshrl.u32 %v12298_v29, 16  ;;  %v4711_v40 = vrot.slane %v4709_v34, 1  ;;  %6372 = vmatprep.mubr.bf16.mxu0 %v4856_v27  ;;  %v4716_v9 = vrot.slane %v4714_v24, 1 }
 0x256   : > { %v3683_v60 = vsel %vm11769_vm4, 0, %v3682_v16  ;;  %v4259_v2 = vrot.slane %v4257_v53, 1  ;;  %v3737_v13 = vld [vmem:[#allocation2 + $0xb0] sm:$0x1]  ;;  %v3413_v51 = vshrl.u32 %v8708_v17, 16  ;;  %v3416_v52 = vshll.u32 %v8708_v17, 16 }
 0x257   : > { %3684 = vst [vmem:[#allocation2 + $0xa8] sm:$0x1] %v3683_v60  ;;  %v3738_v43 = vsel %vm11795_vm5, 0, %v3737_v13  ;;  %v3410_v15 = vor.u32 %v3408_v7, %v3407_v21  ;;  %v3852_v4 = vld [vmem:[#allocation2 + $0xac] sm:$0xf]  ;;  %v4264_v57 = vrot.slane %v4262_v12, 1  ;;  %v4712_v20 = vor.u32 %v4711_v40, %v4707_v44 }
 0x258   : > { %v4260_v23 = vor.u32 %v4259_v2, %v4255_v11  ;;  %v3886_v37 = vld [vmem:[#allocation2 + $0xa8] sm:$0xe]  ;;  %3739 = vst [vmem:[#allocation2 + $0xb0] sm:$0x1] %v3738_v43  ;;  %v3415_v10 = vrot.slane %v3413_v51, 7  ;;  %v2829_v47 = vpop.f32.mrb[64].mxu0 }
 0x259   : > { %v3411_v1 = vrot.slane %v3407_v21, 4  ;;  %v3620_v8 = vsel %vm11762_vm9, %v3410_v15, %v3619_v59  ;;  %v2883_v53 = vmul.f32 %v12276_v3, %v2829_v47  ;;  %v2831_v16 = vpop.f32.mrb[65].mxu0  ;;  %v8432_v7 = vcombine.low %v3886_v37, %v3852_v4  ;;  %v12325_v15 = vld [vmem:[#allocation2 + $0xac] sm:$0xf] }
 0x25a   : > { %3621 = vst [vmem:[#allocation2 + $0xb4] sm:$0xf] %v3620_v8  ;;  %v3418_v17 = vor.u32 %v3416_v52, %v3415_v10  ;;  %v3420_v11 = vrot.slane %v3415_v10, 4  ;;  %v4265_v46 = vsel %vm750_vm1, %v4260_v23, %v4264_v57  ;;  %v4717_v34 = vsel %vm750_vm1, %v4712_v20, %v4716_v9  ;;  %v2832_v60 = vpop.f32.mrb[66].mxu0  ;;  %v3626_v16 = vld [vmem:[#allocation2 + $0xc0] sm:$0xf] }
 0x25b   : > { %v2926_v2 = vadd.f32 %v12284_v50, %v2883_v53  ;;  %6058 = vmatprep.mubr.bf16.mxu1 %v4265_v46  ;;  %6373 = vmatmul.mubr.bf16.gmra.mrb[120].mxu0 %v4717_v34  ;;  %v2884_v24 = vmul.f32 %v12276_v3, %v2832_v60  ;;  %v2834_v21 = vpop.f32.mrb[67].mxu0  ;;  %v4857_v40 = vrot.slane %v8432_v7, 1 }
 0x25c   : > { %v3419_v59 = vsel %vm11775_vm10, %v3411_v1, %v3418_v17  ;;  %v3624_v12 = vsel %vm11769_vm4, %v3420_v11, %v3623_v19  ;;  %6059 = vmatmul.mubr.bf16.gmra.mrb[52].mxu1 %v8352_v5 }
 0x25d   : > { %3622 = vst [vmem:[#allocation2 + $0xb8] sm:$0xf] %v3419_v59  ;;  %3625 = vst [vmem:[#allocation2 + $0xbc] sm:$0x1] %v3624_v12  ;;  %vm2962_vm7 = vcmp.gt.f32.partialorder %v2926_v2, 0.0  ;;  %v2927_v51 = vadd.f32 %v12284_v50, %v2884_v24 }
 0x25e   : > { %v2998_v13 = vmul.f32 0.01, %v2926_v2  ;;  %v3851_v27 = vld [vmem:[#allocation2 + $0xa8] sm:$0xf] }
 0x25f   : > { %v12323_v44 = vcombine.low %v3851_v27, %v3852_v4  ;;  %v3788_v43 = vld [vmem:[#allocation2 + $0xa8] sm:$0xf]  ;;  %vm2963_vm8 = vcmp.gt.f32.partialorder %v2927_v51, 0.0  ;;  %v2999_v23 = vmul.f32 0.01, %v2927_v51 }
 0x260   : > { %v3034_v52 = vsel %vm2962_vm7, %v2926_v2, %v2998_v13  ;;  %v8353_v37 = vcombine.low %v3788_v43, %v12325_v15  ;;  %v9778_v5 = vld [vmem:[#allocation2 + $0xb0] ss:$0 sps:$4 sm:$0x11]  }
 0x261   : > { %13766 = vst [vmem:[#allocation19_spill] sm:$0xff] %v12323_v44  ;;  %v8709_v10 = vpack.c.bf16 %v3034_v52, %v3034_v52  ;;  %v4719_v47 = vshrl.u32 %v12323_v44, 16  ;;  %v3685_v57 = vld [vmem:[#allocation2 + $0xb4] sm:$0x1]  ;;  %v3035_v20 = vsel %vm2963_vm8, %v2927_v51, %v2999_v23  ;;  %v4858_v7 = vrot.slane %v9778_v5, 1 }
 0x262   : > { %v12329_v9 = vld [vmem:[#allocation2 + $0xb0] ss:$0 sps:$4 sm:$0x11]   ;;  %v4267_v1 = vshrl.u32 %v8353_v37, 16  ;;  %v3686_v4 = vsel %vm11769_vm4, 0, %v3685_v57  ;;  %v8710_v53 = vpack.c.bf16 %v3035_v20, %v3035_v20  ;;  %v4269_v17 = vshll.u32 %v8353_v37, 16 }
 0x263   : > { %v3422_v8 = vshrl.u32 %v8709_v10, 16  ;;  %v3425_v19 = vshll.u32 %v8709_v10, 16  ;;  %3687 = vst [vmem:[#allocation2 + $0xb4] sm:$0x1] %v3686_v4  ;;  %v4274_v11 = vshll.u32 %v12329_v9, 16  ;;  %v4721_v46 = vshll.u32 %v12323_v44, 16 }
 0x264   : > { %v3740_v34 = vld [vmem:[#allocation2 + $0xbc] sm:$0x1]  ;;  %v3430_v2 = vshrl.u32 %v8710_v53, 16  ;;  %v3433_v24 = vshll.u32 %v8710_v53, 16  ;;  %v4726_v21 = vshll.u32 %v9778_v5, 16  ;;  %v4859_v12 = vsel %vm1057_vm0, %v4857_v40, %v4858_v7 }
 0x265   : > { %v3424_v60 = vrot.slane %v3422_v8, 7  ;;  %v3741_v59 = vsel %vm11795_vm5, 0, %v3740_v34  ;;  %v4271_v13 = vrot.slane %v4269_v17, 1  ;;  %v4276_v51 = vrot.slane %v4274_v11, 1  ;;  %v3854_v27 = vld [vmem:[#allocation2 + $0xb8] sm:$0xf]  ;;  %6380 = vmatprep.mubr.bf16.mxu0 %v4859_v12 }
 0x266   : > { %3742 = vst [vmem:[#allocation2 + $0xbc] sm:$0x1] %v3741_v59  ;;  %v3432_v23 = vrot.slane %v3430_v2, 7  ;;  %v4723_v10 = vrot.slane %v4721_v46, 1  ;;  %v3887_v57 = vld [vmem:[#allocation2 + $0xb4] sm:$0xe] }
 0x267   : > { %v3427_v43 = vor.u32 %v3425_v19, %v3424_v60  ;;  %v3428_v52 = vrot.slane %v3424_v60, 4  ;;  %v2837_v20 = vpop.f32.mrb[68].mxu0  ;;  %v3630_v4 = vld [vmem:[#allocation2 + $0xc8] sm:$0x1]  ;;  %v4272_v8 = vor.u32 %v4271_v13, %v4267_v1  ;;  %v4728_v53 = vrot.slane %v4726_v21, 1 }
 0x268   : > { %v8433_v5 = vcombine.low %v3887_v57, %v3854_v27  ;;  %v2885_v44 = vmul.f32 %v12276_v3, %v2837_v20  ;;  %v2839_v34 = vpop.f32.mrb[69].mxu0  ;;  %v3435_v7 = vor.u32 %v3433_v24, %v3432_v23  ;;  %v3437_v17 = vrot.slane %v3432_v23, 4  ;;  %v12348_v12 = vld [vmem:[#allocation2 + $0xb8] sm:$0xf] }
 0x269   : > { %v3627_v40 = vsel %vm11762_vm9, %v3427_v43, %v3626_v16  ;;  %v4724_v11 = vor.u32 %v4723_v10, %v4719_v47  ;;  %v2840_v19 = vpop.f32.mrb[70].mxu0  ;;  %v4277_v60 = vsel %vm750_vm1, %v4272_v8, %v4276_v51 }
 0x26a   : > { %3628 = vst [vmem:[#allocation2 + $0xc0] sm:$0xf] %v3627_v40  ;;  %v2928_v46 = vadd.f32 %v12284_v50, %v2885_v44  ;;  %v2842_v2 = vpop.f32.mrb[71].mxu0  ;;  %v3436_v1 = vsel %vm11775_vm10, %v3428_v52, %v3435_v7  ;;  %v3631_v21 = vsel %vm11769_vm4, %v3437_v17, %v3630_v4  ;;  %6066 = vmatprep.mubr.bf16.mxu1 %v4277_v60  ;;  %v3853_v16 = vld [vmem:[#allocation2 + $0xb4] sm:$0xf]  ;;  %v4860_v43 = vrot.slane %v8433_v5, 1 }
 0x26b   : > { %v4729_v59 = vsel %vm750_vm1, %v4724_v11, %v4728_v53  ;;  %v3790_v24 = vld [vmem:[#allocation2 + $0xb4] sm:$0xf]  ;;  %v2886_v47 = vmul.f32 %v12276_v3, %v2840_v19  ;;  %3629 = vst [vmem:[#allocation2 + $0xc4] sm:$0xf] %v3436_v1  ;;  %3632 = vst [vmem:[#allocation2 + $0xc8] sm:$0x1] %v3631_v21  ;;  %6067 = vmatmul.mubr.bf16.gmra.mrb[56].mxu1 %v8353_v37  ;;  %v12351_v44 = vcombine.low %v3853_v16, %v3854_v27 }
 0x26c   : > { %6381 = vmatmul.mubr.bf16.gmra.mrb[124].mxu0 %v4729_v59  ;;  %v8354_v13 = vcombine.low %v3790_v24, %v12348_v12  ;;  %vm2964_vm11 = vcmp.gt.f32.partialorder %v2928_v46, 0.0  ;;  %v3000_v51 = vmul.f32 0.01, %v2928_v46  ;;  %v3808_v4 = vld [vmem:[#allocation2] sm:$0xe] }
 0x26d   : > { %v9787_v52 = vld [vmem:[#allocation2 + $0xbc] ss:$0 sps:$4 sm:$0x11]   ;;  %v2929_v3 = vadd.f32 %v12284_v50, %v2886_v47  ;;  %v4731_v37 = vshrl.u32 %v12351_v44, 16  ;;  %v4733_v27 = vshll.u32 %v12351_v44, 16 }
 0x26e   : > { %v4279_v23 = vshrl.u32 %v8354_v13, 16  ;;  %v3036_v10 = vsel %vm2964_vm11, %v2928_v46, %v3000_v51  ;;  %v12354_v57 = vld [vmem:[#allocation2 + $0xbc] ss:$0 sps:$4 sm:$0x11]   ;;  %v4281_v20 = vshll.u32 %v8354_v13, 16  ;;  %v4861_v53 = vrot.slane %v9787_v52, 1 }
 0x26f   : > { %v8711_v8 = vpack.c.bf16 %v3036_v10, %v3036_v10  ;;  %v4738_v34 = vshll.u32 %v9787_v52, 16  ;;  %v4286_v5 = vshll.u32 %v12354_v57, 16  ;;  %v4735_v46 = vrot.slane %v4733_v27, 1  ;;  %v3633_v50 = vld [vmem:[#allocation2 + $0xcc] sm:$0xf] }
 0x270   : > { %v4283_v7 = vrot.slane %v4281_v20, 1  ;;  %v4862_v60 = vsel %vm1057_vm0, %v4860_v43, %v4861_v53  ;;  %v12363_v21 = vld [vmem:[#allocation2 + $0x20] ss:$0 sps:$4 sm:$0x11]   ;;  %vm2965_vm13 = vcmp.gt.f32.partialorder %v2929_v3, 0.0 }
 0x271   : > { %v3688_v40 = vld [vmem:[#allocation2 + $0xc0] sm:$0x1]  ;;  %v3439_v17 = vshrl.u32 %v8711_v8, 16  ;;  %v3442_v11 = vshll.u32 %v8711_v8, 16  ;;  %v4740_v2 = vrot.slane %v4738_v34, 1  ;;  %6388 = vmatprep.mubr.bf16.mxu0 %v4862_v60  ;;  %v4288_v24 = vrot.slane %v4286_v5, 1 }
 0x272   : > { %v3689_v19 = vsel %vm11769_vm4, 0, %v3688_v40  ;;  %v3888_v1 = vld [vmem:[#allocation2 + $0xc0] sm:$0xe]  ;;  %v3743_v59 = vld [vmem:[#allocation2 + $0xc8] sm:$0x1]  ;;  %v4284_v16 = vor.u32 %v4283_v7, %v4279_v23  ;;  %v4736_v52 = vor.u32 %v4735_v46, %v4731_v37 }
 0x273   : > { %3690 = vst [vmem:[#allocation2 + $0xc0] sm:$0x1] %v3689_v19  ;;  %v12365_v47 = vrot.slane %v3439_v17, 7  ;;  %v3744_v51 = vsel %vm11795_vm5, 0, %v3743_v59  ;;  %v9885_v10 = vld [vmem:[#allocation2 + $0x4] sm:$0xf] }
 0x274   : > { %v8371_v43 = vcombine.low %v3808_v4, %v9885_v10  ;;  %v3001_v20 = vmul.f32 0.01, %v2929_v3  ;;  %v3819_v8 = vld [vmem:[#allocation2 + $0x84] sm:$0xe]  ;;  %3745 = vst [vmem:[#allocation2 + $0xc8] sm:$0x1] %v3744_v51  ;;  %v4289_v53 = vsel %vm750_vm1, %v4284_v16, %v4288_v24  ;;  %v4741_v5 = vsel %vm750_vm1, %v4736_v52, %v4740_v2 }
 0x275   : > { %v3444_v27 = vor.u32 %v3442_v11, %v12365_v47  ;;  %v3856_v34 = vld [vmem:[#allocation2 + $0xc4] sm:$0xf]  ;;  %v12371_v40 = vld [vmem:[#allocation2 + $0x1c] sm:$0xf]  ;;  %v8382_v23 = vcombine.low %v3819_v8, %v12227_v38  ;;  %v3820_v7 = vld [vmem:[#allocation2 + $0x90] sm:$0xe]  ;;  %6074 = vmatprep.mubr.bf16.mxu1 %v4289_v53  ;;  %6389 = vmatmul.mubr.bf16.gmra.mrb[128].mxu0 %v4741_v5 }
 0x276   : > { %v3037_v37 = vsel %vm2965_vm13, %v2929_v3, %v3001_v20  ;;  %v8434_v17 = vcombine.low %v3888_v1, %v3856_v34  ;;  %v8383_v4 = vcombine.low %v3820_v7, %v12256_v63  ;;  %v3821_v19 = vld [vmem:[#allocation2 + $0x9c] sm:$0xe]  ;;  %6075 = vmatmul.mubr.bf16.gmra.mrb[60].mxu1 %v8354_v13  ;;  %v12379_v46 = vld [vmem:[#allocation2 + $0x18] sm:$0xe]  ;;  %v4354_v2 = vrot.slane %v8371_v43, 1  ;;  %v9796_v20 = vld [vmem:[%s13619_s4 + $0x180] sm:$0xff]  }
 0x277   : > { %v3634_v11 = vsel %vm11762_vm9, %v3444_v27, %v3633_v50  ;;  %v8712_v60 = vpack.c.bf16 %v3037_v37, %v3037_v37  ;;  %v8384_v38 = vcombine.low %v3821_v19, %v12296_v25  ;;  %v9886_v59 = vld [vmem:[#allocation2 + $0x8] ss:$0 sps:$4 sm:$0x11]   ;;  %6115 = vmatprep.mubr.bf16.mxu1 %v11842_v41  ;;  %v8467_v63 = vcombine.low %v12379_v46, %v12371_v40  ;;  %v3822_v13 = vld [vmem:[#allocation2 + $0xa8] sm:$0xe] }
 0x278   : > { %v4355_v16 = vrot.slane %v9886_v59, 1  ;;  %3635 = vst [vmem:[#allocation2 + $0xcc] sm:$0xf] %v3634_v11  ;;  %v5283_v3 = vrot.slane %v12363_v21, 1  ;;  %v3445_v61 = vrot.slane %v12365_v47, 4  ;;  %v8385_v24 = vcombine.low %v3822_v13, %v12325_v15 }
 0x279   : > { %v3447_v50 = vshrl.u32 %v8712_v60, 16  ;;  %v3450_v1 = vshll.u32 %v8712_v60, 16  ;;  %v3637_v51 = vld [vmem:[#allocation2 + $0xd4] sm:$0x1]  ;;  %v4863_v52 = vrot.slane %v8434_v17, 1  ;;  %v4387_v10 = vrot.slane %v8382_v23, 1 }
 0x27a   : > { %v3855_v25 = vld [vmem:[#allocation2 + $0xc0] sm:$0xf]  ;;  %v4388_v41 = vrot.slane %v12232_v39, 1  ;;  %v4390_v43 = vrot.slane %v8383_v4, 1  ;;  %v4391_v47 = vrot.slane %v12261_v56, 1  ;;  %v4393_v27 = vrot.slane %v8384_v38, 1 }
 0x27b   : > { %v3449_v8 = vrot.slane %v3447_v50, 7  ;;  %v12392_v53 = vcombine.low %v3855_v25, %v3856_v34  ;;  %v3823_v40 = vld [vmem:[#allocation2 + $0xb4] sm:$0xe]  ;;  %v4356_v15 = vsel %vm1057_vm0, %v4354_v2, %v4355_v16  ;;  %v9799_v7 = vld [vmem:[#allocation2 + $0xc8] ss:$0 sps:$4 sm:$0x11]  }
 0x27c   : > { %v12397_v5 = vsel %vm1057_vm0, %v4387_v10, %v4388_v41  ;;  %v4394_v39 = vrot.slane %v12301_v54, 1  ;;  %v8386_v23 = vcombine.low %v3823_v40, %v12348_v12  ;;  %v9809_v56 = vld [vmem:[%s13619_s4 + $0x1c8] sm:$0xff]   ;;  %v4864_v19 = vrot.slane %v9799_v7, 1  ;;  %v3939_v40 = vld [vmem:[#allocation2 + $0x24] sm:$0xe] }
 0x27d   : > { %v3452_v37 = vor.u32 %v3450_v1, %v3449_v8  ;;  %v3454_v17 = vrot.slane %v3449_v8, 4  ;;  %v4743_v4 = vshrl.u32 %v12392_v53, 16  ;;  %v4745_v34 = vshll.u32 %v12392_v53, 16 }
 0x27e   : > { %v4750_v11 = vshll.u32 %v9799_v7, 16  ;;  %v12407_v60 = vsel %vm1057_vm0, %v4390_v43, %v4391_v47  ;;  %v12410_v46 = vsel %vm1057_vm0, %v4393_v27, %v4394_v39  ;;  %6116 = vmatmul.mubr.bf16.vlgmr.msra.gmra.mrb[64].mxu1 %v4356_v15  ;;  %v4396_v16 = vrot.slane %v8385_v24, 1  ;;  %v8857_v13 = vpop.f32.mrb[0].mxu1  ;;  %v12427_v24 = vld [vmem:[%s13622_s7] sm:$0xff]   ;;  %v3893_v43 = vld [vmem:[#allocation2 + $0x28] sm:$0xf] }
 0x27f   : > { %v3691_v54 = vld [vmem:[#allocation2 + $0xcc] sm:$0x1]  ;;  %v3453_v12 = vsel %vm11775_vm10, %v3445_v61, %v3452_v37  ;;  %v3638_v38 = vsel %vm11769_vm4, %v3454_v17, %v3637_v51  ;;  %v4747_v59 = vrot.slane %v4745_v34, 1  ;;  %9178 = vmatpush3.bf16.msra.mxu1 %v9796_v20  ;;  %6123 = vmatprep.mubr.bf16.mxu1 %v11881_v26  ;;  %v4865_v50 = vsel %vm1057_vm0, %v4863_v52, %v4864_v19  ;;  %v8858_v14 = vpop.f32.mrb[1].mxu1  ;;  %v9825_v51 = vld [vmem:[%s13619_s4 + $0x1d0] sm:$0xff]   ;;  %v9841_v34 = vld [vmem:[%s13619_s4 + $0x1d8] sm:$0xff]  }
 0x280   : > { %v3692_v2 = vsel %vm11769_vm4, 0, %v3691_v54  ;;  %3636 = vst [vmem:[#allocation2 + $0xd0] sm:$0xf] %v3453_v12  ;;  %3639 = vst [vmem:[#allocation2 + $0xd4] sm:$0x1] %v3638_v38  ;;  %v4752_v1 = vrot.slane %v4750_v11, 1  ;;  %6396 = vmatprep.mubr.bf16.mxu0 %v4865_v50  ;;  %9179 = vmatprep.subr.bf16.mxu1 %v9809_v56  ;;  %v8468_v17 = vcombine.low %v3939_v40, %v3893_v43 }
 0x281   : > { %v4397_v61 = vrot.slane %v12329_v9, 1  ;;  %3693 = vst [vmem:[#allocation2 + $0xcc] sm:$0x1] %v3692_v2  ;;  %3758 = vst [vmem:[#allocation2 + $0xd0] sm:$0xf] %v13763_v48  ;;  %v4748_v26 = vor.u32 %v4747_v59, %v4743_v4  ;;  %v4399_v25 = vrot.slane %v8386_v23, 1  ;;  %v12435_v9 = vadd.f32 %v8858_v14, %v8857_v13  ;;  %9378 = vmatprep.subr.bf16.mxu0 %v12427_v24 }
 0x282   : > { %v4400_v52 = vrot.slane %v12354_v57, 1  ;;  %3757 = vst [vmem:[#allocation2 + $0xcc] sm:$0xf] %v13763_v48  ;;  %v8860_v10 = vpop.f32.mrb[2].mxu1  ;;  %v5282_v41 = vrot.slane %v8467_v63, 1  ;;  %v9830_v37 = vld [vmem:[%s13619_s4 + $0x190] sm:$0xff]  }
 0x283   : > { %v3895_v20 = vld [vmem:[#allocation2 + $0x34] sm:$0xf]  ;;  %v12438_v8 = vsel %vm1057_vm0, %v4396_v16, %v4397_v61  ;;  %v4753_v47 = vsel %vm750_vm1, %v4748_v26, %v4752_v1  ;;  %v8861_v27 = vpop.f32.mrb[3].mxu1  ;;  %v9807_v15 = vld [vmem:[#allocation2 + $0x2c] ss:$0 sps:$4 sm:$0x11]   ;;  %9180 = vmatpush3.bf16.msra.mxu1 %v9814_v62 }
 0x284   : > { %v12443_v57 = vsel %vm1057_vm0, %v4399_v25, %v4400_v52  ;;  %6397 = vmatmul.mubr.bf16.gmra.mrb[132].mxu0 %v4753_v47  ;;  %v5284_v63 = vsel %vm1057_vm0, %v5282_v41, %v5283_v3  ;;  %v12448_v7 = vadd.f32 %v8861_v27, %v8860_v10  ;;  %v3940_v39 = vld [vmem:[#allocation2 + $0x30] sm:$0xe]  ;;  %v9811_v23 = vld [vmem:[#allocation2 + $0x38] ss:$0 sps:$4 sm:$0x11]   ;;  %9181 = vmatprep.subr.bf16.mxu1 %v9825_v51  ;;  %v5286_v3 = vrot.slane %v9807_v15, 1 }
 0x285   : > { %9346 = vmatprep.mubr.bf16.mxu0 %v5284_v63  ;;  %v8469_v4 = vcombine.low %v3940_v39, %v3895_v20  ;;  %v5289_v11 = vrot.slane %v9811_v23, 1  ;;  %v9846_v54 = vld [vmem:[%s13619_s4 + $0x198] sm:$0xff]   ;;  %v5285_v38 = vrot.slane %v8468_v17, 1  ;;  %v3897_v16 = vld [vmem:[#allocation2 + $0x40] sm:$0xf]  ;;  %v9861_v20 = vld [vmem:[%s13619_s4 + $0x1e8] sm:$0xff]  }
 0x286   : > { %6124 = vmatmul.mubr.bf16.gmra.mrb[68].mxu1 %v11891_v42  ;;  %v8863_v19 = vpop.f32.mrb[4].mxu1  ;;  %v9857_v42 = vld [vmem:[%s13619_s4 + $0x1e0] sm:$0xff]   ;;  %v3941_v62 = vld [vmem:[#allocation2 + $0x3c] sm:$0xe]  ;;  %v3899_v61 = vld [vmem:[#allocation2 + $0x4c] sm:$0xf] }
 0x287   : > { %v3746_v21 = vld [vmem:[#allocation2 + $0xd4] sm:$0x1]  ;;  %6131 = vmatprep.mubr.bf16.mxu1 %v11919_v28  ;;  %9182 = vmatpush3.bf16.msra.mxu1 %v9830_v37  ;;  %v8864_v12 = vpop.f32.mrb[5].mxu1  ;;  %v5288_v59 = vrot.slane %v8469_v4, 1  ;;  %v5287_v1 = vsel %vm1057_vm0, %v5285_v38, %v5286_v3  ;;  %v8470_v41 = vcombine.low %v3941_v62, %v3897_v16  ;;  %v3942_v43 = vld [vmem:[#allocation2 + $0x48] sm:$0xe] }
 0x288   : > { %v3747_v56 = vsel %vm11795_vm5, 0, %v3746_v21  ;;  %9183 = vmatprep.subr.bf16.mxu1 %v9841_v34  ;;  %v12467_v55 = vadd.f32 %v8864_v12, %v8863_v19  ;;  %v8866_v28 = vpop.f32.mrb[6].mxu1  ;;  %v9816_v2 = vld [vmem:[#allocation2 + $0x44] ss:$0 sps:$4 sm:$0x11]   ;;  %v9081_v13 = vpop.f32.mrb[72].mxu0  ;;  %v8471_v27 = vcombine.low %v3942_v43, %v3899_v61 }
 0x289   : > { %3748 = vst [vmem:[#allocation2 + $0xd4] sm:$0x1] %v3747_v56  ;;  %v8867_v50 = vpop.f32.mrb[7].mxu1  ;;  %v9082_v14 = vpop.f32.mrb[73].mxu0  ;;  %v5290_v51 = vsel %vm1057_vm0, %v5288_v59, %v5289_v11  ;;  %v5292_v15 = vrot.slane %v9816_v2, 1  ;;  %v9863_v37 = vld [vmem:[%s13619_s4 + $0x1a8] sm:$0xff]  }
 0x28a   : > { %3759 = vst [vmem:[#allocation2 + $0xd4] sm:$0x1] %v13763_v48  ;;  %v12470_v26 = vadd.f32 %v8867_v50, %v8866_v28  ;;  %v9819_v25 = vld [vmem:[#allocation2 + $0x50] ss:$0 sps:$4 sm:$0x11]   ;;  %v9859_v48 = vld [vmem:[%s13619_s4 + $0x1a0] sm:$0xff]   ;;  %v12476_v52 = vadd.f32 %v9082_v14, %v9081_v13 }
 0x28b   : > { %9184 = vmatpush3.bf16.msra.mxu1 %v9846_v54  ;;  %v9084_v10 = vpop.f32.mrb[74].mxu0  ;;  %v9823_v63 = vld [vmem:[#allocation2 + $0x5c] ss:$0 sps:$4 sm:$0x11]   ;;  %v5295_v39 = vrot.slane %v9819_v25, 1  ;;  %v5291_v17 = vrot.slane %v8470_v41, 1 }
 0x28c   : > { %9347 = vmatmul.mubr.bf16.vlgmr.msra.gmra.mrb[136].mxu0 %v5287_v1  ;;  %9185 = vmatprep.subr.bf16.mxu1 %v9857_v42  ;;  %v9085_v47 = vpop.f32.mrb[75].mxu0  ;;  %v3901_v23 = vld [vmem:[#allocation2 + $0x58] sm:$0xf]  ;;  %v5294_v4 = vrot.slane %v8471_v27, 1  ;;  %v3943_v34 = vld [vmem:[#allocation2 + $0x54] sm:$0xe] }
 0x28d   : > { %9350 = vmatprep.mubr.bf16.mxu0 %v5290_v51  ;;  %9379 = vmatpush3.bf16.msra.mxu0 %v12427_v24  ;;  %v12482_v40 = vadd.f32 %v9085_v47, %v9084_v10  ;;  %v9865_v24 = vld [vmem:[%s13619_s4 + $0x1f0] sm:$0xff]   ;;  %v5293_v21 = vsel %vm1057_vm0, %v5291_v17, %v5292_v15  ;;  %v8472_v3 = vcombine.low %v3943_v34, %v3901_v23  ;;  %v3944_v56 = vld [vmem:[#allocation2 + $0x60] sm:$0xe]  ;;  %v9827_v54 = vld [vmem:[#allocation2 + $0x68] ss:$0 sps:$4 sm:$0x11]  }
 0x28e   : > { %6132 = vmatmul.mubr.bf16.gmra.mrb[72].mxu1 %v11947_v18  ;;  %v3903_v18 = vld [vmem:[#allocation2 + $0x64] sm:$0xf]  ;;  %v3905_v19 = vld [vmem:[#allocation2 + $0x70] sm:$0xf]  ;;  %v5296_v11 = vsel %vm1057_vm0, %v5294_v4, %v5295_v39  ;;  %v3907_v12 = vld [vmem:[#allocation2 + $0x7c] sm:$0xf] }
 0x28f   : > { %6139 = vmatprep.mubr.bf16.mxu1 %v11954_v32  ;;  %9186 = vmatpush3.bf16.msra.mxu1 %v9859_v48  ;;  %v5298_v32 = vrot.slane %v9823_v63, 1  ;;  %v9867_v38 = vld [vmem:[%s13619_s4 + $0x1b0] sm:$0xff]   ;;  %v3945_v59 = vld [vmem:[#allocation2 + $0x6c] sm:$0xe]  ;;  %v3814_v28 = vld [vmem:[#allocation2 + $0x48] sm:$0xe]  ;;  %v8473_v2 = vcombine.low %v3944_v56, %v3903_v18 }
 0x290   : > { %9187 = vmatprep.subr.bf16.mxu1 %v9861_v20  ;;  %v12497_v42 = vld [vmem:[#allocation2 + $0x74] ss:$0 sps:$4 sm:$0x11]   ;;  %v9869_v16 = vld [vmem:[%s13619_s4 + $0x1f8] sm:$0xff]   ;;  %v8474_v13 = vcombine.low %v3945_v59, %v3905_v19  ;;  %v3909_v1 = vld [vmem:[#allocation2 + $0x88] sm:$0xf] }
 0x291   : > { %v3946_v50 = vld [vmem:[#allocation2 + $0x78] sm:$0xe]  ;;  %v3947_v62 = vld [vmem:[#allocation2 + $0x84] sm:$0xe]  ;;  %v12502_v61 = vld [vmem:[#allocation2 + $0x54] sm:$0xe] }
 0x292   : > { %v5297_v51 = vrot.slane %v8472_v3, 1  ;;  %v12505_v25 = vld [vmem:[#allocation2 + $0x80] ss:$0 sps:$4 sm:$0x11]   ;;  %v8475_v48 = vcombine.low %v3946_v50, %v3907_v12  ;;  %v3911_v41 = vld [vmem:[#allocation2 + $0x94] sm:$0xf]  ;;  %v8476_v4 = vcombine.low %v3947_v62, %v3909_v1 }
 0x293   : > { %9188 = vmatpush3.bf16.msra.mxu1 %v9863_v37  ;;  %v12507_v10 = vld [vmem:[#allocation2 + $0x8c] ss:$0 sps:$4 sm:$0x11]   ;;  %v3948_v43 = vld [vmem:[#allocation2 + $0x90] sm:$0xe]  ;;  %v5301_v27 = vrot.slane %v9827_v54, 1 }
 0x294   : > { %9351 = vmatmul.mubr.bf16.gmra.mrb[140].mxu0 %v5293_v21  ;;  %9189 = vmatprep.subr.bf16.mxu1 %v9865_v24  ;;  %v9887_v15 = vld [vmem:[#allocation2 + $0x4c] sm:$0xf]  ;;  %v3913_v39 = vld [vmem:[#allocation2 + $0xa0] sm:$0xf]  ;;  %v5299_v24 = vsel %vm1057_vm0, %v5297_v51, %v5298_v32  ;;  %v9888_v18 = vld [vmem:[#allocation2 + $0x58] sm:$0xf]  ;;  %v8477_v12 = vcombine.low %v3948_v43, %v3911_v41 }
 0x295   : > { %9354 = vmatprep.mubr.bf16.mxu0 %v5296_v11  ;;  %v8377_v63 = vcombine.low %v3814_v28, %v9887_v15  ;;  %v12516_v34 = vld [vmem:[#allocation2 + $0x98] ss:$0 sps:$4 sm:$0x11]   ;;  %v12519_v21 = vld [vmem:[#allocation2 + $0x60] sm:$0xe]  ;;  %v5300_v11 = vrot.slane %v8473_v2, 1 }
 0x296   : > { %v8869_v14 = vpop.f32.mrb[8].mxu1  ;;  %6140 = vmatmul.mubr.bf16.gmra.mrb[76].mxu1 %v12006_v6  ;;  %v9871_v6 = vld [vmem:[%s13619_s4 + $0x1b8] sm:$0xff]   ;;  %v5303_v54 = vrot.slane %v8474_v13, 1  ;;  %v5304_v28 = vrot.slane %v12497_v42, 1  ;;  %v5306_v50 = vrot.slane %v8475_v48, 1  ;;  %v5307_v43 = vrot.slane %v12505_v25, 1 }
 0x297   : > { %v9087_v20 = vpop.f32.mrb[76].mxu0  ;;  %v8870_v47 = vpop.f32.mrb[9].mxu1  ;;  %6147 = vmatprep.mubr.bf16.mxu1 %v11998_v36  ;;  %9190 = vmatpush3.bf16.msra.mxu1 %v9867_v38  ;;  %v8378_v36 = vcombine.low %v12502_v61, %v9888_v18  ;;  %v3949_v38 = vld [vmem:[#allocation2 + $0x9c] sm:$0xe]  ;;  %v8557_v62 = vld [vmem:[%s10146_s22 + $0x18] sm:$0xf] }
 0x298   : > { %v9088_v23 = vpop.f32.mrb[77].mxu0  ;;  %v12513_v37 = vadd.f32 %v8870_v47, %v8869_v14  ;;  %v8872_v17 = vpop.f32.mrb[10].mxu1  ;;  %9191 = vmatprep.subr.bf16.mxu1 %v9869_v16  ;;  %v8478_v1 = vcombine.low %v3949_v38, %v3913_v39  ;;  %v5302_v16 = vsel %vm1057_vm0, %v5300_v11, %v5301_v27  ;;  %v4372_v14 = vrot.slane %v8377_v63, 1  ;;  %v12530_v51 = vld [vmem:[#allocation2 + $0xa4] ss:$0 sps:$4 sm:$0x11]  }
 0x299   : > { %v12521_v3 = vadd.f32 %v9088_v23, %v9087_v20  ;;  %v9090_v56 = vpop.f32.mrb[78].mxu0  ;;  %v8873_v19 = vpop.f32.mrb[11].mxu1  ;;  %v9889_v2 = vld [vmem:[#allocation2 + $0x64] sm:$0xf]  ;;  %v8558_v41 = vld [vmem:[%s10146_s22 + $0x1c] sm:$0xf]  ;;  %v5308_v38 = vsel %vm1057_vm0, %v5306_v50, %v5307_v43 }
 0x29a   : > { %13767 = vst [vmem:[#allocation21_spill] sm:$0xff] %v12513_v37  ;;  %v9091_v32 = vpop.f32.mrb[79].mxu0  ;;  %v12523_v59 = vadd.f32 %v8873_v19, %v8872_v17  ;;  %v8379_v13 = vcombine.low %v12519_v21, %v9889_v2  ;;  %v5309_v42 = vrot.slane %v8476_v4, 1  ;;  %v5310_v48 = vrot.slane %v12507_v10, 1  ;;  %v3915_v15 = vld [vmem:[#allocation2 + $0xac] sm:$0xf] }
 0x29b   : > { %v12527_v61 = vadd.f32 %v9091_v32, %v9090_v56  ;;  %9192 = vmatpush3.bf16.msra.mxu1 %v9871_v6  ;;  %v9890_v20 = vld [vmem:[#allocation2 + $0x50] ss:$0 sps:$4 sm:$0x11]   ;;  %v12536_v39 = vld [vmem:[#allocation2 + $0x6c] sm:$0xe]  ;;  %v12541_v27 = vld [vmem:[%s13619_s4 + $0x200] sm:$0xff]   ;;  %v5305_v56 = vsel %vm1057_vm0, %v5303_v54, %v5304_v28 }
 0x29c   : > { %13768 = vst [vmem:[#allocation22_spill] sm:$0xff] %v12523_v59  ;;  %9355 = vmatmul.mubr.bf16.gmra.mrb[144].mxu0 %v5299_v24  ;;  %v4373_v47 = vrot.slane %v9890_v20, 1  ;;  %9412 = vmatprep.subr.bf16.mxu1 %v12541_v27  ;;  %v5312_v63 = vrot.slane %v8477_v12, 1  ;;  %v5313_v6 = vrot.slane %v12516_v34, 1  ;;  %v12545_v23 = vld [vmem:[#allocation2 + $0x78] sm:$0xe]  ;;  %v12562_v32 = vsel %vm1057_vm0, %v5309_v42, %v5310_v48 }
 0x29d   : > { %13769 = vst [vmem:[#allocation10_spill] sm:$0xff] %v12527_v61  ;;  %9358 = vmatprep.mubr.bf16.mxu0 %v5302_v16  ;;  %v6857_v25 = vshrl.u32 %v8557_v62, 16  ;;  %v6860_v10 = vshll.u32 %v8557_v62, 16  ;;  %v5315_v17 = vrot.slane %v8478_v1, 1  ;;  %v3950_v24 = vld [vmem:[#allocation2 + $0xa8] sm:$0xe] }
 0x29e   : > { %6148 = vmatmul.mubr.bf16.gmra.mrb[80].mxu1 %v12058_v31  ;;  %v12548_v4 = vrot.slane %v8378_v36, 1  ;;  %v6866_v18 = vshll.u32 %v8558_v41, 16  ;;  %v6870_v21 = vshrl.u32 %v8558_v41, 16  ;;  %v5316_v34 = vrot.slane %v12530_v51, 1  ;;  %v12555_v12 = vld [vmem:[#allocation2 + $0x70] sm:$0xf] }
 0x29f   : > { %6155 = vmatprep.mubr.bf16.mxu1 %v12049_v33  ;;  %v12553_v19 = vld [vmem:[#allocation2 + $0xb0] ss:$0 sps:$4 sm:$0x11]   ;;  %v8479_v11 = vcombine.low %v3950_v24, %v3915_v15  ;;  %v8380_v31 = vcombine.low %v12536_v39, %v12555_v12  ;;  %v8560_v36 = vld [vmem:[%s10146_s22 + $0x24] sm:$0xf]  ;;  %v12565_v33 = vsel %vm1057_vm0, %v4372_v14, %v4373_v47  ;;  %v12573_v2 = vsel %vm1057_vm0, %v5312_v63, %v5313_v6 }
 0x2a0   : > { %v3917_v54 = vld [vmem:[#allocation2 + $0xb8] sm:$0xf]  ;;  %v3951_v28 = vld [vmem:[#allocation2 + $0xb4] sm:$0xe]  ;;  %v12567_v1 = vld [vmem:[#allocation2 + $0x7c] sm:$0xf] }
 0x2a1   : > { %v8559_v16 = vld [vmem:[%s10146_s22 + $0x20] sm:$0x1]  ;;  %v9894_v41 = vld [vmem:[#allocation2 + $0x5c] ss:$0 sps:$4 sm:$0x11]   ;;  %v6859_v43 = vrot.slane %v6857_v25, 4  ;;  %v8480_v6 = vcombine.low %v3951_v28, %v3917_v54 }
 0x2a2   : > { %v8875_v51 = vpop.f32.mrb[12].mxu1  ;;  %v4376_v50 = vrot.slane %v9894_v41, 1  ;;  %v6862_v42 = vrot.slane %v6860_v10, 5  ;;  %v8561_v48 = vld [vmem:[%s10146_s22 + $0x28] sm:$0xf]  ;;  %v9093_v20 = vpop.f32.mrb[80].mxu0 }
 0x2a3   : > { %v8876_v14 = vpop.f32.mrb[13].mxu1  ;;  %v12576_v47 = vrot.slane %v6866_v18, 5  ;;  %v6872_v15 = vrot.slane %v6870_v21, 4  ;;  %v6881_v39 = vshrl.u32 %v8560_v36, 16  ;;  %v6884_v24 = vshll.u32 %v8560_v36, 16  ;;  %v9094_v12 = vpop.f32.mrb[81].mxu0 }
 0x2a4   : > { %v12578_v62 = vadd.f32 %v8876_v14, %v8875_v51  ;;  %v8878_v61 = vpop.f32.mrb[14].mxu1  ;;  %9359 = vmatmul.mubr.bf16.gmra.mrb[148].mxu0 %v5305_v56  ;;  %v5318_v63 = vrot.slane %v8479_v11, 1  ;;  %v12580_v41 = vrot.slane %v8379_v13, 1  ;;  %v12582_v25 = vadd.f32 %v9094_v12, %v9093_v20  ;;  %v9096_v10 = vpop.f32.mrb[82].mxu0  ;;  %v8563_v37 = vld [vmem:[%s10146_s22 + $0x30] sm:$0xf] }
 0x2a5   : > { %v8879_v59 = vpop.f32.mrb[15].mxu1  ;;  %9362 = vmatprep.mubr.bf16.mxu0 %v5308_v38  ;;  %v12585_v18 = vsel %vm1057_vm0, %v5315_v17, %v5316_v34  ;;  %v6890_v21 = vshll.u32 %v8561_v48, 16  ;;  %v6894_v36 = vshrl.u32 %v8561_v48, 16  ;;  %v9097_v51 = vpop.f32.mrb[83].mxu0  ;;  %v5319_v56 = vrot.slane %v12553_v19, 1 }
 0x2a6   : > { %13770 = vst [vmem:[#allocation7_spill] sm:$0xff] %v12578_v62  ;;  %13771 = vst [vmem:[#allocation26_spill] sm:$0xff] %v12582_v25  ;;  %v12588_v14 = vadd.f32 %v8879_v59, %v8878_v61  ;;  %v6863_v11 = vor.u32 %v6862_v42, %v6859_v43  ;;  %v6876_v13 = vshll.u32 %v8559_v16, 16  ;;  %v8564_v54 = vld [vmem:[%s10146_s22 + $0x34] sm:$0xf]  ;;  %v12592_v28 = vadd.f32 %v9097_v51, %v9096_v10 }
 0x2a7   : > { %6156 = vmatmul.mubr.bf16.gmra.mrb[84].mxu1 %v12201_v22  ;;  %v12595_v38 = vld [vmem:[#allocation2 + $0xbc] ss:$0 sps:$4 sm:$0x11]   ;;  %v6873_v17 = vor.u32 %v6872_v15, %v12576_v47  ;;  %v6883_v34 = vrot.slane %v6881_v39, 4  ;;  %v6886_v48 = vrot.slane %v6884_v24, 5  ;;  %v5321_v59 = vrot.slane %v8480_v6, 1 }
 0x2a8   : > { %13772 = vst [vmem:[#allocation25_spill] sm:$0xff] %v12588_v14  ;;  %13773 = vst [vmem:[#allocation29_spill] sm:$0xff] %v12592_v28  ;;  %6163 = vmatprep.mubr.bf16.mxu1 %v12103_v35  ;;  %vm6853_vm9 = vsmask.f32 3328  ;;  %vm6854_vm4 = vsmask.f32 7440  ;;  %v12609_v12 = vsel %vm1057_vm0, %v12548_v4, %v4376_v50 }
 0x2a9   : > { %v6905_v61 = vshrl.u32 %v8563_v37, 16  ;;  %v8562_v19 = vld [vmem:[%s10146_s22 + $0x2c] sm:$0x1]  ;;  %v12600_v16 = vrot.slane %v6890_v21, 5  ;;  %v6896_v43 = vrot.slane %v6894_v36, 4  ;;  %v6908_v42 = vshll.u32 %v8563_v37, 16  ;;  %vm12620_vm10 = vmor %vm6853_vm9, %vm6854_vm4 }
 0x2aa   : > { %v6914_v22 = vshll.u32 %v8564_v54, 16  ;;  %v12602_v20 = vld [vmem:[#allocation2 + $0x68] ss:$0 sps:$4 sm:$0x11]   ;;  %v12605_v39 = vrot.slane %v8380_v31, 1  ;;  %v6878_v24 = vrot.slane %v6876_v13, 5  ;;  %v6887_v21 = vor.u32 %v6886_v48, %v6883_v34 }
 0x2ab   : > { %v6918_v35 = vshrl.u32 %v8564_v54, 16  ;;  %v6864_v6 = vrot.slane %v6863_v11, 4  ;;  %v6874_v10 = vrot.slane %v6873_v17, 4  ;;  %v8566_v36 = vld [vmem:[%s10146_s22 + $0x3c] sm:$0xf]  ;;  %v5322_v51 = vrot.slane %v12595_v38, 1 }
 0x2ac   : > { %v8567_v37 = vld [vmem:[%s10146_s22 + $0x40] sm:$0xf]  ;;  %9363 = vmatmul.mubr.bf16.gmra.mrb[152].mxu0 %v12562_v32  ;;  %v12615_v31 = vld [vmem:[#allocation2 + $0x74] ss:$0 sps:$4 sm:$0x11]   ;;  %v6900_v50 = vshll.u32 %v8562_v19, 16  ;;  %v5320_v54 = vsel %vm1057_vm0, %v5318_v63, %v5319_v56  ;;  %v6897_v32 = vor.u32 %v6896_v43, %v12600_v16 }
 0x2ad   : > { %v6907_v11 = vrot.slane %v6905_v61, 4  ;;  %9366 = vmatprep.mubr.bf16.mxu0 %v12573_v2  ;;  %v6910_v17 = vrot.slane %v6908_v42, 5  ;;  %v12627_v38 = vrot.slane %v6914_v22, 5  ;;  %v8569_v34 = vld [vmem:[%s10146_s22 + $0x48] sm:$0xf]  ;;  %v6920_v15 = vrot.slane %v6918_v35, 4 }
 0x2ae   : > { %v8570_v48 = vld [vmem:[%s10146_s22 + $0x4c] sm:$0xf]  ;;  %v8565_v13 = vld [vmem:[%s10146_s22 + $0x38] sm:$0x1]  ;;  %v6929_v28 = vshrl.u32 %v8566_v36, 16  ;;  %v6932_v25 = vshll.u32 %v8566_v36, 16  ;;  %v6869_v2 = vsel %vm12620_vm10, %v6864_v6, %v12576_v47  ;;  %v6879_v63 = vsel %vm12620_vm10, %v6874_v10, %v6878_v24 }
 0x2af   : > { %v6938_v14 = vshll.u32 %v8567_v37, 16  ;;  %6164 = vmatmul.mubr.bf16.gmra.mrb[88].mxu1 %v12565_v33  ;;  %v12638_v56 = vrot.slane %v6887_v21, 4  ;;  %v6942_v61 = vshrl.u32 %v8567_v37, 16  ;;  %v6953_v19 = vshrl.u32 %v8569_v34, 16  ;;  %v8568_v24 = vld [vmem:[%s10146_s22 + $0x44] sm:$0x1] }
 0x2b0   : > { %6171 = vmatprep.mubr.bf16.mxu1 %v12138_v30  ;;  %v6956_v43 = vshll.u32 %v8569_v34, 16  ;;  %v6962_v42 = vshll.u32 %v8570_v48, 16  ;;  %v6966_v22 = vshrl.u32 %v8570_v48, 16  ;;  %v12641_v35 = vrot.slane %v6897_v32, 4  ;;  %v8571_v48 = vld [vmem:[%s10146_s22 + $0x50] sm:$0x1] }
 0x2b1   : > { %v12643_v33 = vrot.slane %v6900_v50, 5  ;;  %v6911_v36 = vor.u32 %v6910_v17, %v6907_v11  ;;  %v6924_v47 = vshll.u32 %v8565_v13, 16  ;;  %v6921_v6 = vor.u32 %v6920_v15, %v12627_v38  ;;  %v8572_v11 = vld [vmem:[%s10146_s22 + $0x54] sm:$0xf]  ;;  %v9913_v4 = vld [vmem:[%s13619_s4 + $0x228] sm:$0xff]  }
 0x2b2   : > { %v6931_v10 = vrot.slane %v6929_v28, 4  ;;  %v6934_v21 = vrot.slane %v6932_v25, 5  ;;  %v12647_v37 = vrot.slane %v6938_v14, 5  ;;  %v8881_v30 = vpop.f32.mrb[16].mxu1  ;;  %v5323_v34 = vsel %vm1057_vm0, %v5321_v59, %v5322_v51 }
 0x2b3   : > { %v8605_v62 = vcombine.low %v6869_v2, %v6879_v63  ;;  %v6893_v32 = vsel %vm12620_vm10, %v12638_v56, %v12600_v16  ;;  %v6944_v50 = vrot.slane %v6942_v61, 4  ;;  %v9099_v13 = vpop.f32.mrb[84].mxu0  ;;  %v8882_v17 = vpop.f32.mrb[17].mxu1  ;;  %v6955_v28 = vrot.slane %v6953_v19, 4 }
 0x2b4   : > { %9367 = vmatmul.mubr.bf16.gmra.mrb[156].mxu0 %v12585_v18  ;;  %v6958_v25 = vrot.slane %v6956_v43, 5  ;;  %v12657_v14 = vrot.slane %v6962_v42, 5  ;;  %v6968_v15 = vrot.slane %v6966_v22, 4  ;;  %v9100_v59 = vpop.f32.mrb[85].mxu0  ;;  %v12659_v51 = vadd.f32 %v8882_v17, %v8881_v30  ;;  %v8884_v2 = vpop.f32.mrb[18].mxu1 }
 0x2b5   : > { %9370 = vmatprep.mubr.bf16.mxu0 %v5320_v54  ;;  %v6903_v16 = vsel %vm12620_vm10, %v12641_v35, %v12643_v33  ;;  %v6912_v63 = vrot.slane %v6911_v36, 4  ;;  %v6948_v56 = vshll.u32 %v8568_v24, 16  ;;  %v12665_v18 = vadd.f32 %v9100_v59, %v9099_v13  ;;  %v9102_v61 = vpop.f32.mrb[86].mxu0  ;;  %v8885_v19 = vpop.f32.mrb[19].mxu1  ;;  %v8573_v30 = vld [vmem:[%s10146_s22 + $0x58] sm:$0xf] }
 0x2b6   : > { %13776 = vst [vmem:[#allocation27_spill] sm:$0xff] %v12659_v51  ;;  %v6922_v43 = vrot.slane %v6921_v6, 4  ;;  %v6926_v42 = vrot.slane %v6924_v47, 5  ;;  %v6935_v22 = vor.u32 %v6934_v21, %v6931_v10  ;;  %v9103_v17 = vpop.f32.mrb[87].mxu0  ;;  %v12668_v51 = vadd.f32 %v8885_v19, %v8884_v2  ;;  %v8575_v36 = vld [vmem:[%s10146_s22 + $0x60] sm:$0xf] }
 0x2b7   : > { %6172 = vmatmul.mubr.bf16.gmra.mrb[92].mxu1 %v12609_v12  ;;  %v6945_v54 = vor.u32 %v6944_v50, %v12647_v37  ;;  %v6972_v35 = vshll.u32 %v8571_v48, 16  ;;  %v6977_v33 = vshrl.u32 %v8572_v11, 16  ;;  %v12673_v24 = vadd.f32 %v9103_v17, %v9102_v61  ;;  %v8576_v10 = vld [vmem:[%s10146_s22 + $0x64] sm:$0xf] }
 0x2b8   : > { %6179 = vmatprep.mubr.bf16.mxu1 %v12170_v0  ;;  %v6959_v13 = vor.u32 %v6958_v25, %v6955_v28  ;;  %v6969_v6 = vor.u32 %v6968_v15, %v12657_v14  ;;  %v6980_v47 = vshll.u32 %v8572_v11, 16  ;;  %v6917_v21 = vsel %vm12620_vm10, %v6912_v63, %v12627_v38 }
 0x2b9   : > { %v6950_v59 = vrot.slane %v6948_v56, 5  ;;  %v6986_v12 = vshll.u32 %v8573_v30, 16  ;;  %v6990_v2 = vshrl.u32 %v8573_v30, 16  ;;  %v6927_v50 = vsel %vm12620_vm10, %v6922_v43, %v6926_v42  ;;  %v8574_v30 = vld [vmem:[%s10146_s22 + $0x5c] sm:$0x1] }
 0x2ba   : > { %v6936_v48 = vrot.slane %v6935_v22, 4  ;;  %v7001_v61 = vshrl.u32 %v8575_v36, 16  ;;  %v7004_v19 = vshll.u32 %v8575_v36, 16  ;;  %v6946_v0 = vrot.slane %v6945_v54, 4  ;;  %v8577_v36 = vld [vmem:[%s10146_s22 + $0x68] sm:$0x1] }
 0x2bb   : > { %v6974_v28 = vrot.slane %v6972_v35, 5  ;;  %v7010_v25 = vshll.u32 %v8576_v10, 16  ;;  %v7014_v11 = vshrl.u32 %v8576_v10, 16  ;;  %v6960_v15 = vrot.slane %v6959_v13, 4  ;;  %v8579_v10 = vld [vmem:[%s10146_s22 + $0x70] sm:$0xf] }
 0x2bc   : > { %9371 = vmatmul.mubr.bf16.gmra.mrb[160].mxu0 %v5323_v34  ;;  %v6970_v17 = vrot.slane %v6969_v6, 4  ;;  %v6979_v38 = vrot.slane %v6977_v33, 4  ;;  %v6982_v63 = vrot.slane %v6980_v47, 5  ;;  %v13777_v56 = vrot.slane %v12602_v20, 1  ;;  %v8578_v6 = vld [vmem:[%s10146_s22 + $0x6c] sm:$0xf] }
 0x2bd   : > { %v13778_v42 = vrot.slane %v12615_v31, 1  ;;  %9380 = vmatprep.mubr.msk.bf16.mxu0 %vm2264_vm2, %v8605_v62  ;;  %v12693_v34 = vrot.slane %v6986_v12, 5  ;;  %v6992_v54 = vrot.slane %v6990_v2, 4  ;;  %v8606_v35 = vcombine.low %v6893_v32, %v6903_v16  ;;  %v9105_v47 = vpop.f32.mrb[88].mxu0 }
 0x2be   : > { %v4380_v43 = vsel %vm1057_vm0, %v12580_v41, %v13777_v56  ;;  %v8607_v33 = vcombine.low %v6917_v21, %v6927_v50  ;;  %v7003_v13 = vrot.slane %v7001_v61, 4  ;;  %v7006_v20 = vrot.slane %v7004_v19, 5  ;;  %v9106_v32 = vpop.f32.mrb[89].mxu0 }
 0x2bf   : > { %v4383_v22 = vsel %vm1057_vm0, %v12605_v39, %v13778_v42  ;;  %6180 = vmatmul.mubr.bf16.gmra.mrb[96].mxu1 %v4380_v43  ;;  %v6941_v41 = vsel %vm12620_vm10, %v6936_v48, %v12647_v37  ;;  %v6951_v62 = vsel %vm12620_vm10, %v6946_v0, %v6950_v59  ;;  %v12702_v39 = vrot.slane %v7010_v25, 5  ;;  %v8887_v12 = vpop.f32.mrb[20].mxu1  ;;  %v9108_v48 = vpop.f32.mrb[90].mxu0  ;;  %v8581_v42 = vld [vmem:[%s10146_s22 + $0x78] sm:$0xf] }
 0x2c0   : > { %v7016_v31 = vrot.slane %v7014_v11, 4  ;;  %6187 = vmatprep.mubr.bf16.mxu1 %v12198_v58  ;;  %v6965_v16 = vsel %vm12620_vm10, %v6960_v15, %v12657_v14  ;;  %v6975_v21 = vsel %vm12620_vm10, %v6970_v17, %v6974_v28  ;;  %v6983_v2 = vor.u32 %v6982_v63, %v6979_v38  ;;  %v8888_v59 = vpop.f32.mrb[21].mxu1  ;;  %v9109_v11 = vpop.f32.mrb[91].mxu0 }
 0x2c1   : > { %v6996_v37 = vshll.u32 %v8574_v30, 16  ;;  %v12711_v50 = vadd.f32 %v9106_v32, %v9105_v47  ;;  %v6993_v61 = vor.u32 %v6992_v54, %v12693_v34  ;;  %v7020_v19 = vshll.u32 %v8577_v36, 16  ;;  %v8890_v25 = vpop.f32.mrb[22].mxu1  ;;  %v8582_v30 = vld [vmem:[%s10146_s22 + $0x7c] sm:$0xf] }
 0x2c2   : > { %v7025_v0 = vshrl.u32 %v8578_v6, 16  ;;  %v12714_v58 = vadd.f32 %v8888_v59, %v8887_v12  ;;  %v7007_v14 = vor.u32 %v7006_v20, %v7003_v13  ;;  %v7028_v15 = vshll.u32 %v8578_v6, 16  ;;  %v8891_v17 = vpop.f32.mrb[23].mxu1 }
 0x2c3   : > { %v7034_v56 = vshll.u32 %v8579_v10, 16  ;;  %v12716_v28 = vadd.f32 %v9109_v11, %v9108_v48  ;;  %v8608_v38 = vcombine.low %v6941_v41, %v6951_v62  ;;  %v7017_v63 = vor.u32 %v7016_v31, %v12702_v39  ;;  %v8584_v62 = vld [vmem:[%s10146_s22 + $0x84] sm:$0xf]  ;;  %v8585_v48 = vld [vmem:[%s10146_s22 + $0x88] sm:$0xf] }
 0x2c4   : > { %v7038_v43 = vshrl.u32 %v8579_v10, 16  ;;  %v12721_v54 = vadd.f32 %v8891_v17, %v8890_v25  ;;  %9381 = vmatmul.mubr.msk.bf16.vlgmr.msra.gmra.mrb[164].mxu0 %vm2264_vm2, %v8606_v35  ;;  %v6998_v36 = vrot.slane %v6996_v37, 5  ;;  %v7049_v47 = vshrl.u32 %v8581_v42, 16 }
 0x2c5   : > { %v7052_v13 = vshll.u32 %v8581_v42, 16  ;;  %9384 = vmatprep.mubr.msk.bf16.mxu0 %vm2264_vm2, %v8607_v33  ;;  %v8609_v20 = vcombine.low %v6965_v16, %v6975_v21  ;;  %v6984_v6 = vrot.slane %v6983_v2, 4  ;;  %v7058_v12 = vshll.u32 %v8582_v30, 16  ;;  %v8580_v33 = vld [vmem:[%s10146_s22 + $0x74] sm:$0x1] }
 0x2c6   : > { %v7062_v41 = vshrl.u32 %v8582_v30, 16  ;;  %v6994_v31 = vrot.slane %v6993_v61, 4  ;;  %v7008_v10 = vrot.slane %v7007_v14, 4  ;;  %v7022_v32 = vrot.slane %v7020_v19, 5  ;;  %v8583_v42 = vld [vmem:[%s10146_s22 + $0x80] sm:$0x1] }
 0x2c7   : > { %v7027_v59 = vrot.slane %v7025_v0, 4  ;;  %6188 = vmatmul.mubr.bf16.gmra.mrb[100].mxu1 %v4383_v22  ;;  %v7018_v25 = vrot.slane %v7017_v63, 4  ;;  %v7030_v35 = vrot.slane %v7028_v15, 5  ;;  %v12727_v37 = vrot.slane %v7034_v56, 5 }
 0x2c8   : > { %v7040_v11 = vrot.slane %v7038_v43, 4  ;;  %6195 = vmatprep.mubr.bf16.mxu1 %v12229_v45  ;;  %v7051_v16 = vrot.slane %v7049_v47, 4  ;;  %v7054_v21 = vrot.slane %v7052_v13, 5  ;;  %v7073_v2 = vshrl.u32 %v8584_v62, 16 }
 0x2c9   : > { %v7076_v17 = vshll.u32 %v8584_v62, 16  ;;  %v12732_v61 = vrot.slane %v7058_v12, 5  ;;  %v7064_v14 = vrot.slane %v7062_v41, 4  ;;  %v7082_v19 = vshll.u32 %v8585_v48, 16 }
 0x2ca   : > { %v7086_v0 = vshrl.u32 %v8585_v48, 16  ;;  %v13779_v22 = vcombine.low %v12545_v23, %v12567_v1  ;;  %v9897_v56 = vld [vmem:[#allocation2 + $0x80] ss:$0 sps:$4 sm:$0x11]   ;;  %v6989_v45 = vsel %vm12620_vm10, %v6984_v6, %v12693_v34  ;;  %v6999_v43 = vsel %vm12620_vm10, %v6994_v31, %v6998_v36  ;;  %v8586_v6 = vld [vmem:[%s10146_s22 + $0x8c] sm:$0x1] }
 0x2cb   : > { %v4385_v63 = vrot.slane %v9897_v56, 1  ;;  %v7013_v30 = vsel %vm12620_vm10, %v7008_v10, %v12702_v39  ;;  %v7023_v47 = vsel %vm12620_vm10, %v7018_v25, %v7022_v32  ;;  %v7031_v13 = vor.u32 %v7030_v35, %v7027_v59 }
 0x2cc   : > { %v4384_v15 = vrot.slane %v13779_v22, 1  ;;  %v7044_v23 = vshll.u32 %v8580_v33, 16  ;;  %9385 = vmatmul.mubr.msk.bf16.gmra.mrb[168].mxu0 %vm2264_vm2, %v8608_v38  ;;  %v7041_v1 = vor.u32 %v7040_v11, %v12727_v37  ;;  %v7068_v12 = vshll.u32 %v8583_v42, 16 }
 0x2cd   : > { %v7075_v41 = vrot.slane %v7073_v2, 4  ;;  %v7078_v62 = vrot.slane %v7076_v17, 5  ;;  %9388 = vmatprep.mubr.msk.bf16.mxu0 %vm2264_vm2, %v8609_v20  ;;  %v7055_v34 = vor.u32 %v7054_v21, %v7051_v16  ;;  %v7065_v36 = vor.u32 %v7064_v14, %v12732_v61 }
 0x2ce   : > { %v12752_v31 = vrot.slane %v7082_v19, 5  ;;  %v7088_v39 = vrot.slane %v7086_v0, 4  ;;  %v4386_v10 = vsel %vm1057_vm0, %v4384_v15, %v4385_v63  ;;  %v8893_v32 = vpop.f32.mrb[24].mxu1  ;;  %v8610_v59 = vcombine.low %v6989_v45, %v6999_v43 }
 0x2cf   : > { %6196 = vmatmul.mubr.bf16.gmra.mrb[104].mxu1 %v4386_v10  ;;  %v8611_v38 = vcombine.low %v7013_v30, %v7023_v47  ;;  %v7032_v48 = vrot.slane %v7031_v13, 4  ;;  %v7046_v25 = vrot.slane %v7044_v23, 5  ;;  %v9111_v35 = vpop.f32.mrb[92].mxu0  ;;  %v8894_v11 = vpop.f32.mrb[25].mxu1  ;;  %v7042_v20 = vrot.slane %v7041_v1, 4 }
 0x2d0   : > { %6203 = vmatprep.mubr.bf16.mxu1 %v12254_v49  ;;  %v7070_v33 = vrot.slane %v7068_v12, 5  ;;  %v7079_v16 = vor.u32 %v7078_v62, %v7075_v41  ;;  %v7092_v21 = vshll.u32 %v8586_v6, 16  ;;  %v9112_v2 = vpop.f32.mrb[93].mxu0  ;;  %v12756_v17 = vadd.f32 %v8894_v11, %v8893_v32  ;;  %v8896_v42 = vpop.f32.mrb[26].mxu1  ;;  %v8587_v41 = vld [vmem:[%s10146_s22 + $0x90] sm:$0xf] }
 0x2d1   : > { %v7056_v14 = vrot.slane %v7055_v34, 4  ;;  %v7066_v19 = vrot.slane %v7065_v36, 4  ;;  %v7089_v0 = vor.u32 %v7088_v39, %v12752_v31  ;;  %v12759_v22 = vadd.f32 %v9112_v2, %v9111_v35  ;;  %v9114_v15 = vpop.f32.mrb[94].mxu0  ;;  %v8897_v56 = vpop.f32.mrb[27].mxu1  ;;  %v8588_v62 = vld [vmem:[%s10146_s22 + $0x94] sm:$0xf] }
 0x2d2   : > { %v9115_v49 = vpop.f32.mrb[95].mxu0  ;;  %v12761_v63 = vadd.f32 %v8897_v56, %v8896_v42  ;;  %v7037_v43 = vsel %vm12620_vm10, %v7032_v48, %v12727_v37  ;;  %v7047_v30 = vsel %vm12620_vm10, %v7042_v20, %v7046_v25  ;;  %v7080_v47 = vrot.slane %v7079_v16, 4  ;;  %v8589_v37 = vld [vmem:[%s10146_s22 + $0x98] sm:$0x1]  ;;  %v8591_v48 = vld [vmem:[%s10146_s22 + $0xa0] sm:$0xf] }
 0x2d3   : > { %v12763_v45 = vadd.f32 %v9115_v49, %v9114_v15  ;;  %v7061_v13 = vsel %vm12620_vm10, %v7056_v14, %v12732_v61  ;;  %v7071_v23 = vsel %vm12620_vm10, %v7066_v19, %v7070_v33  ;;  %v7090_v1 = vrot.slane %v7089_v0, 4  ;;  %v8592_v20 = vld [vmem:[%s10146_s22 + $0xa4] sm:$0x1] }
 0x2d4   : > { %9389 = vmatmul.mubr.msk.bf16.gmra.mrb[172].mxu0 %vm2264_vm2, %v8610_v59  ;;  %v7094_v12 = vrot.slane %v7092_v21, 5  ;;  %v7097_v34 = vshrl.u32 %v8587_v41, 16  ;;  %v7100_v36 = vshll.u32 %v8587_v41, 16  ;;  %v7106_v6 = vshll.u32 %v8588_v62, 16 }
 0x2d5   : > { %9392 = vmatprep.mubr.msk.bf16.mxu0 %vm2264_vm2, %v8611_v38  ;;  %v7110_v39 = vshrl.u32 %v8588_v62, 16  ;;  %v8612_v61 = vcombine.low %v7037_v43, %v7047_v30  ;;  %v8613_v10 = vcombine.low %v7061_v13, %v7071_v23  ;;  %v7085_v32 = vsel %vm12620_vm10, %v7080_v47, %v12752_v31  ;;  %v8590_v38 = vld [vmem:[%s10146_s22 + $0x9c] sm:$0xf] }
 0x2d6   : > { %v7116_v59 = vshll.u32 %v8589_v37, 16  ;;  %v7099_v25 = vrot.slane %v7097_v34, 4  ;;  %v7102_v35 = vrot.slane %v7100_v36, 5  ;;  %v7108_v11 = vrot.slane %v7106_v6, 5 }
 0x2d7   : > { %6204 = vmatmul.mubr.bf16.gmra.mrb[108].mxu1 %v12397_v5  ;;  %v7112_v5 = vrot.slane %v7110_v39, 4  ;;  %v7095_v33 = vsel %vm12620_vm10, %v7090_v1, %v7094_v12  ;;  %v7121_v16 = vshrl.u32 %v8590_v38, 16  ;;  %v7124_v21 = vshll.u32 %v8590_v38, 16 }
 0x2d8   : > { %6211 = vmatprep.mubr.bf16.mxu1 %v12298_v29  ;;  %v7130_v29 = vshll.u32 %v8591_v48, 16  ;;  %v7103_v42 = vor.u32 %v7102_v35, %v7099_v25  ;;  %v7118_v19 = vrot.slane %v7116_v59, 5  ;;  %v7134_v0 = vshrl.u32 %v8591_v48, 16  ;;  %v13780_v48 = vld [vmem:[#allocation19_spill] sm:$0xff] }
 0x2d9   : > { %v9117_v2 = vpop.f32.mrb[96].mxu0  ;;  %v7113_v14 = vor.u32 %v7112_v5, %v7108_v11  ;;  %v7123_v56 = vrot.slane %v7121_v16, 4  ;;  %v7126_v49 = vrot.slane %v7124_v21, 5  ;;  %v7140_v30 = vshll.u32 %v8592_v20, 16  ;;  %v3890_v35 = vld [vmem:[#allocation2 + $0x18] sm:$0xf] }
 0x2da   : > { %v9118_v15 = vpop.f32.mrb[97].mxu0  ;;  %v7132_v43 = vrot.slane %v7130_v29, 5  ;;  %v7104_v1 = vrot.slane %v7103_v42, 4  ;;  %v7136_v41 = vrot.slane %v7134_v0, 4  ;;  %v8614_v25 = vcombine.low %v7085_v32, %v7095_v33  ;;  %v9898_v21 = vld [vmem:[#allocation2 + $0x1c] sm:$0xf] }
 0x2db   : > { %v8899_v31 = vpop.f32.mrb[28].mxu1  ;;  %v12791_v47 = vadd.f32 %v9118_v15, %v9117_v2  ;;  %v9120_v23 = vpop.f32.mrb[98].mxu0  ;;  %v7114_v12 = vrot.slane %v7113_v14, 4  ;;  %v7127_v36 = vor.u32 %v7126_v49, %v7123_v56  ;;  %v12806_v29 = vcombine.low %v3890_v35, %v9898_v21  ;;  %v8593_v33 = vld [vmem:[%s10146_s22 + $0xa8] sm:$0xf] }
 0x2dc   : > { %9393 = vmatmul.mubr.msk.bf16.gmra.mrb[176].mxu0 %vm2264_vm2, %v8612_v61  ;;  %v8900_v13 = vpop.f32.mrb[29].mxu1  ;;  %v9121_v34 = vpop.f32.mrb[99].mxu0  ;;  %v7109_v61 = vsel %vm12620_vm10, %v7104_v1, %v7108_v11  ;;  %v3892_v11 = vld [vmem:[#allocation2 + $0x24] sm:$0xf]  ;;  %v8594_v42 = vld [vmem:[%s10146_s22 + $0xac] sm:$0xf] }
 0x2dd   : > { %9396 = vmatprep.mubr.msk.bf16.mxu0 %vm2264_vm2, %v8613_v10  ;;  %v12794_v62 = vadd.f32 %v8900_v13, %v8899_v31  ;;  %v8902_v37 = vpop.f32.mrb[30].mxu1  ;;  %v12796_v6 = vadd.f32 %v9121_v34, %v9120_v23  ;;  %v7119_v59 = vsel %vm12620_vm10, %v7114_v12, %v7118_v19  ;;  %v7137_v10 = vor.u32 %v7136_v41, %v7132_v43  ;;  %v8595_v14 = vld [vmem:[%s10146_s22 + $0xb0] sm:$0x1]  ;;  %v9899_v49 = vld [vmem:[#allocation2 + $0x28] sm:$0xf] }
 0x2de   : > { %v8903_v39 = vpop.f32.mrb[31].mxu1  ;;  %v8615_v5 = vcombine.low %v7109_v61, %v7119_v59  ;;  %v7128_v20 = vrot.slane %v7127_v36, 4  ;;  %v7145_v19 = vshrl.u32 %v8593_v33, 16  ;;  %v7148_v0 = vshll.u32 %v8593_v33, 16  ;;  %v8596_v23 = vld [vmem:[%s10146_s22 + $0xb4] sm:$0xf] }
 0x2df   : > { %6212 = vmatmul.mubr.bf16.gmra.mrb[112].mxu1 %v12407_v60  ;;  %v12803_v38 = vadd.f32 %v8903_v39, %v8902_v37  ;;  %v7138_v16 = vrot.slane %v7137_v10, 4  ;;  %v7142_v60 = vrot.slane %v7140_v30, 5  ;;  %v7154_v31 = vshll.u32 %v8594_v42, 16  ;;  %v8597_v1 = vld [vmem:[%s10146_s22 + $0xb8] sm:$0xf] }
 0x2e0   : > { %6219 = vmatprep.mubr.bf16.mxu1 %v13780_v48  ;;  %v7133_v2 = vsel %vm12620_vm10, %v7128_v20, %v7132_v43  ;;  %v7158_v15 = vshrl.u32 %v8594_v42, 16  ;;  %v5029_v56 = vshll.u32 %v12806_v29, 16  ;;  %v12820_v43 = vcombine.low %v3892_v11, %v9899_v49  ;;  %v8598_v34 = vld [vmem:[%s10146_s22 + $0xbc] sm:$0x1] }
 0x2e1   : > { %v7143_v32 = vsel %vm12620_vm10, %v7138_v16, %v7142_v60  ;;  %v7164_v13 = vshll.u32 %v8595_v14, 16  ;;  %v7147_v12 = vrot.slane %v7145_v19, 4  ;;  %v7150_v41 = vrot.slane %v7148_v0, 5  ;;  %v9900_v16 = vld [vmem:[#allocation2 + $0x20] ss:$0 sps:$4 sm:$0x11]  }
 0x2e2   : > { %v8616_v30 = vcombine.low %v7133_v2, %v7143_v32  ;;  %v7156_v37 = vrot.slane %v7154_v31, 5  ;;  %v7169_v39 = vshrl.u32 %v8596_v23, 16  ;;  %v7172_v61 = vshll.u32 %v8596_v23, 16 }
 0x2e3   : > { %v7166_v36 = vrot.slane %v7164_v13, 5  ;;  %v7178_v59 = vshll.u32 %v8597_v1, 16  ;;  %v7188_v35 = vshll.u32 %v8598_v34, 16  ;;  %v5034_v60 = vshll.u32 %v9900_v16, 16 }
 0x2e4   : > { %9397 = vmatmul.mubr.msk.bf16.gmra.mrb[180].mxu0 %vm2264_vm2, %v8614_v25  ;;  %v7182_v25 = vshrl.u32 %v8597_v1, 16  ;;  %v7171_v21 = vrot.slane %v7169_v39, 4  ;;  %v7174_v11 = vrot.slane %v7172_v61, 5  ;;  %v5031_v13 = vrot.slane %v5029_v56, 1 }
 0x2e5   : > { %9400 = vmatprep.mubr.msk.bf16.mxu0 %vm2264_vm2, %v8615_v5  ;;  %v7180_v2 = vrot.slane %v7178_v59, 5  ;;  %v7190_v1 = vrot.slane %v7188_v35, 5  ;;  %v5027_v59 = vshrl.u32 %v12806_v29, 16 }
 0x2e6   : > { %v7184_v0 = vrot.slane %v7182_v25, 4  ;;  %v7175_v23 = vor.u32 %v7174_v11, %v7171_v21 }
 0x2e7   : > { %6220 = vmatmul.mubr.bf16.gmra.mrb[116].mxu1 %v12410_v46  ;;  %v7160_v46 = vrot.slane %v7158_v15, 4 }
 0x2e8   : > { %6227 = vmatprep.mubr.bf16.mxu1 %v12351_v44  ;;  %v7151_v44 = vor.u32 %v7150_v41, %v7147_v12  ;;  %v7185_v34 = vor.u32 %v7184_v0, %v7180_v2  ;;  %v7176_v56 = vrot.slane %v7175_v23, 4 }
 0x2e9   : > { %v7161_v48 = vor.u32 %v7160_v46, %v7156_v37 }
 0x2ea   : > { %v8905_v10 = vpop.f32.mrb[32].mxu1  ;;  %v7152_v14 = vrot.slane %v7151_v44, 4  ;;  %v3894_v44 = vld [vmem:[#allocation2 + $0x30] sm:$0xf] }
 0x2eb   : > { %v9123_v5 = vpop.f32.mrb[100].mxu0  ;;  %v8906_v20 = vpop.f32.mrb[33].mxu1  ;;  %v7162_v19 = vrot.slane %v7161_v48, 4  ;;  %v5036_v48 = vrot.slane %v5034_v60, 1 }
 0x2ec   : > { %9401 = vmatmul.mubr.msk.bf16.gmra.mrb[184].mxu0 %vm2264_vm2, %v8616_v30  ;;  %v9124_v32 = vpop.f32.mrb[101].mxu0  ;;  %v12826_v33 = vadd.f32 %v8906_v20, %v8905_v10  ;;  %v8908_v42 = vpop.f32.mrb[34].mxu1  ;;  %v7157_v30 = vsel %vm12620_vm10, %v7152_v14, %v7156_v37  ;;  %v7186_v10 = vrot.slane %v7185_v34, 4  ;;  %v5032_v37 = vor.u32 %v5031_v13, %v5027_v59  ;;  %v3896_v20 = vld [vmem:[#allocation2 + $0x3c] sm:$0xf] }
 0x2ed   : > { %v12828_v31 = vadd.f32 %v9124_v32, %v9123_v5  ;;  %v9126_v15 = vpop.f32.mrb[102].mxu0  ;;  %v8909_v49 = vpop.f32.mrb[35].mxu1  ;;  %v7167_v46 = vsel %vm12620_vm10, %v7162_v19, %v7166_v36  ;;  %v5041_v36 = vshll.u32 %v12820_v43, 16 }
 0x2ee   : > { %v9127_v12 = vpop.f32.mrb[103].mxu0  ;;  %v12830_v41 = vadd.f32 %v8909_v49, %v8908_v42  ;;  %v8617_v61 = vcombine.low %v7157_v30, %v7167_v46  ;;  %v7191_v25 = vsel %vm12620_vm10, %v7186_v10, %v7190_v1  ;;  %v5037_v21 = vsel %vm750_vm1, %v5032_v37, %v5036_v48  ;;  %v9903_v49 = vld [vmem:[#allocation2 + $0x40] sm:$0xf] }
 0x2ef   : > { %6228 = vmatmul.mubr.bf16.gmra.mrb[120].mxu1 %v12438_v8  ;;  %v12837_v39 = vadd.f32 %v9127_v12, %v9126_v15  ;;  %v7181_v8 = vsel %vm12620_vm10, %v7176_v56, %v7180_v2  ;;  %v5043_v11 = vrot.slane %v5041_v36, 1  ;;  %v9902_v2 = vld [vmem:[#allocation2 + $0x2c] ss:$0 sps:$4 sm:$0x11]   ;;  %v5039_v15 = vshrl.u32 %v12820_v43, 16 }
 0x2f0   : > { %6235 = vmatprep.mubr.bf16.mxu1 %v12392_v53  ;;  %9404 = vmatprep.mubr.msk.bf16.mxu0 %vm2264_vm2, %v8617_v61  ;;  %v8618_v35 = vcombine.low %v7181_v8, %v7191_v25  ;;  %v9901_v53 = vld [vmem:[#allocation2 + $0x34] sm:$0xf]  ;;  %v5046_v60 = vshll.u32 %v9902_v2, 16  ;;  %v12855_v13 = vcombine.low %v3896_v20, %v9903_v49  ;;  %v9904_v56 = vld [vmem:[#allocation2 + $0x38] ss:$0 sps:$4 sm:$0x11]  }
 0x2f1   : > { %v12847_v5 = vcombine.low %v3894_v44, %v9901_v53  ;;  %v5044_v34 = vor.u32 %v5043_v11, %v5039_v15  ;;  %v5058_v59 = vshll.u32 %v9904_v56, 16  ;;  %v8600_v53 = vld [vmem:[%s10146_s22 + $0xc4] sm:$0xf]  ;;  %v8601_v20 = vld [vmem:[%s10146_s22 + $0xc8] sm:$0x1] }
 0x2f2   : > { %v5048_v61 = vrot.slane %v5046_v60, 1  ;;  %v5063_v36 = vshrl.u32 %v12855_v13, 16  ;;  %v5065_v25 = vshll.u32 %v12855_v13, 16  ;;  %v7202_v60 = vshll.u32 %v8600_v53, 16  ;;  %v8604_v15 = vld [vmem:[%s10146_s22 + $0xd4] sm:$0x1] }
 0x2f3   : > { %v5053_v12 = vshll.u32 %v12847_v5, 16  ;;  %v5051_v8 = vshrl.u32 %v12847_v5, 16  ;;  %v5060_v48 = vrot.slane %v5058_v59, 1 }
 0x2f4   : > { %9405 = vmatmul.mubr.msk.bf16.gmra.mrb[188].mxu0 %vm2264_vm2, %v8618_v35  ;;  %v5049_v37 = vsel %vm750_vm1, %v5044_v34, %v5048_v61  ;;  %v8599_v35 = vld [vmem:[%s10146_s22 + $0xc0] sm:$0xf]  ;;  %v5067_v34 = vrot.slane %v5065_v25, 1 }
 0x2f5   : > { %v9129_v16 = vpop.f32.mrb[104].mxu0  ;;  %v5055_v44 = vrot.slane %v5053_v12, 1  ;;  %v7193_v11 = vshrl.u32 %v8599_v35, 16  ;;  %v7196_v2 = vshll.u32 %v8599_v35, 16 }
 0x2f6   : > { %v9130_v42 = vpop.f32.mrb[105].mxu0 }
 0x2f7   : > { %6236 = vmatmul.mubr.bf16.gmra.mrb[124].mxu1 %v12443_v57  ;;  %v8911_v32 = vpop.f32.mrb[36].mxu1  ;;  %v12852_v14 = vadd.f32 %v9130_v42, %v9129_v16  ;;  %v9132_v0 = vpop.f32.mrb[106].mxu0  ;;  %v9906_v16 = vld [vmem:[#allocation2 + $0x44] ss:$0 sps:$4 sm:$0x11]   ;;  %v5056_v42 = vor.u32 %v5055_v44, %v5051_v8  ;;  %v7195_v49 = vrot.slane %v7193_v11, 4 }
 0x2f8   : > { %6437 = vmatprep.mubr.bf16.mxu1 %v5037_v21  ;;  %v8912_v19 = vpop.f32.mrb[37].mxu1  ;;  %v9133_v1 = vpop.f32.mrb[107].mxu0  ;;  %v5070_v21 = vshll.u32 %v9906_v16, 16 }
 0x2f9   : > { %13781 = vst [vmem:[#allocation30_spill] sm:$0xff] %v12852_v14  ;;  %v12857_v23 = vadd.f32 %v8912_v19, %v8911_v32  ;;  %v8914_v57 = vpop.f32.mrb[38].mxu1  ;;  %v12860_v30 = vadd.f32 %v9133_v1, %v9132_v0  ;;  %v8602_v32 = vld [vmem:[%s10146_s22 + $0xcc] sm:$0xf]  ;;  %v7206_v19 = vshrl.u32 %v8600_v53, 16  ;;  %v7204_v1 = vrot.slane %v7202_v60, 5 }
 0x2fa   : > { %v8915_v46 = vpop.f32.mrb[39].mxu1  ;;  %v8603_v0 = vld [vmem:[%s10146_s22 + $0xd0] sm:$0xf]  ;;  %v7217_v12 = vshrl.u32 %v8602_v32, 16  ;;  %v7220_v56 = vshll.u32 %v8602_v32, 16  ;;  %v7236_v53 = vshll.u32 %v8604_v15, 16 }
 0x2fb   : > { %13782 = vst [vmem:[#allocation28_spill] sm:$0xff] %v12860_v30  ;;  %v12862_v10 = vadd.f32 %v8915_v46, %v8914_v57  ;;  %v7198_v57 = vrot.slane %v7196_v2, 5  ;;  %v3898_v46 = vld [vmem:[#allocation2 + $0x48] sm:$0xf]  ;;  %v7208_v61 = vrot.slane %v7206_v19, 4  ;;  %v7226_v59 = vshll.u32 %v8603_v0, 16 }
 0x2fc   : > { %v7219_v44 = vrot.slane %v7217_v12, 4  ;;  %v7230_v35 = vshrl.u32 %v8603_v0, 16  ;;  %v7222_v11 = vrot.slane %v7220_v56, 5  ;;  %v9908_v60 = vld [vmem:[#allocation2 + $0x4c] sm:$0xf]  ;;  %v5072_v56 = vrot.slane %v5070_v21, 1 }
 0x2fd   : > { %13783 = vst [vmem:[#allocation12_spill] sm:$0xff] %v12862_v10  ;;  %v7199_v8 = vor.u32 %v7198_v57, %v7195_v49  ;;  %v7228_v2 = vrot.slane %v7226_v59, 5  ;;  %v12882_v30 = vcombine.low %v3898_v46, %v9908_v60  ;;  %v5068_v49 = vor.u32 %v5067_v34, %v5063_v36  ;;  %v9909_v46 = vld [vmem:[%s13619_s4 + $0x218] sm:$0xff]   ;;  %v9910_v21 = vld [vmem:[%s13619_s4 + $0x220] sm:$0xff]   ;;  %s13346_s22 = scalar_lea.vmem [#allocation3], %s7966_s30  ;;  %s9937_s30 = sshll.u32 %s10021_s11, 4  ;;  %s9938_s30 = int_to_ptr.vmem [resolvable:$false] %s9937_s30 }
 0x2fe   : > { %v7232_v19 = vrot.slane %v7230_v35, 4  ;;  %v7223_v15 = vor.u32 %v7222_v11, %v7219_v44  ;;  %v3900_v11 = vld [vmem:[#allocation2 + $0x54] sm:$0xf]  ;;  %v9911_v60 = vld [vmem:[#allocation2 + $0x58] sm:$0xf]  ;;  %s7888_s12 = sshll.u32 %s13346_s22, 4  ;;  %s13561_s12 = int_to_ptr.vmem [resolvable:$true] %s7888_s12 }
 0x2ff   : > { %6438 = vmatmul.mubr.bf16.vlgmr.msra.gmra.mrb[128].mxu1 %v12806_v29  ;;  %v9905_v29 = vld [vmem:[%s13619_s4 + $0x208] sm:$0xff]   ;;  %v7200_v32 = vrot.slane %v7199_v8, 4  ;;  %v5077_v44 = vshll.u32 %v12882_v30, 16  ;;  %s9933_s24 = scalar_lea.vmem %s13561_s12, 2048  ;;  %s9939_s29 = scalar_lea.vmem %s9938_s30, 4096 }
 0x300   : > { %9420 = vmatpush3.bf16.msra.mxu1 %v12541_v27  ;;  %6445 = vmatprep.mubr.bf16.mxu1 %v5049_v37  ;;  %v7212_v27 = vshll.u32 %v8601_v20, 16  ;;  %v9907_v37 = vld [vmem:[%s13619_s4 + $0x210] sm:$0xff]   ;;  %v7209_v20 = vor.u32 %v7208_v61, %v7204_v1  ;;  %v7224_v59 = vrot.slane %v7223_v15, 4  ;;  %v3902_v15 = vld [vmem:[#allocation2 + $0x60] sm:$0xf]  ;;  %p9934_p12 = scmp.ne.s32.totalorder %s13561_s12, %s9933_s24  ;;  %p9940_p1 = scmp.lt.s32.totalorder %s13561_s12, %s9938_s30 }
 0x301   : > { %9413 = vmatprep.subr.bf16.mxu1 %v9905_v29  ;;  %p9941_p2 = scmp.lt.s32.totalorder %s9939_s29, %s9933_s24 }
 0x302   : > { %v7214_v16 = vrot.slane %v7212_v27, 5  ;;  %v7210_v0 = vrot.slane %v7209_v20, 4  ;;  %p9935_p13 = pnand %p9934_p12, %p10118_p4 }
 0x303   : > { %p9942_p3 = por %p9941_p2, %p9940_p1 }
 0x304   : > { %9421 = vmatpush3.bf16.msra.mxu1 %v9905_v29  ;;  %v5061_v29 = vsel %vm750_vm1, %v5056_v42, %v5060_v48  ;;  %v7233_v48 = vor.u32 %v7232_v19, %v7228_v2  ;;  %v7238_v42 = vrot.slane %v7236_v53, 5  ;;  %p9936_p0 = pneg %p9935_p13 }
 0x305   : > { %9414 = vmatprep.subr.bf16.mxu1 %v9907_v37 }
 0x306   : > { %v8917_v25 = vpop.f32.mrb[40].mxu1  ;;  %v7234_v20 = vrot.slane %v7233_v48, 4  ;;  %p9943_p5 = pnand %p9942_p3, %p9936_p0 }
 0x307   : > { %6446 = vmatmul.mubr.bf16.gmra.mrb[132].mxu1 %v12820_v43  ;;  %v9135_v14 = vpop.f32.mrb[108].mxu0  ;;  %v8918_v10 = vpop.f32.mrb[41].mxu1  ;;  %v7205_v43 = vsel %vm12620_vm10, %v7200_v32, %v7204_v1  ;;  %v5079_v32 = vrot.slane %v5077_v44, 1 }
 0x308   : > { %6453 = vmatprep.mubr.bf16.mxu1 %v5061_v29  ;;  %9422 = vmatpush3.bf16.msra.mxu1 %v9907_v37  ;;  %v9136_v27 = vpop.f32.mrb[109].mxu0  ;;  %v12886_v57 = vadd.f32 %v8918_v10, %v8917_v25  ;;  %v8920_v12 = vpop.f32.mrb[42].mxu1  ;;  %v7215_v10 = vsel %vm12620_vm10, %v7210_v0, %v7214_v16  ;;  %v7239_v53 = vsel %vm12620_vm10, %v7234_v20, %v7238_v42  ;;  %v5075_v0 = vshrl.u32 %v12882_v30, 16 }
 0x309   : > { %9415 = vmatprep.subr.bf16.mxu1 %v9909_v46  ;;  %v12893_v61 = vadd.f32 %v9136_v27, %v9135_v14  ;;  %v9138_v36 = vpop.f32.mrb[110].mxu0  ;;  %v8921_v34 = vpop.f32.mrb[43].mxu1  ;;  %v8619_v35 = vcombine.low %v7205_v43, %v7215_v10  ;;  %v7229_v14 = vsel %vm12620_vm10, %v7224_v59, %v7228_v2  ;;  %v12910_v25 = vcombine.low %v3900_v11, %v9911_v60  ;;  %v9912_v2 = vld [vmem:[#allocation2 + $0x50] ss:$0 sps:$4 sm:$0x11]  }
 0x30a   : > { %v9139_v37 = vpop.f32.mrb[111].mxu0  ;;  %v12897_v8 = vadd.f32 %v8921_v34, %v8920_v12  ;;  %v8620_v16 = vcombine.low %v7229_v14, %v7239_v53  ;;  %v5073_v29 = vsel %vm750_vm1, %v5068_v49, %v5072_v56  ;;  %v5082_v19 = vshll.u32 %v9912_v2, 16  ;;  %v9914_v34 = vld [vmem:[%s13619_s4 + $0x230] sm:$0xff]   ;;  %v9915_v56 = vld [vmem:[#allocation2 + $0x64] sm:$0xf] }
 0x30b   : > { %v12900_v1 = vadd.f32 %v9139_v37, %v9138_v36  ;;  %9408 = vmatprep.mubr.msk.bf16.mxu0 %vm2264_vm2, %v8619_v35  ;;  %v5080_v12 = vor.u32 %v5079_v32, %v5075_v0  ;;  %v5089_v49 = vshll.u32 %v12910_v25, 16  ;;  %v8441_v10 = vcombine.low %v3902_v15, %v9915_v56  ;;  %v9918_v0 = vld [vmem:[#allocation2 + $0x70] sm:$0xf] }
 0x30c   : > { %9423 = vmatpush3.bf16.msra.mxu1 %v9909_v46  ;;  %9409 = vmatmul.mubr.msk.bf16.gmra.mrb[192].mxu0 %vm2264_vm2, %v8620_v16  ;;  %v5087_v60 = vshrl.u32 %v12910_v25, 16 }
 0x30d   : > { %9416 = vmatprep.subr.bf16.mxu1 %v9910_v21  ;;  %v5091_v14 = vrot.slane %v5089_v49, 1  ;;  %v5099_v49 = vshrl.u32 %v8441_v10, 16 }
 0x30f   : > { %6454 = vmatmul.mubr.bf16.gmra.mrb[136].mxu1 %v12847_v5  ;;  %v5084_v5 = vrot.slane %v5082_v19, 1  ;;  %v5092_v32 = vor.u32 %v5091_v14, %v5087_v60  ;;  %v5101_v19 = vshll.u32 %v8441_v10, 16 }
 0x310   : > { %6461 = vmatprep.mubr.bf16.mxu1 %v5073_v29  ;;  %9424 = vmatpush3.bf16.msra.mxu1 %v9910_v21  ;;  %v9916_v21 = vld [vmem:[#allocation2 + $0x5c] ss:$0 sps:$4 sm:$0x11]  }
 0x311   : > { %9417 = vmatprep.subr.bf16.mxu1 %v9913_v4  ;;  %v9141_v27 = vpop.f32.mrb[112].mxu0  ;;  %v5085_v11 = vsel %vm750_vm1, %v5080_v12, %v5084_v5  ;;  %v5094_v53 = vshll.u32 %v9916_v21, 16  ;;  %v9917_v29 = vld [vmem:[%s13619_s4 + $0x238] sm:$0xff]   ;;  %v9919_v12 = vld [vmem:[#allocation2 + $0x68] ss:$0 sps:$4 sm:$0x11]  }
 0x312   : > { %v9142_v43 = vpop.f32.mrb[113].mxu0  ;;  %v5106_v5 = vshll.u32 %v9919_v12, 16 }
 0x313   : > { %v8923_v46 = vpop.f32.mrb[44].mxu1  ;;  %v12920_v48 = vadd.f32 %v9142_v43, %v9141_v27  ;;  %v9144_v36 = vpop.f32.mrb[114].mxu0  ;;  %v5096_v2 = vrot.slane %v5094_v53, 1  ;;  %v5103_v27 = vrot.slane %v5101_v19, 1 }
 0x314   : > { %9425 = vmatpush3.bf16.msra.mxu1 %v9913_v4  ;;  %v8924_v42 = vpop.f32.mrb[45].mxu1  ;;  %v9145_v44 = vpop.f32.mrb[115].mxu0 }
 0x315   : > { %9418 = vmatprep.subr.bf16.mxu1 %v9914_v34  ;;  %v12925_v59 = vadd.f32 %v8924_v42, %v8923_v46  ;;  %v8926_v37 = vpop.f32.mrb[46].mxu1  ;;  %v12927_v35 = vadd.f32 %v9145_v44, %v9144_v36  ;;  %v5097_v15 = vsel %vm750_vm1, %v5092_v32, %v5096_v2  ;;  %v3906_v46 = vld [vmem:[#allocation2 + $0x78] sm:$0xf]  ;;  %v5104_v42 = vor.u32 %v5103_v27, %v5099_v49 }
 0x316   : > { %v8927_v20 = vpop.f32.mrb[47].mxu1  ;;  %v5108_v36 = vrot.slane %v5106_v5, 1 }
 0x317   : > { %6462 = vmatmul.mubr.bf16.gmra.mrb[140].mxu1 %v12855_v13  ;;  %v12931_v16 = vadd.f32 %v8927_v20, %v8926_v37  ;;  %v3904_v13 = vld [vmem:[#allocation2 + $0x6c] sm:$0xf] }
 0x318   : > { %6469 = vmatprep.mubr.bf16.mxu1 %v5085_v11  ;;  %9426 = vmatpush3.bf16.msra.mxu1 %v9914_v34  ;;  %v12937_v4 = vcombine.low %v3904_v13, %v9918_v0  ;;  %v5109_v2 = vsel %vm750_vm1, %v5104_v42, %v5108_v36  ;;  %v9921_v13 = vld [vmem:[#allocation2 + $0x74] ss:$0 sps:$4 sm:$0x11]   ;;  %v9923_v36 = vld [vmem:[#allocation2 + $0x80] ss:$0 sps:$4 sm:$0x11]  }
 0x319   : > { %9419 = vmatprep.subr.bf16.mxu1 %v9917_v29  ;;  %v5118_v0 = vshll.u32 %v9921_v13, 16 }
 0x31a   : > { %v5113_v34 = vshll.u32 %v12937_v4, 16  ;;  %v5111_v27 = vshrl.u32 %v12937_v4, 16 }
 0x31b   : > { %v5120_v5 = vrot.slane %v5118_v0, 1 }
 0x31c   : > { %9427 = vmatpush3.bf16.msra.mxu1 %v9917_v29  ;;  %v5115_v19 = vrot.slane %v5113_v34, 1  ;;  %v5130_v34 = vshll.u32 %v9923_v36, 16 }
 0x31e   : > { %v5116_v12 = vor.u32 %v5115_v19, %v5111_v27 }
 0x31f   : > { %6470 = vmatmul.mubr.bf16.gmra.mrb[144].mxu1 %v12882_v30  ;;  %v9920_v30 = vld [vmem:[#allocation2 + $0x7c] sm:$0xf] }
 0x320   : > { %6477 = vmatprep.mubr.bf16.mxu1 %v5097_v15  ;;  %v8443_v14 = vcombine.low %v3906_v46, %v9920_v30  ;;  %v3908_v46 = vld [vmem:[#allocation2 + $0x84] sm:$0xf] }
 0x322   : > { %v8929_v43 = vpop.f32.mrb[48].mxu1  ;;  %v5125_v49 = vshll.u32 %v8443_v14, 16 }
 0x323   : > { %v9147_v56 = vpop.f32.mrb[116].mxu0  ;;  %v8930_v37 = vpop.f32.mrb[49].mxu1 }
 0x324   : > { %v9148_v44 = vpop.f32.mrb[117].mxu0  ;;  %v12942_v20 = vadd.f32 %v8930_v37, %v8929_v43  ;;  %v8932_v11 = vpop.f32.mrb[50].mxu1  ;;  %v9922_v43 = vld [vmem:[#allocation2 + $0x88] sm:$0xf]  ;;  %v5127_v42 = vrot.slane %v5125_v49, 1 }
 0x325   : > { %v12944_v21 = vadd.f32 %v9148_v44, %v9147_v56  ;;  %v9150_v53 = vpop.f32.mrb[118].mxu0  ;;  %v8933_v60 = vpop.f32.mrb[51].mxu1  ;;  %v12953_v56 = vcombine.low %v3908_v46, %v9922_v43  ;;  %v3910_v49 = vld [vmem:[#allocation2 + $0x90] sm:$0xf]  ;;  %v9924_v43 = vld [vmem:[#allocation2 + $0x94] sm:$0xf] }
 0x326   : > { %v9151_v29 = vpop.f32.mrb[119].mxu0  ;;  %v12946_v32 = vadd.f32 %v8933_v60, %v8932_v11 }
 0x327   : > { %6478 = vmatmul.mubr.bf16.gmra.mrb[148].mxu1 %v12910_v25  ;;  %v12950_v15 = vadd.f32 %v9151_v29, %v9150_v53  ;;  %v5121_v25 = vsel %vm750_vm1, %v5116_v12, %v5120_v5  ;;  %v5123_v29 = vshrl.u32 %v8443_v14, 16  ;;  %v5132_v12 = vrot.slane %v5130_v34, 1 }
 0x328   : > { %6485 = vmatprep.mubr.bf16.mxu1 %v5109_v2  ;;  %v5137_v5 = vshll.u32 %v12953_v56, 16 }
 0x329   : > { %v5128_v27 = vor.u32 %v5127_v42, %v5123_v29  ;;  %v3912_v29 = vld [vmem:[#allocation2 + $0x9c] sm:$0xf] }
 0x32a   : > { %v5139_v36 = vrot.slane %v5137_v5, 1 }
 0x32e   : > { %v9153_v37 = vpop.f32.mrb[120].mxu0 }
 0x32f   : > { %6486 = vmatmul.mubr.bf16.gmra.mrb[152].mxu1 %v8441_v10  ;;  %v8935_v44 = vpop.f32.mrb[52].mxu1  ;;  %v9154_v11 = vpop.f32.mrb[121].mxu0 }
 0x330   : > { %6493 = vmatprep.mubr.bf16.mxu1 %v5121_v25  ;;  %v12956_v30 = vadd.f32 %v9154_v11, %v9153_v37  ;;  %v8936_v53 = vpop.f32.mrb[53].mxu1  ;;  %v9156_v60 = vpop.f32.mrb[122].mxu0  ;;  %v12965_v37 = vcombine.low %v3910_v49, %v9924_v43  ;;  %v5133_v25 = vsel %vm750_vm1, %v5128_v27, %v5132_v12 }
 0x331   : > { %v12958_v2 = vadd.f32 %v8936_v53, %v8935_v44  ;;  %v8938_v19 = vpop.f32.mrb[54].mxu1  ;;  %v9157_v13 = vpop.f32.mrb[123].mxu0  ;;  %v9925_v44 = vld [vmem:[#allocation2 + $0x8c] ss:$0 sps:$4 sm:$0x11]   ;;  %v5135_v53 = vshrl.u32 %v12953_v56, 16 }
 0x332   : > { %13784 = vst [vmem:[#allocation8_spill] sm:$0xff] %v12956_v30  ;;  %v12960_v0 = vadd.f32 %v9157_v13, %v9156_v60  ;;  %v8939_v10 = vpop.f32.mrb[55].mxu1  ;;  %v5142_v11 = vshll.u32 %v9925_v44, 16  ;;  %v5149_v60 = vshll.u32 %v12965_v37, 16 }
 0x333   : > { %v12963_v46 = vadd.f32 %v8939_v10, %v8938_v19  ;;  %v5140_v42 = vor.u32 %v5139_v36, %v5135_v53  ;;  %v9926_v19 = vld [vmem:[#allocation2 + $0x98] ss:$0 sps:$4 sm:$0x11]   ;;  %v9927_v10 = vld [vmem:[#allocation2 + $0xa0] sm:$0xf] }
 0x334   : > { %13785 = vst [vmem:[#allocation31_spill] sm:$0xff] %v12960_v0  ;;  %v5144_v34 = vrot.slane %v5142_v11, 1  ;;  %v5154_v13 = vshll.u32 %v9926_v19, 16  ;;  %v12971_v49 = vcombine.low %v3912_v29, %v9927_v10  ;;  %v5151_v12 = vrot.slane %v5149_v60, 1  ;;  %v3914_v60 = vld [vmem:[#allocation2 + $0xa8] sm:$0xf] }
 0x335   : > { %13786 = vst [vmem:[#allocation32_spill] sm:$0xff] %v12963_v46  ;;  %v5147_v19 = vshrl.u32 %v12965_v37, 16 }
 0x336   : > { %v5145_v27 = vsel %vm750_vm1, %v5140_v42, %v5144_v34  ;;  %v5156_v10 = vrot.slane %v5154_v13, 1  ;;  %v5161_v34 = vshll.u32 %v12971_v49, 16 }
 0x337   : > { %6494 = vmatmul.mubr.bf16.gmra.mrb[156].mxu1 %v12937_v4  ;;  %v5152_v42 = vor.u32 %v5151_v12, %v5147_v19 }
 0x338   : > { %6501 = vmatprep.mubr.bf16.mxu1 %v5133_v25 }
 0x33e   : > { %v8941_v4 = vpop.f32.mrb[56].mxu1 }
 0x33f   : > { %v9159_v43 = vpop.f32.mrb[124].mxu0  ;;  %6502 = vmatmul.mubr.bf16.gmra.mrb[160].mxu1 %v8443_v14  ;;  %v8942_v25 = vpop.f32.mrb[57].mxu1 }
 0x340   : > { %v9160_v5 = vpop.f32.mrb[125].mxu0  ;;  %6509 = vmatprep.mubr.bf16.mxu1 %v5145_v27  ;;  %v12976_v36 = vadd.f32 %v8942_v25, %v8941_v4  ;;  %v8944_v53 = vpop.f32.mrb[58].mxu1  ;;  %v9928_v27 = vld [vmem:[#allocation2 + $0xac] sm:$0xf]  ;;  %v5157_v4 = vsel %vm750_vm1, %v5152_v42, %v5156_v10 }
 0x341   : > { %v12974_v44 = vadd.f32 %v9160_v5, %v9159_v43  ;;  %v9162_v11 = vpop.f32.mrb[126].mxu0  ;;  %v8945_v29 = vpop.f32.mrb[59].mxu1  ;;  %v12984_v43 = vcombine.low %v3914_v60, %v9928_v27  ;;  %v5163_v5 = vrot.slane %v5161_v34, 1  ;;  %v9929_v25 = vld [vmem:[#allocation2 + $0xa4] ss:$0 sps:$4 sm:$0x11]  }
 0x342   : > { %13788 = vst [vmem:[#allocation9_spill] sm:$0xff] %v12976_v36  ;;  %v9163_v0 = vpop.f32.mrb[127].mxu0  ;;  %v12981_v14 = vadd.f32 %v8945_v29, %v8944_v53  ;;  %v5166_v36 = vshll.u32 %v9929_v25, 16  ;;  %v3916_v60 = vld [vmem:[#allocation2 + $0xb4] sm:$0xf] }
 0x343   : > { %13787 = vst [vmem:[#allocation13_spill] sm:$0xff] %v12974_v44  ;;  %v12979_v30 = vadd.f32 %v9163_v0, %v9162_v11  ;;  %v5159_v0 = vshrl.u32 %v12971_v49, 16  ;;  %v9930_v44 = vld [vmem:[#allocation2 + $0xb8] sm:$0xf] }
 0x344   : > { %13790 = vst [vmem:[#allocation33_spill] sm:$0xff] %v12981_v14  ;;  %v5168_v29 = vrot.slane %v5166_v36, 1  ;;  %v12998_v46 = vcombine.low %v3916_v60, %v9930_v44  ;;  %v3918_v44 = vld [vmem:[#allocation2 + $0xc0] sm:$0xf]  ;;  %v13004_v60 = vld [vmem:[#allocation2 + $0xc4] sm:$0xf] }
 0x345   : > { %13789 = vst [vmem:[#allocation35_spill] sm:$0xff] %v12979_v30  ;;  %v5164_v19 = vor.u32 %v5163_v5, %v5159_v0  ;;  %v5173_v30 = vshll.u32 %v12984_v43, 16  ;;  %v9931_v0 = vld [vmem:[#allocation2 + $0xb0] ss:$0 sps:$4 sm:$0x11]  }
 0x347   : > { %6510 = vmatmul.mubr.bf16.gmra.mrb[164].mxu1 %v12953_v56  ;;  %v5169_v36 = vsel %vm750_vm1, %v5164_v19, %v5168_v29  ;;  %v5175_v5 = vrot.slane %v5173_v30, 1 }
 0x348   : > { %6517 = vmatprep.mubr.bf16.mxu1 %v5157_v4  ;;  %v9165_v13 = vpop.f32.mrb[128].mxu0 }
 0x349   : > { %v8947_v11 = vpop.f32.mrb[60].mxu1  ;;  %v9166_v53 = vpop.f32.mrb[129].mxu0 }
 0x34a   : > { %v8948_v12 = vpop.f32.mrb[61].mxu1  ;;  %v12990_v27 = vadd.f32 %v9166_v53, %v9165_v13  ;;  %v9168_v10 = vpop.f32.mrb[130].mxu0  ;;  %v5178_v13 = vshll.u32 %v9931_v0, 16 }
 0x34b   : > { %v12992_v56 = vadd.f32 %v8948_v12, %v8947_v11  ;;  %v8950_v42 = vpop.f32.mrb[62].mxu1  ;;  %v9169_v34 = vpop.f32.mrb[131].mxu0  ;;  %v5171_v11 = vshrl.u32 %v12984_v43, 16 }
 0x34c   : > { %13791 = vst [vmem:[#allocation37_spill] sm:$0xff] %v12990_v27  ;;  %v8951_v25 = vpop.f32.mrb[63].mxu1  ;;  %v12994_v4 = vadd.f32 %v9169_v34, %v9168_v10  ;;  %v5180_v10 = vrot.slane %v5178_v13, 1  ;;  %v13010_v13 = vcombine.low %v3918_v44, %v13004_v60 }
 0x34d   : > { %v12996_v14 = vadd.f32 %v8951_v25, %v8950_v42  ;;  %v5176_v27 = vor.u32 %v5175_v5, %v5171_v11  ;;  %v5185_v42 = vshll.u32 %v12998_v46, 16 }
 0x34e   : > { %13792 = vst [vmem:[#allocation36_spill] sm:$0xff] %v12994_v4  ;;  %v9932_v4 = vld [vmem:[#allocation2 + $0xbc] ss:$0 sps:$4 sm:$0x11]  }
 0x34f   : > { %13793 = vst [vmem:[#allocation34_spill] sm:$0xff] %v12996_v14  ;;  %6518 = vmatmul.mubr.bf16.gmra.mrb[168].mxu1 %v12965_v37  ;;  %v5181_v29 = vsel %vm750_vm1, %v5176_v27, %v5180_v10  ;;  %v5187_v0 = vrot.slane %v5185_v42, 1  ;;  %v5190_v5 = vshll.u32 %v9932_v4, 16  ;;  %v3920_v42 = vld [vmem:[#allocation2 + $0xcc] sm:$0xf] }
 0x350   : > { %6525 = vmatprep.mubr.bf16.mxu1 %v5169_v36 }
 0x351   : > { %v8969_v53 = vpop.f32.mrb[64].mxu1 }
 0x352   : > { %v8970_v12 = vpop.f32.mrb[65].mxu1 }
 0x353   : > { %v8971_v34 = vadd.f32 %v8970_v12, %v8969_v53  ;;  %v8972_v25 = vpop.f32.mrb[66].mxu1 }
 0x354   : > { %v8973_v37 = vpop.f32.mrb[67].mxu1 }
 0x355   : > { %v6118_v19 = vadd.f32 %v8971_v34, %v12435_v9  ;;  %v8974_v30 = vadd.f32 %v8973_v37, %v8972_v25  ;;  %v13019_v25 = vld [vmem:[#allocation2 + $0xd0] sm:$0xf] }
 0x357   : > { %6526 = vmatmul.mubr.bf16.gmra.mrb[172].mxu1 %v12971_v49  ;;  %v9171_v36 = vpop.f32.mrb[132].mxu0  ;;  %v6121_v11 = vadd.f32 %v8974_v30, %v12448_v7  ;;  %v13014_v12 = vadd.f32 %v12476_v52, %v6118_v19  ;;  %v5183_v49 = vshrl.u32 %v12998_v46, 16  ;;  %v5192_v30 = vrot.slane %v5190_v5, 1  ;;  %v13026_v52 = vld [vmem:[#allocation2 + $0xc8] ss:$0 sps:$4 sm:$0x11]  }
 0x358   : > { %6533 = vmatprep.mubr.bf16.mxu1 %v5181_v29  ;;  %v9172_v53 = vpop.f32.mrb[133].mxu0  ;;  %v5197_v19 = vshll.u32 %v13010_v13, 16 }
 0x359   : > { %13794 = vst [vmem:[#allocation39_spill] sm:$0xff] %v13014_v12  ;;  %v13016_v9 = vadd.f32 %v9172_v53, %v9171_v36  ;;  %v9174_v34 = vpop.f32.mrb[134].mxu0  ;;  %v8975_v27 = vpop.f32.mrb[68].mxu1  ;;  %v13022_v4 = vadd.f32 %v12482_v40, %v6121_v11  ;;  %v5188_v37 = vor.u32 %v5187_v0, %v5183_v49  ;;  %v13030_v12 = vcombine.low %v3920_v42, %v13019_v25 }
 0x35a   : > { %v9175_v10 = vpop.f32.mrb[135].mxu0  ;;  %v8976_v44 = vpop.f32.mrb[69].mxu1  ;;  %v5195_v0 = vshrl.u32 %v13010_v13, 16  ;;  %v5199_v5 = vrot.slane %v5197_v19, 1 }
 0x35b   : > { %13795 = vst [vmem:[#allocation38_spill] sm:$0xff] %v13016_v9  ;;  %13796 = vst [vmem:[#allocation16_spill] sm:$0xff] %v13022_v4  ;;  %v13024_v7 = vadd.f32 %v9175_v10, %v9174_v34  ;;  %v8977_v29 = vadd.f32 %v8976_v44, %v8975_v27  ;;  %v8978_v36 = vpop.f32.mrb[70].mxu1  ;;  %v5193_v40 = vsel %vm750_vm1, %v5188_v37, %v5192_v30  ;;  %v5202_v34 = vshll.u32 %v13026_v52, 16 }
 0x35c   : > { %v8979_v53 = vpop.f32.mrb[71].mxu1  ;;  %v5200_v19 = vor.u32 %v5199_v5, %v5195_v0 }
 0x35d   : > { %13797 = vst [vmem:[#allocation11_spill] sm:$0xff] %v13024_v7  ;;  %v6126_v9 = vadd.f32 %v8977_v29, %v12467_v55  ;;  %v8980_v14 = vadd.f32 %v8979_v53, %v8978_v36  ;;  %v13044_v55 = vld [vmem:[#allocation2 + $0xd4] ss:$0 sps:$4 sm:$0x11]   ;;  %v5204_v29 = vrot.slane %v5202_v34, 1  ;;  %v5207_v53 = vshrl.u32 %v13030_v12, 16 }
 0x35f   : > { %6534 = vmatmul.mubr.bf16.gmra.mrb[176].mxu1 %v12984_v43  ;;  %v13035_v11 = vpop.f32.mrb[136].mxu0  ;;  %v6129_v49 = vadd.f32 %v8980_v14, %v12470_v26  ;;  %v5209_v43 = vshll.u32 %v13030_v12, 16  ;;  %v13050_v37 = vadd.f32 %v12521_v3, %v6126_v9  ;;  %v13804_v9 = vld [vmem:[#allocation22_spill] sm:$0xff] }
 0x360   : > { %13798 = vst [vmem:[#allocation18_spill] sm:$0xff] %v13035_v11  ;;  %6541 = vmatprep.mubr.bf16.mxu1 %v5193_v40  ;;  %v13040_v27 = vpop.f32.mrb[137].mxu0  ;;  %v13802_v11 = vld [vmem:[#allocation21_spill] sm:$0xff] }
 0x361   : > { %v13042_v10 = vpop.f32.mrb[138].mxu0  ;;  %v8981_v42 = vpop.f32.mrb[72].mxu1  ;;  %13801 = vst [vmem:[#allocation15_spill] sm:$0xff] %v13050_v37  ;;  %v5211_v40 = vrot.slane %v5209_v43, 1 }
 0x362   : > { %13799 = vst [vmem:[#allocation14_spill] sm:$0xff] %v13042_v10  ;;  %v13047_v44 = vpop.f32.mrb[139].mxu0  ;;  %v8982_v30 = vpop.f32.mrb[73].mxu1  ;;  %v5214_v10 = vshll.u32 %v13044_v55, 16 }
 0x363   : > { %13800 = vst [vmem:[#allocation24_spill] sm:$0xff] %v13047_v44  ;;  %v8983_v36 = vadd.f32 %v8982_v30, %v8981_v42  ;;  %v8984_v26 = vpop.f32.mrb[74].mxu1  ;;  %v5205_v44 = vsel %vm750_vm1, %v5200_v19, %v5204_v29  ;;  %v5212_v42 = vor.u32 %v5211_v40, %v5207_v53  ;;  %v3952_v29 = vld [vmem:[#allocation2 + $0xc0] sm:$0xe]  ;;  %v13809_v40 = vld [vmem:[#allocation25_spill] sm:$0xff] }
 0x364   : > { %v8985_v14 = vpop.f32.mrb[75].mxu1  ;;  %v5216_v43 = vrot.slane %v5214_v10, 1  ;;  %v8481_v10 = vcombine.low %v3952_v29, %v13004_v60  ;;  %v5325_v29 = vrot.slane %v13026_v52, 1 }
 0x365   : > { %v6134_v7 = vadd.f32 %v8983_v36, %v13802_v11  ;;  %v8986_v4 = vadd.f32 %v8985_v14, %v8984_v26  ;;  %v13807_v11 = vld [vmem:[#allocation10_spill] sm:$0xff] }
 0x366   : > { %v13067_v36 = vadd.f32 %v13807_v11, %v6129_v49 }
 0x367   : > { %6542 = vmatmul.mubr.bf16.gmra.mrb[180].mxu1 %v12998_v46  ;;  %v13057_v3 = vpop.f32.mrb[140].mxu0  ;;  %v6137_v0 = vadd.f32 %v8986_v4, %v13804_v9  ;;  %v5217_v4 = vsel %vm750_vm1, %v5212_v42, %v5216_v43  ;;  %v3953_v43 = vld [vmem:[#allocation2 + $0xcc] sm:$0xe] }
 0x368   : > { %13803 = vst [vmem:[#allocation17_spill] sm:$0xff] %v13057_v3  ;;  %6549 = vmatprep.mubr.bf16.mxu1 %v5205_v44  ;;  %v13060_v5 = vpop.f32.mrb[141].mxu0  ;;  %v13808_v44 = vld [vmem:[#allocation7_spill] sm:$0xff] }
 0x369   : > { %v13062_v34 = vpop.f32.mrb[142].mxu0  ;;  %v8987_v30 = vpop.f32.mrb[76].mxu1 }
 0x36a   : > { %13805 = vst [vmem:[#allocation20_spill] sm:$0xff] %v13062_v34  ;;  %v13064_v37 = vpop.f32.mrb[143].mxu0  ;;  %v8988_v46 = vpop.f32.mrb[77].mxu1 }
 0x36b   : > { %13806 = vst [vmem:[#allocation23_spill] sm:$0xff] %v13064_v37  ;;  %v8989_v26 = vadd.f32 %v8988_v46, %v8987_v30  ;;  %v8990_v19 = vpop.f32.mrb[78].mxu1  ;;  %v13810_v30 = vld [vmem:[#allocation26_spill] sm:$0xff]  ;;  %v13811_v46 = vld [vmem:[#allocation29_spill] sm:$0xff] }
 0x36c   : > { %v8991_v14 = vpop.f32.mrb[79].mxu1  ;;  %v13079_v11 = vadd.f32 %v13810_v30, %v6134_v7  ;;  %v13082_v37 = vadd.f32 %v13811_v46, %v6137_v0  ;;  %v8482_v7 = vcombine.low %v3953_v43, %v13019_v25  ;;  %v13813_v0 = vld [vmem:[#allocation27_spill] sm:$0xff] }
 0x36d   : > { %v6142_v9 = vadd.f32 %v8989_v26, %v13808_v44  ;;  %v8992_v3 = vadd.f32 %v8991_v14, %v8990_v19 }
 0x36e   : > { %v5327_v52 = vrot.slane %v8482_v7, 1 }
 0x36f   : > { %6550 = vmatmul.mubr.bf16.gmra.mrb[184].mxu1 %v13010_v13  ;;  %v13072_v53 = vpop.f32.mrb[144].mxu0  ;;  %v6145_v34 = vadd.f32 %v8992_v3, %v13809_v40  ;;  %v13089_v19 = vadd.f32 %v12665_v18, %v6142_v9  ;;  %v5324_v3 = vrot.slane %v8481_v10, 1  ;;  %v5328_v10 = vrot.slane %v13044_v55, 1 }
 0x370   : > { %v13076_v49 = vpop.f32.mrb[145].mxu0  ;;  %6557 = vmatprep.mubr.bf16.mxu1 %v5217_v4 }
 0x371   : > { %v13084_v42 = vpop.f32.mrb[146].mxu0  ;;  %v8993_v26 = vpop.f32.mrb[80].mxu1 }
 0x372   : > { %13812 = vst [vmem:[#allocation19_spill] sm:$0xff] %v13084_v42  ;;  %v13086_v13 = vpop.f32.mrb[147].mxu0  ;;  %v8994_v60 = vpop.f32.mrb[81].mxu1  ;;  %v5326_v42 = vsel %vm1057_vm0, %v5324_v3, %v5325_v29  ;;  %v5329_v3 = vsel %vm1057_vm0, %v5327_v52, %v5328_v10 }
 0x373   : > { %v8995_v14 = vadd.f32 %v8994_v60, %v8993_v26  ;;  %v8996_v4 = vpop.f32.mrb[82].mxu1  ;;  %v13107_v60 = vadd.f32 %v12673_v24, %v6145_v34 }
 0x374   : > { %v8997_v44 = vpop.f32.mrb[83].mxu1 }
 0x375   : > { %v6150_v40 = vadd.f32 %v8995_v14, %v13813_v0  ;;  %v8998_v30 = vadd.f32 %v8997_v44, %v8996_v4 }
 0x377   : > { %6558 = vmatmul.mubr.bf16.gmra.mrb[188].mxu1 %v13030_v12  ;;  %v13095_v46 = vpop.f32.mrb[148].mxu0  ;;  %v6153_v18 = vadd.f32 %v8998_v30, %v12668_v51  ;;  %v13117_v0 = vadd.f32 %v12711_v50, %v6150_v40 }
 0x378   : > { %9374 = vmatprep.mubr.bf16.mxu1 %v5326_v42  ;;  %v13099_v9 = vpop.f32.mrb[149].mxu0 }
 0x379   : > { %v13102_v26 = vpop.f32.mrb[150].mxu0  ;;  %v13120_v24 = vadd.f32 %v12716_v28, %v6153_v18 }
 0x37a   : > { %v8999_v25 = vpop.f32.mrb[84].mxu1  ;;  %v13104_v43 = vpop.f32.mrb[151].mxu0 }
 0x37b   : > { %v9000_v12 = vpop.f32.mrb[85].mxu1 }
 0x37c   : > { %v9001_v14 = vadd.f32 %v9000_v12, %v8999_v25  ;;  %v9002_v4 = vpop.f32.mrb[86].mxu1 }
 0x37d   : > { %v9003_v51 = vpop.f32.mrb[87].mxu1 }
 0x37e   : > { %v6158_v42 = vadd.f32 %v9001_v14, %v12714_v58  ;;  %v9004_v29 = vadd.f32 %v9003_v51, %v9002_v4 }
 0x37f   : > { %9375 = vmatmul.mubr.bf16.vlgmr.msra.gmra.mrb[192].mxu1 %v5329_v3  ;;  %v13111_v7 = vpop.f32.mrb[152].mxu0 }
 0x380   : > { %13814 = vst [vmem:[#allocation21_spill] sm:$0xff] %v13111_v7  ;;  %v6161_v55 = vadd.f32 %v9004_v29, %v12721_v54  ;;  %v13114_v44 = vpop.f32.mrb[153].mxu0  ;;  %v13127_v58 = vadd.f32 %v12759_v22, %v6158_v42 }
 0x381   : > { %13815 = vst [vmem:[#allocation22_spill] sm:$0xff] %v13114_v44  ;;  %v13122_v34 = vpop.f32.mrb[154].mxu0 }
 0x382   : > { %13816 = vst [vmem:[#allocation10_spill] sm:$0xff] %v13122_v34  ;;  %v9005_v30 = vpop.f32.mrb[88].mxu1  ;;  %v13124_v52 = vpop.f32.mrb[155].mxu0  ;;  %v13140_v22 = vadd.f32 %v12763_v45, %v6161_v55 }
 0x383   : > { %13817 = vst [vmem:[#allocation7_spill] sm:$0xff] %v13124_v52  ;;  %v9006_v10 = vpop.f32.mrb[89].mxu1 }
 0x384   : > { %v9007_v25 = vadd.f32 %v9006_v10, %v9005_v30  ;;  %v9008_v12 = vpop.f32.mrb[90].mxu1 }
 0x385   : > { %v9009_v54 = vpop.f32.mrb[91].mxu1 }
 0x386   : > { %v6166_v14 = vadd.f32 %v9007_v25, %v12756_v17  ;;  %v9010_v4 = vadd.f32 %v9009_v54, %v9008_v12 }
 0x387   : > { %v13130_v50 = vpop.f32.mrb[156].mxu0 }
 0x388   : > { %13818 = vst [vmem:[#allocation25_spill] sm:$0xff] %v13130_v50  ;;  %v6169_v28 = vadd.f32 %v9010_v4, %v12761_v63  ;;  %v13133_v40 = vpop.f32.mrb[157].mxu0  ;;  %v13149_v4 = vadd.f32 %v12791_v47, %v6166_v14 }
 0x389   : > { %13819 = vst [vmem:[#allocation26_spill] sm:$0xff] %v13133_v40  ;;  %v13135_v18 = vpop.f32.mrb[158].mxu0 }
 0x38a   : > { %13820 = vst [vmem:[#allocation29_spill] sm:$0xff] %v13135_v18  ;;  %v9011_v3 = vpop.f32.mrb[92].mxu1  ;;  %v13137_v51 = vpop.f32.mrb[159].mxu0  ;;  %v13152_v18 = vadd.f32 %v12796_v6, %v6169_v28 }
 0x38b   : > { %13821 = vst [vmem:[#allocation27_spill] sm:$0xff] %v13137_v51  ;;  %v9012_v42 = vpop.f32.mrb[93].mxu1  ;;  %v13828_v51 = vld [vmem:[#allocation28_spill] sm:$0xff] }
 0x38c   : > { %v9013_v29 = vadd.f32 %v9012_v42, %v9011_v3  ;;  %v9014_v30 = vpop.f32.mrb[94].mxu1 }
 0x38d   : > { %v9015_v10 = vpop.f32.mrb[95].mxu1 }
 0x38e   : > { %v6174_v17 = vadd.f32 %v9013_v29, %v12794_v62  ;;  %v9016_v25 = vadd.f32 %v9015_v10, %v9014_v30 }
 0x38f   : > { %v13143_v12 = vpop.f32.mrb[160].mxu0 }
 0x390   : > { %13822 = vst [vmem:[#allocation40_spill] sm:$0xff] %v13143_v12  ;;  %v6177_v63 = vadd.f32 %v9016_v25, %v12803_v38  ;;  %v13146_v54 = vpop.f32.mrb[161].mxu0  ;;  %v13159_v62 = vadd.f32 %v12828_v31, %v6174_v17 }
 0x391   : > { %13823 = vst [vmem:[#allocation41_spill] sm:$0xff] %v13146_v54  ;;  %v13154_v45 = vpop.f32.mrb[162].mxu0  ;;  %v13827_v54 = vld [vmem:[#allocation30_spill] sm:$0xff] }
 0x392   : > { %13824 = vst [vmem:[#allocation42_spill] sm:$0xff] %v13154_v45  ;;  %v9017_v55 = vpop.f32.mrb[96].mxu1  ;;  %v13156_v3 = vpop.f32.mrb[163].mxu0  ;;  %v13172_v31 = vadd.f32 %v12837_v39, %v6177_v63 }
 0x393   : > { %13825 = vst [vmem:[#allocation43_spill] sm:$0xff] %v13156_v3  ;;  %v9018_v42 = vpop.f32.mrb[97].mxu1 }
 0x394   : > { %v9019_v29 = vadd.f32 %v9018_v42, %v9017_v55  ;;  %v9020_v30 = vpop.f32.mrb[98].mxu1 }
 0x395   : > { %v9021_v38 = vpop.f32.mrb[99].mxu1 }
 0x396   : > { %v6182_v10 = vadd.f32 %v9019_v29, %v12826_v33  ;;  %v9022_v25 = vadd.f32 %v9021_v38, %v9020_v30 }
 0x397   : > { %v13162_v47 = vpop.f32.mrb[164].mxu0 }
 0x398   : > { %v6185_v6 = vadd.f32 %v9022_v25, %v12830_v41  ;;  %v13165_v14 = vpop.f32.mrb[165].mxu0  ;;  %v13826_v41 = vld [vmem:[#allocation12_spill] sm:$0xff]  ;;  %v13181_v50 = vadd.f32 %v13827_v54, %v6182_v10 }
 0x399   : > { %v13167_v28 = vpop.f32.mrb[166].mxu0 }
 0x39a   : > { %v9023_v45 = vpop.f32.mrb[100].mxu1  ;;  %v13169_v12 = vpop.f32.mrb[167].mxu0  ;;  %v13184_v40 = vadd.f32 %v13828_v51, %v6185_v6 }
 0x39b   : > { %v9024_v17 = vpop.f32.mrb[101].mxu1 }
 0x39c   : > { %v9025_v55 = vadd.f32 %v9024_v17, %v9023_v45  ;;  %v9026_v42 = vpop.f32.mrb[102].mxu1  ;;  %13829 = vst [vmem:[#allocation12_spill] sm:$0xff] %v13184_v40 }
 0x39d   : > { %v9027_v3 = vpop.f32.mrb[103].mxu1 }
 0x39e   : > { %v6190_v33 = vadd.f32 %v9025_v55, %v12857_v23  ;;  %v9028_v29 = vadd.f32 %v9027_v3, %v9026_v42 }
 0x39f   : > { %v13175_v30 = vpop.f32.mrb[168].mxu0 }
 0x3a0   : > { %v6193_v38 = vadd.f32 %v9028_v29, %v13826_v41  ;;  %v13178_v25 = vpop.f32.mrb[169].mxu0  ;;  %v13191_v23 = vadd.f32 %v12893_v61, %v6190_v33 }
 0x3a1   : > { %v13186_v39 = vpop.f32.mrb[170].mxu0 }
 0x3a2   : > { %v9029_v63 = vpop.f32.mrb[104].mxu1  ;;  %v13188_v45 = vpop.f32.mrb[171].mxu0  ;;  %13830 = vst [vmem:[#allocation30_spill] sm:$0xff] %v13191_v23  ;;  %v13204_v61 = vadd.f32 %v12900_v1, %v6193_v38 }
 0x3a3   : > { %v9030_v3 = vpop.f32.mrb[105].mxu1 }
 0x3a4   : > { %v9031_v17 = vadd.f32 %v9030_v3, %v9029_v63  ;;  %v9032_v55 = vpop.f32.mrb[106].mxu1  ;;  %13831 = vst [vmem:[#allocation28_spill] sm:$0xff] %v13204_v61  ;;  %v13843_v61 = vld [vmem:[#allocation8_spill] sm:$0xff] }
 0x3a5   : > { %v9033_v42 = vpop.f32.mrb[107].mxu1 }
 0x3a6   : > { %v6198_v29 = vadd.f32 %v9031_v17, %v12886_v57  ;;  %v9034_v41 = vadd.f32 %v9033_v42, %v9032_v55 }
 0x3a7   : > { %v13194_v54 = vpop.f32.mrb[172].mxu0 }
 0x3a8   : > { %v6201_v51 = vadd.f32 %v9034_v41, %v12897_v8  ;;  %v13197_v10 = vpop.f32.mrb[173].mxu0  ;;  %v13213_v41 = vadd.f32 %v12920_v48, %v6198_v29 }
 0x3a9   : > { %v13199_v6 = vpop.f32.mrb[174].mxu0 }
 0x3aa   : > { %v9035_v34 = vpop.f32.mrb[108].mxu1  ;;  %v13201_v7 = vpop.f32.mrb[175].mxu0  ;;  %13832 = vst [vmem:[#allocation44_spill] sm:$0xff] %v13213_v41  ;;  %v13216_v52 = vadd.f32 %v12927_v35, %v6201_v51 }
 0x3ab   : > { %v9036_v33 = vpop.f32.mrb[109].mxu1 }
 0x3ac   : > { %v9037_v63 = vadd.f32 %v9036_v33, %v9035_v34  ;;  %v9038_v3 = vpop.f32.mrb[110].mxu1  ;;  %13833 = vst [vmem:[#allocation45_spill] sm:$0xff] %v13216_v52 }
 0x3ad   : > { %v9039_v23 = vpop.f32.mrb[111].mxu1 }
 0x3ae   : > { %v6206_v57 = vadd.f32 %v9037_v63, %v12925_v59  ;;  %v9040_v17 = vadd.f32 %v9039_v23, %v9038_v3 }
 0x3af   : > { %v13207_v55 = vpop.f32.mrb[176].mxu0 }
 0x3b0   : > { %v6209_v8 = vadd.f32 %v9040_v17, %v12931_v16  ;;  %v13210_v42 = vpop.f32.mrb[177].mxu0  ;;  %v13223_v59 = vadd.f32 %v12944_v21, %v6206_v57 }
 0x3b1   : > { %v13218_v1 = vpop.f32.mrb[178].mxu0 }
 0x3b2   : > { %v9041_v34 = vpop.f32.mrb[112].mxu1  ;;  %v13220_v38 = vpop.f32.mrb[179].mxu0  ;;  %13834 = vst [vmem:[#allocation46_spill] sm:$0xff] %v13223_v59  ;;  %v13236_v21 = vadd.f32 %v12950_v15, %v6209_v8 }
 0x3b3   : > { %v9042_v23 = vpop.f32.mrb[113].mxu1 }
 0x3b4   : > { %v9043_v33 = vadd.f32 %v9042_v23, %v9041_v34  ;;  %v9044_v63 = vpop.f32.mrb[114].mxu1  ;;  %13839 = vst [vmem:[#allocation51_spill] sm:$0xff] %v13236_v21 }
 0x3b5   : > { %v9045_v16 = vpop.f32.mrb[115].mxu1 }
 0x3b6   : > { %v6214_v3 = vadd.f32 %v9043_v33, %v12942_v20  ;;  %v9046_v17 = vadd.f32 %v9045_v16, %v9044_v63 }
 0x3b7   : > { %v13226_v48 = vpop.f32.mrb[180].mxu0 }
 0x3b8   : > { %13835 = vst [vmem:[#allocation47_spill] sm:$0xff] %v13226_v48  ;;  %v6217_v35 = vadd.f32 %v9046_v17, %v12946_v32  ;;  %v13229_v29 = vpop.f32.mrb[181].mxu0  ;;  %v13841_v32 = vld [vmem:[#allocation32_spill] sm:$0xff]  ;;  %v13845_v48 = vld [vmem:[#allocation31_spill] sm:$0xff] }
 0x3b9   : > { %13836 = vst [vmem:[#allocation48_spill] sm:$0xff] %v13229_v29  ;;  %v13231_v51 = vpop.f32.mrb[182].mxu0 }
 0x3ba   : > { %13837 = vst [vmem:[#allocation49_spill] sm:$0xff] %v13231_v51  ;;  %v9047_v52 = vpop.f32.mrb[116].mxu1  ;;  %v13233_v41 = vpop.f32.mrb[183].mxu0  ;;  %v13245_v51 = vadd.f32 %v13843_v61, %v6214_v3  ;;  %v13852_v61 = vld [vmem:[#allocation33_spill] sm:$0xff] }
 0x3bb   : > { %13838 = vst [vmem:[#allocation50_spill] sm:$0xff] %v13233_v41  ;;  %v9048_v57 = vpop.f32.mrb[117].mxu1  ;;  %v13248_v41 = vadd.f32 %v13845_v48, %v6217_v35 }
 0x3bc   : > { %v9049_v34 = vadd.f32 %v9048_v57, %v9047_v52  ;;  %v9050_v23 = vpop.f32.mrb[118].mxu1  ;;  %13844 = vst [vmem:[#allocation8_spill] sm:$0xff] %v13245_v51  ;;  %v13849_v57 = vld [vmem:[#allocation13_spill] sm:$0xff]  ;;  %v13855_v51 = vld [vmem:[#allocation35_spill] sm:$0xff] }
 0x3bd   : > { %v9051_v59 = vpop.f32.mrb[119].mxu1  ;;  %13846 = vst [vmem:[#allocation31_spill] sm:$0xff] %v13248_v41 }
 0x3be   : > { %v6222_v20 = vadd.f32 %v9049_v34, %v12958_v2  ;;  %v9052_v33 = vadd.f32 %v9051_v59, %v9050_v23 }
 0x3bf   : > { %v13239_v63 = vpop.f32.mrb[184].mxu0 }
 0x3c0   : > { %13840 = vst [vmem:[#allocation52_spill] sm:$0xff] %v13239_v63  ;;  %v6225_v16 = vadd.f32 %v9052_v33, %v13841_v32  ;;  %v13242_v17 = vpop.f32.mrb[185].mxu0  ;;  %v13255_v2 = vadd.f32 %v13849_v57, %v6222_v20  ;;  %v13851_v32 = vld [vmem:[#allocation9_spill] sm:$0xff] }
 0x3c1   : > { %13842 = vst [vmem:[#allocation32_spill] sm:$0xff] %v13242_v17  ;;  %v13250_v15 = vpop.f32.mrb[186].mxu0 }
 0x3c2   : > { %13847 = vst [vmem:[#allocation53_spill] sm:$0xff] %v13250_v15  ;;  %v9053_v52 = vpop.f32.mrb[120].mxu1  ;;  %v13252_v8 = vpop.f32.mrb[187].mxu0  ;;  %13850 = vst [vmem:[#allocation13_spill] sm:$0xff] %v13255_v2  ;;  %v13266_v15 = vadd.f32 %v13855_v51, %v6225_v16  ;;  %v13280_v51 = vld [vmem:[%s13623_s8] ss:$0 sm:$0xff] }
 0x3c3   : > { %13848 = vst [vmem:[#allocation54_spill] sm:$0xff] %v13252_v8  ;;  %v9054_v59 = vpop.f32.mrb[121].mxu1 }
 0x3c4   : > { %v9055_v34 = vadd.f32 %v9054_v59, %v9053_v52  ;;  %v9056_v23 = vpop.f32.mrb[122].mxu1  ;;  %13856 = vst [vmem:[#allocation35_spill] sm:$0xff] %v13266_v15  ;;  %v13862_v15 = vld [vmem:[#allocation39_spill] sm:$0xff] }
 0x3c5   : > { %v9057_v33 = vpop.f32.mrb[123].mxu1 }
 0x3c6   : > { %v6230_v21 = vadd.f32 %v9055_v34, %v13851_v32  ;;  %v9058_v63 = vadd.f32 %v9057_v33, %v9056_v23  ;;  %v13859_v33 = vld [vmem:[#allocation34_spill] sm:$0xff] }
 0x3c7   : > { %v13261_v48 = vpop.f32.mrb[188].mxu0 }
 0x3c8   : > { %v13259_v3 = vadd.f32 %v9058_v63, %v13852_v61  ;;  %13853 = vst [vmem:[#allocation9_spill] sm:$0xff] %v13261_v48  ;;  %v13263_v41 = vpop.f32.mrb[189].mxu0  ;;  %v13860_v61 = vld [vmem:[#allocation38_spill] sm:$0xff] }
 0x3c9   : > { %13854 = vst [vmem:[#allocation33_spill] sm:$0xff] %v13263_v41  ;;  %v13268_v57 = vpop.f32.mrb[190].mxu0 }
 0x3ca   : > { %v9059_v35 = vpop.f32.mrb[124].mxu1  ;;  %13857 = vst [vmem:[#allocation55_spill] sm:$0xff] %v13268_v57  ;;  %v13270_v2 = vpop.f32.mrb[191].mxu0 }
 0x3cb   : > { %v9060_v20 = vpop.f32.mrb[125].mxu1  ;;  %13858 = vst [vmem:[#allocation56_spill] sm:$0xff] %v13270_v2 }
 0x3cc   : > { %v9061_v52 = vadd.f32 %v9060_v20, %v9059_v35  ;;  %v9062_v59 = vpop.f32.mrb[126].mxu1 }
 0x3cd   : > { %v9063_v34 = vpop.f32.mrb[127].mxu1 }
 0x3ce   : > { %v6238_v23 = vadd.f32 %v9061_v52, %v12992_v56  ;;  %v9064_v63 = vadd.f32 %v9063_v34, %v9062_v59  ;;  %v7512_v56 = vmul.f32 %v13280_v51, %v13165_v14  ;;  %v13288_v52 = vld [vmem:[%s13620_s5] ss:$0 sm:$0xff] }
 0x3cf   : > { %v13293_v59 = vld [vmem:[%s13624_s9] ss:$0 sm:$0xff] }
 0x3d0   : > { %v6241_v32 = vadd.f32 %v9064_v63, %v13859_v33  ;;  %v13275_v48 = vadd.f32 %v13860_v61, %v6238_v23  ;;  %v13302_v14 = vld [vmem:[%s13621_s6] ss:$0 sm:$0xff]  ;;  %v7551_v61 = vadd.f32 %v13293_v59, %v7512_v56  ;;  %v13866_v56 = vld [vmem:[#allocation15_spill] sm:$0xff] }
 0x3d1   : > { %v13864_v63 = vld [vmem:[#allocation24_spill] sm:$0xff] }
 0x3d2   : > { %13861 = vst [vmem:[#allocation34_spill] sm:$0xff] %v13275_v48  ;;  %v9193_v41 = vpop.f32.mrb[128].mxu1 }
 0x3d3   : > { %v9194_v8 = vpop.f32.mrb[129].mxu1 }
 0x3d4   : > { %v9195_v16 = vadd.f32 %v9194_v8, %v9193_v41  ;;  %v9196_v35 = vpop.f32.mrb[130].mxu1  ;;  %v13863_v8 = vld [vmem:[#allocation16_spill] sm:$0xff] }
 0x3d5   : > { %v9197_v20 = vpop.f32.mrb[131].mxu1 }
 0x3d6   : > { %v6440_v57 = vadd.f32 %v9195_v16, %v13862_v15  ;;  %v9198_v2 = vadd.f32 %v9197_v20, %v9196_v35  ;;  %v7513_v15 = vmul.f32 %v13280_v51, %v13169_v12 }
 0x3d8   : > { %v6601_v41 = vadd.f32 %v13040_v27, %v6440_v57  ;;  %v6443_v34 = vadd.f32 %v9198_v2, %v13863_v8  ;;  %v7552_v12 = vadd.f32 %v13293_v59, %v7513_v15  ;;  %v7514_v8 = vmul.f32 %v13162_v47, %v13280_v51 }
 0x3d9   : > { %v7515_v47 = vmul.f32 %v13167_v28, %v13280_v51 }
 0x3da   : > { %v6734_v23 = vmul.f32 %v13288_v52, %v6601_v41  ;;  %v6604_v33 = vadd.f32 %v13864_v63, %v6443_v34  ;;  %v9199_v16 = vpop.f32.mrb[132].mxu1  ;;  %v13865_v41 = vld [vmem:[#allocation37_spill] sm:$0xff] }
 0x3db   : > { %v9200_v35 = vpop.f32.mrb[133].mxu1  ;;  %v13313_v17 = vadd.f32 %v13865_v41, %v6230_v21 }
 0x3dc   : > { %v6735_v27 = vmul.f32 %v13288_v52, %v6604_v33  ;;  %v6773_v2 = vadd.f32 %v13302_v14, %v6734_v23  ;;  %v9201_v57 = vadd.f32 %v9200_v35, %v9199_v16  ;;  %v9202_v20 = vpop.f32.mrb[134].mxu1  ;;  %v13867_v23 = vld [vmem:[#allocation11_spill] sm:$0xff]  ;;  %v13868_v35 = vld [vmem:[#allocation18_spill] sm:$0xff] }
 0x3dd   : > { %v9203_v48 = vpop.f32.mrb[135].mxu1  ;;  %v13319_v16 = vadd.f32 %v13867_v23, %v6241_v32 }
 0x3de   : > { %v7583_v34 = vadd.f32 %v7551_v61, %v6773_v2  ;;  %v6448_v63 = vadd.f32 %v9201_v57, %v13866_v56  ;;  %v6774_v33 = vadd.f32 %v13302_v14, %v6735_v27  ;;  %v9204_v40 = vadd.f32 %v9203_v48, %v9202_v20  ;;  %v13869_v2 = vld [vmem:[#allocation14_spill] sm:$0xff] }
 0x3df   : > { %v7553_v61 = vadd.f32 %v13293_v59, %v7514_v8 }
 0x3e0   : > { %v7647_v15 = vmul.f32 0.01, %v7583_v34  ;;  %v6609_v44 = vadd.f32 %v13868_v35, %v6448_v63  ;;  %v7584_v29 = vadd.f32 %v7552_v12, %v6774_v33  ;;  %vm7615_vm0 = vcmp.gt.f32.partialorder %v7583_v34, 0.0  ;;  %v13870_v12 = vld [vmem:[#allocation36_spill] sm:$0xff] }
 0x3e1   : > { %v6451_v21 = vadd.f32 %v9204_v40, %v13067_v36  ;;  %v13332_v41 = vadd.f32 %v13870_v12, %v13259_v3  ;;  %v13335_v40 = vpop.f32.mrb[192].mxu0 }
 0x3e2   : > { %v6736_v27 = vmul.f32 %v13288_v52, %v6609_v44  ;;  %vm7616_vm1 = vcmp.gt.f32.partialorder %v7584_v29, 0.0  ;;  %v7648_v48 = vmul.f32 0.01, %v7584_v29  ;;  %v9205_v32 = vpop.f32.mrb[136].mxu1  ;;  %v7679_v56 = vsel %vm7615_vm0, %v7583_v34, %v7647_v15 }
 0x3e3   : > { %v6612_v57 = vadd.f32 %v13869_v2, %v6451_v21  ;;  %v9206_v20 = vpop.f32.mrb[137].mxu1  ;;  %v7554_v44 = vadd.f32 %v13293_v59, %v7515_v47  ;;  %v13339_v21 = vpop.f32.mrb[193].mxu0  ;;  %v7516_v34 = vmul.f32 %v13280_v51, %v13178_v25 }
 0x3e4   : > { %v6775_v28 = vadd.f32 %v13302_v14, %v6736_v27  ;;  %v7680_v63 = vsel %vm7616_vm1, %v7584_v29, %v7648_v48  ;;  %v9207_v33 = vadd.f32 %v9206_v20, %v9205_v32  ;;  %v9208_v36 = vpop.f32.mrb[138].mxu1  ;;  %v13344_v29 = vpop.f32.mrb[194].mxu0 }
 0x3e5   : > { %v8749_v8 = vpack.c.bf16 %v7680_v63, %v7679_v56  ;;  %v6737_v23 = vmul.f32 %v13288_v52, %v6612_v57  ;;  %v9209_v35 = vpop.f32.mrb[139].mxu1  ;;  %v13350_v47 = vpop.f32.mrb[195].mxu0  ;;  %v13871_v57 = vld [vmem:[#allocation23_spill] sm:$0xff]  ;;  %v7555_v56 = vadd.f32 %v13293_v59, %v7516_v34 }
 0x3e6   : > { %v7585_v2 = vadd.f32 %v7553_v61, %v6775_v28  ;;  %v6456_v3 = vadd.f32 %v9207_v33, %v13079_v11  ;;  %v9210_v12 = vadd.f32 %v9209_v35, %v9208_v36  ;;  %v7517_v11 = vmul.f32 %v13280_v51, %v13188_v45 }
 0x3e7   : > { %8750 = vst [vmem:[%s13346_s22] sm:$0xff] %v8749_v8   ;;  %v6776_v15 = vadd.f32 %v13302_v14, %v6737_v23  ;;  %v7518_v35 = vmul.f32 %v13175_v30, %v13280_v51 }
 0x3e8   : > { %v6617_v27 = vadd.f32 %v13060_v5, %v6456_v3  ;;  %v6459_v61 = vadd.f32 %v9210_v12, %v13082_v37  ;;  %v7649_v48 = vmul.f32 0.01, %v7585_v2  ;;  %vm7617_vm2 = vcmp.gt.f32.partialorder %v7585_v2, 0.0 }
 0x3e9   : > { %v7586_v32 = vadd.f32 %v7554_v44, %v6776_v15  ;;  %v7556_v45 = vadd.f32 %v13293_v59, %v7517_v11  ;;  %v7557_v30 = vadd.f32 %v13293_v59, %v7518_v35 }
 0x3ea   : > { %v6738_v25 = vmul.f32 %v13288_v52, %v6617_v27  ;;  %v6620_v20 = vadd.f32 %v13871_v57, %v6459_v61  ;;  %v9211_v28 = vpop.f32.mrb[140].mxu1  ;;  %v7681_v8 = vsel %vm7617_vm2, %v7585_v2, %v7649_v48  ;;  %v7519_v2 = vmul.f32 %v13186_v39, %v13280_v51 }
 0x3eb   : > { %vm7618_vm5 = vcmp.gt.f32.partialorder %v7586_v32, 0.0  ;;  %v7650_v63 = vmul.f32 0.01, %v7586_v32  ;;  %v9212_v33 = vpop.f32.mrb[141].mxu1 }
 0x3ec   : > { %v6739_v5 = vmul.f32 %v13288_v52, %v6620_v20  ;;  %v6777_v37 = vadd.f32 %v13302_v14, %v6738_v25  ;;  %v9213_v36 = vadd.f32 %v9212_v33, %v9211_v28  ;;  %v9214_v44 = vpop.f32.mrb[142].mxu1  ;;  %v13872_v25 = vld [vmem:[#allocation17_spill] sm:$0xff]  ;;  %v7558_v39 = vadd.f32 %v13293_v59, %v7519_v2 }
 0x3ed   : > { %v7682_v23 = vsel %vm7618_vm5, %v7586_v32, %v7650_v63  ;;  %v9215_v3 = vpop.f32.mrb[143].mxu1 }
 0x3ee   : > { %v8754_v12 = vpack.c.bf16 %v7682_v23, %v7681_v8  ;;  %v7587_v34 = vadd.f32 %v7555_v56, %v6777_v37  ;;  %v6464_v15 = vadd.f32 %v9213_v36, %v13089_v19  ;;  %v6778_v27 = vadd.f32 %v13302_v14, %v6739_v5  ;;  %v13873_v56 = vld [vmem:[#allocation20_spill] sm:$0xff] }
 0x3ef   : > { %v9216_v61 = vadd.f32 %v9215_v3, %v9214_v44 }
 0x3f0   : > { %8826 = vst [vmem:[%s13346_s22 + $0x8] sm:$0xff] %v8754_v12   ;;  %v7651_v57 = vmul.f32 0.01, %v7587_v34  ;;  %v6625_v20 = vadd.f32 %v13872_v25, %v6464_v15  ;;  %v7588_v28 = vadd.f32 %v7556_v45, %v6778_v27  ;;  %vm7619_vm14 = vcmp.gt.f32.partialorder %v7587_v34, 0.0 }
 0x3f1   : > { %v6467_v11 = vadd.f32 %v9216_v61, %v13107_v60  ;;  %v7520_v15 = vmul.f32 %v13280_v51, %v13197_v10 }
 0x3f2   : > { %v6740_v48 = vmul.f32 %v13288_v52, %v6625_v20  ;;  %vm7620_vm15 = vcmp.gt.f32.partialorder %v7588_v28, 0.0  ;;  %v7652_v19 = vmul.f32 0.01, %v7588_v28  ;;  %v9217_v32 = vpop.f32.mrb[144].mxu1  ;;  %v7683_v5 = vsel %vm7619_vm14, %v7587_v34, %v7651_v57 }
 0x3f3   : > { %v6628_v63 = vadd.f32 %v13873_v56, %v6467_v11  ;;  %v9218_v33 = vpop.f32.mrb[145].mxu1  ;;  %v7521_v57 = vmul.f32 %v13280_v51, %v13201_v7  ;;  %v7559_v2 = vadd.f32 %v13293_v59, %v7520_v15 }
 0x3f4   : > { %v6779_v37 = vadd.f32 %v13302_v14, %v6740_v48  ;;  %v7684_v36 = vsel %vm7620_vm15, %v7588_v28, %v7652_v19  ;;  %v9219_v45 = vadd.f32 %v9218_v33, %v9217_v32  ;;  %v9220_v44 = vpop.f32.mrb[146].mxu1 }
 0x3f5   : > { %v8759_v60 = vpack.c.bf16 %v7684_v36, %v7683_v5  ;;  %v6741_v8 = vmul.f32 %v13288_v52, %v6628_v63  ;;  %v9221_v23 = vpop.f32.mrb[147].mxu1  ;;  %v7560_v7 = vadd.f32 %v13293_v59, %v7521_v57 }
 0x3f6   : > { %v7589_v35 = vadd.f32 %v7557_v30, %v6779_v37  ;;  %v6472_v3 = vadd.f32 %v9219_v45, %v13117_v0  ;;  %v9222_v12 = vadd.f32 %v9221_v23, %v9220_v44 }
 0x3f7   : > { %8827 = vst [vmem:[%s13346_s22 + $0x10] sm:$0xff] %v8759_v60   ;;  %v6780_v34 = vadd.f32 %v13302_v14, %v6741_v8  ;;  %v7523_v8 = vmul.f32 %v13199_v6, %v13280_v51 }
 0x3f8   : > { %v6633_v27 = vadd.f32 %v13076_v49, %v6472_v3  ;;  %v6475_v61 = vadd.f32 %v9222_v12, %v13120_v24  ;;  %v7653_v25 = vmul.f32 0.01, %v7589_v35  ;;  %vm7621_vm3 = vcmp.gt.f32.partialorder %v7589_v35, 0.0  ;;  %v13874_v12 = vld [vmem:[#allocation19_spill] sm:$0xff] }
 0x3f9   : > { %v7590_v20 = vadd.f32 %v7558_v39, %v6780_v34  ;;  %v7562_v6 = vadd.f32 %v13293_v59, %v7523_v8 }
 0x3fa   : > { %v6742_v28 = vmul.f32 %v13288_v52, %v6633_v27  ;;  %v6636_v0 = vadd.f32 %v13086_v13, %v6475_v61  ;;  %v9223_v10 = vpop.f32.mrb[148].mxu1  ;;  %v7685_v32 = vsel %vm7621_vm3, %v7589_v35, %v7653_v25  ;;  %v7522_v13 = vmul.f32 %v13194_v54, %v13280_v51 }
 0x3fb   : > { %vm7622_vm12 = vcmp.gt.f32.partialorder %v7590_v20, 0.0  ;;  %v7654_v11 = vmul.f32 0.01, %v7590_v20  ;;  %v9224_v30 = vpop.f32.mrb[149].mxu1 }
 0x3fc   : > { %v6743_v49 = vmul.f32 %v13288_v52, %v6636_v0  ;;  %v6781_v24 = vadd.f32 %v13302_v14, %v6742_v28  ;;  %v9225_v48 = vadd.f32 %v9224_v30, %v9223_v10  ;;  %v9226_v19 = vpop.f32.mrb[150].mxu1  ;;  %v7561_v54 = vadd.f32 %v13293_v59, %v7522_v13 }
 0x3fd   : > { %v7686_v56 = vsel %vm7622_vm12, %v7590_v20, %v7654_v11  ;;  %v9227_v63 = vpop.f32.mrb[151].mxu1  ;;  %v7524_v11 = vmul.f32 %v13280_v51, %v13210_v42 }
 0x3fe   : > { %v8764_v33 = vpack.c.bf16 %v7686_v56, %v7685_v32  ;;  %v7591_v5 = vadd.f32 %v7559_v2, %v6781_v24  ;;  %v6480_v37 = vadd.f32 %v9225_v48, %v13127_v58  ;;  %v6782_v36 = vadd.f32 %v13302_v14, %v6743_v49 }
 0x3ff   : > { %v9228_v45 = vadd.f32 %v9227_v63, %v9226_v19  ;;  %v7525_v48 = vmul.f32 %v13280_v51, %v13220_v38  ;;  %v7563_v56 = vadd.f32 %v13293_v59, %v7524_v11 }
 0x400   : > { %8828 = vst [vmem:[%s13346_s22 + $0x18] sm:$0xff] %v8764_v33   ;;  %v7655_v44 = vmul.f32 0.01, %v7591_v5  ;;  %v6641_v39 = vadd.f32 %v13072_v53, %v6480_v37  ;;  %v7592_v60 = vadd.f32 %v7560_v7, %v6782_v36  ;;  %vm7623_vm6 = vcmp.gt.f32.partialorder %v7591_v5, 0.0 }
 0x401   : > { %v6483_v23 = vadd.f32 %v9228_v45, %v13140_v22  ;;  %v7564_v38 = vadd.f32 %v13293_v59, %v7525_v48 }
 0x402   : > { %v6744_v35 = vmul.f32 %v13288_v52, %v6641_v39  ;;  %vm7624_vm7 = vcmp.gt.f32.partialorder %v7592_v60, 0.0  ;;  %v7656_v58 = vmul.f32 0.01, %v7592_v60  ;;  %v9229_v3 = vpop.f32.mrb[152].mxu1  ;;  %v7687_v27 = vsel %vm7623_vm6, %v7591_v5, %v7655_v44 }
 0x403   : > { %v6644_v15 = vadd.f32 %v13874_v12, %v6483_v23  ;;  %v9230_v34 = vpop.f32.mrb[153].mxu1 }
 0x404   : > { %v6783_v53 = vadd.f32 %v13302_v14, %v6744_v35  ;;  %v7688_v61 = vsel %vm7624_vm7, %v7592_v60, %v7656_v58  ;;  %v9231_v57 = vadd.f32 %v9230_v34, %v9229_v3  ;;  %v9232_v25 = vpop.f32.mrb[154].mxu1  ;;  %v7527_v3 = vmul.f32 %v13218_v1, %v13280_v51 }
 0x405   : > { %v8769_v22 = vpack.c.bf16 %v7688_v61, %v7687_v27  ;;  %v6745_v20 = vmul.f32 %v13288_v52, %v6644_v15  ;;  %v9233_v28 = vpop.f32.mrb[155].mxu1 }
 0x406   : > { %v7593_v0 = vadd.f32 %v7561_v54, %v6783_v53  ;;  %v6488_v2 = vadd.f32 %v9231_v57, %v13149_v4  ;;  %v9234_v10 = vadd.f32 %v9233_v28, %v9232_v25  ;;  %v7566_v1 = vadd.f32 %v13293_v59, %v7527_v3 }
 0x407   : > { %8829 = vst [vmem:[%s13346_s22 + $0x20] sm:$0xff] %v8769_v22   ;;  %v6784_v30 = vadd.f32 %v13302_v14, %v6745_v20 }
 0x408   : > { %v6649_v49 = vadd.f32 %v13099_v9, %v6488_v2  ;;  %v6491_v24 = vadd.f32 %v9234_v10, %v13152_v18  ;;  %v7657_v7 = vmul.f32 0.01, %v7593_v0  ;;  %vm7625_vm8 = vcmp.gt.f32.partialorder %v7593_v0, 0.0  ;;  %v13875_v10 = vld [vmem:[#allocation48_spill] sm:$0xff] }
 0x409   : > { %v7594_v19 = vadd.f32 %v7562_v6, %v6784_v30  ;;  %v13876_v30 = vld [vmem:[#allocation22_spill] sm:$0xff] }
 0x40a   : > { %v6746_v32 = vmul.f32 %v13288_v52, %v6649_v49  ;;  %v6652_v4 = vadd.f32 %v13104_v43, %v6491_v24  ;;  %v9235_v42 = vpop.f32.mrb[156].mxu1  ;;  %v7689_v37 = vsel %vm7625_vm8, %v7593_v0, %v7657_v7  ;;  %v7526_v43 = vmul.f32 %v13207_v55, %v13280_v51  ;;  %v13877_v24 = vld [vmem:[#allocation12_spill] sm:$0xff]  ;;  %v13878_v7 = vld [vmem:[#allocation50_spill] sm:$0xff] }
 0x40b   : > { %vm7626_vm11 = vcmp.gt.f32.partialorder %v7594_v19, 0.0  ;;  %v7658_v13 = vmul.f32 0.01, %v7594_v19  ;;  %v9236_v63 = vpop.f32.mrb[157].mxu1 }
 0x40c   : > { %v6747_v9 = vmul.f32 %v13288_v52, %v6652_v4  ;;  %v6785_v18 = vadd.f32 %v13302_v14, %v6746_v32  ;;  %v9237_v33 = vadd.f32 %v9236_v63, %v9235_v42  ;;  %v9238_v5 = vpop.f32.mrb[158].mxu1  ;;  %v7565_v55 = vadd.f32 %v13293_v59, %v7526_v43 }
 0x40d   : > { %v7690_v36 = vsel %vm7626_vm11, %v7594_v19, %v7658_v13  ;;  %v9239_v45 = vpop.f32.mrb[159].mxu1  ;;  %v7529_v19 = vmul.f32 %v13280_v51, %v13878_v7 }
 0x40e   : > { %v8774_v44 = vpack.c.bf16 %v7690_v36, %v7689_v37  ;;  %v7595_v39 = vadd.f32 %v7563_v56, %v6785_v18  ;;  %v6496_v60 = vadd.f32 %v9237_v33, %v13159_v62  ;;  %v6786_v8 = vadd.f32 %v13302_v14, %v6747_v9 }
 0x40f   : > { %v9240_v23 = vadd.f32 %v9239_v45, %v9238_v5  ;;  %v7568_v37 = vadd.f32 %v13293_v59, %v7529_v19 }
 0x410   : > { %8830 = vst [vmem:[%s13346_s22 + $0x28] sm:$0xff] %v8774_v44   ;;  %v7659_v54 = vmul.f32 0.01, %v7595_v39  ;;  %v6657_v35 = vadd.f32 %v13095_v46, %v6496_v60  ;;  %v7596_v58 = vadd.f32 %v7564_v38, %v6786_v8  ;;  %vm7627_vm13 = vcmp.gt.f32.partialorder %v7595_v39, 0.0  ;;  %v13880_v44 = vld [vmem:[#allocation47_spill] sm:$0xff] }
 0x411   : > { %v6499_v12 = vadd.f32 %v9240_v23, %v13172_v31 }
 0x412   : > { %v6748_v15 = vmul.f32 %v13288_v52, %v6657_v35  ;;  %vm7628_vm9 = vcmp.gt.f32.partialorder %v7596_v58, 0.0  ;;  %v7660_v62 = vmul.f32 0.01, %v7596_v58  ;;  %v9241_v34 = vpop.f32.mrb[160].mxu1  ;;  %v7691_v61 = vsel %vm7627_vm13, %v7595_v39, %v7659_v54  ;;  %v13881_v54 = vld [vmem:[#allocation30_spill] sm:$0xff] }
 0x413   : > { %v6660_v27 = vadd.f32 %v13102_v26, %v6499_v12  ;;  %v9242_v53 = vpop.f32.mrb[161].mxu1  ;;  %v7528_v26 = vmul.f32 %v13280_v51, %v13875_v10  ;;  %v7530_v39 = vmul.f32 %v13880_v44, %v13280_v51 }
 0x414   : > { %v6787_v46 = vadd.f32 %v13302_v14, %v6748_v15  ;;  %v7692_v57 = vsel %vm7628_vm9, %v7596_v58, %v7660_v62  ;;  %v9243_v25 = vadd.f32 %v9242_v53, %v9241_v34  ;;  %v9244_v6 = vpop.f32.mrb[162].mxu1  ;;  %v13883_v34 = vld [vmem:[#allocation49_spill] sm:$0xff]  ;;  %v13884_v53 = vld [vmem:[#allocation28_spill] sm:$0xff] }
 0x415   : > { %v8779_v31 = vpack.c.bf16 %v7692_v57, %v7691_v61  ;;  %v6749_v22 = vmul.f32 %v13288_v52, %v6660_v27  ;;  %v9245_v20 = vpop.f32.mrb[163].mxu1  ;;  %v7567_v13 = vadd.f32 %v13293_v59, %v7528_v26  ;;  %v7531_v27 = vmul.f32 %v13883_v34, %v13280_v51 }
 0x416   : > { %v7597_v28 = vadd.f32 %v7565_v55, %v6787_v46  ;;  %v6504_v0 = vadd.f32 %v9243_v25, %v13181_v50  ;;  %v9246_v2 = vadd.f32 %v9245_v20, %v9244_v6  ;;  %v13879_v50 = vld [vmem:[#allocation7_spill] sm:$0xff]  ;;  %v13882_v55 = vld [vmem:[#allocation21_spill] sm:$0xff]  ;;  %v7569_v46 = vadd.f32 %v13293_v59, %v7530_v39 }
 0x417   : > { %8831 = vst [vmem:[%s13346_s22 + $0x30] sm:$0xff] %v8779_v31   ;;  %v6788_v11 = vadd.f32 %v13302_v14, %v6749_v22  ;;  %v7570_v26 = vadd.f32 %v13293_v59, %v7531_v27  ;;  %v13893_v27 = vld [vmem:[#allocation46_spill] sm:$0xff] }
 0x418   : > { %v6665_v49 = vadd.f32 %v13876_v30, %v6504_v0  ;;  %v6507_v48 = vadd.f32 %v9246_v2, %v13877_v24  ;;  %v7661_v32 = vmul.f32 0.01, %v7597_v28  ;;  %vm7629_vm4 = vcmp.gt.f32.partialorder %v7597_v28, 0.0 }
 0x419   : > { %v7598_v4 = vadd.f32 %v7566_v1, %v6788_v11  ;;  %v13885_v1 = vld [vmem:[#allocation10_spill] sm:$0xff] }
 0x41a   : > { %v6750_v56 = vmul.f32 %v13288_v52, %v6665_v49  ;;  %v6668_v42 = vadd.f32 %v13879_v50, %v6507_v48  ;;  %v9247_v63 = vpop.f32.mrb[164].mxu1  ;;  %v7693_v43 = vsel %vm7629_vm4, %v7597_v28, %v7661_v32  ;;  %v13886_v48 = vld [vmem:[#allocation44_spill] sm:$0xff]  ;;  %v13888_v50 = vld [vmem:[#allocation26_spill] sm:$0xff] }
 0x41b   : > { %vm7630_vm10 = vcmp.gt.f32.partialorder %v7598_v4, 0.0  ;;  %v7662_v9 = vmul.f32 0.01, %v7598_v4  ;;  %v9248_v18 = vpop.f32.mrb[165].mxu1  ;;  %v13887_v32 = vld [vmem:[#allocation32_spill] sm:$0xff] }
 0x41c   : > { %v6751_v33 = vmul.f32 %v13288_v52, %v6668_v42  ;;  %v6789_v38 = vadd.f32 %v13302_v14, %v6750_v56  ;;  %v9249_v5 = vadd.f32 %v9248_v18, %v9247_v63  ;;  %v9250_v36 = vpop.f32.mrb[166].mxu1 }
 0x41d   : > { %v7694_v45 = vsel %vm7630_vm10, %v7598_v4, %v7662_v9  ;;  %v9251_v60 = vpop.f32.mrb[167].mxu1  ;;  %v7532_v4 = vmul.f32 %v13280_v51, %v13887_v32  ;;  %v13890_v9 = vld [vmem:[#allocation54_spill] sm:$0xff] }
 0x41e   : > { %v8784_v8 = vpack.c.bf16 %v7694_v45, %v7693_v43  ;;  %v7599_v23 = vadd.f32 %v7567_v13, %v6789_v38  ;;  %v6512_v35 = vadd.f32 %v9249_v5, %v13881_v54  ;;  %v6790_v58 = vadd.f32 %v13302_v14, %v6751_v33  ;;  %v13889_v13 = vld [vmem:[#allocation45_spill] sm:$0xff] }
 0x41f   : > { %v9252_v3 = vadd.f32 %v9251_v60, %v9250_v36  ;;  %v7533_v18 = vmul.f32 %v13280_v51, %v13890_v9  ;;  %v7571_v43 = vadd.f32 %v13293_v59, %v7532_v4 }
 0x420   : > { %8832 = vst [vmem:[%s13346_s22 + $0x38] sm:$0xff] %v8784_v8   ;;  %v7663_v12 = vmul.f32 0.01, %v7599_v23  ;;  %v6673_v15 = vadd.f32 %v13882_v55, %v6512_v35  ;;  %v7600_v62 = vadd.f32 %v7568_v37, %v6790_v58  ;;  %vm7631_vm0 = vcmp.gt.f32.partialorder %v7599_v23, 0.0  ;;  %v13891_v37 = vld [vmem:[#allocation27_spill] sm:$0xff] }
 0x421   : > { %v6515_v61 = vadd.f32 %v9252_v3, %v13884_v53  ;;  %v7572_v54 = vadd.f32 %v13293_v59, %v7533_v18 }
 0x422   : > { %v6752_v57 = vmul.f32 %v13288_v52, %v6673_v15  ;;  %vm7632_vm1 = vcmp.gt.f32.partialorder %v7600_v62, 0.0  ;;  %v7664_v25 = vmul.f32 0.01, %v7600_v62  ;;  %v9253_v6 = vpop.f32.mrb[168].mxu1  ;;  %v7695_v20 = vsel %vm7631_vm0, %v7599_v23, %v7663_v12  ;;  %v13892_v12 = vld [vmem:[#allocation52_spill] sm:$0xff] }
 0x423   : > { %v6676_v31 = vadd.f32 %v13885_v1, %v6515_v61  ;;  %v9254_v22 = vpop.f32.mrb[169].mxu1  ;;  %v7534_v55 = vmul.f32 %v13892_v12, %v13280_v51 }
 0x424   : > { %v6791_v28 = vadd.f32 %v13302_v14, %v6752_v57  ;;  %v7696_v0 = vsel %vm7632_vm1, %v7600_v62, %v7664_v25  ;;  %v9255_v2 = vadd.f32 %v9254_v22, %v9253_v6  ;;  %v9256_v10 = vpop.f32.mrb[170].mxu1  ;;  %v13894_v25 = vld [vmem:[#allocation25_spill] sm:$0xff] }
 0x425   : > { %v8789_v11 = vpack.c.bf16 %v7696_v0, %v7695_v20  ;;  %v6753_v30 = vmul.f32 %v13288_v52, %v6676_v31  ;;  %v9257_v49 = vpop.f32.mrb[171].mxu1  ;;  %v13895_v31 = vld [vmem:[#allocation53_spill] sm:$0xff]  ;;  %v13896_v20 = vld [vmem:[#allocation51_spill] sm:$0xff]  ;;  %v7573_v0 = vadd.f32 %v13293_v59, %v7534_v55 }
 0x426   : > { %v7601_v24 = vadd.f32 %v7569_v46, %v6791_v28  ;;  %v6520_v7 = vadd.f32 %v9255_v2, %v13886_v48  ;;  %v9258_v19 = vadd.f32 %v9257_v49, %v9256_v10  ;;  %v7535_v22 = vmul.f32 %v13895_v31, %v13280_v51 }
 0x427   : > { %8833 = vst [vmem:[%s13346_s22 + $0x40] sm:$0xff] %v8789_v11   ;;  %v6792_v56 = vadd.f32 %v13302_v14, %v6753_v30  ;;  %v13897_v11 = vld [vmem:[#allocation29_spill] sm:$0xff] }
 0x428   : > { %v6681_v42 = vadd.f32 %v13888_v50, %v6520_v7  ;;  %v6523_v63 = vadd.f32 %v9258_v19, %v13889_v13  ;;  %v7665_v33 = vmul.f32 0.01, %v7601_v24  ;;  %vm7633_vm2 = vcmp.gt.f32.partialorder %v7601_v24, 0.0 }
 0x429   : > { %v7602_v38 = vadd.f32 %v7570_v26, %v6792_v56  ;;  %v7574_v4 = vadd.f32 %v13293_v59, %v7535_v22  ;;  %v13905_v22 = vld [vmem:[#allocation13_spill] sm:$0xff] }
 0x42a   : > { %v6754_v5 = vmul.f32 %v13288_v52, %v6681_v42  ;;  %v6684_v36 = vadd.f32 %v13891_v37, %v6523_v63  ;;  %v9259_v45 = vpop.f32.mrb[172].mxu1  ;;  %v7697_v58 = vsel %vm7633_vm2, %v7601_v24, %v7665_v33  ;;  %v13898_v63 = vld [vmem:[#allocation8_spill] sm:$0xff]  ;;  %v13899_v33 = vld [vmem:[#allocation33_spill] sm:$0xff] }
 0x42b   : > { %vm7634_vm5 = vcmp.gt.f32.partialorder %v7602_v38, 0.0  ;;  %v7666_v44 = vmul.f32 0.01, %v7602_v38  ;;  %v9260_v39 = vpop.f32.mrb[173].mxu1  ;;  %v13900_v37 = vld [vmem:[#allocation41_spill] sm:$0xff] }
 0x42c   : > { %v6755_v60 = vmul.f32 %v13288_v52, %v6684_v36  ;;  %v6793_v8 = vadd.f32 %v13302_v14, %v6754_v5  ;;  %v9261_v23 = vadd.f32 %v9260_v39, %v9259_v45  ;;  %v9262_v35 = vpop.f32.mrb[174].mxu1 }
 0x42d   : > { %v7698_v3 = vsel %vm7634_vm5, %v7602_v38, %v7666_v44  ;;  %v9263_v15 = vpop.f32.mrb[175].mxu1  ;;  %v7536_v38 = vmul.f32 %v13280_v51, %v13899_v33  ;;  %v13902_v44 = vld [vmem:[#allocation56_spill] sm:$0xff] }
 0x42e   : > { %v8794_v62 = vpack.c.bf16 %v7698_v3, %v7697_v58  ;;  %v7603_v34 = vadd.f32 %v7571_v43, %v6793_v8  ;;  %v6528_v53 = vadd.f32 %v9261_v23, %v13893_v27  ;;  %v6794_v61 = vadd.f32 %v13302_v14, %v6755_v60  ;;  %v13901_v43 = vld [vmem:[#allocation31_spill] sm:$0xff] }
 0x42f   : > { %v9264_v46 = vadd.f32 %v9263_v15, %v9262_v35  ;;  %v7537_v39 = vmul.f32 %v13280_v51, %v13902_v44  ;;  %v7575_v58 = vadd.f32 %v13293_v59, %v7536_v38 }
 0x430   : > { %8834 = vst [vmem:[%s13346_s22 + $0x48] sm:$0xff] %v8794_v62   ;;  %v7667_v57 = vmul.f32 0.01, %v7603_v34  ;;  %v6689_v6 = vadd.f32 %v13894_v25, %v6528_v53  ;;  %v7604_v1 = vadd.f32 %v7572_v54, %v6794_v61  ;;  %vm7635_vm14 = vcmp.gt.f32.partialorder %v7603_v34, 0.0  ;;  %v13903_v54 = vld [vmem:[#allocation43_spill] sm:$0xff] }
 0x431   : > { %v6531_v28 = vadd.f32 %v9264_v46, %v13896_v20  ;;  %v7576_v27 = vadd.f32 %v13293_v59, %v7537_v39 }
 0x432   : > { %v6756_v2 = vmul.f32 %v13288_v52, %v6689_v6  ;;  %vm7636_vm15 = vcmp.gt.f32.partialorder %v7604_v1, 0.0  ;;  %v7668_v10 = vmul.f32 0.01, %v7604_v1  ;;  %v9265_v26 = vpop.f32.mrb[176].mxu1  ;;  %v7699_v24 = vsel %vm7635_vm14, %v7603_v34, %v7667_v57  ;;  %v13904_v57 = vld [vmem:[#allocation9_spill] sm:$0xff] }
 0x433   : > { %v6692_v30 = vadd.f32 %v13897_v11, %v6531_v28  ;;  %v9266_v49 = vpop.f32.mrb[177].mxu1  ;;  %v7538_v25 = vmul.f32 %v13904_v57, %v13280_v51  ;;  %v7540_v57 = vmul.f32 %v13280_v51, %v13339_v21  ;;  %v7541_v21 = vmul.f32 %v13280_v51, %v13350_v47 }
 0x434   : > { %v6795_v48 = vadd.f32 %v13302_v14, %v6756_v2  ;;  %v7700_v7 = vsel %vm7636_vm15, %v7604_v1, %v7668_v10  ;;  %v9267_v19 = vadd.f32 %v9266_v49, %v9265_v26  ;;  %v9268_v32 = vpop.f32.mrb[178].mxu1  ;;  %v13906_v10 = vld [vmem:[#allocation40_spill] sm:$0xff] }
 0x435   : > { %v8799_v56 = vpack.c.bf16 %v7700_v7, %v7699_v24  ;;  %v6757_v50 = vmul.f32 %v13288_v52, %v6692_v30  ;;  %v9269_v42 = vpop.f32.mrb[179].mxu1  ;;  %v13907_v30 = vld [vmem:[#allocation55_spill] sm:$0xff]  ;;  %v7577_v7 = vadd.f32 %v13293_v59, %v7538_v25 }
 0x436   : > { %v7605_v13 = vadd.f32 %v7573_v0, %v6795_v48  ;;  %v6536_v9 = vadd.f32 %v9267_v19, %v13898_v63  ;;  %v9270_v18 = vadd.f32 %v9269_v42, %v9268_v32  ;;  %v7539_v49 = vmul.f32 %v13907_v30, %v13280_v51  ;;  %v13908_v24 = vld [vmem:[#allocation35_spill] sm:$0xff] }
 0x437   : > { %8835 = vst [vmem:[%s13346_s22 + $0x50] sm:$0xff] %v8799_v56   ;;  %v6796_v5 = vadd.f32 %v13302_v14, %v6757_v50  ;;  %v13909_v56 = vld [vmem:[#allocation42_spill] sm:$0xff] }
 0x438   : > { %v6697_v36 = vadd.f32 %v13900_v37, %v6536_v9  ;;  %v6539_v45 = vadd.f32 %v9270_v18, %v13901_v43  ;;  %v7669_v60 = vmul.f32 0.01, %v7605_v13  ;;  %vm7637_vm3 = vcmp.gt.f32.partialorder %v7605_v13, 0.0 }
 0x439   : > { %v7606_v8 = vadd.f32 %v7574_v4, %v6796_v5  ;;  %v7578_v38 = vadd.f32 %v13293_v59, %v7539_v49 }
 0x43a   : > { %v6758_v23 = vmul.f32 %v13288_v52, %v6697_v36  ;;  %v6700_v35 = vadd.f32 %v13903_v54, %v6539_v45  ;;  %v9271_v3 = vpop.f32.mrb[180].mxu1  ;;  %v7701_v61 = vsel %vm7637_vm3, %v7605_v13, %v7669_v60 }
 0x43b   : > { %vm7638_vm12 = vcmp.gt.f32.partialorder %v7606_v8, 0.0  ;;  %v7670_v12 = vmul.f32 0.01, %v7606_v8  ;;  %v9272_v55 = vpop.f32.mrb[181].mxu1 }
 0x43c   : > { %v6759_v15 = vmul.f32 %v13288_v52, %v6700_v35  ;;  %v6797_v62 = vadd.f32 %v13302_v14, %v6758_v23  ;;  %v9273_v34 = vadd.f32 %v9272_v55, %v9271_v3  ;;  %v9274_v53 = vpop.f32.mrb[182].mxu1 }
 0x43d   : > { %v7702_v46 = vsel %vm7638_vm12, %v7606_v8, %v7670_v12  ;;  %v9275_v6 = vpop.f32.mrb[183].mxu1 }
 0x43e   : > { %v8804_v1 = vpack.c.bf16 %v7702_v46, %v7701_v61  ;;  %v7607_v31 = vadd.f32 %v7575_v58, %v6797_v62  ;;  %v6544_v20 = vadd.f32 %v9273_v34, %v13905_v22  ;;  %v6798_v28 = vadd.f32 %v13302_v14, %v6759_v15 }
 0x43f   : > { %v9276_v0 = vadd.f32 %v9275_v6, %v9274_v53  ;;  %v7542_v61 = vmul.f32 %v13335_v40, %v13280_v51 }
 0x440   : > { %8836 = vst [vmem:[%s13346_s22 + $0x58] sm:$0xff] %v8804_v1   ;;  %v7671_v2 = vmul.f32 0.01, %v7607_v31  ;;  %v6705_v26 = vadd.f32 %v13906_v10, %v6544_v20  ;;  %v7608_v11 = vadd.f32 %v7576_v27, %v6798_v28  ;;  %vm7639_vm6 = vcmp.gt.f32.partialorder %v7607_v31, 0.0  ;;  %v13910_v27 = vld [vmem:[#allocation34_spill] sm:$0xff] }
 0x441   : > { %v6547_v48 = vadd.f32 %v9276_v0, %v13908_v24  ;;  %v7581_v22 = vadd.f32 %v13293_v59, %v7542_v61  ;;  %v7543_v28 = vmul.f32 %v13344_v29, %v13280_v51 }
 0x442   : > { %v6760_v19 = vmul.f32 %v13288_v52, %v6705_v26  ;;  %vm7640_vm7 = vcmp.gt.f32.partialorder %v7608_v11, 0.0  ;;  %v7672_v32 = vmul.f32 0.01, %v7608_v11  ;;  %v9277_v4 = vpop.f32.mrb[184].mxu1  ;;  %v7703_v13 = vsel %vm7639_vm6, %v7607_v31, %v7671_v2 }
 0x443   : > { %v6708_v50 = vadd.f32 %v13909_v56, %v6547_v48  ;;  %v9278_v42 = vpop.f32.mrb[185].mxu1  ;;  %v7579_v2 = vadd.f32 %v13293_v59, %v7540_v57  ;;  %v7582_v24 = vadd.f32 %v13293_v59, %v7543_v28 }
 0x444   : > { %v6799_v63 = vadd.f32 %v13302_v14, %v6760_v19  ;;  %v7704_v9 = vsel %vm7640_vm7, %v7608_v11, %v7672_v32  ;;  %v9279_v18 = vadd.f32 %v9278_v42, %v9277_v4  ;;  %v9280_v33 = vpop.f32.mrb[186].mxu1  ;;  %v7580_v19 = vadd.f32 %v13293_v59, %v7541_v21 }
 0x445   : > { %v8809_v5 = vpack.c.bf16 %v7704_v9, %v7703_v13  ;;  %v6761_v37 = vmul.f32 %v13288_v52, %v6708_v50  ;;  %v9281_v36 = vpop.f32.mrb[187].mxu1 }
 0x446   : > { %v7609_v43 = vadd.f32 %v7577_v7, %v6799_v63  ;;  %v9282_v45 = vadd.f32 %v9281_v36, %v9280_v33  ;;  %v6552_v44 = vadd.f32 %v9279_v18, %v13313_v17 }
 0x447   : > { %8837 = vst [vmem:[%s13346_s22 + $0x60] sm:$0xff] %v8809_v5   ;;  %v6800_v39 = vadd.f32 %v13302_v14, %v6761_v37 }
 0x448   : > { %v6555_v60 = vadd.f32 %v9282_v45, %v13332_v41  ;;  %v7673_v8 = vmul.f32 0.01, %v7609_v43  ;;  %vm7641_vm8 = vcmp.gt.f32.partialorder %v7609_v43, 0.0 }
 0x449   : > { %v7610_v23 = vadd.f32 %v7578_v38, %v6800_v39 }
 0x44a   : > { %v9283_v54 = vpop.f32.mrb[188].mxu1  ;;  %v7705_v55 = vsel %vm7641_vm8, %v7609_v43, %v7673_v8 }
 0x44b   : > { %vm7642_vm11 = vcmp.gt.f32.partialorder %v7610_v23, 0.0  ;;  %v7674_v35 = vmul.f32 0.01, %v7610_v23  ;;  %v9284_v58 = vpop.f32.mrb[189].mxu1 }
 0x44c   : > { %v9285_v3 = vadd.f32 %v9284_v58, %v9283_v54  ;;  %v9286_v12 = vpop.f32.mrb[190].mxu1 }
 0x44d   : > { %v7706_v15 = vsel %vm7642_vm11, %v7610_v23, %v7674_v35  ;;  %v9287_v62 = vpop.f32.mrb[191].mxu1 }
 0x44e   : > { %v8814_v34 = vpack.c.bf16 %v7706_v15, %v7705_v55  ;;  %v9288_v17 = vadd.f32 %v9287_v62, %v9286_v12  ;;  %v6560_v53 = vadd.f32 %v9285_v3, %v13910_v27 }
 0x450   : > { %8838 = vst [vmem:[%s13346_s22 + $0x68] sm:$0xff] %v8814_v34   ;;  %v6563_v41 = vadd.f32 %v9288_v17, %v13319_v16 }
 0x452   : > { %v9376_v46 = vpop.f32.mrb[192].mxu1 }
 0x453   : > { %v6721_v25 = vadd.f32 %v9376_v46, %v6560_v53  ;;  %v6712_v6 = vpop.f32.mrb[193].mxu1 }
 0x454   : > { %v6713_v1 = vadd.f32 %v6712_v6, %v6552_v44  ;;  %v9377_v31 = vpop.f32.mrb[194].mxu1 }
 0x455   : > { %v6764_v20 = vmul.f32 %v13288_v52, %v6721_v25  ;;  %v6724_v0 = vadd.f32 %v9377_v31, %v6563_v41  ;;  %v6715_v16 = vpop.f32.mrb[195].mxu1 }
 0x456   : > { %v6762_v40 = vmul.f32 %v13288_v52, %v6713_v1  ;;  %v6716_v10 = vadd.f32 %v6715_v16, %v6555_v60 }
 0x457   : > { %v6803_v26 = vadd.f32 %v13302_v14, %v6764_v20  ;;  %v6765_v11 = vmul.f32 %v13288_v52, %v6724_v0 }
 0x458   : > { %v6801_v30 = vadd.f32 %v13302_v14, %v6762_v40  ;;  %v6763_v49 = vmul.f32 %v13288_v52, %v6716_v10 }
 0x459   : > { %v7613_v29 = vadd.f32 %v7581_v22, %v6803_v26  ;;  %v6804_v48 = vadd.f32 %v13302_v14, %v6765_v11 }
 0x45a   : > { %v7611_v7 = vadd.f32 %v7579_v2, %v6801_v30  ;;  %v6802_v51 = vadd.f32 %v13302_v14, %v6763_v49 }
 0x45b   : > { %v7677_v47 = vmul.f32 0.01, %v7613_v29  ;;  %v7614_v32 = vadd.f32 %v7582_v24, %v6804_v48  ;;  %vm7645_vm13 = vcmp.gt.f32.partialorder %v7613_v29, 0.0 }
 0x45c   : > { %v7675_v4 = vmul.f32 0.01, %v7611_v7  ;;  %v7612_v56 = vadd.f32 %v7580_v19, %v6802_v51  ;;  %vm7643_vm9 = vcmp.gt.f32.partialorder %v7611_v7, 0.0 }
 0x45d   : > { %vm7646_vm4 = vcmp.gt.f32.partialorder %v7614_v32, 0.0  ;;  %v7678_v52 = vmul.f32 0.01, %v7614_v32  ;;  %v7709_v42 = vsel %vm7645_vm13, %v7613_v29, %v7677_v47 }
 0x45e   : > { %vm7644_vm10 = vcmp.gt.f32.partialorder %v7612_v56, 0.0  ;;  %v7676_v50 = vmul.f32 0.01, %v7612_v56  ;;  %v7707_v13 = vsel %vm7643_vm9, %v7611_v7, %v7675_v4 }
 0x45f   : > { %v7710_v59 = vsel %vm7646_vm4, %v7614_v32, %v7678_v52 }
 0x460   : > { %v8824_v14 = vpack.c.bf16 %v7710_v59, %v7709_v42  ;;  %v7708_v63 = vsel %vm7644_vm10, %v7612_v56, %v7676_v50 }
 0x461   : > { %v8819_v9 = vpack.c.bf16 %v7708_v63, %v7707_v13 }
 0x462   : > { %8840 = vst [vmem:[%s13346_s22 + $0x78] sm:$0xff] %v8824_v14  }
 0x463   : > { %8839 = vst [vmem:[%s13346_s22 + $0x70] sm:$0xff] %v8819_v9  }
 0x464   : > { %9946 = shalt.err (!%p9943_p5)
}
 0x465   : > { %s9947_s20 = scalar_lea.hbm %s13559_s21, 2048  ;;  %s9951_s28 = scalar_lea.hbm %s13625_s10, 4096 }
 0x466   : > { %p9948_p6 = scmp.ne.s32.totalorder %s13559_s21, %s9947_s20  ;;  %p9952_p10 = scmp.lt.u32.totalorder %s13559_s21, %s13625_s10 }
 0x467   : > { %p9953_p11 = scmp.lt.u32.totalorder %s9951_s28, %s9947_s20  ;;  %p9955_p13 = scmp.lt.u32.totalorder %s9947_s20, %s13559_s21 }
 0x468   : > { %p9949_p7 = pnand %p9948_p6, %p10118_p4 }
 0x469   : > { %p9954_p12 = por %p9953_p11, %p9952_p10 }
 0x46a   : > { %p9950_p9 = pneg %p9949_p7 }
 0x46b   : > { %p9956_p0 = por %p9955_p13, %p9954_p12 }
 0x46d   : > { %p9957_p1 = pnand %p9956_p0, %p9950_p9 }
 0x46f   : > { %9960 = shalt.err (!%p9957_p1)
}
 0x470   : > { %s10022_s24 = smov 4  }
 0x471   : > { %9429 = dma.vmem_to_hbm [thread:$0]  (%p10118_p4), %s13561_s12, 2048, %s13559_s21, %s13567_s16, %s13752_s27, %s13752_s27, %s10022_s24  }
 0x472 PF: > { %p9435_p2 = scmp.ge.s32.totalorder %s10011_s18, 2  ;;  %s7903_s29 = sand.u32 1, %s9991_s13  }
 0x473   : > { %s7904_s20 = scalar_lea.sflag [#allocation4], %s7903_s29 }
 0x474   : > { %p9432_p3 = pnand %p9435_p2, %p10125_p8 }
 0x476   : > { %9986 = dma.done.wait (!%p9432_p3), %s7904_s20, 2048  }
 0x477   : > { %9988 = vsyncadd (!%p9432_p3), %s7904_s20, 4294965248  ;;  %s23_s18 = sadd.s32 1, %s10011_s18   ;;  %s13911_s23 = sld [smem:[#allocation6_spill]] }
 0x478   : > { %p20_p5 = scmp.ge.s32.totalorder %s23_s18, 4   ;;  %s13912_s13 = smov %s9995_s14 }
 0x479   : > { %s13913_s14 = smov %s9999_s15  ;;  %s13914_s15 = smov %s10131_s26 }
 0x47a   : > { %s13915_s16 = smov %s10007_s17  ;;  %22 = sbr.rel (!%p20_p5) target bundleno = 4 (0x4), region = 104 }
 0x47d   : > { %s13916_s17 = smov %s13911_s23 }
 0x481   :  { %7909 = vsyncpa [#allocation4], 1 }
 0x482   :  { %7911 = vsyncpa [#allocation4 + $0x1], 1 }

</bundles_post_ra>
